<compile_context>
chip_gen: v7x
topology: tpu7x:2x2x1
jax: 0.10.0
libtpu: 0.0.40
codegen_flags: <defaults>
</compile_context>

<pallas_src>
import functools

import jax
import jax.numpy as jnp
from jax.experimental import pallas as pl
from jax.experimental.pallas import tpu as pltpu

EPS = 1e-5
LANE = 128   # pad channels to a multiple of the 128-lane axis


def _round_up(x, m):
    return (x + m - 1) // m * m


def _chip_caps():
    """(row-tile cap, scoped-VMEM limit) tuned per TPU generation."""
    try:
        kind = jax.devices()[0].device_kind.lower()
    except Exception:  # pragma: no cover - defensive
        kind = ""
    if ("v5" in kind) or ("v6" in kind) or ("v4" in kind):
        # 128 MiB physical VMEM: big tiles amortize the ~0.35us/step overhead.
        return 1024, 64 * 1024 * 1024
    # v7x (64 MiB VMEM / TensorCore) or unknown: keep tiles modest so 2-deep
    # double-buffering plus the stage-2 halo scratch stay inside budget.
    return 512, 40 * 1024 * 1024


def _pick_tile(m, cap):
    """Largest multiple-of-8 divisor of m that is <= cap, else the full m."""
    cap = min(cap, m)
    for t in range(cap - cap % 8, 7, -8):
        if m % t == 0:
            return t
    return m  # full-extent block is always legal


# ---------------------------------------------------------------------------
# Kernels
# ---------------------------------------------------------------------------
def _write_partial_stats(y_f32, stats_ref):
    """stats_ref: (1, 2, C) block <- per-tile [sum ; sum of squares] (f32).

    Computed from the f32 matmul accumulator (before any bf16 downcast) and
    written with a single store.
    """
    s = jnp.sum(y_f32, axis=0, keepdims=True)            # (1, C)
    sq = jnp.sum(y_f32 * y_f32, axis=0, keepdims=True)   # (1, C)
    stats_ref[...] = jnp.concatenate([s, sq], axis=0)[None]


def conv1x1_stats_kernel(x_ref, w_ref, y_ref, stats_ref):
    """y = x @ w (1x1 conv); emits bf16 y + f32 partial BN stats."""
    y = jnp.dot(x_ref[...], w_ref[...], preferred_element_type=jnp.float32)
    _write_partial_stats(y, stats_ref)
    y_ref[...] = y.astype(y_ref.dtype)


def bn_relu_conv1x1_stats_kernel(y_in_ref, scale_ref, shift_ref, w_ref,
                                 y_out_ref, stats_ref):
    """Fused: BN-apply + ReLU of previous stage, then 1x1 conv + stats."""
    a = jnp.maximum(
        y_in_ref[...].astype(jnp.float32) * scale_ref[...] + shift_ref[...],
        0.0)
    y = jnp.dot(a.astype(jnp.bfloat16), w_ref[...],
                preferred_element_type=jnp.float32)
    _write_partial_stats(y, stats_ref)
    y_out_ref[...] = y.astype(y_out_ref.dtype)


def bn_relu_conv3x3_stats_kernel(y1_ref, scale_ref, shift_ref, w_ref,
                                 y2_ref, stats_ref, img_ref, *, H, W):
    """Fused: BN1-apply + ReLU, bf16 in-VMEM halo, per-tap 3x3 conv + stats.

    y1_ref : (H*W, C)   raw conv1 output for one image (bf16)
    w_ref  : (9, C, Cout) tap-major 3x3 weights (bf16)
    img_ref: (H+2, W+2, C) bf16 VMEM scratch holding the zero-padded image
    """
    C = y1_ref.shape[-1]
    Cout = w_ref.shape[-1]
    HW = H * W

    # BN1 apply + ReLU in f32, downcast once into the bf16 halo scratch.
    a = jnp.maximum(
        y1_ref[...].astype(jnp.float32) * scale_ref[...] + shift_ref[...],
        0.0)
    img_ref[pl.ds(1, H), pl.ds(1, W), :] = a.reshape(H, W, C).astype(jnp.bfloat16)

    # Zero only the 1-pixel border (cheap; interior is fully overwritten each
    # step; correct even if the grid axis is sharded across TensorCores).
    zrow = jnp.zeros((1, W + 2, C), jnp.bfloat16)
    img_ref[pl.ds(0, 1), :, :] = zrow
    img_ref[pl.ds(H + 1, 1), :, :] = zrow
    zcol = jnp.zeros((H, 1, C), jnp.bfloat16)
    img_ref[pl.ds(1, H), pl.ds(0, 1), :] = zcol
    img_ref[pl.ds(1, H), pl.ds(W + 1, 1), :] = zcol

    # 3x3 conv as nine per-tap MXU dots accumulated in f32 — no (HW, 9C)
    # im2col materialization, no zero-padded long-K weight block.
    # TODO(synk): pair taps (K=256 per dot) to fill the 256-deep v6e/v7x MXU
    # when the channel count pads to only 128.
    acc = jnp.zeros((HW, Cout), jnp.float32)
    taps = [(kh, kw) for kh in range(3) for kw in range(3)]
    for t, (kh, kw) in enumerate(taps):
        patch = img_ref[pl.ds(kh, H), pl.ds(kw, W), :]        # (H, W, C) bf16
        acc = acc + jnp.dot(patch.reshape(HW, C), w_ref[t],
                            preferred_element_type=jnp.float32)

    _write_partial_stats(acc, stats_ref)
    y2_ref[...] = acc.astype(y2_ref.dtype)


def bn_residual_relu_kernel(y_ref, scale_ref, shift_ref, res_ref, o_ref):
    """out = relu(bn3(y) + residual)."""
    o_ref[...] = jnp.maximum(
        y_ref[...].astype(jnp.float32) * scale_ref[...] + shift_ref[...]
        + res_ref[...].astype(jnp.float32),
        0.0)


# ---------------------------------------------------------------------------
# Wrapper
# ---------------------------------------------------------------------------
def _pad_last(a, target):
    pad = target - a.shape[-1]
    if pad == 0:
        return a
    return jnp.pad(a, [(0, 0)] * (a.ndim - 1) + [(0, pad)])


def _pad2(w, rows, cols):
    return jnp.pad(w, ((0, rows - w.shape[0]), (0, cols - w.shape[1])))


def _scale_shift(partial_stats, g, b, count):
    """(T, 2, C) per-tile [sum, sumsq] -> fused BN scale / shift (f32).

    Note: var = E[x^2] - E[x]^2 in f32 (clamped at 0); fine for these
    magnitudes, but a centered / Welford pass would be safer for very large M.
    """
    tot = jnp.sum(partial_stats, axis=0)                  # (2, C)
    mean = tot[0:1] / count
    var = jnp.maximum(tot[1:2] / count - mean * mean, 0.0)
    scale = g * jax.lax.rsqrt(var + EPS)
    shift = b - mean * scale
    return scale, shift


def bottleneck_forward(x_nchw, params, stride=1):
    assert stride == 1
    N, Cin, H, W = x_nchw.shape
    P = params["w1"].shape[1]
    Cout = 4 * P
    assert Cin == Cout, "identity residual requires inplanes == planes * 4"

    f32, bf16 = jnp.float32, jnp.bfloat16
    Cin_p = _round_up(Cin, LANE)
    P_p = _round_up(P, LANE)
    Cout_p = _round_up(Cout, LANE)
    HW = H * W
    M = N * HW

    tm_cap, vmem_limit = _chip_caps()
    tm = _pick_tile(M, tm_cap)
    nM = M // tm
    cparams = pltpu.CompilerParams(
        dimension_semantics=("parallel",),
        vmem_limit_bytes=vmem_limit)

    # ---- one-off layout / parameter prep (channel-padded NHWC slabs) -------
    # NOTE: across chained bottleneck blocks this (M, C) bf16 slab should be
    # the carried activation format to avoid the NCHW<->NHWC HBM round trips.
    x2d = _pad_last(
        jnp.transpose(x_nchw, (0, 2, 3, 1)).reshape(M, Cin).astype(bf16),
        Cin_p)

    w1 = _pad2(params["w1"], Cin_p, P_p).astype(bf16)
    w3 = _pad2(params["w3"], P_p, Cout_p).astype(bf16)
    # Tap-major 3x3 weights: (9, C_in_padded, C_out_padded).
    w2t = jnp.zeros((9, P_p, P_p), f32).at[:, :P, :P].set(
        params["w2"]).astype(bf16)

    g1, b1 = _pad_last(params["g1"], P_p), _pad_last(params["b1"], P_p)
    g2, b2 = _pad_last(params["g2"], P_p), _pad_last(params["b2"], P_p)
    g3, b3 = _pad_last(params["g3"], Cout_p), _pad_last(params["b3"], Cout_p)

    row_spec = lambda bm, c: pl.BlockSpec((bm, c), lambda i: (i, 0))
    full2 = lambda r, c: pl.BlockSpec((r, c), lambda i: (0, 0))
    full3 = lambda a, r, c: pl.BlockSpec((a, r, c), lambda i: (0, 0, 0))
    stat_spec = lambda c: pl.BlockSpec((1, 2, c), lambda i: (i, 0, 0))

    # ---- stage 1: conv1 (1x1) + bn1 partial stats ---------------------------
    y1, st1 = pl.pallas_call(
        conv1x1_stats_kernel,
        grid=(nM,),
        in_specs=[row_spec(tm, Cin_p), full2(Cin_p, P_p)],
        out_specs=(row_spec(tm, P_p), stat_spec(P_p)),
        out_shape=(jax.ShapeDtypeStruct((M, P_p), bf16),
                   jax.ShapeDtypeStruct((nM, 2, P_p), f32)),
        compiler_params=cparams,
    )(x2d, w1)
    scale1, shift1 = _scale_shift(st1, g1, b1, M)

    # ---- stage 2: bn1-apply + relu + conv2 (3x3) + bn2 partial stats --------
    conv3x3 = functools.partial(bn_relu_conv3x3_stats_kernel, H=H, W=W)
    y2, st2 = pl.pallas_call(
        conv3x3,
        grid=(N,),
        in_specs=[row_spec(HW, P_p), full2(1, P_p), full2(1, P_p),
                  full3(9, P_p, P_p)],
        out_specs=(row_spec(HW, P_p), stat_spec(P_p)),
        out_shape=(jax.ShapeDtypeStruct((M, P_p), bf16),
                   jax.ShapeDtypeStruct((N, 2, P_p), f32)),
        scratch_shapes=[pltpu.VMEM((H + 2, W + 2, P_p), bf16)],
        compiler_params=cparams,
    )(y1, scale1, shift1, w2t)
    scale2, shift2 = _scale_shift(st2, g2, b2, M)

    # ---- stage 3: bn2-apply + relu + conv3 (1x1) + bn3 partial stats --------
    y3, st3 = pl.pallas_call(
        bn_relu_conv1x1_stats_kernel,
        grid=(nM,),
        in_specs=[row_spec(tm, P_p), full2(1, P_p), full2(1, P_p),
                  full2(P_p, Cout_p)],
        out_specs=(row_spec(tm, Cout_p), stat_spec(Cout_p)),
        out_shape=(jax.ShapeDtypeStruct((M, Cout_p), bf16),
                   jax.ShapeDtypeStruct((nM, 2, Cout_p), f32)),
        compiler_params=cparams,
    )(y2, scale2, shift2, w3)
    scale3, shift3 = _scale_shift(st3, g3, b3, M)

    # ---- stage 4: bn3-apply + residual add + relu (block output in f32) -----
    # (input_output_aliases onto y3 skipped: y3 is bf16, block output is f32.)
    out2d = pl.pallas_call(
        bn_residual_relu_kernel,
        grid=(nM,),
        in_specs=[row_spec(tm, Cout_p), full2(1, Cout_p),
                  full2(1, Cout_p), row_spec(tm, Cin_p)],
        out_specs=row_spec(tm, Cout_p),
        out_shape=jax.ShapeDtypeStruct((M, Cout_p), f32),
        compiler_params=cparams,
    )(y3, scale3, shift3, x2d)

    out = out2d[:, :Cout].reshape(N, H, W, Cout)
    return jnp.transpose(out, (0, 3, 1, 2))


# ---------------------------------------------------------------------------
# Pure-JAX reference (same math, f32 end to end) for a correctness check
# ---------------------------------------------------------------------------
def _ref_bn(y, g, b):
    mean = jnp.mean(y, axis=(0, 1, 2), keepdims=True)
    var = jnp.mean((y - mean) ** 2, axis=(0, 1, 2), keepdims=True)
    return (y - mean) * jax.lax.rsqrt(var + EPS) * g.reshape(1, 1, 1, -1) \
        + b.reshape(1, 1, 1, -1)


def _ref_conv(x, w4d, padding):
    return jax.lax.conv_general_dilated(
        x, w4d, window_strides=(1, 1), padding=padding,
        dimension_numbers=("NHWC", "HWIO", "NHWC"))


def bottleneck_reference(x_nchw, params):
    x = jnp.transpose(x_nchw, (0, 2, 3, 1)).astype(jnp.float32)
    planes = params["w1"].shape[1]
    w1 = params["w1"].reshape(1, 1, *params["w1"].shape)
    w2 = params["w2"].reshape(3, 3, planes, planes)
    w3 = params["w3"].reshape(1, 1, *params["w3"].shape)
    o = jax.nn.relu(_ref_bn(_ref_conv(x, w1, "VALID"), params["g1"], params["b1"]))
    o = jax.nn.relu(_ref_bn(_ref_conv(o, w2, "SAME"), params["g2"], params["b2"]))
    o = _ref_bn(_ref_conv(o, w3, "VALID"), params["g3"], params["b3"]) + x
    o = jax.nn.relu(o)
    return jnp.transpose(o, (0, 3, 1, 2))


# ---------------------------------------------------------------------------
# Main
# ---------------------------------------------------------------------------
if __name__ == "__main__":
    key = jax.random.PRNGKey(0)
    keys = jax.random.split(key, 10)

    # Shapes consistent with the module: planes=4, inplanes=planes*4=16.
    N, planes = 2, 4
    inplanes = planes * 4          # identity residual path (downsample=None)
    H = W = 16

    x = jax.random.normal(keys[0], (N, inplanes, H, W), jnp.float32)  # NCHW

    params = {
        "w1": 0.1 * jax.random.normal(keys[1], (inplanes, planes), jnp.float32),
        "g1": 1.0 + 0.1 * jax.random.normal(keys[2], (1, planes), jnp.float32),
        "b1": 0.1 * jax.random.normal(keys[3], (1, planes), jnp.float32),
        "w2": 0.1 * jax.random.normal(keys[4], (9, planes, planes), jnp.float32),
        "g2": 1.0 + 0.1 * jax.random.normal(keys[5], (1, planes), jnp.float32),
        "b2": 0.1 * jax.random.normal(keys[6], (1, planes), jnp.float32),
        "w3": 0.1 * jax.random.normal(keys[7], (planes, planes * 4), jnp.float32),
        "g3": 1.0 + 0.1 * jax.random.normal(keys[8], (1, planes * 4), jnp.float32),
        "b3": 0.1 * jax.random.normal(keys[9], (1, planes * 4), jnp.float32),
    }
    # Keep parameters bf16-representable so the f32 reference and the
    # bf16-MXU kernels see identical weights (isolates activation rounding).
    params = jax.tree_util.tree_map(
        lambda a: a.astype(jnp.bfloat16).astype(jnp.float32), params)

    out = jax.block_until_ready(jax.jit(bottleneck_forward)(x, params))
    ref = jax.block_until_ready(bottleneck_reference(x, params))

    assert out.shape == (N, inplanes, H, W)
    err = float(jnp.max(jnp.abs(out - ref)))
    # Tolerance accounts for the bf16 inter-stage activation storage.
    assert jnp.allclose(out, ref, atol=5e-2, rtol=5e-2), f"max abs err = {err}"

    print("KERNEL_OK")
</pallas_src>

<mosaic_0001>
module attributes {stable_mosaic.version = 11 : i64} {
  func.func @conv1x1_stats_kernel(%arg0: i32, %arg1: memref<512x128xbf16, #tpu.memory_space<vmem>>, %arg2: memref<128x128xbf16, #tpu.memory_space<vmem>>, %arg3: memref<512x128xbf16, #tpu.memory_space<vmem>>, %arg4: memref<1x2x128xf32, #tpu.memory_space<vmem>>) attributes {dimension_semantics = [#tpu.dimension_semantics<parallel>], iteration_bounds = array<i64: 1>, scalar_prefetch = 0 : i64, scratch_operands = 0 : i64, tpu.core_type = #tpu.core_type<tc>, window_params = [{transform_indices = @transform_0, window_bounds = array<i64: 512, 128>}, {pipeline_mode = #tpu.pipeline_mode<synchronous>, transform_indices = @transform_1, window_bounds = array<i64: 128, 128>}, {transform_indices = @transform_2, window_bounds = array<i64: 512, 128>}, {transform_indices = @transform_3, window_bounds = array<i64: 1, 2, 128>}]} {
    %c0 = arith.constant 0 : index
    %c0_0 = arith.constant 0 : index
    %0 = vector.load %arg1[%c0, %c0_0] : memref<512x128xbf16, #tpu.memory_space<vmem>>, vector<512x128xbf16>
    %c0_1 = arith.constant 0 : index
    %c0_2 = arith.constant 0 : index
    %1 = vector.load %arg2[%c0_1, %c0_2] : memref<128x128xbf16, #tpu.memory_space<vmem>>, vector<128x128xbf16>
    %cst = arith.constant dense<0.000000e+00> : vector<512x128xf32>
    %2 = tpu.matmul %0, %1, %cst {dimension_numbers = #tpu.dot_dimension_numbers<[1], [0], [0], [1], [0, 0, 1, 1], [], []>} : vector<512x128xbf16>, vector<128x128xbf16>, vector<512x128xf32> -> vector<512x128xf32>
    %cst_3 = arith.constant dense<0.000000e+00> : vector<128xf32>
    %3 = vector.multi_reduction <add>, %2, %cst_3 [0] : vector<512x128xf32> to vector<128xf32>
    %4 = vector.shape_cast %3 : vector<128xf32> to vector<1x128xf32>
    %5 = arith.mulf %2, %2 : vector<512x128xf32>
    %cst_4 = arith.constant dense<0.000000e+00> : vector<128xf32>
    %6 = vector.multi_reduction <add>, %5, %cst_4 [0] : vector<512x128xf32> to vector<128xf32>
    %7 = vector.shape_cast %6 : vector<128xf32> to vector<1x128xf32>
    %8 = tpu.concatenate %4, %7 in 0 : vector<1x128xf32>, vector<1x128xf32> -> vector<2x128xf32>
    %9 = vector.shape_cast %8 : vector<2x128xf32> to vector<1x2x128xf32>
    %c0_5 = arith.constant 0 : index
    %c0_6 = arith.constant 0 : index
    %c0_7 = arith.constant 0 : index
    %10 = vector.load %arg4[%c0_5, %c0_6, %c0_7] : memref<1x2x128xf32, #tpu.memory_space<vmem>>, vector<1x2x128xf32>
    tpu.vector_store %arg4[%c0_5, %c0_6, %c0_7], %9 {strides = array<i32>} : memref<1x2x128xf32, #tpu.memory_space<vmem>>, vector<1x2x128xf32>,
    %11 = arith.truncf %2 : vector<512x128xf32> to vector<512x128xbf16>
    %c0_8 = arith.constant 0 : index
    %c0_9 = arith.constant 0 : index
    %12 = vector.load %arg3[%c0_8, %c0_9] : memref<512x128xbf16, #tpu.memory_space<vmem>>, vector<512x128xbf16>
    tpu.vector_store %arg3[%c0_8, %c0_9], %11 {strides = array<i32>} : memref<512x128xbf16, #tpu.memory_space<vmem>>, vector<512x128xbf16>,
    return
  }
  func.func @transform_0(%arg0: i32) -> (i32, i32) {
    %c0_i32 = arith.constant 0 : i32
    %c0_i32_0 = arith.constant 0 : i32
    return %arg0, %c0_i32 : i32, i32
  }
  func.func @transform_1(%arg0: i32) -> (i32, i32) {
    %c0_i32 = arith.constant 0 : i32
    %c0_i32_0 = arith.constant 0 : i32
    %c0_i32_1 = arith.constant 0 : i32
    return %c0_i32, %c0_i32_0 : i32, i32
  }
  func.func @transform_2(%arg0: i32) -> (i32, i32) {
    %c0_i32 = arith.constant 0 : i32
    %c0_i32_0 = arith.constant 0 : i32
    return %arg0, %c0_i32 : i32, i32
  }
  func.func @transform_3(%arg0: i32) -> (i32, i32, i32) {
    %c0_i32 = arith.constant 0 : i32
    %c0_i32_0 = arith.constant 0 : i32
    %c0_i32_1 = arith.constant 0 : i32
    return %arg0, %c0_i32, %c0_i32_0 : i32, i32, i32
  }
}

module attributes {stable_mosaic.version = 11 : i64} {
  func.func @bn_relu_conv3x3_stats_kernel(%arg0: i32, %arg1: memref<256x128xbf16, #tpu.memory_space<vmem>>, %arg2: memref<1x128xf32, #tpu.memory_space<vmem>>, %arg3: memref<1x128xf32, #tpu.memory_space<vmem>>, %arg4: memref<9x128x128xbf16, #tpu.memory_space<vmem>>, %arg5: memref<256x128xbf16, #tpu.memory_space<vmem>>, %arg6: memref<1x2x128xf32, #tpu.memory_space<vmem>>, %arg7: memref<18x18x128xbf16, #tpu.memory_space<vmem>>) attributes {dimension_semantics = [#tpu.dimension_semantics<parallel>], iteration_bounds = array<i64: 2>, scalar_prefetch = 0 : i64, scratch_operands = 1 : i64, tpu.core_type = #tpu.core_type<tc>, window_params = [{transform_indices = @transform_0, window_bounds = array<i64: 256, 128>}, {pipeline_mode = #tpu.pipeline_mode<synchronous>, transform_indices = @transform_1, window_bounds = array<i64: 1, 128>}, {pipeline_mode = #tpu.pipeline_mode<synchronous>, transform_indices = @transform_2, window_bounds = array<i64: 1, 128>}, {pipeline_mode = #tpu.pipeline_mode<synchronous>, transform_indices = @transform_3, window_bounds = array<i64: 9, 128, 128>}, {transform_indices = @transform_4, window_bounds = array<i64: 256, 128>}, {transform_indices = @transform_5, window_bounds = array<i64: 1, 2, 128>}]} {
    %c0 = arith.constant 0 : index
    %c0_0 = arith.constant 0 : index
    %0 = vector.load %arg1[%c0, %c0_0] : memref<256x128xbf16, #tpu.memory_space<vmem>>, vector<256x128xbf16>
    %1 = arith.extf %0 : vector<256x128xbf16> to vector<256x128xf32>
    %c0_1 = arith.constant 0 : index
    %c0_2 = arith.constant 0 : index
    %2 = vector.load %arg2[%c0_1, %c0_2] : memref<1x128xf32, #tpu.memory_space<vmem>>, vector<1x128xf32>
    %3 = vector.broadcast %2 : vector<1x128xf32> to vector<256x128xf32>
    %4 = arith.mulf %1, %3 : vector<256x128xf32>
    %c0_3 = arith.constant 0 : index
    %c0_4 = arith.constant 0 : index
    %5 = vector.load %arg3[%c0_3, %c0_4] : memref<1x128xf32, #tpu.memory_space<vmem>>, vector<1x128xf32>
    %6 = vector.broadcast %5 : vector<1x128xf32> to vector<256x128xf32>
    %7 = arith.addf %4, %6 : vector<256x128xf32>
    %cst = arith.constant 0.000000e+00 : f32
    %8 = vector.broadcast %cst : f32 to vector<256x128xf32>
    %9 = arith.maximumf %7, %8 : vector<256x128xf32>
    %10 = vector.shape_cast %9 : vector<256x128xf32> to vector<16x16x128xf32>
    %11 = arith.truncf %10 : vector<16x16x128xf32> to vector<16x16x128xbf16>
    %c1 = arith.constant 1 : index
    %c1_5 = arith.constant 1 : index
    %c0_6 = arith.constant 0 : index
    %12 = vector.load %arg7[%c1, %c1_5, %c0_6] : memref<18x18x128xbf16, #tpu.memory_space<vmem>>, vector<16x16x128xbf16>
    tpu.vector_store %arg7[%c1, %c1_5, %c0_6], %11 {strides = array<i32>} : memref<18x18x128xbf16, #tpu.memory_space<vmem>>, vector<16x16x128xbf16>,
    %cst_7 = arith.constant 0.000000e+00 : bf16
    %13 = vector.broadcast %cst_7 : bf16 to vector<1x18x128xbf16>
    %c0_8 = arith.constant 0 : index
    %c0_9 = arith.constant 0 : index
    %c0_10 = arith.constant 0 : index
    %14 = vector.load %arg7[%c0_8, %c0_9, %c0_10] : memref<18x18x128xbf16, #tpu.memory_space<vmem>>, vector<1x18x128xbf16>
    tpu.vector_store %arg7[%c0_8, %c0_9, %c0_10], %13 {strides = array<i32>} : memref<18x18x128xbf16, #tpu.memory_space<vmem>>, vector<1x18x128xbf16>,
    %c17 = arith.constant 17 : index
    %c0_11 = arith.constant 0 : index
    %c0_12 = arith.constant 0 : index
    %15 = vector.load %arg7[%c17, %c0_11, %c0_12] : memref<18x18x128xbf16, #tpu.memory_space<vmem>>, vector<1x18x128xbf16>
    tpu.vector_store %arg7[%c17, %c0_11, %c0_12], %13 {strides = array<i32>} : memref<18x18x128xbf16, #tpu.memory_space<vmem>>, vector<1x18x128xbf16>,
    %cst_13 = arith.constant 0.000000e+00 : bf16
    %16 = vector.broadcast %cst_13 : bf16 to vector<16x1x128xbf16>
    %c1_14 = arith.constant 1 : index
    %c0_15 = arith.constant 0 : index
    %c0_16 = arith.constant 0 : index
    %17 = vector.load %arg7[%c1_14, %c0_15, %c0_16] : memref<18x18x128xbf16, #tpu.memory_space<vmem>>, vector<16x1x128xbf16>
    tpu.vector_store %arg7[%c1_14, %c0_15, %c0_16], %16 {strides = array<i32>} : memref<18x18x128xbf16, #tpu.memory_space<vmem>>, vector<16x1x128xbf16>,
    %c1_17 = arith.constant 1 : index
    %c17_18 = arith.constant 17 : index
    %c0_19 = arith.constant 0 : index
    %18 = vector.load %arg7[%c1_17, %c17_18, %c0_19] : memref<18x18x128xbf16, #tpu.memory_space<vmem>>, vector<16x1x128xbf16>
    tpu.vector_store %arg7[%c1_17, %c17_18, %c0_19], %16 {strides = array<i32>} : memref<18x18x128xbf16, #tpu.memory_space<vmem>>, vector<16x1x128xbf16>,
    %cst_20 = arith.constant 0.000000e+00 : f32
    %19 = vector.broadcast %cst_20 : f32 to vector<256x128xf32>
    %c0_21 = arith.constant 0 : index
    %c0_22 = arith.constant 0 : index
    %c0_23 = arith.constant 0 : index
    %20 = vector.load %arg7[%c0_21, %c0_22, %c0_23] : memref<18x18x128xbf16, #tpu.memory_space<vmem>>, vector<16x16x128xbf16>
    %21 = vector.shape_cast %20 : vector<16x16x128xbf16> to vector<256x128xbf16>
    %c0_24 = arith.constant 0 : index
    %c0_25 = arith.constant 0 : index
    %c0_26 = arith.constant 0 : index
    %22 = vector.load %arg4[%c0_24, %c0_25, %c0_26] : memref<9x128x128xbf16, #tpu.memory_space<vmem>>, vector<1x128x128xbf16>
    %23 = vector.shape_cast %22 : vector<1x128x128xbf16> to vector<128x128xbf16>
    %cst_27 = arith.constant dense<0.000000e+00> : vector<256x128xf32>
    %24 = tpu.matmul %21, %23, %cst_27 {dimension_numbers = #tpu.dot_dimension_numbers<[1], [0], [0], [1], [0, 0, 1, 1], [], []>} : vector<256x128xbf16>, vector<128x128xbf16>, vector<256x128xf32> -> vector<256x128xf32>
    %25 = arith.addf %19, %24 : vector<256x128xf32>
    %c0_28 = arith.constant 0 : index
    %c1_29 = arith.constant 1 : index
    %c0_30 = arith.constant 0 : index
    %26 = vector.load %arg7[%c0_28, %c1_29, %c0_30] : memref<18x18x128xbf16, #tpu.memory_space<vmem>>, vector<16x16x128xbf16>
    %27 = vector.shape_cast %26 : vector<16x16x128xbf16> to vector<256x128xbf16>
    %c1_31 = arith.constant 1 : index
    %c0_32 = arith.constant 0 : index
    %c0_33 = arith.constant 0 : index
    %28 = vector.load %arg4[%c1_31, %c0_32, %c0_33] : memref<9x128x128xbf16, #tpu.memory_space<vmem>>, vector<1x128x128xbf16>
    %29 = vector.shape_cast %28 : vector<1x128x128xbf16> to vector<128x128xbf16>
    %cst_34 = arith.constant dense<0.000000e+00> : vector<256x128xf32>
    %30 = tpu.matmul %27, %29, %cst_34 {dimension_numbers = #tpu.dot_dimension_numbers<[1], [0], [0], [1], [0, 0, 1, 1], [], []>} : vector<256x128xbf16>, vector<128x128xbf16>, vector<256x128xf32> -> vector<256x128xf32>
    %31 = arith.addf %25, %30 : vector<256x128xf32>
    %c0_35 = arith.constant 0 : index
    %c2 = arith.constant 2 : index
    %c0_36 = arith.constant 0 : index
    %32 = vector.load %arg7[%c0_35, %c2, %c0_36] : memref<18x18x128xbf16, #tpu.memory_space<vmem>>, vector<16x16x128xbf16>
    %33 = vector.shape_cast %32 : vector<16x16x128xbf16> to vector<256x128xbf16>
    %c2_37 = arith.constant 2 : index
    %c0_38 = arith.constant 0 : index
    %c0_39 = arith.constant 0 : index
    %34 = vector.load %arg4[%c2_37, %c0_38, %c0_39] : memref<9x128x128xbf16, #tpu.memory_space<vmem>>, vector<1x128x128xbf16>
    %35 = vector.shape_cast %34 : vector<1x128x128xbf16> to vector<128x128xbf16>
    %cst_40 = arith.constant dense<0.000000e+00> : vector<256x128xf32>
    %36 = tpu.matmul %33, %35, %cst_40 {dimension_numbers = #tpu.dot_dimension_numbers<[1], [0], [0], [1], [0, 0, 1, 1], [], []>} : vector<256x128xbf16>, vector<128x128xbf16>, vector<256x128xf32> -> vector<256x128xf32>
    %37 = arith.addf %31, %36 : vector<256x128xf32>
    %c1_41 = arith.constant 1 : index
    %c0_42 = arith.constant 0 : index
    %c0_43 = arith.constant 0 : index
    %38 = vector.load %arg7[%c1_41, %c0_42, %c0_43] : memref<18x18x128xbf16, #tpu.memory_space<vmem>>, vector<16x16x128xbf16>
    %39 = vector.shape_cast %38 : vector<16x16x128xbf16> to vector<256x128xbf16>
    %c3 = arith.constant 3 : index
    %c0_44 = arith.constant 0 : index
    %c0_45 = arith.constant 0 : index
    %40 = vector.load %arg4[%c3, %c0_44, %c0_45] : memref<9x128x128xbf16, #tpu.memory_space<vmem>>, vector<1x128x128xbf16>
    %41 = vector.shape_cast %40 : vector<1x128x128xbf16> to vector<128x128xbf16>
    %cst_46 = arith.constant dense<0.000000e+00> : vector<256x128xf32>
    %42 = tpu.matmul %39, %41, %cst_46 {dimension_numbers = #tpu.dot_dimension_numbers<[1], [0], [0], [1], [0, 0, 1, 1], [], []>} : vector<256x128xbf16>, vector<128x128xbf16>, vector<256x128xf32> -> vector<256x128xf32>
    %43 = arith.addf %37, %42 : vector<256x128xf32>
    %c1_47 = arith.constant 1 : index
    %c1_48 = arith.constant 1 : index
    %c0_49 = arith.constant 0 : index
    %44 = vector.load %arg7[%c1_47, %c1_48, %c0_49] : memref<18x18x128xbf16, #tpu.memory_space<vmem>>, vector<16x16x128xbf16>
    %45 = vector.shape_cast %44 : vector<16x16x128xbf16> to vector<256x128xbf16>
    %c4 = arith.constant 4 : index
    %c0_50 = arith.constant 0 : index
    %c0_51 = arith.constant 0 : index
    %46 = vector.load %arg4[%c4, %c0_50, %c0_51] : memref<9x128x128xbf16, #tpu.memory_space<vmem>>, vector<1x128x128xbf16>
    %47 = vector.shape_cast %46 : vector<1x128x128xbf16> to vector<128x128xbf16>
    %cst_52 = arith.constant dense<0.000000e+00> : vector<256x128xf32>
    %48 = tpu.matmul %45, %47, %cst_52 {dimension_numbers = #tpu.dot_dimension_numbers<[1], [0], [0], [1], [0, 0, 1, 1], [], []>} : vector<256x128xbf16>, vector<128x128xbf16>, vector<256x128xf32> -> vector<256x128xf32>
    %49 = arith.addf %43, %48 : vector<256x128xf32>
    %c1_53 = arith.constant 1 : index
    %c2_54 = arith.constant 2 : index
    %c0_55 = arith.constant 0 : index
    %50 = vector.load %arg7[%c1_53, %c2_54, %c0_55] : memref<18x18x128xbf16, #tpu.memory_space<vmem>>, vector<16x16x128xbf16>
    %51 = vector.shape_cast %50 : vector<16x16x128xbf16> to vector<256x128xbf16>
    %c5 = arith.constant 5 : index
    %c0_56 = arith.constant 0 : index
    %c0_57 = arith.constant 0 : index
    %52 = vector.load %arg4[%c5, %c0_56, %c0_57] : memref<9x128x128xbf16, #tpu.memory_space<vmem>>, vector<1x128x128xbf16>
    %53 = vector.shape_cast %52 : vector<1x128x128xbf16> to vector<128x128xbf16>
    %cst_58 = arith.constant dense<0.000000e+00> : vector<256x128xf32>
    %54 = tpu.matmul %51, %53, %cst_58 {dimension_numbers = #tpu.dot_dimension_numbers<[1], [0], [0], [1], [0, 0, 1, 1], [], []>} : vector<256x128xbf16>, vector<128x128xbf16>, vector<256x128xf32> -> vector<256x128xf32>
    %55 = arith.addf %49, %54 : vector<256x128xf32>
    %c2_59 = arith.constant 2 : index
    %c0_60 = arith.constant 0 : index
    %c0_61 = arith.constant 0 : index
    %56 = vector.load %arg7[%c2_59, %c0_60, %c0_61] : memref<18x18x128xbf16, #tpu.memory_space<vmem>>, vector<16x16x128xbf16>
    %57 = vector.shape_cast %56 : vector<16x16x128xbf16> to vector<256x128xbf16>
    %c6 = arith.constant 6 : index
    %c0_62 = arith.constant 0 : index
    %c0_63 = arith.constant 0 : index
    %58 = vector.load %arg4[%c6, %c0_62, %c0_63] : memref<9x128x128xbf16, #tpu.memory_space<vmem>>, vector<1x128x128xbf16>
    %59 = vector.shape_cast %58 : vector<1x128x128xbf16> to vector<128x128xbf16>
    %cst_64 = arith.constant dense<0.000000e+00> : vector<256x128xf32>
    %60 = tpu.matmul %57, %59, %cst_64 {dimension_numbers = #tpu.dot_dimension_numbers<[1], [0], [0], [1], [0, 0, 1, 1], [], []>} : vector<256x128xbf16>, vector<128x128xbf16>, vector<256x128xf32> -> vector<256x128xf32>
    %61 = arith.addf %55, %60 : vector<256x128xf32>
    %c2_65 = arith.constant 2 : index
    %c1_66 = arith.constant 1 : index
    %c0_67 = arith.constant 0 : index
    %62 = vector.load %arg7[%c2_65, %c1_66, %c0_67] : memref<18x18x128xbf16, #tpu.memory_space<vmem>>, vector<16x16x128xbf16>
    %63 = vector.shape_cast %62 : vector<16x16x128xbf16> to vector<256x128xbf16>
    %c7 = arith.constant 7 : index
    %c0_68 = arith.constant 0 : index
    %c0_69 = arith.constant 0 : index
    %64 = vector.load %arg4[%c7, %c0_68, %c0_69] : memref<9x128x128xbf16, #tpu.memory_space<vmem>>, vector<1x128x128xbf16>
    %65 = vector.shape_cast %64 : vector<1x128x128xbf16> to vector<128x128xbf16>
    %cst_70 = arith.constant dense<0.000000e+00> : vector<256x128xf32>
    %66 = tpu.matmul %63, %65, %cst_70 {dimension_numbers = #tpu.dot_dimension_numbers<[1], [0], [0], [1], [0, 0, 1, 1], [], []>} : vector<256x128xbf16>, vector<128x128xbf16>, vector<256x128xf32> -> vector<256x128xf32>
    %67 = arith.addf %61, %66 : vector<256x128xf32>
    %c2_71 = arith.constant 2 : index
    %c2_72 = arith.constant 2 : index
    %c0_73 = arith.constant 0 : index
    %68 = vector.load %arg7[%c2_71, %c2_72, %c0_73] : memref<18x18x128xbf16, #tpu.memory_space<vmem>>, vector<16x16x128xbf16>
    %69 = vector.shape_cast %68 : vector<16x16x128xbf16> to vector<256x128xbf16>
    %c8 = arith.constant 8 : index
    %c0_74 = arith.constant 0 : index
    %c0_75 = arith.constant 0 : index
    %70 = vector.load %arg4[%c8, %c0_74, %c0_75] : memref<9x128x128xbf16, #tpu.memory_space<vmem>>, vector<1x128x128xbf16>
    %71 = vector.shape_cast %70 : vector<1x128x128xbf16> to vector<128x128xbf16>
    %cst_76 = arith.constant dense<0.000000e+00> : vector<256x128xf32>
    %72 = tpu.matmul %69, %71, %cst_76 {dimension_numbers = #tpu.dot_dimension_numbers<[1], [0], [0], [1], [0, 0, 1, 1], [], []>} : vector<256x128xbf16>, vector<128x128xbf16>, vector<256x128xf32> -> vector<256x128xf32>
    %73 = arith.addf %67, %72 : vector<256x128xf32>
    %cst_77 = arith.constant dense<0.000000e+00> : vector<128xf32>
    %74 = vector.multi_reduction <add>, %73, %cst_77 [0] : vector<256x128xf32> to vector<128xf32>
    %75 = vector.shape_cast %74 : vector<128xf32> to vector<1x128xf32>
    %76 = arith.mulf %73, %73 : vector<256x128xf32>
    %cst_78 = arith.constant dense<0.000000e+00> : vector<128xf32>
    %77 = vector.multi_reduction <add>, %76, %cst_78 [0] : vector<256x128xf32> to vector<128xf32>
    %78 = vector.shape_cast %77 : vector<128xf32> to vector<1x128xf32>
    %79 = tpu.concatenate %75, %78 in 0 : vector<1x128xf32>, vector<1x128xf32> -> vector<2x128xf32>
    %80 = vector.shape_cast %79 : vector<2x128xf32> to vector<1x2x128xf32>
    %c0_79 = arith.constant 0 : index
    %c0_80 = arith.constant 0 : index
    %c0_81 = arith.constant 0 : index
    %81 = vector.load %arg6[%c0_79, %c0_80, %c0_81] : memref<1x2x128xf32, #tpu.memory_space<vmem>>, vector<1x2x128xf32>
    tpu.vector_store %arg6[%c0_79, %c0_80, %c0_81], %80 {strides = array<i32>} : memref<1x2x128xf32, #tpu.memory_space<vmem>>, vector<1x2x128xf32>,
    %82 = arith.truncf %73 : vector<256x128xf32> to vector<256x128xbf16>
    %c0_82 = arith.constant 0 : index
    %c0_83 = arith.constant 0 : index
    %83 = vector.load %arg5[%c0_82, %c0_83] : memref<256x128xbf16, #tpu.memory_space<vmem>>, vector<256x128xbf16>
    tpu.vector_store %arg5[%c0_82, %c0_83], %82 {strides = array<i32>} : memref<256x128xbf16, #tpu.memory_space<vmem>>, vector<256x128xbf16>,
    return
  }
  func.func @transform_0(%arg0: i32) -> (i32, i32) {
    %c0_i32 = arith.constant 0 : i32
    %c0_i32_0 = arith.constant 0 : i32
    return %arg0, %c0_i32 : i32, i32
  }
  func.func @transform_1(%arg0: i32) -> (i32, i32) {
    %c0_i32 = arith.constant 0 : i32
    %c0_i32_0 = arith.constant 0 : i32
    %c0_i32_1 = arith.constant 0 : i32
    return %c0_i32, %c0_i32_0 : i32, i32
  }
  func.func @transform_2(%arg0: i32) -> (i32, i32) {
    %c0_i32 = arith.constant 0 : i32
    %c0_i32_0 = arith.constant 0 : i32
    %c0_i32_1 = arith.constant 0 : i32
    return %c0_i32, %c0_i32_0 : i32, i32
  }
  func.func @transform_3(%arg0: i32) -> (i32, i32, i32) {
    %c0_i32 = arith.constant 0 : i32
    %c0_i32_0 = arith.constant 0 : i32
    %c0_i32_1 = arith.constant 0 : i32
    %c0_i32_2 = arith.constant 0 : i32
    return %c0_i32, %c0_i32_0, %c0_i32_1 : i32, i32, i32
  }
  func.func @transform_4(%arg0: i32) -> (i32, i32) {
    %c0_i32 = arith.constant 0 : i32
    %c0_i32_0 = arith.constant 0 : i32
    return %arg0, %c0_i32 : i32, i32
  }
  func.func @transform_5(%arg0: i32) -> (i32, i32, i32) {
    %c0_i32 = arith.constant 0 : i32
    %c0_i32_0 = arith.constant 0 : i32
    %c0_i32_1 = arith.constant 0 : i32
    return %arg0, %c0_i32, %c0_i32_0 : i32, i32, i32
  }
}

module attributes {stable_mosaic.version = 11 : i64} {
  func.func @bn_residual_relu_kernel(%arg0: i32, %arg1: memref<512x128xbf16, #tpu.memory_space<vmem>>, %arg2: memref<1x128xf32, #tpu.memory_space<vmem>>, %arg3: memref<1x128xf32, #tpu.memory_space<vmem>>, %arg4: memref<512x128xbf16, #tpu.memory_space<vmem>>, %arg5: memref<512x128xf32, #tpu.memory_space<vmem>>) attributes {dimension_semantics = [#tpu.dimension_semantics<parallel>], iteration_bounds = array<i64: 1>, scalar_prefetch = 0 : i64, scratch_operands = 0 : i64, tpu.core_type = #tpu.core_type<tc>, window_params = [{transform_indices = @transform_0, window_bounds = array<i64: 512, 128>}, {pipeline_mode = #tpu.pipeline_mode<synchronous>, transform_indices = @transform_1, window_bounds = array<i64: 1, 128>}, {pipeline_mode = #tpu.pipeline_mode<synchronous>, transform_indices = @transform_2, window_bounds = array<i64: 1, 128>}, {transform_indices = @transform_3, window_bounds = array<i64: 512, 128>}, {transform_indices = @transform_4, window_bounds = array<i64: 512, 128>}]} {
    %c0 = arith.constant 0 : index
    %c0_0 = arith.constant 0 : index
    %0 = vector.load %arg1[%c0, %c0_0] : memref<512x128xbf16, #tpu.memory_space<vmem>>, vector<512x128xbf16>
    %1 = arith.extf %0 : vector<512x128xbf16> to vector<512x128xf32>
    %c0_1 = arith.constant 0 : index
    %c0_2 = arith.constant 0 : index
    %2 = vector.load %arg2[%c0_1, %c0_2] : memref<1x128xf32, #tpu.memory_space<vmem>>, vector<1x128xf32>
    %3 = vector.broadcast %2 : vector<1x128xf32> to vector<512x128xf32>
    %4 = arith.mulf %1, %3 : vector<512x128xf32>
    %c0_3 = arith.constant 0 : index
    %c0_4 = arith.constant 0 : index
    %5 = vector.load %arg3[%c0_3, %c0_4] : memref<1x128xf32, #tpu.memory_space<vmem>>, vector<1x128xf32>
    %6 = vector.broadcast %5 : vector<1x128xf32> to vector<512x128xf32>
    %7 = arith.addf %4, %6 : vector<512x128xf32>
    %c0_5 = arith.constant 0 : index
    %c0_6 = arith.constant 0 : index
    %8 = vector.load %arg4[%c0_5, %c0_6] : memref<512x128xbf16, #tpu.memory_space<vmem>>, vector<512x128xbf16>
    %9 = arith.extf %8 : vector<512x128xbf16> to vector<512x128xf32>
    %10 = arith.addf %7, %9 : vector<512x128xf32>
    %cst = arith.constant 0.000000e+00 : f32
    %11 = vector.broadcast %cst : f32 to vector<512x128xf32>
    %12 = arith.maximumf %10, %11 : vector<512x128xf32>
    %c0_7 = arith.constant 0 : index
    %c0_8 = arith.constant 0 : index
    %13 = vector.load %arg5[%c0_7, %c0_8] : memref<512x128xf32, #tpu.memory_space<vmem>>, vector<512x128xf32>
    tpu.vector_store %arg5[%c0_7, %c0_8], %12 {strides = array<i32>} : memref<512x128xf32, #tpu.memory_space<vmem>>, vector<512x128xf32>,
    return
  }
  func.func @transform_0(%arg0: i32) -> (i32, i32) {
    %c0_i32 = arith.constant 0 : i32
    %c0_i32_0 = arith.constant 0 : i32
    return %arg0, %c0_i32 : i32, i32
  }
  func.func @transform_1(%arg0: i32) -> (i32, i32) {
    %c0_i32 = arith.constant 0 : i32
    %c0_i32_0 = arith.constant 0 : i32
    %c0_i32_1 = arith.constant 0 : i32
    return %c0_i32, %c0_i32_0 : i32, i32
  }
  func.func @transform_2(%arg0: i32) -> (i32, i32) {
    %c0_i32 = arith.constant 0 : i32
    %c0_i32_0 = arith.constant 0 : i32
    %c0_i32_1 = arith.constant 0 : i32
    return %c0_i32, %c0_i32_0 : i32, i32
  }
  func.func @transform_3(%arg0: i32) -> (i32, i32) {
    %c0_i32 = arith.constant 0 : i32
    %c0_i32_0 = arith.constant 0 : i32
    return %arg0, %c0_i32 : i32, i32
  }
  func.func @transform_4(%arg0: i32) -> (i32, i32) {
    %c0_i32 = arith.constant 0 : i32
    %c0_i32_0 = arith.constant 0 : i32
    return %arg0, %c0_i32 : i32, i32
  }
}

module attributes {stable_mosaic.version = 11 : i64} {
  func.func @bn_relu_conv1x1_stats_kernel(%arg0: i32, %arg1: memref<512x128xbf16, #tpu.memory_space<vmem>>, %arg2: memref<1x128xf32, #tpu.memory_space<vmem>>, %arg3: memref<1x128xf32, #tpu.memory_space<vmem>>, %arg4: memref<128x128xbf16, #tpu.memory_space<vmem>>, %arg5: memref<512x128xbf16, #tpu.memory_space<vmem>>, %arg6: memref<1x2x128xf32, #tpu.memory_space<vmem>>) attributes {dimension_semantics = [#tpu.dimension_semantics<parallel>], iteration_bounds = array<i64: 1>, scalar_prefetch = 0 : i64, scratch_operands = 0 : i64, tpu.core_type = #tpu.core_type<tc>, window_params = [{transform_indices = @transform_0, window_bounds = array<i64: 512, 128>}, {pipeline_mode = #tpu.pipeline_mode<synchronous>, transform_indices = @transform_1, window_bounds = array<i64: 1, 128>}, {pipeline_mode = #tpu.pipeline_mode<synchronous>, transform_indices = @transform_2, window_bounds = array<i64: 1, 128>}, {pipeline_mode = #tpu.pipeline_mode<synchronous>, transform_indices = @transform_3, window_bounds = array<i64: 128, 128>}, {transform_indices = @transform_4, window_bounds = array<i64: 512, 128>}, {transform_indices = @transform_5, window_bounds = array<i64: 1, 2, 128>}]} {
    %c0 = arith.constant 0 : index
    %c0_0 = arith.constant 0 : index
    %0 = vector.load %arg1[%c0, %c0_0] : memref<512x128xbf16, #tpu.memory_space<vmem>>, vector<512x128xbf16>
    %1 = arith.extf %0 : vector<512x128xbf16> to vector<512x128xf32>
    %c0_1 = arith.constant 0 : index
    %c0_2 = arith.constant 0 : index
    %2 = vector.load %arg2[%c0_1, %c0_2] : memref<1x128xf32, #tpu.memory_space<vmem>>, vector<1x128xf32>
    %3 = vector.broadcast %2 : vector<1x128xf32> to vector<512x128xf32>
    %4 = arith.mulf %1, %3 : vector<512x128xf32>
    %c0_3 = arith.constant 0 : index
    %c0_4 = arith.constant 0 : index
    %5 = vector.load %arg3[%c0_3, %c0_4] : memref<1x128xf32, #tpu.memory_space<vmem>>, vector<1x128xf32>
    %6 = vector.broadcast %5 : vector<1x128xf32> to vector<512x128xf32>
    %7 = arith.addf %4, %6 : vector<512x128xf32>
    %cst = arith.constant 0.000000e+00 : f32
    %8 = vector.broadcast %cst : f32 to vector<512x128xf32>
    %9 = arith.maximumf %7, %8 : vector<512x128xf32>
    %10 = arith.truncf %9 : vector<512x128xf32> to vector<512x128xbf16>
    %c0_5 = arith.constant 0 : index
    %c0_6 = arith.constant 0 : index
    %11 = vector.load %arg4[%c0_5, %c0_6] : memref<128x128xbf16, #tpu.memory_space<vmem>>, vector<128x128xbf16>
    %cst_7 = arith.constant dense<0.000000e+00> : vector<512x128xf32>
    %12 = tpu.matmul %10, %11, %cst_7 {dimension_numbers = #tpu.dot_dimension_numbers<[1], [0], [0], [1], [0, 0, 1, 1], [], []>} : vector<512x128xbf16>, vector<128x128xbf16>, vector<512x128xf32> -> vector<512x128xf32>
    %cst_8 = arith.constant dense<0.000000e+00> : vector<128xf32>
    %13 = vector.multi_reduction <add>, %12, %cst_8 [0] : vector<512x128xf32> to vector<128xf32>
    %14 = vector.shape_cast %13 : vector<128xf32> to vector<1x128xf32>
    %15 = arith.mulf %12, %12 : vector<512x128xf32>
    %cst_9 = arith.constant dense<0.000000e+00> : vector<128xf32>
    %16 = vector.multi_reduction <add>, %15, %cst_9 [0] : vector<512x128xf32> to vector<128xf32>
    %17 = vector.shape_cast %16 : vector<128xf32> to vector<1x128xf32>
    %18 = tpu.concatenate %14, %17 in 0 : vector<1x128xf32>, vector<1x128xf32> -> vector<2x128xf32>
    %19 = vector.shape_cast %18 : vector<2x128xf32> to vector<1x2x128xf32>
    %c0_10 = arith.constant 0 : index
    %c0_11 = arith.constant 0 : index
    %c0_12 = arith.constant 0 : index
    %20 = vector.load %arg6[%c0_10, %c0_11, %c0_12] : memref<1x2x128xf32, #tpu.memory_space<vmem>>, vector<1x2x128xf32>
    tpu.vector_store %arg6[%c0_10, %c0_11, %c0_12], %19 {strides = array<i32>} : memref<1x2x128xf32, #tpu.memory_space<vmem>>, vector<1x2x128xf32>,
    %21 = arith.truncf %12 : vector<512x128xf32> to vector<512x128xbf16>
    %c0_13 = arith.constant 0 : index
    %c0_14 = arith.constant 0 : index
    %22 = vector.load %arg5[%c0_13, %c0_14] : memref<512x128xbf16, #tpu.memory_space<vmem>>, vector<512x128xbf16>
    tpu.vector_store %arg5[%c0_13, %c0_14], %21 {strides = array<i32>} : memref<512x128xbf16, #tpu.memory_space<vmem>>, vector<512x128xbf16>,
    return
  }
  func.func @transform_0(%arg0: i32) -> (i32, i32) {
    %c0_i32 = arith.constant 0 : i32
    %c0_i32_0 = arith.constant 0 : i32
    return %arg0, %c0_i32 : i32, i32
  }
  func.func @transform_1(%arg0: i32) -> (i32, i32) {
    %c0_i32 = arith.constant 0 : i32
    %c0_i32_0 = arith.constant 0 : i32
    %c0_i32_1 = arith.constant 0 : i32
    return %c0_i32, %c0_i32_0 : i32, i32
  }
  func.func @transform_2(%arg0: i32) -> (i32, i32) {
    %c0_i32 = arith.constant 0 : i32
    %c0_i32_0 = arith.constant 0 : i32
    %c0_i32_1 = arith.constant 0 : i32
    return %c0_i32, %c0_i32_0 : i32, i32
  }
  func.func @transform_3(%arg0: i32) -> (i32, i32) {
    %c0_i32 = arith.constant 0 : i32
    %c0_i32_0 = arith.constant 0 : i32
    %c0_i32_1 = arith.constant 0 : i32
    return %c0_i32, %c0_i32_0 : i32, i32
  }
  func.func @transform_4(%arg0: i32) -> (i32, i32) {
    %c0_i32 = arith.constant 0 : i32
    %c0_i32_0 = arith.constant 0 : i32
    return %arg0, %c0_i32 : i32, i32
  }
  func.func @transform_5(%arg0: i32) -> (i32, i32, i32) {
    %c0_i32 = arith.constant 0 : i32
    %c0_i32_0 = arith.constant 0 : i32
    %c0_i32_1 = arith.constant 0 : i32
    return %arg0, %c0_i32, %c0_i32_0 : i32, i32, i32
  }
}

</mosaic_0001>

<bundles_post_ra>
// kernel: bottleneck_forward.7
= control target key start
LH: loop header
LB: loop body
LE: loop exit
PB: predicated region body
PF: predicated region fallthrough
CT: control target
= control target key end

     0   :  { %s1478_s0 = inlined_call_operand.vmem [shape: bf16[512,128], index: 0, kind: input, shape index: {}]   ;;  %s1479_s1 = inlined_call_operand.vmem [shape: f32[1,128], index: 1, kind: input, shape index: {}]   ;;  %s1480_s2 = inlined_call_operand.vmem [shape: f32[1,128], index: 2, kind: input, shape index: {}]   ;;  %s1481_s3 = inlined_call_operand.vmem [shape: bf16[512,128], index: 3, kind: input, shape index: {}]   ;;  %s1482_s4 = inlined_call_operand.vmem [shape: f32[512,128], index: 4, kind: output, shape index: {}]  }
   0x1   :  { %v614_v0 = vld [vmem:[%s1478_s0] sm:$0xff]   ;;  %v869_v5 = vld [vmem:[%s1478_s0 + $0x8] sm:$0xff]   ;;  %v870_v12 = vld [vmem:[%s1478_s0 + $0x10] sm:$0xff]  }
   0x2   :  { %v962_v1 = vld [vmem:[%s1479_s1] ss:$0 sm:$0xff]  ;;  %v615_v2 = vunpack.c.l.bf16 %v614_v0  ;;  %v616_v4 = vunpack.c.h.bf16 %v614_v0  ;;  %v900_v6 = vld [vmem:[%s1481_s3 + $0x8] sm:$0xff]   ;;  %v619_v10 = vunpack.c.l.bf16 %v869_v5  ;;  %v901_v13 = vld [vmem:[%s1481_s3 + $0x10] sm:$0xff]   ;;  %v620_v16 = vunpack.c.h.bf16 %v869_v5 }
   0x3   :  { %v742_v3 = vld [vmem:[%s1481_s3] sm:$0xff]   ;;  %v747_v11 = vunpack.c.l.bf16 %v900_v6  ;;  %v748_v17 = vunpack.c.h.bf16 %v900_v6  ;;  %v871_v18 = vld [vmem:[%s1478_s0 + $0x18] sm:$0xff]   ;;  %v623_v20 = vunpack.c.l.bf16 %v870_v12  ;;  %v751_v21 = vunpack.c.l.bf16 %v901_v13  ;;  %v873_v54 = vld [vmem:[%s1478_s0 + $0x28] sm:$0xff]  }
   0x4   :  { %v976_v7 = vld [vmem:[%s1480_s2] ss:$0 sm:$0xff]  ;;  %v743_v8 = vunpack.c.l.bf16 %v742_v3  ;;  %v744_v9 = vunpack.c.h.bf16 %v742_v3  ;;  %v152_v14 = vmul.f32 %v615_v2, %v962_v1  ;;  %v153_v15 = vmul.f32 %v616_v4, %v962_v1  ;;  %v902_v23 = vld [vmem:[%s1481_s3 + $0x18] sm:$0xff]   ;;  %v904_v55 = vld [vmem:[%s1481_s3 + $0x28] sm:$0xff]  }
   0x5   :  { %v154_v19 = vmul.f32 %v619_v10, %v962_v1  ;;  %v624_v22 = vunpack.c.h.bf16 %v870_v12  ;;  %v155_v26 = vmul.f32 %v620_v16, %v962_v1  ;;  %v752_v27 = vunpack.c.h.bf16 %v901_v13  ;;  %v872_v40 = vld [vmem:[%s1478_s0 + $0x20] sm:$0xff]   ;;  %v874_v0 = vld [vmem:[%s1478_s0 + $0x30] sm:$0xff]   ;;  %v875_v16 = vld [vmem:[%s1478_s0 + $0x38] sm:$0xff]  }
   0x6   :  { %v223_v24 = vadd.f32 %v976_v7, %v152_v14  ;;  %v224_v25 = vadd.f32 %v976_v7, %v153_v15  ;;  %v156_v29 = vmul.f32 %v623_v20, %v962_v1  ;;  %v627_v31 = vunpack.c.l.bf16 %v871_v18  ;;  %v903_v45 = vld [vmem:[%s1481_s3 + $0x20] sm:$0xff]   ;;  %v905_v2 = vld [vmem:[%s1481_s3 + $0x30] sm:$0xff]  }
   0x7   :  { %v225_v28 = vadd.f32 %v976_v7, %v154_v19  ;;  %v157_v30 = vmul.f32 %v624_v22, %v962_v1  ;;  %v226_v34 = vadd.f32 %v976_v7, %v155_v26  ;;  %v755_v35 = vunpack.c.l.bf16 %v902_v23 }
   0x8   :  { %v415_v32 = vadd.f32 %v743_v8, %v223_v24  ;;  %v416_v33 = vadd.f32 %v744_v9, %v224_v25  ;;  %v227_v37 = vadd.f32 %v976_v7, %v156_v29  ;;  %v158_v39 = vmul.f32 %v627_v31, %v962_v1 }
   0x9   :  { %v417_v36 = vadd.f32 %v747_v11, %v225_v28  ;;  %v228_v38 = vadd.f32 %v976_v7, %v157_v30  ;;  %v418_v43 = vadd.f32 %v748_v17, %v226_v34  ;;  %v628_v44 = vunpack.c.h.bf16 %v871_v18  ;;  %v876_v34 = vld [vmem:[%s1478_s0 + $0x40] sm:$0xff]  }
   0xa   :  { %v479_v41 = vmax.f32 %v415_v32, 0.0  ;;  %v480_v42 = vmax.f32 %v416_v33, 0.0  ;;  %v419_v47 = vadd.f32 %v751_v21, %v227_v37  ;;  %v229_v49 = vadd.f32 %v976_v7, %v158_v39  ;;  %v906_v21 = vld [vmem:[%s1481_s3 + $0x38] sm:$0xff]   ;;  %v907_v39 = vld [vmem:[%s1481_s3 + $0x40] sm:$0xff]  }
   0xb   :  { %v481_v46 = vmax.f32 %v417_v36, 0.0  ;;  %v420_v48 = vadd.f32 %v752_v27, %v228_v38  ;;  %v482_v50 = vmax.f32 %v418_v43, 0.0  ;;  %v159_v51 = vmul.f32 %v628_v44, %v962_v1 }
   0xc   :  { %543 = vst [vmem:[%s1482_s4] sm:$0xff] %v479_v41  ;;  %544 = vst [vmem:[%s1482_s4 + $0x8] sm:$0xff] %v480_v42  ;;  %v756_v52 = vunpack.c.h.bf16 %v902_v23  ;;  %v631_v53 = vunpack.c.l.bf16 %v872_v40  ;;  %v483_v56 = vmax.f32 %v419_v47, 0.0  ;;  %v421_v58 = vadd.f32 %v755_v35, %v229_v49  ;;  %v908_v49 = vld [vmem:[%s1481_s3 + $0x48] sm:$0xff]  }
   0xd   :  { %545 = vst [vmem:[%s1482_s4 + $0x10] sm:$0xff] %v481_v46  ;;  %v484_v57 = vmax.f32 %v420_v48, 0.0  ;;  %v759_v59 = vunpack.c.l.bf16 %v903_v45  ;;  %546 = vst [vmem:[%s1482_s4 + $0x18] sm:$0xff] %v482_v50  ;;  %v230_v60 = vadd.f32 %v976_v7, %v159_v51  ;;  %v632_v62 = vunpack.c.h.bf16 %v872_v40  ;;  %v877_v48 = vld [vmem:[%s1478_s0 + $0x48] sm:$0xff]  }
   0xe   :  { %v160_v61 = vmul.f32 %v631_v53, %v962_v1  ;;  %v760_v63 = vunpack.c.h.bf16 %v903_v45  ;;  %547 = vst [vmem:[%s1482_s4 + $0x20] sm:$0xff] %v483_v56  ;;  %v485_v3 = vmax.f32 %v421_v58, 0.0  ;;  %v635_v4 = vunpack.c.l.bf16 %v873_v54  ;;  %v878_v58 = vld [vmem:[%s1478_s0 + $0x50] sm:$0xff]  }
   0xf   :  { %548 = vst [vmem:[%s1482_s4 + $0x28] sm:$0xff] %v484_v57  ;;  %v763_v5 = vunpack.c.l.bf16 %v904_v55  ;;  %v636_v6 = vunpack.c.h.bf16 %v873_v54  ;;  %v422_v8 = vadd.f32 %v756_v52, %v230_v60  ;;  %v161_v10 = vmul.f32 %v632_v62, %v962_v1 }
  0x10   :  { %v231_v9 = vadd.f32 %v976_v7, %v160_v61  ;;  %v764_v11 = vunpack.c.h.bf16 %v904_v55  ;;  %549 = vst [vmem:[%s1482_s4 + $0x30] sm:$0xff] %v485_v3  ;;  %v162_v12 = vmul.f32 %v635_v4, %v962_v1  ;;  %v639_v14 = vunpack.c.l.bf16 %v874_v0 }
  0x11   :  { %v163_v13 = vmul.f32 %v636_v6, %v962_v1  ;;  %v767_v15 = vunpack.c.l.bf16 %v905_v2  ;;  %v486_v17 = vmax.f32 %v422_v8, 0.0  ;;  %v232_v19 = vadd.f32 %v976_v7, %v161_v10  ;;  %v879_v10 = vld [vmem:[%s1478_s0 + $0x58] sm:$0xff]  }
  0x12   :  { %v423_v18 = vadd.f32 %v759_v59, %v231_v9  ;;  %v640_v20 = vunpack.c.h.bf16 %v874_v0  ;;  %v233_v22 = vadd.f32 %v976_v7, %v162_v12  ;;  %v164_v24 = vmul.f32 %v639_v14, %v962_v1 }
  0x13   :  { %v234_v23 = vadd.f32 %v976_v7, %v163_v13  ;;  %v768_v25 = vunpack.c.h.bf16 %v905_v2  ;;  %550 = vst [vmem:[%s1482_s4 + $0x38] sm:$0xff] %v486_v17  ;;  %v424_v27 = vadd.f32 %v760_v63, %v232_v19  ;;  %v643_v29 = vunpack.c.l.bf16 %v875_v16  ;;  %v909_v63 = vld [vmem:[%s1481_s3 + $0x50] sm:$0xff]   ;;  %v910_v19 = vld [vmem:[%s1481_s3 + $0x58] sm:$0xff]  }
  0x14   :  { %v487_v26 = vmax.f32 %v423_v18, 0.0  ;;  %v165_v28 = vmul.f32 %v640_v20, %v962_v1  ;;  %v425_v30 = vadd.f32 %v763_v5, %v233_v22  ;;  %v235_v32 = vadd.f32 %v976_v7, %v164_v24 }
  0x15   :  { %v426_v31 = vadd.f32 %v764_v11, %v234_v23  ;;  %v771_v33 = vunpack.c.l.bf16 %v906_v21  ;;  %v488_v35 = vmax.f32 %v424_v27, 0.0  ;;  %v166_v37 = vmul.f32 %v643_v29, %v962_v1 }
  0x16   :  { %551 = vst [vmem:[%s1482_s4 + $0x40] sm:$0xff] %v487_v26  ;;  %v236_v36 = vadd.f32 %v976_v7, %v165_v28  ;;  %v644_v38 = vunpack.c.h.bf16 %v875_v16  ;;  %v489_v40 = vmax.f32 %v425_v30, 0.0  ;;  %v427_v42 = vadd.f32 %v767_v15, %v235_v32  ;;  %v880_v28 = vld [vmem:[%s1478_s0 + $0x60] sm:$0xff]  }
  0x17   :  { %v490_v41 = vmax.f32 %v426_v31, 0.0  ;;  %v772_v43 = vunpack.c.h.bf16 %v906_v21  ;;  %552 = vst [vmem:[%s1482_s4 + $0x48] sm:$0xff] %v488_v35  ;;  %v237_v45 = vadd.f32 %v976_v7, %v166_v37  ;;  %v647_v47 = vunpack.c.l.bf16 %v876_v34 }
  0x18   :  { %v428_v44 = vadd.f32 %v768_v25, %v236_v36  ;;  %v167_v46 = vmul.f32 %v644_v38, %v962_v1  ;;  %553 = vst [vmem:[%s1482_s4 + $0x50] sm:$0xff] %v489_v40  ;;  %v491_v50 = vmax.f32 %v427_v42, 0.0  ;;  %v775_v51 = vunpack.c.l.bf16 %v907_v39  ;;  %v881_v42 = vld [vmem:[%s1478_s0 + $0x68] sm:$0xff]  }
  0x19   :  { %554 = vst [vmem:[%s1482_s4 + $0x58] sm:$0xff] %v490_v41  ;;  %v648_v52 = vunpack.c.h.bf16 %v876_v34  ;;  %v776_v53 = vunpack.c.h.bf16 %v907_v39  ;;  %v429_v55 = vadd.f32 %v771_v33, %v237_v45  ;;  %v168_v57 = vmul.f32 %v647_v47, %v962_v1  ;;  %v911_v33 = vld [vmem:[%s1481_s3 + $0x60] sm:$0xff]  }
  0x1a   :  { %v492_v54 = vmax.f32 %v428_v44, 0.0  ;;  %v238_v56 = vadd.f32 %v976_v7, %v167_v46  ;;  %555 = vst [vmem:[%s1482_s4 + $0x60] sm:$0xff] %v491_v50  ;;  %v651_v60 = vunpack.c.l.bf16 %v877_v48  ;;  %v779_v61 = vunpack.c.l.bf16 %v908_v49 }
  0x1b   :  { %v169_v59 = vmul.f32 %v648_v52, %v962_v1  ;;  %v652_v62 = vunpack.c.h.bf16 %v877_v48  ;;  %v493_v0 = vmax.f32 %v429_v55, 0.0  ;;  %v239_v3 = vadd.f32 %v976_v7, %v168_v57  ;;  %v882_v52 = vld [vmem:[%s1478_s0 + $0x70] sm:$0xff]  }
  0x1c   :  { %556 = vst [vmem:[%s1482_s4 + $0x68] sm:$0xff] %v492_v54  ;;  %v430_v2 = vadd.f32 %v772_v43, %v238_v56  ;;  %v780_v4 = vunpack.c.h.bf16 %v908_v49  ;;  %v170_v6 = vmul.f32 %v651_v60, %v962_v1  ;;  %v655_v9 = vunpack.c.l.bf16 %v878_v58  ;;  %v912_v43 = vld [vmem:[%s1481_s3 + $0x68] sm:$0xff]   ;;  %v913_v57 = vld [vmem:[%s1481_s3 + $0x70] sm:$0xff]  }
  0x1d   :  { %v240_v5 = vadd.f32 %v976_v7, %v169_v59  ;;  %v171_v8 = vmul.f32 %v652_v62, %v962_v1  ;;  %557 = vst [vmem:[%s1482_s4 + $0x70] sm:$0xff] %v493_v0  ;;  %v431_v12 = vadd.f32 %v775_v51, %v239_v3  ;;  %v783_v13 = vunpack.c.l.bf16 %v909_v63  ;;  %v883_v3 = vld [vmem:[%s1478_s0 + $0x78] sm:$0xff]  }
  0x1e   :  { %v494_v11 = vmax.f32 %v430_v2, 0.0  ;;  %v656_v14 = vunpack.c.h.bf16 %v878_v58  ;;  %v241_v16 = vadd.f32 %v976_v7, %v170_v6  ;;  %v172_v18 = vmul.f32 %v655_v9, %v962_v1 }
  0x1f   :  { %v432_v15 = vadd.f32 %v776_v53, %v240_v5  ;;  %v242_v17 = vadd.f32 %v976_v7, %v171_v8  ;;  %v495_v20 = vmax.f32 %v431_v12, 0.0  ;;  %v784_v22 = vunpack.c.h.bf16 %v909_v63 }
  0x20   :  { %558 = vst [vmem:[%s1482_s4 + $0x78] sm:$0xff] %v494_v11  ;;  %v173_v21 = vmul.f32 %v656_v14, %v962_v1  ;;  %v659_v23 = vunpack.c.l.bf16 %v879_v10  ;;  %v433_v25 = vadd.f32 %v779_v61, %v241_v16  ;;  %v243_v27 = vadd.f32 %v976_v7, %v172_v18 }
  0x21   :  { %v496_v24 = vmax.f32 %v432_v15, 0.0  ;;  %v434_v26 = vadd.f32 %v780_v4, %v242_v17  ;;  %559 = vst [vmem:[%s1482_s4 + $0x80] sm:$0xff] %v495_v20  ;;  %v787_v31 = vunpack.c.l.bf16 %v910_v19  ;;  %v660_v32 = vunpack.c.h.bf16 %v879_v10 }
  0x22   :  { %v244_v29 = vadd.f32 %v976_v7, %v173_v21  ;;  %v174_v30 = vmul.f32 %v659_v23, %v962_v1  ;;  %v497_v34 = vmax.f32 %v433_v25, 0.0  ;;  %v435_v36 = vadd.f32 %v783_v13, %v243_v27  ;;  %v914_v13 = vld [vmem:[%s1481_s3 + $0x78] sm:$0xff]   ;;  %v915_v27 = vld [vmem:[%s1481_s3 + $0x80] sm:$0xff]  }
  0x23   :  { %560 = vst [vmem:[%s1482_s4 + $0x88] sm:$0xff] %v496_v24  ;;  %v498_v35 = vmax.f32 %v434_v26, 0.0  ;;  %v788_v37 = vunpack.c.h.bf16 %v910_v19  ;;  %v175_v40 = vmul.f32 %v660_v32, %v962_v1  ;;  %v663_v41 = vunpack.c.l.bf16 %v880_v28 }
  0x24   :  { %v436_v38 = vadd.f32 %v784_v22, %v244_v29  ;;  %v245_v39 = vadd.f32 %v976_v7, %v174_v30  ;;  %561 = vst [vmem:[%s1482_s4 + $0x90] sm:$0xff] %v497_v34  ;;  %v499_v44 = vmax.f32 %v435_v36, 0.0  ;;  %v791_v45 = vunpack.c.l.bf16 %v911_v33  ;;  %v884_v22 = vld [vmem:[%s1478_s0 + $0x80] sm:$0xff]   ;;  %v885_v36 = vld [vmem:[%s1478_s0 + $0x88] sm:$0xff]  }
  0x25   :  { %562 = vst [vmem:[%s1482_s4 + $0x98] sm:$0xff] %v498_v35  ;;  %v664_v46 = vunpack.c.h.bf16 %v880_v28  ;;  %v792_v47 = vunpack.c.h.bf16 %v911_v33  ;;  %v246_v50 = vadd.f32 %v976_v7, %v175_v40  ;;  %v176_v51 = vmul.f32 %v663_v41, %v962_v1 }
  0x26   :  { %v500_v48 = vmax.f32 %v436_v38, 0.0  ;;  %v437_v49 = vadd.f32 %v787_v31, %v245_v39  ;;  %563 = vst [vmem:[%s1482_s4 + $0xa0] sm:$0xff] %v499_v44  ;;  %v667_v54 = vunpack.c.l.bf16 %v881_v42  ;;  %v795_v55 = vunpack.c.l.bf16 %v912_v43 }
  0x27   :  { %v177_v53 = vmul.f32 %v664_v46, %v962_v1  ;;  %v668_v56 = vunpack.c.h.bf16 %v881_v42  ;;  %v438_v59 = vadd.f32 %v788_v37, %v246_v50  ;;  %v247_v60 = vadd.f32 %v976_v7, %v176_v51  ;;  %v916_v37 = vld [vmem:[%s1481_s3 + $0x88] sm:$0xff]   ;;  %v886_v46 = vld [vmem:[%s1478_s0 + $0x90] sm:$0xff]  }
  0x28   :  { %564 = vst [vmem:[%s1482_s4 + $0xa8] sm:$0xff] %v500_v48  ;;  %v501_v58 = vmax.f32 %v437_v49, 0.0  ;;  %v796_v61 = vunpack.c.h.bf16 %v912_v43  ;;  %v178_v63 = vmul.f32 %v667_v54, %v962_v1  ;;  %v671_v2 = vunpack.c.l.bf16 %v882_v52  ;;  %v917_v51 = vld [vmem:[%s1481_s3 + $0x90] sm:$0xff]  }
  0x29   :  { %v248_v62 = vadd.f32 %v976_v7, %v177_v53  ;;  %v179_v0 = vmul.f32 %v668_v56, %v962_v1  ;;  %v502_v4 = vmax.f32 %v438_v59, 0.0  ;;  %v439_v5 = vadd.f32 %v791_v45, %v247_v60  ;;  %v887_v60 = vld [vmem:[%s1478_s0 + $0x98] sm:$0xff]  }
  0x2a   :  { %565 = vst [vmem:[%s1482_s4 + $0xb0] sm:$0xff] %v501_v58  ;;  %v799_v6 = vunpack.c.l.bf16 %v913_v57  ;;  %v672_v8 = vunpack.c.h.bf16 %v882_v52  ;;  %v249_v10 = vadd.f32 %v976_v7, %v178_v63  ;;  %v180_v12 = vmul.f32 %v671_v2, %v962_v1 }
  0x2b   :  { %v440_v9 = vadd.f32 %v792_v47, %v248_v62  ;;  %v250_v11 = vadd.f32 %v976_v7, %v179_v0  ;;  %566 = vst [vmem:[%s1482_s4 + $0xb8] sm:$0xff] %v502_v4  ;;  %v503_v14 = vmax.f32 %v439_v5, 0.0  ;;  %v800_v16 = vunpack.c.h.bf16 %v913_v57 }
  0x2c   :  { %v181_v15 = vmul.f32 %v672_v8, %v962_v1  ;;  %v675_v17 = vunpack.c.l.bf16 %v883_v3  ;;  %v441_v19 = vadd.f32 %v795_v55, %v249_v10  ;;  %v251_v21 = vadd.f32 %v976_v7, %v180_v12 }
  0x2d   :  { %v504_v18 = vmax.f32 %v440_v9, 0.0  ;;  %v442_v20 = vadd.f32 %v796_v61, %v250_v11  ;;  %567 = vst [vmem:[%s1482_s4 + $0xc0] sm:$0xff] %v503_v14  ;;  %v803_v25 = vunpack.c.l.bf16 %v914_v13  ;;  %v676_v26 = vunpack.c.h.bf16 %v883_v3 }
  0x2e   :  { %v252_v23 = vadd.f32 %v976_v7, %v181_v15  ;;  %v182_v24 = vmul.f32 %v675_v17, %v962_v1  ;;  %v505_v28 = vmax.f32 %v441_v19, 0.0  ;;  %v443_v30 = vadd.f32 %v799_v6, %v251_v21  ;;  %v918_v6 = vld [vmem:[%s1481_s3 + $0x98] sm:$0xff]   ;;  %v919_v21 = vld [vmem:[%s1481_s3 + $0xa0] sm:$0xff]  }
  0x2f   :  { %568 = vst [vmem:[%s1482_s4 + $0xc8] sm:$0xff] %v504_v18  ;;  %v506_v29 = vmax.f32 %v442_v20, 0.0  ;;  %v804_v31 = vunpack.c.h.bf16 %v914_v13  ;;  %v183_v34 = vmul.f32 %v676_v26, %v962_v1  ;;  %v679_v35 = vunpack.c.l.bf16 %v884_v22 }
  0x30   :  { %v444_v32 = vadd.f32 %v800_v16, %v252_v23  ;;  %v253_v33 = vadd.f32 %v976_v7, %v182_v24  ;;  %569 = vst [vmem:[%s1482_s4 + $0xd0] sm:$0xff] %v505_v28  ;;  %v507_v38 = vmax.f32 %v443_v30, 0.0  ;;  %v807_v39 = vunpack.c.l.bf16 %v915_v27  ;;  %v888_v16 = vld [vmem:[%s1478_s0 + $0xa0] sm:$0xff]   ;;  %v889_v30 = vld [vmem:[%s1478_s0 + $0xa8] sm:$0xff]  }
  0x31   :  { %570 = vst [vmem:[%s1482_s4 + $0xd8] sm:$0xff] %v506_v29  ;;  %v680_v40 = vunpack.c.h.bf16 %v884_v22  ;;  %v808_v41 = vunpack.c.h.bf16 %v915_v27  ;;  %v254_v44 = vadd.f32 %v976_v7, %v183_v34  ;;  %v184_v45 = vmul.f32 %v679_v35, %v962_v1 }
  0x32   :  { %v508_v42 = vmax.f32 %v444_v32, 0.0  ;;  %v445_v43 = vadd.f32 %v803_v25, %v253_v33  ;;  %571 = vst [vmem:[%s1482_s4 + $0xe0] sm:$0xff] %v507_v38  ;;  %v683_v48 = vunpack.c.l.bf16 %v885_v36  ;;  %v811_v49 = vunpack.c.l.bf16 %v916_v37 }
  0x33   :  { %v185_v47 = vmul.f32 %v680_v40, %v962_v1  ;;  %v684_v50 = vunpack.c.h.bf16 %v885_v36  ;;  %v446_v53 = vadd.f32 %v804_v31, %v254_v44  ;;  %v255_v54 = vadd.f32 %v976_v7, %v184_v45  ;;  %v920_v31 = vld [vmem:[%s1481_s3 + $0xa8] sm:$0xff]   ;;  %v890_v40 = vld [vmem:[%s1478_s0 + $0xb0] sm:$0xff]  }
  0x34   :  { %572 = vst [vmem:[%s1482_s4 + $0xe8] sm:$0xff] %v508_v42  ;;  %v509_v52 = vmax.f32 %v445_v43, 0.0  ;;  %v812_v55 = vunpack.c.h.bf16 %v916_v37  ;;  %v186_v57 = vmul.f32 %v683_v48, %v962_v1  ;;  %v687_v59 = vunpack.c.l.bf16 %v886_v46  ;;  %v921_v45 = vld [vmem:[%s1481_s3 + $0xb0] sm:$0xff]  }
  0x35   :  { %v256_v56 = vadd.f32 %v976_v7, %v185_v47  ;;  %v187_v58 = vmul.f32 %v684_v50, %v962_v1  ;;  %v510_v61 = vmax.f32 %v446_v53, 0.0  ;;  %v447_v62 = vadd.f32 %v807_v39, %v255_v54  ;;  %v891_v54 = vld [vmem:[%s1478_s0 + $0xb8] sm:$0xff]  }
  0x36   :  { %573 = vst [vmem:[%s1482_s4 + $0xf0] sm:$0xff] %v509_v52  ;;  %v815_v63 = vunpack.c.l.bf16 %v917_v51  ;;  %v688_v0 = vunpack.c.h.bf16 %v886_v46  ;;  %v257_v3 = vadd.f32 %v976_v7, %v186_v57  ;;  %v188_v5 = vmul.f32 %v687_v59, %v962_v1 }
  0x37   :  { %v448_v2 = vadd.f32 %v808_v41, %v256_v56  ;;  %v258_v4 = vadd.f32 %v976_v7, %v187_v58  ;;  %574 = vst [vmem:[%s1482_s4 + $0xf8] sm:$0xff] %v510_v61  ;;  %v511_v8 = vmax.f32 %v447_v62, 0.0  ;;  %v816_v10 = vunpack.c.h.bf16 %v917_v51 }
  0x38   :  { %v189_v9 = vmul.f32 %v688_v0, %v962_v1  ;;  %v691_v11 = vunpack.c.l.bf16 %v887_v60  ;;  %v449_v13 = vadd.f32 %v811_v49, %v257_v3  ;;  %v259_v15 = vadd.f32 %v976_v7, %v188_v5 }
  0x39   :  { %v512_v12 = vmax.f32 %v448_v2, 0.0  ;;  %v450_v14 = vadd.f32 %v812_v55, %v258_v4  ;;  %575 = vst [vmem:[%s1482_s4 + $0x100] sm:$0xff] %v511_v8  ;;  %v819_v19 = vunpack.c.l.bf16 %v918_v6  ;;  %v692_v20 = vunpack.c.h.bf16 %v887_v60 }
  0x3a   :  { %v260_v17 = vadd.f32 %v976_v7, %v189_v9  ;;  %v190_v18 = vmul.f32 %v691_v11, %v962_v1  ;;  %v513_v22 = vmax.f32 %v449_v13, 0.0  ;;  %v451_v24 = vadd.f32 %v815_v63, %v259_v15  ;;  %v922_v63 = vld [vmem:[%s1481_s3 + $0xb8] sm:$0xff]   ;;  %v923_v15 = vld [vmem:[%s1481_s3 + $0xc0] sm:$0xff]  }
  0x3b   :  { %576 = vst [vmem:[%s1482_s4 + $0x108] sm:$0xff] %v512_v12  ;;  %v514_v23 = vmax.f32 %v450_v14, 0.0  ;;  %v820_v25 = vunpack.c.h.bf16 %v918_v6  ;;  %v191_v28 = vmul.f32 %v692_v20, %v962_v1  ;;  %v695_v29 = vunpack.c.l.bf16 %v888_v16 }
  0x3c   :  { %v452_v26 = vadd.f32 %v816_v10, %v260_v17  ;;  %v261_v27 = vadd.f32 %v976_v7, %v190_v18  ;;  %577 = vst [vmem:[%s1482_s4 + $0x110] sm:$0xff] %v513_v22  ;;  %v515_v32 = vmax.f32 %v451_v24, 0.0  ;;  %v823_v33 = vunpack.c.l.bf16 %v919_v21  ;;  %v892_v10 = vld [vmem:[%s1478_s0 + $0xc0] sm:$0xff]   ;;  %v893_v24 = vld [vmem:[%s1478_s0 + $0xc8] sm:$0xff]  }
  0x3d   :  { %578 = vst [vmem:[%s1482_s4 + $0x118] sm:$0xff] %v514_v23  ;;  %v696_v34 = vunpack.c.h.bf16 %v888_v16  ;;  %v824_v35 = vunpack.c.h.bf16 %v919_v21  ;;  %v262_v38 = vadd.f32 %v976_v7, %v191_v28  ;;  %v192_v39 = vmul.f32 %v695_v29, %v962_v1 }
  0x3e   :  { %v516_v36 = vmax.f32 %v452_v26, 0.0  ;;  %v453_v37 = vadd.f32 %v819_v19, %v261_v27  ;;  %579 = vst [vmem:[%s1482_s4 + $0x120] sm:$0xff] %v515_v32  ;;  %v699_v42 = vunpack.c.l.bf16 %v889_v30  ;;  %v827_v43 = vunpack.c.l.bf16 %v920_v31 }
  0x3f   :  { %v193_v41 = vmul.f32 %v696_v34, %v962_v1  ;;  %v700_v44 = vunpack.c.h.bf16 %v889_v30  ;;  %v454_v47 = vadd.f32 %v820_v25, %v262_v38  ;;  %v263_v48 = vadd.f32 %v976_v7, %v192_v39  ;;  %v924_v25 = vld [vmem:[%s1481_s3 + $0xc8] sm:$0xff]   ;;  %v894_v34 = vld [vmem:[%s1478_s0 + $0xd0] sm:$0xff]  }
  0x40   :  { %580 = vst [vmem:[%s1482_s4 + $0x128] sm:$0xff] %v516_v36  ;;  %v517_v46 = vmax.f32 %v453_v37, 0.0  ;;  %v828_v49 = vunpack.c.h.bf16 %v920_v31  ;;  %v194_v51 = vmul.f32 %v699_v42, %v962_v1  ;;  %v703_v53 = vunpack.c.l.bf16 %v890_v40  ;;  %v925_v39 = vld [vmem:[%s1481_s3 + $0xd0] sm:$0xff]  }
  0x41   :  { %v264_v50 = vadd.f32 %v976_v7, %v193_v41  ;;  %v195_v52 = vmul.f32 %v700_v44, %v962_v1  ;;  %v518_v55 = vmax.f32 %v454_v47, 0.0  ;;  %v455_v56 = vadd.f32 %v823_v33, %v263_v48  ;;  %v895_v48 = vld [vmem:[%s1478_s0 + $0xd8] sm:$0xff]  }
  0x42   :  { %581 = vst [vmem:[%s1482_s4 + $0x130] sm:$0xff] %v517_v46  ;;  %v831_v57 = vunpack.c.l.bf16 %v921_v45  ;;  %v704_v58 = vunpack.c.h.bf16 %v890_v40  ;;  %v265_v60 = vadd.f32 %v976_v7, %v194_v51  ;;  %v196_v62 = vmul.f32 %v703_v53, %v962_v1 }
  0x43   :  { %v456_v59 = vadd.f32 %v824_v35, %v264_v50  ;;  %v266_v61 = vadd.f32 %v976_v7, %v195_v52  ;;  %582 = vst [vmem:[%s1482_s4 + $0x138] sm:$0xff] %v518_v55  ;;  %v519_v0 = vmax.f32 %v455_v56, 0.0  ;;  %v832_v3 = vunpack.c.h.bf16 %v921_v45 }
  0x44   :  { %v197_v2 = vmul.f32 %v704_v58, %v962_v1  ;;  %v707_v4 = vunpack.c.l.bf16 %v891_v54  ;;  %v457_v6 = vadd.f32 %v827_v43, %v265_v60  ;;  %v267_v9 = vadd.f32 %v976_v7, %v196_v62 }
  0x45   :  { %v520_v5 = vmax.f32 %v456_v59, 0.0  ;;  %v458_v8 = vadd.f32 %v828_v49, %v266_v61  ;;  %583 = vst [vmem:[%s1482_s4 + $0x140] sm:$0xff] %v519_v0  ;;  %v835_v13 = vunpack.c.l.bf16 %v922_v63  ;;  %v708_v14 = vunpack.c.h.bf16 %v891_v54 }
  0x46   :  { %v268_v11 = vadd.f32 %v976_v7, %v197_v2  ;;  %v198_v12 = vmul.f32 %v707_v4, %v962_v1  ;;  %v521_v16 = vmax.f32 %v457_v6, 0.0  ;;  %v459_v18 = vadd.f32 %v831_v57, %v267_v9  ;;  %v926_v57 = vld [vmem:[%s1481_s3 + $0xd8] sm:$0xff]   ;;  %v927_v9 = vld [vmem:[%s1481_s3 + $0xe0] sm:$0xff]  }
  0x47   :  { %584 = vst [vmem:[%s1482_s4 + $0x148] sm:$0xff] %v520_v5  ;;  %v522_v17 = vmax.f32 %v458_v8, 0.0  ;;  %v836_v19 = vunpack.c.h.bf16 %v922_v63  ;;  %v199_v22 = vmul.f32 %v708_v14, %v962_v1  ;;  %v711_v23 = vunpack.c.l.bf16 %v892_v10 }
  0x48   :  { %v460_v20 = vadd.f32 %v832_v3, %v268_v11  ;;  %v269_v21 = vadd.f32 %v976_v7, %v198_v12  ;;  %585 = vst [vmem:[%s1482_s4 + $0x150] sm:$0xff] %v521_v16  ;;  %v523_v26 = vmax.f32 %v459_v18, 0.0  ;;  %v839_v27 = vunpack.c.l.bf16 %v923_v15  ;;  %v896_v3 = vld [vmem:[%s1478_s0 + $0xe0] sm:$0xff]   ;;  %v897_v18 = vld [vmem:[%s1478_s0 + $0xe8] sm:$0xff]  }
  0x49   :  { %586 = vst [vmem:[%s1482_s4 + $0x158] sm:$0xff] %v522_v17  ;;  %v712_v28 = vunpack.c.h.bf16 %v892_v10  ;;  %v840_v29 = vunpack.c.h.bf16 %v923_v15  ;;  %v270_v32 = vadd.f32 %v976_v7, %v199_v22  ;;  %v200_v33 = vmul.f32 %v711_v23, %v962_v1 }
  0x4a   :  { %v524_v30 = vmax.f32 %v460_v20, 0.0  ;;  %v461_v31 = vadd.f32 %v835_v13, %v269_v21  ;;  %587 = vst [vmem:[%s1482_s4 + $0x160] sm:$0xff] %v523_v26  ;;  %v715_v36 = vunpack.c.l.bf16 %v893_v24  ;;  %v843_v37 = vunpack.c.l.bf16 %v924_v25 }
  0x4b   :  { %v201_v35 = vmul.f32 %v712_v28, %v962_v1  ;;  %v716_v38 = vunpack.c.h.bf16 %v893_v24  ;;  %v462_v41 = vadd.f32 %v836_v19, %v270_v32  ;;  %v271_v42 = vadd.f32 %v976_v7, %v200_v33  ;;  %v928_v19 = vld [vmem:[%s1481_s3 + $0xe8] sm:$0xff]   ;;  %v898_v28 = vld [vmem:[%s1478_s0 + $0xf0] sm:$0xff]  }
  0x4c   :  { %588 = vst [vmem:[%s1482_s4 + $0x168] sm:$0xff] %v524_v30  ;;  %v525_v40 = vmax.f32 %v461_v31, 0.0  ;;  %v844_v43 = vunpack.c.h.bf16 %v924_v25  ;;  %v202_v45 = vmul.f32 %v715_v36, %v962_v1  ;;  %v719_v47 = vunpack.c.l.bf16 %v894_v34  ;;  %v929_v33 = vld [vmem:[%s1481_s3 + $0xf0] sm:$0xff]  }
  0x4d   :  { %v272_v44 = vadd.f32 %v976_v7, %v201_v35  ;;  %v203_v46 = vmul.f32 %v716_v38, %v962_v1  ;;  %v526_v49 = vmax.f32 %v462_v41, 0.0  ;;  %v463_v50 = vadd.f32 %v839_v27, %v271_v42  ;;  %v899_v42 = vld [vmem:[%s1478_s0 + $0xf8] sm:$0xff]  }
  0x4e   :  { %589 = vst [vmem:[%s1482_s4 + $0x170] sm:$0xff] %v525_v40  ;;  %v847_v51 = vunpack.c.l.bf16 %v925_v39  ;;  %v720_v52 = vunpack.c.h.bf16 %v894_v34  ;;  %v273_v54 = vadd.f32 %v976_v7, %v202_v45  ;;  %v204_v56 = vmul.f32 %v719_v47, %v962_v1 }
  0x4f   :  { %v464_v53 = vadd.f32 %v840_v29, %v272_v44  ;;  %v274_v55 = vadd.f32 %v976_v7, %v203_v46  ;;  %590 = vst [vmem:[%s1482_s4 + $0x178] sm:$0xff] %v526_v49  ;;  %v527_v58 = vmax.f32 %v463_v50, 0.0  ;;  %v848_v60 = vunpack.c.h.bf16 %v925_v39 }
  0x50   :  { %v205_v59 = vmul.f32 %v720_v52, %v962_v1  ;;  %v723_v61 = vunpack.c.l.bf16 %v895_v48  ;;  %v465_v63 = vadd.f32 %v843_v37, %v273_v54  ;;  %v275_v2 = vadd.f32 %v976_v7, %v204_v56 }
  0x51   :  { %v528_v62 = vmax.f32 %v464_v53, 0.0  ;;  %v466_v0 = vadd.f32 %v844_v43, %v274_v55  ;;  %591 = vst [vmem:[%s1482_s4 + $0x180] sm:$0xff] %v527_v58  ;;  %v851_v6 = vunpack.c.l.bf16 %v926_v57  ;;  %v724_v8 = vunpack.c.h.bf16 %v895_v48 }
  0x52   :  { %v276_v4 = vadd.f32 %v976_v7, %v205_v59  ;;  %v206_v5 = vmul.f32 %v723_v61, %v962_v1  ;;  %v529_v10 = vmax.f32 %v465_v63, 0.0  ;;  %v467_v12 = vadd.f32 %v847_v51, %v275_v2  ;;  %v930_v51 = vld [vmem:[%s1481_s3 + $0xf8] sm:$0xff]  }
  0x53   :  { %592 = vst [vmem:[%s1482_s4 + $0x188] sm:$0xff] %v528_v62  ;;  %v530_v11 = vmax.f32 %v466_v0, 0.0  ;;  %v852_v13 = vunpack.c.h.bf16 %v926_v57  ;;  %v207_v16 = vmul.f32 %v724_v8, %v962_v1  ;;  %v727_v17 = vunpack.c.l.bf16 %v896_v3 }
  0x54   :  { %v468_v14 = vadd.f32 %v848_v60, %v276_v4  ;;  %v277_v15 = vadd.f32 %v976_v7, %v206_v5  ;;  %593 = vst [vmem:[%s1482_s4 + $0x190] sm:$0xff] %v529_v10  ;;  %v531_v20 = vmax.f32 %v467_v12, 0.0  ;;  %v855_v21 = vunpack.c.l.bf16 %v927_v9 }
  0x55   :  { %594 = vst [vmem:[%s1482_s4 + $0x198] sm:$0xff] %v530_v11  ;;  %v728_v22 = vunpack.c.h.bf16 %v896_v3  ;;  %v856_v23 = vunpack.c.h.bf16 %v927_v9  ;;  %v278_v26 = vadd.f32 %v976_v7, %v207_v16  ;;  %v208_v27 = vmul.f32 %v727_v17, %v962_v1 }
  0x56   :  { %v532_v24 = vmax.f32 %v468_v14, 0.0  ;;  %v469_v25 = vadd.f32 %v851_v6, %v277_v15  ;;  %595 = vst [vmem:[%s1482_s4 + $0x1a0] sm:$0xff] %v531_v20  ;;  %v731_v30 = vunpack.c.l.bf16 %v897_v18  ;;  %v859_v31 = vunpack.c.l.bf16 %v928_v19 }
  0x57   :  { %v209_v29 = vmul.f32 %v728_v22, %v962_v1  ;;  %v732_v32 = vunpack.c.h.bf16 %v897_v18  ;;  %v470_v35 = vadd.f32 %v852_v13, %v278_v26  ;;  %v279_v36 = vadd.f32 %v976_v7, %v208_v27 }
  0x58   :  { %596 = vst [vmem:[%s1482_s4 + $0x1a8] sm:$0xff] %v532_v24  ;;  %v533_v34 = vmax.f32 %v469_v25, 0.0  ;;  %v860_v37 = vunpack.c.h.bf16 %v928_v19  ;;  %v210_v39 = vmul.f32 %v731_v30, %v962_v1  ;;  %v735_v41 = vunpack.c.l.bf16 %v898_v28 }
  0x59   :  { %v280_v38 = vadd.f32 %v976_v7, %v209_v29  ;;  %v211_v40 = vmul.f32 %v732_v32, %v962_v1  ;;  %v534_v43 = vmax.f32 %v470_v35, 0.0  ;;  %v471_v44 = vadd.f32 %v855_v21, %v279_v36 }
  0x5a   :  { %597 = vst [vmem:[%s1482_s4 + $0x1b0] sm:$0xff] %v533_v34  ;;  %v863_v45 = vunpack.c.l.bf16 %v929_v33  ;;  %v736_v46 = vunpack.c.h.bf16 %v898_v28  ;;  %v281_v48 = vadd.f32 %v976_v7, %v210_v39  ;;  %v212_v50 = vmul.f32 %v735_v41, %v962_v1 }
  0x5b   :  { %v472_v47 = vadd.f32 %v856_v23, %v280_v38  ;;  %v282_v49 = vadd.f32 %v976_v7, %v211_v40  ;;  %598 = vst [vmem:[%s1482_s4 + $0x1b8] sm:$0xff] %v534_v43  ;;  %v535_v52 = vmax.f32 %v471_v44, 0.0  ;;  %v864_v54 = vunpack.c.h.bf16 %v929_v33 }
  0x5c   :  { %v213_v53 = vmul.f32 %v736_v46, %v962_v1  ;;  %v739_v55 = vunpack.c.l.bf16 %v899_v42  ;;  %v473_v57 = vadd.f32 %v859_v31, %v281_v48  ;;  %v283_v59 = vadd.f32 %v976_v7, %v212_v50 }
  0x5d   :  { %v536_v56 = vmax.f32 %v472_v47, 0.0  ;;  %v474_v58 = vadd.f32 %v860_v37, %v282_v49  ;;  %599 = vst [vmem:[%s1482_s4 + $0x1c0] sm:$0xff] %v535_v52  ;;  %v867_v62 = vunpack.c.l.bf16 %v930_v51  ;;  %v740_v63 = vunpack.c.h.bf16 %v899_v42 }
  0x5e   :  { %v284_v60 = vadd.f32 %v976_v7, %v213_v53  ;;  %v214_v61 = vmul.f32 %v739_v55, %v962_v1  ;;  %v537_v0 = vmax.f32 %v473_v57, 0.0  ;;  %v475_v3 = vadd.f32 %v863_v45, %v283_v59 }
  0x5f   :  { %600 = vst [vmem:[%s1482_s4 + $0x1c8] sm:$0xff] %v536_v56  ;;  %v538_v2 = vmax.f32 %v474_v58, 0.0  ;;  %v215_v6 = vmul.f32 %v740_v63, %v962_v1  ;;  %v868_v8 = vunpack.c.h.bf16 %v930_v51 }
  0x60   :  { %v476_v4 = vadd.f32 %v864_v54, %v284_v60  ;;  %v285_v5 = vadd.f32 %v976_v7, %v214_v61  ;;  %601 = vst [vmem:[%s1482_s4 + $0x1d0] sm:$0xff] %v537_v0  ;;  %v539_v9 = vmax.f32 %v475_v3, 0.0 }
  0x61   :  { %602 = vst [vmem:[%s1482_s4 + $0x1d8] sm:$0xff] %v538_v2  ;;  %v286_v12 = vadd.f32 %v976_v7, %v215_v6 }
  0x62   :  { %v540_v10 = vmax.f32 %v476_v4, 0.0  ;;  %v477_v11 = vadd.f32 %v867_v62, %v285_v5  ;;  %603 = vst [vmem:[%s1482_s4 + $0x1e0] sm:$0xff] %v539_v9 }
  0x63   :  { %v478_v13 = vadd.f32 %v868_v8, %v286_v12 }
  0x64   :  { %604 = vst [vmem:[%s1482_s4 + $0x1e8] sm:$0xff] %v540_v10  ;;  %v541_v1 = vmax.f32 %v477_v11, 0.0 }
  0x65   :  { %v542_v14 = vmax.f32 %v478_v13, 0.0 }
  0x66   :  { %605 = vst [vmem:[%s1482_s4 + $0x1f0] sm:$0xff] %v541_v1 }
  0x67   :  { %606 = vst [vmem:[%s1482_s4 + $0x1f8] sm:$0xff] %v542_v14 }

// kernel: bottleneck_forward.4
= control target key start
LH: loop header
LB: loop body
LE: loop exit
PB: predicated region body
PF: predicated region fallthrough
CT: control target
= control target key end

     0   :  { %vm825_vm0 = vcmask 1040384   ;;  %s2122_s1 = inlined_call_operand.vmem [shape: bf16[128,128], index: 1, kind: input, shape index: {}]   ;;  %s2123_s0 = inlined_call_operand.vmem [shape: bf16[512,128], index: 0, kind: input, shape index: {}]   ;;  %s2124_s2 = inlined_call_operand.vmem [shape: bf16[512,128], index: 2, kind: output, shape index: {0}]   ;;  %s2125_s3 = inlined_call_operand.vmem [shape: f32[1,2,128], index: 3, kind: output, shape index: {1}]  }
   0x1   :  { %v1651_v0 = vld [vmem:[%s2122_s1] sm:$0xff]   ;;  %v1652_v1 = vld [vmem:[%s2122_s1 + $0x8] sm:$0xff]   ;;  %v1653_v2 = vld [vmem:[%s2122_s1 + $0x10] sm:$0xff]  }
   0x2   :  { %1555 = vmatprep.subr.bf16.mxu0 %v1651_v0  ;;  %1635 = vmatprep.subr.bf16.mxu1 %v1651_v0  ;;  %v1654_v3 = vld [vmem:[%s2122_s1 + $0x18] sm:$0xff]   ;;  %v1659_v4 = vld [vmem:[%s2123_s0] sm:$0xff]   ;;  %v1656_v6 = vld [vmem:[%s2122_s1 + $0x28] sm:$0xff]  }
   0x3   :  { %1556 = vmatpush3.bf16.msra.mxu0 %v1651_v0  ;;  %1643 = vmatpush3.bf16.msra.mxu1 %v1651_v0  ;;  %v1655_v5 = vld [vmem:[%s2122_s1 + $0x20] sm:$0xff]   ;;  %v1657_v7 = vld [vmem:[%s2122_s1 + $0x30] sm:$0xff]   ;;  %v1658_v8 = vld [vmem:[%s2122_s1 + $0x38] sm:$0xff]  }
   0x4   :  { %1557 = vmatprep.subr.bf16.mxu0 %v1652_v1  ;;  %1636 = vmatprep.subr.bf16.mxu1 %v1652_v1  ;;  %v1675_v9 = vld [vmem:[%s2123_s0 + $0x80] sm:$0xff]   ;;  %v1660_v10 = vld [vmem:[%s2123_s0 + $0x8] sm:$0xff]   ;;  %v1661_v11 = vld [vmem:[%s2123_s0 + $0x10] sm:$0xff]  }
   0x5   :  { %1571 = vmatprep.mubr.bf16.mxu0 %v1659_v4  ;;  %1603 = vmatprep.mubr.bf16.mxu1 %v1675_v9  ;;  %v1676_v12 = vld [vmem:[%s2123_s0 + $0x88] sm:$0xff]   ;;  %v1677_v13 = vld [vmem:[%s2123_s0 + $0x90] sm:$0xff]   ;;  %v1662_v14 = vld [vmem:[%s2123_s0 + $0x18] sm:$0xff]  }
   0x6   :  { %v1663_v15 = vld [vmem:[%s2123_s0 + $0x20] sm:$0xff]   ;;  %v1678_v16 = vld [vmem:[%s2123_s0 + $0x98] sm:$0xff]   ;;  %v1664_v18 = vld [vmem:[%s2123_s0 + $0x28] sm:$0xff]  }
   0x7   :  { %1558 = vmatpush3.bf16.msra.mxu0 %v1652_v1  ;;  %1644 = vmatpush3.bf16.msra.mxu1 %v1652_v1  ;;  %v1679_v17 = vld [vmem:[%s2123_s0 + $0xa0] sm:$0xff]   ;;  %v1680_v19 = vld [vmem:[%s2123_s0 + $0xa8] sm:$0xff]   ;;  %v1665_v20 = vld [vmem:[%s2123_s0 + $0x30] sm:$0xff]  }
   0x8   :  { %1559 = vmatprep.subr.bf16.mxu0 %v1653_v2  ;;  %1637 = vmatprep.subr.bf16.mxu1 %v1653_v2  ;;  %v1681_v21 = vld [vmem:[%s2123_s0 + $0xb0] sm:$0xff]   ;;  %v1666_v22 = vld [vmem:[%s2123_s0 + $0x38] sm:$0xff]   ;;  %v1667_v24 = vld [vmem:[%s2123_s0 + $0x40] sm:$0xff]  }
   0x9   :  { %v1682_v23 = vld [vmem:[%s2123_s0 + $0xb8] sm:$0xff]   ;;  %v1683_v25 = vld [vmem:[%s2123_s0 + $0xc0] sm:$0xff]   ;;  %v1668_v26 = vld [vmem:[%s2123_s0 + $0x48] sm:$0xff]  }
   0xa   :  { %v1684_v27 = vld [vmem:[%s2123_s0 + $0xc8] sm:$0xff]   ;;  %v1669_v28 = vld [vmem:[%s2123_s0 + $0x50] sm:$0xff]   ;;  %v1670_v30 = vld [vmem:[%s2123_s0 + $0x58] sm:$0xff]  }
   0xb   :  { %1560 = vmatpush3.bf16.msra.mxu0 %v1653_v2  ;;  %1645 = vmatpush3.bf16.msra.mxu1 %v1653_v2  ;;  %v1685_v29 = vld [vmem:[%s2123_s0 + $0xd0] sm:$0xff]   ;;  %v1686_v31 = vld [vmem:[%s2123_s0 + $0xd8] sm:$0xff]   ;;  %v1671_v32 = vld [vmem:[%s2123_s0 + $0x60] sm:$0xff]  }
   0xc   :  { %1561 = vmatprep.subr.bf16.mxu0 %v1654_v3  ;;  %1638 = vmatprep.subr.bf16.mxu1 %v1654_v3  ;;  %v1687_v33 = vld [vmem:[%s2123_s0 + $0xe0] sm:$0xff]   ;;  %v1672_v34 = vld [vmem:[%s2123_s0 + $0x68] sm:$0xff]   ;;  %v1673_v36 = vld [vmem:[%s2123_s0 + $0x70] sm:$0xff]  }
   0xd   :  { %v1688_v35 = vld [vmem:[%s2123_s0 + $0xe8] sm:$0xff]   ;;  %v1689_v37 = vld [vmem:[%s2123_s0 + $0xf0] sm:$0xff]   ;;  %v1674_v38 = vld [vmem:[%s2123_s0 + $0x78] sm:$0xff]  }
   0xe   :  { %v1690_v39 = vld [vmem:[%s2123_s0 + $0xf8] sm:$0xff]  }
   0xf   :  { %1562 = vmatpush3.bf16.msra.mxu0 %v1654_v3  ;;  %1646 = vmatpush3.bf16.msra.mxu1 %v1654_v3 }
  0x10   :  { %1563 = vmatprep.subr.bf16.mxu0 %v1655_v5  ;;  %1639 = vmatprep.subr.bf16.mxu1 %v1655_v5 }
  0x13   :  { %1564 = vmatpush3.bf16.msra.mxu0 %v1655_v5  ;;  %1647 = vmatpush3.bf16.msra.mxu1 %v1655_v5 }
  0x14   :  { %1565 = vmatprep.subr.bf16.mxu0 %v1656_v6  ;;  %1640 = vmatprep.subr.bf16.mxu1 %v1656_v6 }
  0x17   :  { %1566 = vmatpush3.bf16.msra.mxu0 %v1656_v6  ;;  %1648 = vmatpush3.bf16.msra.mxu1 %v1656_v6 }
  0x18   :  { %1567 = vmatprep.subr.bf16.mxu0 %v1657_v7  ;;  %1641 = vmatprep.subr.bf16.mxu1 %v1657_v7 }
  0x1b   :  { %1568 = vmatpush3.bf16.msra.mxu0 %v1657_v7  ;;  %1649 = vmatpush3.bf16.msra.mxu1 %v1657_v7 }
  0x1c   :  { %1569 = vmatprep.subr.bf16.mxu0 %v1658_v8  ;;  %1642 = vmatprep.subr.bf16.mxu1 %v1658_v8 }
  0x1f   :  { %1570 = vmatpush3.bf16.msra.mxu0 %v1658_v8  ;;  %1650 = vmatpush3.bf16.msra.mxu1 %v1658_v8 }
  0x22   :  { %1572 = vmatmul.mubr.bf16.vlgmr.msra.gmra.mrb[0].mxu0 %v1660_v10  ;;  %1604 = vmatmul.mubr.bf16.vlgmr.msra.gmra.mrb[0].mxu1 %v1676_v12 }
  0x23   :  { %1575 = vmatprep.mubr.bf16.mxu0 %v1661_v11  ;;  %1607 = vmatprep.mubr.bf16.mxu1 %v1677_v13 }
  0x2a   :  { %1576 = vmatmul.mubr.bf16.gmra.mrb[4].mxu0 %v1662_v14  ;;  %1608 = vmatmul.mubr.bf16.gmra.mrb[4].mxu1 %v1678_v16 }
  0x2b   :  { %1579 = vmatprep.mubr.bf16.mxu0 %v1663_v15  ;;  %1611 = vmatprep.mubr.bf16.mxu1 %v1679_v17 }
  0x32   :  { %1580 = vmatmul.mubr.bf16.gmra.mrb[8].mxu0 %v1664_v18  ;;  %1612 = vmatmul.mubr.bf16.gmra.mrb[8].mxu1 %v1680_v19 }
  0x33   :  { %1583 = vmatprep.mubr.bf16.mxu0 %v1665_v20  ;;  %1615 = vmatprep.mubr.bf16.mxu1 %v1681_v21 }
  0x3a   :  { %1584 = vmatmul.mubr.bf16.gmra.mrb[12].mxu0 %v1666_v22  ;;  %1616 = vmatmul.mubr.bf16.gmra.mrb[12].mxu1 %v1682_v23 }
  0x3b   :  { %1587 = vmatprep.mubr.bf16.mxu0 %v1667_v24  ;;  %1619 = vmatprep.mubr.bf16.mxu1 %v1683_v25 }
  0x42   :  { %1588 = vmatmul.mubr.bf16.gmra.mrb[16].mxu0 %v1668_v26  ;;  %1620 = vmatmul.mubr.bf16.gmra.mrb[16].mxu1 %v1684_v27 }
  0x43   :  { %1591 = vmatprep.mubr.bf16.mxu0 %v1669_v28  ;;  %1623 = vmatprep.mubr.bf16.mxu1 %v1685_v29 }
  0x4a   :  { %1592 = vmatmul.mubr.bf16.gmra.mrb[20].mxu0 %v1670_v30  ;;  %1624 = vmatmul.mubr.bf16.gmra.mrb[20].mxu1 %v1686_v31 }
  0x4b   :  { %1595 = vmatprep.mubr.bf16.mxu0 %v1671_v32  ;;  %1627 = vmatprep.mubr.bf16.mxu1 %v1687_v33 }
  0x52   :  { %1596 = vmatmul.mubr.bf16.gmra.mrb[24].mxu0 %v1672_v34  ;;  %1628 = vmatmul.mubr.bf16.gmra.mrb[24].mxu1 %v1688_v35 }
  0x53   :  { %1599 = vmatprep.mubr.bf16.mxu0 %v1673_v36  ;;  %1631 = vmatprep.mubr.bf16.mxu1 %v1689_v37 }
  0x5a   :  { %1600 = vmatmul.mubr.bf16.gmra.mrb[28].mxu0 %v1674_v38  ;;  %1632 = vmatmul.mubr.bf16.gmra.mrb[28].mxu1 %v1690_v39 }
  0xf5   :  { %v1573_v40 = vpop.f32.mrb[0].mxu0  ;;  %v1831_v41 = vpop.f32.mrb[0].mxu1 }
  0xf6   :  { %v368_v42 = vpop.f32.mrb[1].mxu0  ;;  %v1833_v43 = vpop.f32.mrb[1].mxu1  ;;  %v694_v55 = vmul.f32 %v1573_v40, %v1573_v40 }
  0xf7   :  { %v1574_v44 = vpop.f32.mrb[2].mxu0  ;;  %v1835_v45 = vpop.f32.mrb[2].mxu1  ;;  %v692_v50 = vmul.f32 %v368_v42, %v368_v42 }
  0xf8   :  { %v1332_v46 = vpack.c.bf16 %v1574_v44, %v1573_v40  ;;  %v371_v47 = vpop.f32.mrb[3].mxu0  ;;  %v1412_v48 = vpack.c.bf16 %v1835_v45, %v1831_v41  ;;  %v1839_v49 = vpop.f32.mrb[3].mxu1  ;;  %v695_v58 = vmul.f32 %v1574_v44, %v1574_v44 }
  0xf9   :  { %v623_v51 = vadd.f32 %v371_v47, %v368_v42  ;;  %v693_v52 = vmul.f32 %v371_v47, %v371_v47  ;;  %v1327_v53 = vpack.c.bf16 %v371_v47, %v368_v42  ;;  %v1407_v54 = vpack.c.bf16 %v1839_v49, %v1833_v43 }
  0xfa   :  { %1484 = vst [vmem:[%s2124_s2 + $0x8] sm:$0xff] %v1332_v46   ;;  %1500 = vst [vmem:[%s2124_s2 + $0x88] sm:$0xff] %v1412_v48  }
  0xfb   :  { %v624_v56 = vadd.f32 %v1573_v40, %v623_v51  ;;  %v756_v57 = vadd.f32 %v693_v52, %v692_v50  ;;  %1328 = vst [vmem:[%s2124_s2] sm:$0xff] %v1327_v53   ;;  %1499 = vst [vmem:[%s2124_s2 + $0x80] sm:$0xff] %v1407_v54  }
  0xfd   :  { %v757_v59 = vadd.f32 %v756_v57, %v694_v55  ;;  %v1577_v60 = vpop.f32.mrb[4].mxu0  ;;  %v625_v61 = vadd.f32 %v1574_v44, %v624_v56  ;;  %v1855_v62 = vpop.f32.mrb[4].mxu1 }
  0xfe   :  { %v384_v63 = vpop.f32.mrb[5].mxu0  ;;  %v1857_v0 = vpop.f32.mrb[5].mxu1  ;;  %v698_v15 = vmul.f32 %v1577_v60, %v1577_v60 }
  0xff   :  { %v626_v1 = vadd.f32 %v625_v61, %v384_v63  ;;  %v696_v2 = vmul.f32 %v384_v63, %v384_v63  ;;  %v758_v3 = vadd.f32 %v757_v59, %v695_v58  ;;  %v1578_v4 = vpop.f32.mrb[6].mxu0  ;;  %v1859_v5 = vpop.f32.mrb[6].mxu1 }
 0x100   :  { %v1342_v6 = vpack.c.bf16 %v1578_v4, %v1577_v60  ;;  %v387_v7 = vpop.f32.mrb[7].mxu0  ;;  %v1422_v8 = vpack.c.bf16 %v1859_v5, %v1855_v62  ;;  %v1863_v9 = vpop.f32.mrb[7].mxu1  ;;  %v699_v18 = vmul.f32 %v1578_v4, %v1578_v4 }
 0x101   :  { %v759_v10 = vadd.f32 %v758_v3, %v696_v2  ;;  %v627_v11 = vadd.f32 %v626_v1, %v387_v7  ;;  %v697_v12 = vmul.f32 %v387_v7, %v387_v7  ;;  %v1337_v13 = vpack.c.bf16 %v387_v7, %v384_v63 }
 0x102   :  { %1486 = vst [vmem:[%s2124_s2 + $0x18] sm:$0xff] %v1342_v6   ;;  %1502 = vst [vmem:[%s2124_s2 + $0x98] sm:$0xff] %v1422_v8   ;;  %v1417_v14 = vpack.c.bf16 %v1863_v9, %v1857_v0 }
 0x103   :  { %v628_v16 = vadd.f32 %v1577_v60, %v627_v11  ;;  %v760_v17 = vadd.f32 %v759_v10, %v697_v12  ;;  %1485 = vst [vmem:[%s2124_s2 + $0x10] sm:$0xff] %v1337_v13  }
 0x104   :  { %1501 = vst [vmem:[%s2124_s2 + $0x90] sm:$0xff] %v1417_v14  }
 0x105   :  { %v761_v19 = vadd.f32 %v760_v17, %v698_v15  ;;  %v1581_v20 = vpop.f32.mrb[8].mxu0  ;;  %v629_v21 = vadd.f32 %v1578_v4, %v628_v16  ;;  %v1879_v22 = vpop.f32.mrb[8].mxu1 }
 0x106   :  { %v400_v23 = vpop.f32.mrb[9].mxu0  ;;  %v1881_v24 = vpop.f32.mrb[9].mxu1  ;;  %v702_v39 = vmul.f32 %v1581_v20, %v1581_v20 }
 0x107   :  { %v630_v25 = vadd.f32 %v629_v21, %v400_v23  ;;  %v700_v26 = vmul.f32 %v400_v23, %v400_v23  ;;  %v762_v27 = vadd.f32 %v761_v19, %v699_v18  ;;  %v1582_v28 = vpop.f32.mrb[10].mxu0  ;;  %v1883_v29 = vpop.f32.mrb[10].mxu1 }
 0x108   :  { %v1352_v30 = vpack.c.bf16 %v1582_v28, %v1581_v20  ;;  %v403_v31 = vpop.f32.mrb[11].mxu0  ;;  %v1432_v32 = vpack.c.bf16 %v1883_v29, %v1879_v22  ;;  %v1887_v33 = vpop.f32.mrb[11].mxu1  ;;  %v703_v44 = vmul.f32 %v1582_v28, %v1582_v28 }
 0x109   :  { %v763_v34 = vadd.f32 %v762_v27, %v700_v26  ;;  %v631_v35 = vadd.f32 %v630_v25, %v403_v31  ;;  %v701_v36 = vmul.f32 %v403_v31, %v403_v31  ;;  %v1347_v37 = vpack.c.bf16 %v403_v31, %v400_v23 }
 0x10a   :  { %1488 = vst [vmem:[%s2124_s2 + $0x28] sm:$0xff] %v1352_v30   ;;  %1504 = vst [vmem:[%s2124_s2 + $0xa8] sm:$0xff] %v1432_v32   ;;  %v1427_v38 = vpack.c.bf16 %v1887_v33, %v1881_v24 }
 0x10b   :  { %v632_v40 = vadd.f32 %v1581_v20, %v631_v35  ;;  %v764_v42 = vadd.f32 %v763_v34, %v701_v36  ;;  %1487 = vst [vmem:[%s2124_s2 + $0x20] sm:$0xff] %v1347_v37  }
 0x10c   :  { %1503 = vst [vmem:[%s2124_s2 + $0xa0] sm:$0xff] %v1427_v38  }
 0x10d   :  { %v765_v46 = vadd.f32 %v764_v42, %v702_v39  ;;  %v1585_v47 = vpop.f32.mrb[12].mxu0  ;;  %v633_v48 = vadd.f32 %v1582_v28, %v632_v40  ;;  %v1903_v50 = vpop.f32.mrb[12].mxu1 }
 0x10e   :  { %v416_v51 = vpop.f32.mrb[13].mxu0  ;;  %v1905_v52 = vpop.f32.mrb[13].mxu1  ;;  %v706_v6 = vmul.f32 %v1585_v47, %v1585_v47 }
 0x10f   :  { %v634_v53 = vadd.f32 %v633_v48, %v416_v51  ;;  %v704_v54 = vmul.f32 %v416_v51, %v416_v51  ;;  %v766_v55 = vadd.f32 %v765_v46, %v703_v44  ;;  %v1586_v56 = vpop.f32.mrb[14].mxu0  ;;  %v1907_v57 = vpop.f32.mrb[14].mxu1 }
 0x110   :  { %v1362_v58 = vpack.c.bf16 %v1586_v56, %v1585_v47  ;;  %v419_v59 = vpop.f32.mrb[15].mxu0  ;;  %v1442_v60 = vpack.c.bf16 %v1907_v57, %v1903_v50  ;;  %v1911_v61 = vpop.f32.mrb[15].mxu1  ;;  %v707_v10 = vmul.f32 %v1586_v56, %v1586_v56 }
 0x111   :  { %v767_v63 = vadd.f32 %v766_v55, %v704_v54  ;;  %v635_v1 = vadd.f32 %v634_v53, %v419_v59  ;;  %v705_v2 = vmul.f32 %v419_v59, %v419_v59  ;;  %v1357_v3 = vpack.c.bf16 %v419_v59, %v416_v51 }
 0x112   :  { %1490 = vst [vmem:[%s2124_s2 + $0x38] sm:$0xff] %v1362_v58   ;;  %1506 = vst [vmem:[%s2124_s2 + $0xb8] sm:$0xff] %v1442_v60   ;;  %v1437_v4 = vpack.c.bf16 %v1911_v61, %v1905_v52 }
 0x113   :  { %v636_v7 = vadd.f32 %v1585_v47, %v635_v1  ;;  %v768_v8 = vadd.f32 %v767_v63, %v705_v2  ;;  %1489 = vst [vmem:[%s2124_s2 + $0x30] sm:$0xff] %v1357_v3  }
 0x114   :  { %1505 = vst [vmem:[%s2124_s2 + $0xb0] sm:$0xff] %v1437_v4  }
 0x115   :  { %v769_v11 = vadd.f32 %v768_v8, %v706_v6  ;;  %v1589_v12 = vpop.f32.mrb[16].mxu0  ;;  %v637_v13 = vadd.f32 %v1586_v56, %v636_v7  ;;  %v1927_v14 = vpop.f32.mrb[16].mxu1 }
 0x116   :  { %v432_v15 = vpop.f32.mrb[17].mxu0  ;;  %v1929_v16 = vpop.f32.mrb[17].mxu1  ;;  %v710_v35 = vmul.f32 %v1589_v12, %v1589_v12 }
 0x117   :  { %v638_v17 = vadd.f32 %v637_v13, %v432_v15  ;;  %v708_v18 = vmul.f32 %v432_v15, %v432_v15  ;;  %v770_v19 = vadd.f32 %v769_v11, %v707_v10  ;;  %v1590_v20 = vpop.f32.mrb[18].mxu0  ;;  %v1931_v21 = vpop.f32.mrb[18].mxu1 }
 0x118   :  { %v1372_v23 = vpack.c.bf16 %v1590_v20, %v1589_v12  ;;  %v435_v25 = vpop.f32.mrb[19].mxu0  ;;  %v1452_v26 = vpack.c.bf16 %v1931_v21, %v1927_v14  ;;  %v1935_v27 = vpop.f32.mrb[19].mxu1  ;;  %v711_v38 = vmul.f32 %v1590_v20, %v1590_v20 }
 0x119   :  { %v771_v28 = vadd.f32 %v770_v19, %v708_v18  ;;  %v639_v30 = vadd.f32 %v638_v17, %v435_v25  ;;  %v709_v31 = vmul.f32 %v435_v25, %v435_v25  ;;  %v1367_v32 = vpack.c.bf16 %v435_v25, %v432_v15 }
 0x11a   :  { %1492 = vst [vmem:[%s2124_s2 + $0x48] sm:$0xff] %v1372_v23   ;;  %1508 = vst [vmem:[%s2124_s2 + $0xc8] sm:$0xff] %v1452_v26   ;;  %v1447_v34 = vpack.c.bf16 %v1935_v27, %v1929_v16 }
 0x11b   :  { %v640_v36 = vadd.f32 %v1589_v12, %v639_v30  ;;  %v772_v37 = vadd.f32 %v771_v28, %v709_v31  ;;  %1491 = vst [vmem:[%s2124_s2 + $0x40] sm:$0xff] %v1367_v32  }
 0x11c   :  { %1507 = vst [vmem:[%s2124_s2 + $0xc0] sm:$0xff] %v1447_v34  }
 0x11d   :  { %v773_v39 = vadd.f32 %v772_v37, %v710_v35  ;;  %v1593_v40 = vpop.f32.mrb[20].mxu0  ;;  %v641_v42 = vadd.f32 %v1590_v20, %v640_v36  ;;  %v1951_v44 = vpop.f32.mrb[20].mxu1 }
 0x11e   :  { %v448_v46 = vpop.f32.mrb[21].mxu0  ;;  %v1953_v47 = vpop.f32.mrb[21].mxu1  ;;  %v714_v6 = vmul.f32 %v1593_v40, %v1593_v40 }
 0x11f   :  { %v642_v48 = vadd.f32 %v641_v42, %v448_v46  ;;  %v712_v51 = vmul.f32 %v448_v46, %v448_v46  ;;  %v774_v53 = vadd.f32 %v773_v39, %v711_v38  ;;  %v1594_v54 = vpop.f32.mrb[22].mxu0  ;;  %v1955_v55 = vpop.f32.mrb[22].mxu1 }
 0x120   :  { %v1382_v56 = vpack.c.bf16 %v1594_v54, %v1593_v40  ;;  %v451_v58 = vpop.f32.mrb[23].mxu0  ;;  %v1462_v59 = vpack.c.bf16 %v1955_v55, %v1951_v44  ;;  %v1959_v60 = vpop.f32.mrb[23].mxu1  ;;  %v715_v10 = vmul.f32 %v1594_v54, %v1594_v54 }
 0x121   :  { %v775_v63 = vadd.f32 %v774_v53, %v712_v51  ;;  %v643_v1 = vadd.f32 %v642_v48, %v451_v58  ;;  %v713_v2 = vmul.f32 %v451_v58, %v451_v58  ;;  %v1377_v3 = vpack.c.bf16 %v451_v58, %v448_v46 }
 0x122   :  { %1494 = vst [vmem:[%s2124_s2 + $0x58] sm:$0xff] %v1382_v56   ;;  %1510 = vst [vmem:[%s2124_s2 + $0xd8] sm:$0xff] %v1462_v59   ;;  %v1457_v4 = vpack.c.bf16 %v1959_v60, %v1953_v47 }
 0x123   :  { %v644_v7 = vadd.f32 %v1593_v40, %v643_v1  ;;  %v776_v8 = vadd.f32 %v775_v63, %v713_v2  ;;  %1493 = vst [vmem:[%s2124_s2 + $0x50] sm:$0xff] %v1377_v3  }
 0x124   :  { %1509 = vst [vmem:[%s2124_s2 + $0xd0] sm:$0xff] %v1457_v4  }
 0x125   :  { %v777_v11 = vadd.f32 %v776_v8, %v714_v6  ;;  %v1597_v12 = vpop.f32.mrb[24].mxu0  ;;  %v645_v13 = vadd.f32 %v1594_v54, %v644_v7  ;;  %v1975_v15 = vpop.f32.mrb[24].mxu1 }
 0x126   :  { %v464_v17 = vpop.f32.mrb[25].mxu0  ;;  %v1977_v18 = vpop.f32.mrb[25].mxu1  ;;  %v718_v39 = vmul.f32 %v1597_v12, %v1597_v12 }
 0x127   :  { %v646_v19 = vadd.f32 %v645_v13, %v464_v17  ;;  %v716_v20 = vmul.f32 %v464_v17, %v464_v17  ;;  %v778_v23 = vadd.f32 %v777_v11, %v715_v10  ;;  %v1598_v25 = vpop.f32.mrb[26].mxu0  ;;  %v1979_v26 = vpop.f32.mrb[26].mxu1 }
 0x128   :  { %v1392_v28 = vpack.c.bf16 %v1598_v25, %v1597_v12  ;;  %v467_v30 = vpop.f32.mrb[27].mxu0  ;;  %v1472_v31 = vpack.c.bf16 %v1979_v26, %v1975_v15  ;;  %v1983_v32 = vpop.f32.mrb[27].mxu1  ;;  %v719_v46 = vmul.f32 %v1598_v25, %v1598_v25 }
 0x129   :  { %v779_v34 = vadd.f32 %v778_v23, %v716_v20  ;;  %v647_v35 = vadd.f32 %v646_v19, %v467_v30  ;;  %v717_v36 = vmul.f32 %v467_v30, %v467_v30  ;;  %v1387_v37 = vpack.c.bf16 %v467_v30, %v464_v17 }
 0x12a   :  { %1496 = vst [vmem:[%s2124_s2 + $0x68] sm:$0xff] %v1392_v28   ;;  %1512 = vst [vmem:[%s2124_s2 + $0xe8] sm:$0xff] %v1472_v31   ;;  %v1467_v38 = vpack.c.bf16 %v1983_v32, %v1977_v18  ;;  %v724_v31 = vmul.f32 %v1833_v43, %v1833_v43 }
 0x12b   :  { %v648_v40 = vadd.f32 %v1597_v12, %v647_v35  ;;  %v780_v42 = vadd.f32 %v779_v34, %v717_v36  ;;  %1495 = vst [vmem:[%s2124_s2 + $0x60] sm:$0xff] %v1387_v37  }
 0x12c   :  { %1511 = vst [vmem:[%s2124_s2 + $0xe0] sm:$0xff] %v1467_v38   ;;  %v725_v38 = vmul.f32 %v1839_v49, %v1839_v49 }
 0x12d   :  { %v781_v48 = vadd.f32 %v780_v42, %v718_v39  ;;  %v1601_v51 = vpop.f32.mrb[28].mxu0  ;;  %v649_v53 = vadd.f32 %v1598_v25, %v648_v40  ;;  %v1999_v54 = vpop.f32.mrb[28].mxu1  ;;  %v726_v39 = vmul.f32 %v1831_v41, %v1831_v41 }
 0x12e   :  { %v480_v56 = vpop.f32.mrb[29].mxu0  ;;  %v2001_v58 = vpop.f32.mrb[29].mxu1  ;;  %v722_v19 = vmul.f32 %v1601_v51, %v1601_v51 }
 0x12f   :  { %v650_v59 = vadd.f32 %v649_v53, %v480_v56  ;;  %v720_v63 = vmul.f32 %v480_v56, %v480_v56  ;;  %v782_v1 = vadd.f32 %v781_v48, %v719_v46  ;;  %v1602_v2 = vpop.f32.mrb[30].mxu0  ;;  %v2003_v3 = vpop.f32.mrb[30].mxu1  ;;  %v727_v46 = vmul.f32 %v1835_v45, %v1835_v45 }
 0x130   :  { %v1402_v4 = vpack.c.bf16 %v1602_v2, %v1601_v51  ;;  %v483_v6 = vpop.f32.mrb[31].mxu0  ;;  %v1482_v7 = vpack.c.bf16 %v2003_v3, %v1999_v54  ;;  %v2007_v8 = vpop.f32.mrb[31].mxu1  ;;  %v723_v25 = vmul.f32 %v1602_v2, %v1602_v2 }
 0x131   :  { %v783_v10 = vadd.f32 %v782_v1, %v720_v63  ;;  %v651_v11 = vadd.f32 %v650_v59, %v483_v6  ;;  %v721_v12 = vmul.f32 %v483_v6, %v483_v6  ;;  %v1397_v13 = vpack.c.bf16 %v483_v6, %v480_v56 }
 0x132   :  { %1498 = vst [vmem:[%s2124_s2 + $0x78] sm:$0xff] %v1402_v4   ;;  %1514 = vst [vmem:[%s2124_s2 + $0xf8] sm:$0xff] %v1482_v7   ;;  %v1477_v17 = vpack.c.bf16 %v2007_v8, %v2001_v58  ;;  %v729_v63 = vmul.f32 %v1863_v9, %v1863_v9 }
 0x133   :  { %v652_v20 = vadd.f32 %v1601_v51, %v651_v11  ;;  %v784_v23 = vadd.f32 %v783_v10, %v721_v12  ;;  %1497 = vst [vmem:[%s2124_s2 + $0x70] sm:$0xff] %v1397_v13   ;;  %v733_v12 = vmul.f32 %v1887_v33, %v1887_v33 }
 0x134   :  { %1513 = vst [vmem:[%s2124_s2 + $0xf0] sm:$0xff] %v1477_v17  }
 0x135   :  { %v785_v28 = vadd.f32 %v784_v23, %v722_v19  ;;  %v653_v30 = vadd.f32 %v1602_v2, %v652_v20 }
 0x137   :  { %v654_v34 = vadd.f32 %v653_v30, %v1833_v43  ;;  %v786_v35 = vadd.f32 %v785_v28, %v723_v25  ;;  %v728_v43 = vmul.f32 %v1857_v0, %v1857_v0  ;;  %v737_v30 = vmul.f32 %v1911_v61, %v1911_v61 }
 0x139   :  { %v787_v36 = vadd.f32 %v786_v35, %v724_v31  ;;  %v655_v37 = vadd.f32 %v654_v34, %v1839_v49 }
 0x13b   :  { %v656_v40 = vadd.f32 %v1831_v41, %v655_v37  ;;  %v788_v42 = vadd.f32 %v787_v36, %v725_v38  ;;  %v730_v41 = vmul.f32 %v1855_v62, %v1855_v62 }
 0x13d   :  { %v789_v48 = vadd.f32 %v788_v42, %v726_v39  ;;  %v657_v51 = vadd.f32 %v1835_v45, %v656_v40  ;;  %v731_v45 = vmul.f32 %v1859_v5, %v1859_v5  ;;  %v741_v40 = vmul.f32 %v1935_v27, %v1935_v27 }
 0x13f   :  { %v658_v53 = vadd.f32 %v657_v51, %v1857_v0  ;;  %v790_v56 = vadd.f32 %v789_v48, %v727_v46  ;;  %v732_v0 = vmul.f32 %v1881_v24, %v1881_v24 }
 0x141   :  { %v791_v59 = vadd.f32 %v790_v56, %v728_v43  ;;  %v659_v49 = vadd.f32 %v658_v53, %v1863_v9 }
 0x143   :  { %v660_v1 = vadd.f32 %v1855_v62, %v659_v49  ;;  %v792_v2 = vadd.f32 %v791_v59, %v729_v63  ;;  %v734_v62 = vmul.f32 %v1879_v22, %v1879_v22  ;;  %v745_v59 = vmul.f32 %v1959_v60, %v1959_v60 }
 0x145   :  { %v793_v4 = vadd.f32 %v792_v2, %v730_v41  ;;  %v661_v6 = vadd.f32 %v1859_v5, %v660_v1  ;;  %v735_v5 = vmul.f32 %v1883_v29, %v1883_v29 }
 0x147   :  { %v662_v7 = vadd.f32 %v661_v6, %v1881_v24  ;;  %v794_v10 = vadd.f32 %v793_v4, %v731_v45  ;;  %v736_v24 = vmul.f32 %v1905_v52, %v1905_v52  ;;  %v749_v6 = vmul.f32 %v1983_v32, %v1983_v32 }
 0x149   :  { %v795_v11 = vadd.f32 %v794_v10, %v732_v0  ;;  %v663_v9 = vadd.f32 %v662_v7, %v1887_v33 }
 0x14b   :  { %v664_v13 = vadd.f32 %v1879_v22, %v663_v9  ;;  %v796_v17 = vadd.f32 %v795_v11, %v733_v12  ;;  %v738_v22 = vmul.f32 %v1903_v50, %v1903_v50 }
 0x14d   :  { %v797_v19 = vadd.f32 %v796_v17, %v734_v62  ;;  %v665_v20 = vadd.f32 %v1883_v29, %v664_v13  ;;  %v739_v29 = vmul.f32 %v1907_v57, %v1907_v57  ;;  %v753_v13 = vmul.f32 %v2007_v8, %v2007_v8 }
 0x14f   :  { %v666_v23 = vadd.f32 %v665_v20, %v1905_v52  ;;  %v798_v25 = vadd.f32 %v797_v19, %v735_v5  ;;  %v740_v52 = vmul.f32 %v1929_v16, %v1929_v16 }
 0x151   :  { %v799_v28 = vadd.f32 %v798_v25, %v736_v24  ;;  %v667_v33 = vadd.f32 %v666_v23, %v1911_v61 }
 0x153   :  { %v668_v31 = vadd.f32 %v1903_v50, %v667_v33  ;;  %v800_v34 = vadd.f32 %v799_v28, %v737_v30  ;;  %v742_v50 = vmul.f32 %v1927_v14, %v1927_v14 }
 0x155   :  { %v801_v35 = vadd.f32 %v800_v34, %v738_v22  ;;  %v669_v36 = vadd.f32 %v1907_v57, %v668_v31  ;;  %v743_v57 = vmul.f32 %v1931_v21, %v1931_v21 }
 0x157   :  { %v670_v37 = vadd.f32 %v669_v36, %v1929_v16  ;;  %v802_v38 = vadd.f32 %v801_v35, %v739_v29  ;;  %v744_v16 = vmul.f32 %v1953_v47, %v1953_v47 }
 0x159   :  { %v803_v39 = vadd.f32 %v802_v38, %v740_v52  ;;  %v671_v61 = vadd.f32 %v670_v37, %v1935_v27 }
 0x15b   :  { %v672_v42 = vadd.f32 %v1927_v14, %v671_v61  ;;  %v804_v46 = vadd.f32 %v803_v39, %v741_v40  ;;  %v746_v14 = vmul.f32 %v1951_v44, %v1951_v44 }
 0x15d   :  { %v805_v48 = vadd.f32 %v804_v46, %v742_v50  ;;  %v673_v51 = vadd.f32 %v1931_v21, %v672_v42  ;;  %v747_v21 = vmul.f32 %v1955_v55, %v1955_v55 }
 0x15f   :  { %v674_v43 = vadd.f32 %v673_v51, %v1953_v47  ;;  %v806_v53 = vadd.f32 %v805_v48, %v743_v57  ;;  %v748_v47 = vmul.f32 %v1977_v18, %v1977_v18 }
 0x161   :  { %v807_v56 = vadd.f32 %v806_v53, %v744_v16  ;;  %v675_v27 = vadd.f32 %v674_v43, %v1959_v60 }
 0x163   :  { %v676_v49 = vadd.f32 %v1951_v44, %v675_v27  ;;  %v808_v63 = vadd.f32 %v807_v56, %v745_v59  ;;  %v750_v44 = vmul.f32 %v1975_v15, %v1975_v15 }
 0x165   :  { %v809_v41 = vadd.f32 %v808_v63, %v746_v14  ;;  %v677_v1 = vadd.f32 %v1955_v55, %v676_v49  ;;  %v751_v55 = vmul.f32 %v1979_v26, %v1979_v26 }
 0x167   :  { %v678_v2 = vadd.f32 %v677_v1, %v1977_v18  ;;  %v810_v45 = vadd.f32 %v809_v41, %v747_v21  ;;  %v752_v18 = vmul.f32 %v2001_v58, %v2001_v58 }
 0x169   :  { %v811_v4 = vadd.f32 %v810_v45, %v748_v47  ;;  %v679_v60 = vadd.f32 %v678_v2, %v1983_v32 }
 0x16b   :  { %v680_v0 = vadd.f32 %v1975_v15, %v679_v60  ;;  %v812_v7 = vadd.f32 %v811_v4, %v749_v6  ;;  %v754_v15 = vmul.f32 %v1999_v54, %v1999_v54 }
 0x16d   :  { %v813_v10 = vadd.f32 %v812_v7, %v750_v44  ;;  %v681_v11 = vadd.f32 %v1979_v26, %v680_v0  ;;  %v755_v26 = vmul.f32 %v2003_v3, %v2003_v3 }
 0x16f   :  { %v682_v9 = vadd.f32 %v681_v11, %v2001_v58  ;;  %v814_v12 = vadd.f32 %v813_v10, %v751_v55 }
 0x171   :  { %v815_v62 = vadd.f32 %v814_v12, %v752_v18  ;;  %v683_v32 = vadd.f32 %v682_v9, %v2007_v8 }
 0x173   :  { %v684_v17 = vadd.f32 %v1999_v54, %v683_v32  ;;  %v816_v5 = vadd.f32 %v815_v62, %v753_v13 }
 0x175   :  { %v685_v19 = vadd.f32 %v2003_v3, %v684_v17  ;;  %v817_v20 = vadd.f32 %v816_v5, %v754_v15 }
 0x177   :  { %v686_v58 = vrot.slane %v685_v19, 4  ;;  %v818_v24 = vadd.f32 %v817_v20, %v755_v26 }
 0x179   :  { %v687_v23 = vadd.f32 %v686_v58, %v685_v19  ;;  %v819_v25 = vrot.slane %v818_v24, 4 }
 0x17b   :  { %v688_v28 = vrot.slane %v687_v23, 2  ;;  %v820_v33 = vadd.f32 %v819_v25, %v818_v24 }
 0x17d   :  { %v689_v30 = vadd.f32 %v688_v28, %v687_v23  ;;  %v821_v8 = vrot.slane %v820_v33, 2 }
 0x17f   :  { %v690_v22 = vrot.slane %v689_v30, 1  ;;  %v822_v31 = vadd.f32 %v821_v8, %v820_v33 }
 0x181   :  { %v823_v34 = vrot.slane %v822_v31, 1  ;;  %v691_v54 = vadd.f32 %v690_v22, %v689_v30 }
 0x183   :  { %v824_v29 = vadd.f32 %v823_v34, %v822_v31 }
 0x185   :  { %v826_v35 = vsel %vm825_vm0, %v691_v54, %v824_v29 }
 0x186   :  { %827 = vst [vmem:[%s2125_s3] sm:$0x3] %v826_v35 }

// kernel: bottleneck_forward.6
= control target key start
LH: loop header
LB: loop body
LE: loop exit
PB: predicated region body
PF: predicated region fallthrough
CT: control target
= control target key end

     0   :  { %vm941_vm0 = vcmask 1040384   ;;  %s2517_s3 = inlined_call_operand.vmem [shape: bf16[128,128], index: 3, kind: input, shape index: {}]   ;;  %s2518_s0 = inlined_call_operand.vmem [shape: bf16[512,128], index: 0, kind: input, shape index: {}]   ;;  %s2519_s1 = inlined_call_operand.vmem [shape: f32[1,128], index: 1, kind: input, shape index: {}]   ;;  %s2520_s2 = inlined_call_operand.vmem [shape: f32[1,128], index: 2, kind: input, shape index: {}]   ;;  %s2521_s4 = inlined_call_operand.vmem [shape: bf16[512,128], index: 4, kind: output, shape index: {0}]   ;;  %s2522_s5 = inlined_call_operand.vmem [shape: f32[1,2,128], index: 5, kind: output, shape index: {1}]  }
   0x1   :  { %v1896_v0 = vld [vmem:[%s2517_s3] sm:$0xff]   ;;  %v1897_v1 = vld [vmem:[%s2517_s3 + $0x8] sm:$0xff]   ;;  %v1898_v2 = vld [vmem:[%s2517_s3 + $0x10] sm:$0xff]  }
   0x2   :  { %1800 = vmatprep.subr.bf16.mxu0 %v1896_v0  ;;  %1880 = vmatprep.subr.bf16.mxu1 %v1896_v0  ;;  %v1899_v3 = vld [vmem:[%s2517_s3 + $0x18] sm:$0xff]   ;;  %v1411_v4 = vld [vmem:[%s2518_s0] sm:$0xff]   ;;  %v1698_v8 = vld [vmem:[%s2518_s0 + $0x8] sm:$0xff]  }
   0x3   :  { %1801 = vmatpush3.bf16.msra.mxu0 %v1896_v0  ;;  %1888 = vmatpush3.bf16.msra.mxu1 %v1896_v0  ;;  %v1952_v5 = vld [vmem:[%s2519_s1] ss:$0 sm:$0xff]  ;;  %v1412_v6 = vunpack.c.l.bf16 %v1411_v4  ;;  %v1413_v7 = vunpack.c.h.bf16 %v1411_v4  ;;  %v1699_v9 = vld [vmem:[%s2518_s0 + $0x10] sm:$0xff]   ;;  %v1416_v14 = vunpack.c.l.bf16 %v1698_v8  ;;  %v1417_v15 = vunpack.c.h.bf16 %v1698_v8  ;;  %v1901_v22 = vld [vmem:[%s2517_s3 + $0x28] sm:$0xff]  }
   0x4   :  { %1802 = vmatprep.subr.bf16.mxu0 %v1897_v1  ;;  %1881 = vmatprep.subr.bf16.mxu1 %v1897_v1  ;;  %v1963_v10 = vld [vmem:[%s2520_s2] ss:$0 sm:$0xff]  ;;  %v1420_v16 = vunpack.c.l.bf16 %v1699_v9  ;;  %v1421_v19 = vunpack.c.h.bf16 %v1699_v9  ;;  %v1700_v26 = vld [vmem:[%s2518_s0 + $0x18] sm:$0xff]   ;;  %v1902_v31 = vld [vmem:[%s2517_s3 + $0x30] sm:$0xff]  }
   0x5   :  { %v155_v11 = vmul.f32 %v1412_v6, %v1952_v5  ;;  %v156_v12 = vmul.f32 %v1413_v7, %v1952_v5  ;;  %v1900_v13 = vld [vmem:[%s2517_s3 + $0x20] sm:$0xff]   ;;  %v157_v23 = vmul.f32 %v1416_v14, %v1952_v5  ;;  %v158_v24 = vmul.f32 %v1417_v15, %v1952_v5  ;;  %v1702_v38 = vld [vmem:[%s2518_s0 + $0x28] sm:$0xff]   ;;  %v1703_v41 = vld [vmem:[%s2518_s0 + $0x30] sm:$0xff]  }
   0x6   :  { %v159_v25 = vmul.f32 %v1420_v16, %v1952_v5  ;;  %v160_v28 = vmul.f32 %v1421_v19, %v1952_v5  ;;  %v1701_v29 = vld [vmem:[%s2518_s0 + $0x20] sm:$0xff]   ;;  %v1424_v30 = vunpack.c.l.bf16 %v1700_v26  ;;  %v1425_v35 = vunpack.c.h.bf16 %v1700_v26  ;;  %v1704_v42 = vld [vmem:[%s2518_s0 + $0x38] sm:$0xff]   ;;  %v1706_v63 = vld [vmem:[%s2518_s0 + $0x48] sm:$0xff]  }
   0x7   :  { %1803 = vmatpush3.bf16.msra.mxu0 %v1897_v1  ;;  %1889 = vmatpush3.bf16.msra.mxu1 %v1897_v1  ;;  %v226_v17 = vadd.f32 %v1963_v10, %v155_v11  ;;  %v227_v18 = vadd.f32 %v1963_v10, %v156_v12  ;;  %v228_v32 = vadd.f32 %v1963_v10, %v157_v23  ;;  %v1428_v37 = vunpack.c.l.bf16 %v1701_v29  ;;  %v1903_v43 = vld [vmem:[%s2517_s3 + $0x38] sm:$0xff]   ;;  %v1705_v48 = vld [vmem:[%s2518_s0 + $0x40] sm:$0xff]   ;;  %v1707_v4 = vld [vmem:[%s2518_s0 + $0x50] sm:$0xff]  }
   0x8   :  { %1804 = vmatprep.subr.bf16.mxu0 %v1898_v2  ;;  %1882 = vmatprep.subr.bf16.mxu1 %v1898_v2  ;;  %v229_v33 = vadd.f32 %v1963_v10, %v158_v24  ;;  %v230_v34 = vadd.f32 %v1963_v10, %v159_v25  ;;  %v231_v36 = vadd.f32 %v1963_v10, %v160_v28  ;;  %v1429_v40 = vunpack.c.h.bf16 %v1701_v29  ;;  %v1708_v23 = vld [vmem:[%s2518_s0 + $0x58] sm:$0xff]  }
   0x9   :  { %v290_v20 = vmax.f32 %v226_v17, 0.0  ;;  %v291_v21 = vmax.f32 %v227_v18, 0.0  ;;  %v161_v39 = vmul.f32 %v1424_v30, %v1952_v5  ;;  %v292_v44 = vmax.f32 %v228_v32, 0.0 }
   0xa   :  { %v293_v45 = vmax.f32 %v229_v33, 0.0  ;;  %v294_v46 = vmax.f32 %v230_v34, 0.0  ;;  %v162_v47 = vmul.f32 %v1425_v35, %v1952_v5  ;;  %v295_v49 = vmax.f32 %v231_v36, 0.0 }
   0xb   :  { %1805 = vmatpush3.bf16.msra.mxu0 %v1898_v2  ;;  %1890 = vmatpush3.bf16.msra.mxu1 %v1898_v2  ;;  %v354_v27 = vpack.c.bf16 %v291_v21, %v290_v20  ;;  %v163_v50 = vmul.f32 %v1428_v37, %v1952_v5  ;;  %v1432_v51 = vunpack.c.l.bf16 %v1702_v38  ;;  %v1433_v52 = vunpack.c.h.bf16 %v1702_v38 }
   0xc   :  { %1806 = vmatprep.subr.bf16.mxu0 %v1899_v3  ;;  %1883 = vmatprep.subr.bf16.mxu1 %v1899_v3  ;;  %v1436_v53 = vunpack.c.l.bf16 %v1703_v41  ;;  %v1437_v54 = vunpack.c.h.bf16 %v1703_v41  ;;  %v1440_v55 = vunpack.c.l.bf16 %v1704_v42  ;;  %v1441_v56 = vunpack.c.h.bf16 %v1704_v42 }
   0xd   :  { %1816 = vmatprep.mubr.bf16.mxu0 %v354_v27  ;;  %v164_v57 = vmul.f32 %v1429_v40, %v1952_v5  ;;  %v1444_v58 = vunpack.c.l.bf16 %v1705_v48  ;;  %v1445_v59 = vunpack.c.h.bf16 %v1705_v48  ;;  %v355_v60 = vpack.c.bf16 %v293_v45, %v292_v44  ;;  %v1713_v44 = vld [vmem:[%s2518_s0 + $0x80] sm:$0xff]  }
   0xe   :  { %v232_v61 = vadd.f32 %v1963_v10, %v161_v39  ;;  %v233_v62 = vadd.f32 %v1963_v10, %v162_v47  ;;  %v356_v0 = vpack.c.bf16 %v295_v49, %v294_v46  ;;  %v234_v1 = vadd.f32 %v1963_v10, %v163_v50 }
   0xf   :  { %1807 = vmatpush3.bf16.msra.mxu0 %v1899_v3  ;;  %1891 = vmatpush3.bf16.msra.mxu1 %v1899_v3  ;;  %v165_v2 = vmul.f32 %v1432_v51, %v1952_v5  ;;  %v166_v3 = vmul.f32 %v1433_v52, %v1952_v5  ;;  %v167_v6 = vmul.f32 %v1436_v53, %v1952_v5  ;;  %v1448_v14 = vunpack.c.l.bf16 %v1706_v63  ;;  %v2056_v52 = vld [vmem:[%s2518_s0 + $0x60] sm:$0xff]  }
  0x10   :  { %1808 = vmatprep.subr.bf16.mxu0 %v1900_v13  ;;  %1884 = vmatprep.subr.bf16.mxu1 %v1900_v13  ;;  %v168_v7 = vmul.f32 %v1437_v54, %v1952_v5  ;;  %v169_v8 = vmul.f32 %v1440_v55, %v1952_v5  ;;  %v170_v9 = vmul.f32 %v1441_v56, %v1952_v5  ;;  %v296_v15 = vmax.f32 %v232_v61, 0.0 }
  0x11   :  { %v235_v11 = vadd.f32 %v1963_v10, %v164_v57  ;;  %v171_v12 = vmul.f32 %v1444_v58, %v1952_v5  ;;  %v297_v16 = vmax.f32 %v233_v62, 0.0  ;;  %v1449_v17 = vunpack.c.h.bf16 %v1706_v63 }
  0x12   :  { %v1452_v18 = vunpack.c.l.bf16 %v1707_v4  ;;  %v298_v19 = vmax.f32 %v234_v1, 0.0  ;;  %v236_v20 = vadd.f32 %v1963_v10, %v165_v2  ;;  %v237_v21 = vadd.f32 %v1963_v10, %v166_v3 }
  0x13   :  { %1809 = vmatpush3.bf16.msra.mxu0 %v1900_v13  ;;  %1892 = vmatpush3.bf16.msra.mxu1 %v1900_v13  ;;  %v172_v13 = vmul.f32 %v1445_v59, %v1952_v5  ;;  %v238_v24 = vadd.f32 %v1963_v10, %v167_v6  ;;  %v239_v25 = vadd.f32 %v1963_v10, %v168_v7  ;;  %v299_v28 = vmax.f32 %v235_v11, 0.0  ;;  %v1714_v59 = vld [vmem:[%s2518_s0 + $0x88] sm:$0xff]   ;;  %v1716_v11 = vld [vmem:[%s2518_s0 + $0x98] sm:$0xff]  }
  0x14   :  { %1810 = vmatprep.subr.bf16.mxu0 %v1901_v22  ;;  %1885 = vmatprep.subr.bf16.mxu1 %v1901_v22  ;;  %v240_v26 = vadd.f32 %v1963_v10, %v169_v8  ;;  %v241_v27 = vadd.f32 %v1963_v10, %v170_v9  ;;  %v242_v29 = vadd.f32 %v1963_v10, %v171_v12  ;;  %v1456_v35 = vunpack.c.l.bf16 %v1708_v23 }
  0x15   :  { %v243_v30 = vadd.f32 %v1963_v10, %v172_v13  ;;  %v357_v32 = vpack.c.bf16 %v297_v16, %v296_v15  ;;  %v174_v33 = vmul.f32 %v1449_v17, %v1952_v5  ;;  %v175_v34 = vmul.f32 %v1452_v18, %v1952_v5 }
  0x16   :  { %v300_v36 = vmax.f32 %v236_v20, 0.0  ;;  %v301_v37 = vmax.f32 %v237_v21, 0.0  ;;  %v1457_v39 = vunpack.c.h.bf16 %v1708_v23  ;;  %v302_v40 = vmax.f32 %v238_v24, 0.0  ;;  %v1717_v24 = vld [vmem:[%s2518_s0 + $0xa0] sm:$0xff]  }
  0x17   :  { %1811 = vmatpush3.bf16.msra.mxu0 %v1901_v22  ;;  %1893 = vmatpush3.bf16.msra.mxu1 %v1901_v22  ;;  %v1453_v22 = vunpack.c.h.bf16 %v1707_v4  ;;  %v303_v41 = vmax.f32 %v239_v25, 0.0  ;;  %v304_v42 = vmax.f32 %v240_v26, 0.0  ;;  %v358_v45 = vpack.c.bf16 %v299_v28, %v298_v19 }
  0x18   :  { %1812 = vmatprep.subr.bf16.mxu0 %v1902_v31  ;;  %1886 = vmatprep.subr.bf16.mxu1 %v1902_v31  ;;  %v306_v46 = vmax.f32 %v242_v29, 0.0  ;;  %v307_v47 = vmax.f32 %v243_v30, 0.0  ;;  %v245_v49 = vadd.f32 %v1963_v10, %v174_v33  ;;  %v2050_v50 = vadd.f32 %v1963_v10, %v175_v34  ;;  %v1718_v33 = vld [vmem:[%s2518_s0 + $0xa8] sm:$0xff]  }
  0x19   :  { %v176_v38 = vmul.f32 %v1453_v22, %v1952_v5  ;;  %v177_v51 = vmul.f32 %v1456_v35, %v1952_v5  ;;  %v178_v54 = vmul.f32 %v1457_v39, %v1952_v5  ;;  %v1476_v55 = vunpack.c.l.bf16 %v1713_v44 }
  0x1a   :  { %v359_v56 = vpack.c.bf16 %v301_v37, %v300_v36  ;;  %v360_v57 = vpack.c.bf16 %v303_v41, %v302_v40  ;;  %v1460_v62 = vunpack.c.l.bf16 %v2056_v52  ;;  %v1477_v63 = vunpack.c.h.bf16 %v1713_v44 }
  0x1b   :  { %1813 = vmatpush3.bf16.msra.mxu0 %v1902_v31  ;;  %1894 = vmatpush3.bf16.msra.mxu1 %v1902_v31  ;;  %v173_v31 = vmul.f32 %v1448_v14, %v1952_v5  ;;  %v2059_v53 = vadd.f32 %v1963_v10, %v176_v38  ;;  %v309_v1 = vmax.f32 %v245_v49, 0.0  ;;  %v310_v2 = vmax.f32 %v2050_v50, 0.0 }
  0x1c   :  { %1814 = vmatprep.subr.bf16.mxu0 %v1903_v43  ;;  %1887 = vmatprep.subr.bf16.mxu1 %v1903_v43  ;;  %v2075_v3 = vadd.f32 %v1963_v10, %v177_v51  ;;  %v187_v4 = vmul.f32 %v1476_v55, %v1952_v5  ;;  %v2080_v7 = vadd.f32 %v1963_v10, %v178_v54  ;;  %v1480_v9 = vunpack.c.l.bf16 %v1714_v59 }
  0x1d   :  { %v244_v48 = vadd.f32 %v1963_v10, %v173_v31  ;;  %v311_v6 = vmax.f32 %v2059_v53, 0.0  ;;  %v188_v8 = vmul.f32 %v1477_v63, %v1952_v5  ;;  %v1461_v12 = vunpack.c.h.bf16 %v2056_v52 }
  0x1e   :  { %v258_v13 = vadd.f32 %v1963_v10, %v187_v4  ;;  %v1481_v14 = vunpack.c.h.bf16 %v1714_v59  ;;  %v2089_v16 = vmul.f32 %v1460_v62, %v1952_v5  ;;  %v189_v18 = vmul.f32 %v1480_v9, %v1952_v5 }
  0x1f   :  { %1815 = vmatpush3.bf16.msra.mxu0 %v1903_v43  ;;  %1895 = vmatpush3.bf16.msra.mxu1 %v1903_v43  ;;  %v305_v43 = vmax.f32 %v241_v27, 0.0  ;;  %v308_v61 = vmax.f32 %v244_v48, 0.0  ;;  %v259_v17 = vadd.f32 %v1963_v10, %v188_v8  ;;  %v1488_v23 = vunpack.c.l.bf16 %v1716_v11 }
  0x20   :  { %v322_v20 = vmax.f32 %v258_v13, 0.0  ;;  %v190_v21 = vmul.f32 %v1481_v14, %v1952_v5  ;;  %v260_v27 = vadd.f32 %v1963_v10, %v189_v18  ;;  %v1489_v31 = vunpack.c.h.bf16 %v1716_v11  ;;  %v1721_v18 = vld [vmem:[%s2518_s0 + $0xc0] sm:$0xff]  }
  0x21   :  { %v2062_v58 = vpack.c.bf16 %v305_v43, %v304_v42  ;;  %v2098_v25 = vpack.c.bf16 %v309_v1, %v308_v61  ;;  %v323_v26 = vmax.f32 %v259_v17, 0.0  ;;  %v1492_v37 = vunpack.c.l.bf16 %v1717_v24  ;;  %v1720_v1 = vld [vmem:[%s2518_s0 + $0xb8] sm:$0xff]  }
  0x22   :  { %1817 = vmatmul.mubr.bf16.vlgmr.msra.gmra.mrb[0].mxu0 %v355_v60  ;;  %v2067_v60 = vpack.c.bf16 %v307_v47, %v306_v46  ;;  %v261_v29 = vadd.f32 %v1963_v10, %v190_v21  ;;  %v324_v35 = vmax.f32 %v260_v27, 0.0  ;;  %v194_v40 = vmul.f32 %v1489_v31, %v1952_v5  ;;  %v1719_v46 = vld [vmem:[%s2518_s0 + $0xb0] sm:$0xff]   ;;  %v1710_v47 = vld [vmem:[%s2518_s0 + $0x68] sm:$0xff]  }
  0x23   :  { %1820 = vmatprep.mubr.bf16.mxu0 %v356_v0  ;;  %v1715_v0 = vld [vmem:[%s2518_s0 + $0x90] sm:$0xff]   ;;  %v370_v34 = vpack.c.bf16 %v323_v26, %v322_v20  ;;  %v1493_v43 = vunpack.c.h.bf16 %v1717_v24  ;;  %v195_v44 = vmul.f32 %v1492_v37, %v1952_v5  ;;  %v1497_v54 = vunpack.c.h.bf16 %v1718_v33 }
  0x24   :  { %v1484_v15 = vunpack.c.l.bf16 %v1715_v0  ;;  %v1485_v19 = vunpack.c.h.bf16 %v1715_v0  ;;  %v325_v38 = vmax.f32 %v261_v29, 0.0  ;;  %v265_v49 = vadd.f32 %v1963_v10, %v194_v40  ;;  %v1723_v40 = vld [vmem:[%s2518_s0 + $0xd0] sm:$0xff]  }
  0x25   :  { %1848 = vmatprep.mubr.bf16.mxu1 %v370_v34  ;;  %v198_v62 = vmul.f32 %v1497_v54, %v1952_v5  ;;  %v1500_v63 = vunpack.c.l.bf16 %v1719_v46  ;;  %v1501_v0 = vunpack.c.h.bf16 %v1719_v46  ;;  %v312_v4 = vmax.f32 %v2075_v3, 0.0 }
  0x26   :  { %v191_v22 = vmul.f32 %v1484_v15, %v1952_v5  ;;  %v192_v28 = vmul.f32 %v1485_v19, %v1952_v5  ;;  %v371_v48 = vpack.c.bf16 %v325_v38, %v324_v35  ;;  %v329_v61 = vmax.f32 %v265_v49, 0.0 }
  0x27   :  { %v1464_v8 = vunpack.c.l.bf16 %v1710_v47  ;;  %v313_v13 = vmax.f32 %v2080_v7, 0.0  ;;  %v1465_v14 = vunpack.c.h.bf16 %v1710_v47  ;;  %v199_v15 = vmul.f32 %v1500_v63, %v1952_v5 }
  0x28   :  { %v262_v30 = vadd.f32 %v1963_v10, %v191_v22  ;;  %v263_v36 = vadd.f32 %v1963_v10, %v192_v28  ;;  %1849 = vmatmul.mubr.bf16.vlgmr.msra.gmra.mrb[0].mxu1 %v371_v48  ;;  %v200_v17 = vmul.f32 %v1501_v0, %v1952_v5  ;;  %v180_v3 = vmul.f32 %v1461_v12, %v1952_v5 }
  0x29   :  { %v1504_v19 = vunpack.c.l.bf16 %v1720_v1  ;;  %v1505_v20 = vunpack.c.h.bf16 %v1720_v1  ;;  %v270_v24 = vadd.f32 %v1963_v10, %v199_v15  ;;  %v1508_v27 = vunpack.c.l.bf16 %v1721_v18  ;;  %v1724_v15 = vld [vmem:[%s2518_s0 + $0xd8] sm:$0xff]  }
  0x2a   :  { %1821 = vmatmul.mubr.bf16.gmra.mrb[4].mxu0 %v357_v32  ;;  %v193_v32 = vmul.f32 %v1488_v23, %v1952_v5  ;;  %v326_v39 = vmax.f32 %v262_v30, 0.0  ;;  %v327_v42 = vmax.f32 %v263_v36, 0.0  ;;  %v269_v23 = vadd.f32 %v1963_v10, %v198_v62 }
  0x2b   :  { %1824 = vmatprep.mubr.bf16.mxu0 %v358_v45  ;;  %v1496_v45 = vunpack.c.l.bf16 %v1718_v33  ;;  %v1509_v52 = vunpack.c.h.bf16 %v1721_v18  ;;  %v364_v12 = vpack.c.bf16 %v311_v6, %v310_v2  ;;  %v250_v28 = vadd.f32 %v1963_v10, %v2089_v16  ;;  %v1712_v33 = vld [vmem:[%s2518_s0 + $0x78] sm:$0xff]   ;;  %v1722_v16 = vld [vmem:[%s2518_s0 + $0xc8] sm:$0xff]  }
  0x2c   :  { %v264_v41 = vadd.f32 %v1963_v10, %v193_v32  ;;  %v372_v55 = vpack.c.bf16 %v327_v42, %v326_v39  ;;  %v251_v31 = vadd.f32 %v1963_v10, %v180_v3  ;;  %v181_v32 = vmul.f32 %v1464_v8, %v1952_v5 }
  0x2d   :  { %v197_v59 = vmul.f32 %v1496_v45, %v1952_v5  ;;  %v201_v34 = vmul.f32 %v1504_v19, %v1952_v5  ;;  %v202_v50 = vmul.f32 %v1505_v20, %v1952_v5  ;;  %v365_v35 = vpack.c.bf16 %v313_v13, %v312_v4 }
  0x2e   :  { %v328_v51 = vmax.f32 %v264_v41, 0.0  ;;  %1852 = vmatprep.mubr.bf16.mxu1 %v372_v55  ;;  %v182_v53 = vmul.f32 %v1465_v14, %v1952_v5  ;;  %v333_v6 = vmax.f32 %v269_v23, 0.0  ;;  %v334_v36 = vmax.f32 %v270_v24, 0.0 }
  0x2f   :  { %v268_v22 = vadd.f32 %v1963_v10, %v197_v59  ;;  %v203_v38 = vmul.f32 %v1508_v27, %v1952_v5  ;;  %v204_v39 = vmul.f32 %v1509_v52, %v1952_v5  ;;  %v314_v41 = vmax.f32 %v250_v28, 0.0 }
  0x30   :  { %v373_v21 = vpack.c.bf16 %v329_v61, %v328_v51  ;;  %v315_v45 = vmax.f32 %v251_v31, 0.0  ;;  %v272_v46 = vadd.f32 %v1963_v10, %v201_v34  ;;  %v273_v47 = vadd.f32 %v1963_v10, %v202_v50 }
  0x31   :  { %v332_v2 = vmax.f32 %v268_v22, 0.0  ;;  %v1512_v48 = vunpack.c.l.bf16 %v1722_v16  ;;  %v1513_v51 = vunpack.c.h.bf16 %v1722_v16  ;;  %v1516_v54 = vunpack.c.l.bf16 %v1723_v40 }
  0x32   :  { %1825 = vmatmul.mubr.bf16.gmra.mrb[8].mxu0 %v359_v56  ;;  %v196_v56 = vmul.f32 %v1493_v43, %v1952_v5  ;;  %1853 = vmatmul.mubr.bf16.gmra.mrb[4].mxu1 %v373_v21  ;;  %v1517_v55 = vunpack.c.h.bf16 %v1723_v40  ;;  %v275_v59 = vadd.f32 %v1963_v10, %v204_v39  ;;  %v253_v61 = vadd.f32 %v1963_v10, %v182_v53  ;;  %v1725_v21 = vld [vmem:[%s2518_s0 + $0xe0] sm:$0xff]  }
  0x33   :  { %1828 = vmatprep.mubr.bf16.mxu0 %v360_v57  ;;  %v266_v57 = vadd.f32 %v1963_v10, %v195_v44  ;;  %v1472_v44 = vunpack.c.l.bf16 %v1712_v33  ;;  %v375_v49 = vpack.c.bf16 %v333_v6, %v332_v2  ;;  %v1473_v0 = vunpack.c.h.bf16 %v1712_v33 }
  0x34   :  { %v267_v9 = vadd.f32 %v1963_v10, %v196_v56  ;;  %v252_v56 = vadd.f32 %v1963_v10, %v181_v32  ;;  %v366_v1 = vpack.c.bf16 %v315_v45, %v314_v41  ;;  %v336_v4 = vmax.f32 %v272_v46, 0.0  ;;  %v1727_v41 = vld [vmem:[%s2518_s0 + $0xf0] sm:$0xff]  }
  0x35   :  { %v330_v11 = vmax.f32 %v266_v57, 0.0  ;;  %v274_v57 = vadd.f32 %v1963_v10, %v203_v38  ;;  %v337_v8 = vmax.f32 %v273_v47, 0.0  ;;  %v207_v13 = vmul.f32 %v1516_v54, %v1952_v5 }
  0x36   :  { %v331_v7 = vmax.f32 %v267_v9, 0.0  ;;  %v205_v9 = vmul.f32 %v1512_v48, %v1952_v5  ;;  %v208_v14 = vmul.f32 %v1517_v55, %v1952_v5  ;;  %v339_v3 = vmax.f32 %v275_v59, 0.0 }
  0x37   :  { %v338_v18 = vmax.f32 %v274_v57, 0.0  ;;  %v186_v20 = vmul.f32 %v1473_v0, %v1952_v5  ;;  %v377_v23 = vpack.c.bf16 %v337_v8, %v336_v4  ;;  %v278_v27 = vadd.f32 %v1963_v10, %v207_v13 }
  0x38   :  { %v374_v26 = vpack.c.bf16 %v331_v7, %v330_v11  ;;  %v206_v11 = vmul.f32 %v1513_v51, %v1952_v5  ;;  %v317_v7 = vmax.f32 %v253_v61, 0.0  ;;  %v276_v24 = vadd.f32 %v1963_v10, %v205_v9 }
  0x39   :  { %v279_v52 = vadd.f32 %v1963_v10, %v208_v14  ;;  %v378_v28 = vpack.c.bf16 %v339_v3, %v338_v18  ;;  %v257_v33 = vadd.f32 %v1963_v10, %v186_v20  ;;  %v342_v2 = vmax.f32 %v278_v27, 0.0 }
  0x3a   :  { %1829 = vmatmul.mubr.bf16.gmra.mrb[12].mxu0 %v2062_v58  ;;  %v1711_v58 = vld [vmem:[%s2518_s0 + $0x70] sm:$0xff]   ;;  %1856 = vmatprep.mubr.bf16.mxu1 %v374_v26  ;;  %v1520_v26 = vunpack.c.l.bf16 %v1724_v15  ;;  %v340_v50 = vmax.f32 %v276_v24, 0.0  ;;  %v1532_v51 = vunpack.c.l.bf16 %v1727_v41  ;;  %v1533_v54 = vunpack.c.h.bf16 %v1727_v41 }
  0x3b   :  { %1832 = vmatprep.mubr.bf16.mxu0 %v2067_v60  ;;  %v271_v60 = vadd.f32 %v1963_v10, %v200_v17  ;;  %v1468_v29 = vunpack.c.l.bf16 %v1711_v58  ;;  %v1469_v30 = vunpack.c.h.bf16 %v1711_v58  ;;  %1857 = vmatmul.mubr.bf16.gmra.mrb[8].mxu1 %v375_v49  ;;  %v185_v17 = vmul.f32 %v1472_v44, %v1952_v5 }
  0x3c   :  { %v316_v58 = vmax.f32 %v252_v56, 0.0  ;;  %v343_v6 = vmax.f32 %v279_v52, 0.0  ;;  %v321_v40 = vmax.f32 %v257_v33, 0.0  ;;  %v216_v0 = vmul.f32 %v1533_v54, %v1952_v5 }
  0x3d   :  { %v335_v37 = vmax.f32 %v271_v60, 0.0  ;;  %v183_v42 = vmul.f32 %v1468_v29, %v1952_v5  ;;  %v184_v43 = vmul.f32 %v1469_v30, %v1952_v5  ;;  %v277_v60 = vadd.f32 %v1963_v10, %v206_v11 }
  0x3e   :  { %v1524_v29 = vunpack.c.l.bf16 %v1725_v21  ;;  %v1525_v30 = vunpack.c.h.bf16 %v1725_v21  ;;  %v367_v31 = vpack.c.bf16 %v317_v7, %v316_v58  ;;  %v256_v32 = vadd.f32 %v1963_v10, %v185_v17 }
  0x3f   :  { %v254_v62 = vadd.f32 %v1963_v10, %v183_v42  ;;  %v255_v63 = vadd.f32 %v1963_v10, %v184_v43  ;;  %v341_v53 = vmax.f32 %v277_v60, 0.0  ;;  %v380_v45 = vpack.c.bf16 %v343_v6, %v342_v2 }
  0x40   :  { %v212_v38 = vmul.f32 %v1525_v30, %v1952_v5  ;;  %v320_v39 = vmax.f32 %v256_v32, 0.0  ;;  %v287_v17 = vadd.f32 %v1963_v10, %v216_v0 }
  0x41   :  { %v318_v19 = vmax.f32 %v254_v62, 0.0  ;;  %v319_v22 = vmax.f32 %v255_v63, 0.0  ;;  %v379_v44 = vpack.c.bf16 %v341_v53, %v340_v50  ;;  %v215_v63 = vmul.f32 %v1532_v51, %v1952_v5 }
  0x42   :  { %1833 = vmatmul.mubr.bf16.gmra.mrb[16].mxu0 %v2098_v25  ;;  %v376_v25 = vpack.c.bf16 %v335_v37, %v334_v36  ;;  %v1726_v36 = vld [vmem:[%s2518_s0 + $0xe8] sm:$0xff]   ;;  %v211_v37 = vmul.f32 %v1524_v29, %v1952_v5  ;;  %v283_v49 = vadd.f32 %v1963_v10, %v212_v38  ;;  %v369_v55 = vpack.c.bf16 %v321_v40, %v320_v39 }
  0x43   :  { %1836 = vmatprep.mubr.bf16.mxu0 %v364_v12  ;;  %v1521_v12 = vunpack.c.h.bf16 %v1724_v15  ;;  %v368_v34 = vpack.c.bf16 %v319_v22, %v318_v19  ;;  %v1528_v43 = vunpack.c.l.bf16 %v1726_v36  ;;  %v1529_v47 = vunpack.c.h.bf16 %v1726_v36 }
  0x44   :  { %1860 = vmatprep.mubr.bf16.mxu1 %v376_v25  ;;  %v282_v48 = vadd.f32 %v1963_v10, %v211_v37  ;;  %v347_v62 = vmax.f32 %v283_v49, 0.0  ;;  %v286_v15 = vadd.f32 %v1963_v10, %v215_v63  ;;  %v351_v20 = vmax.f32 %v287_v17, 0.0 }
  0x45   :  { %1861 = vmatmul.mubr.bf16.gmra.mrb[12].mxu1 %v377_v23  ;;  %v210_v16 = vmul.f32 %v1521_v12, %v1952_v5  ;;  %v213_v56 = vmul.f32 %v1528_v43, %v1952_v5  ;;  %v214_v59 = vmul.f32 %v1529_v47, %v1952_v5 }
  0x46   :  { %1864 = vmatprep.mubr.bf16.mxu1 %v378_v28  ;;  %v346_v61 = vmax.f32 %v282_v48, 0.0  ;;  %v350_v19 = vmax.f32 %v286_v15, 0.0 }
  0x47   :  { %v281_v46 = vadd.f32 %v1963_v10, %v210_v16  ;;  %v284_v4 = vadd.f32 %v1963_v10, %v213_v56  ;;  %v285_v9 = vadd.f32 %v1963_v10, %v214_v59 }
  0x48   :  { %v382_v14 = vpack.c.bf16 %v347_v62, %v346_v61  ;;  %v384_v24 = vpack.c.bf16 %v351_v20, %v350_v19 }
  0x49   :  { %v345_v57 = vmax.f32 %v281_v46, 0.0  ;;  %v348_v18 = vmax.f32 %v284_v4, 0.0  ;;  %v349_v3 = vmax.f32 %v285_v9, 0.0 }
  0x4a   :  { %1837 = vmatmul.mubr.bf16.gmra.mrb[20].mxu0 %v365_v35  ;;  %v209_v35 = vmul.f32 %v1520_v26, %v1952_v5 }
  0x4b   :  { %1840 = vmatprep.mubr.bf16.mxu0 %v366_v1  ;;  %v1728_v1 = vld [vmem:[%s2518_s0 + $0xf8] sm:$0xff]   ;;  %v383_v21 = vpack.c.bf16 %v349_v3, %v348_v18 }
  0x4c   :  { %v280_v42 = vadd.f32 %v1963_v10, %v209_v35  ;;  %v1536_v11 = vunpack.c.l.bf16 %v1728_v1  ;;  %v1537_v13 = vunpack.c.h.bf16 %v1728_v1 }
  0x4d   :  { %1865 = vmatmul.mubr.bf16.gmra.mrb[16].mxu1 %v379_v44 }
  0x4e   :  { %v344_v25 = vmax.f32 %v280_v42, 0.0  ;;  %1868 = vmatprep.mubr.bf16.mxu1 %v380_v45  ;;  %v217_v58 = vmul.f32 %v1536_v11, %v1952_v5  ;;  %v218_v7 = vmul.f32 %v1537_v13, %v1952_v5 }
  0x50   :  { %v381_v8 = vpack.c.bf16 %v345_v57, %v344_v25  ;;  %v288_v22 = vadd.f32 %v1963_v10, %v217_v58  ;;  %v289_v23 = vadd.f32 %v1963_v10, %v218_v7 }
  0x52   :  { %1841 = vmatmul.mubr.bf16.gmra.mrb[24].mxu0 %v367_v31  ;;  %v352_v26 = vmax.f32 %v288_v22, 0.0  ;;  %v353_v60 = vmax.f32 %v289_v23, 0.0 }
  0x53   :  { %1844 = vmatprep.mubr.bf16.mxu0 %v368_v34 }
  0x54   :  { %v385_v27 = vpack.c.bf16 %v353_v60, %v352_v26 }
  0x55   :  { %1869 = vmatmul.mubr.bf16.gmra.mrb[20].mxu1 %v381_v8 }
  0x56   :  { %1872 = vmatprep.mubr.bf16.mxu1 %v382_v14 }
  0x5a   :  { %1845 = vmatmul.mubr.bf16.gmra.mrb[28].mxu0 %v369_v55 }
  0x5d   :  { %1873 = vmatmul.mubr.bf16.gmra.mrb[24].mxu1 %v383_v21 }
  0x5e   :  { %1876 = vmatprep.mubr.bf16.mxu1 %v384_v24 }
  0x65   :  { %1877 = vmatmul.mubr.bf16.gmra.mrb[28].mxu1 %v385_v27 }
  0xf5   :  { %v1818_v52 = vpop.f32.mrb[0].mxu0 }
  0xf6   :  { %v484_v12 = vpop.f32.mrb[1].mxu0  ;;  %v810_v10 = vmul.f32 %v1818_v52, %v1818_v52 }
  0xf7   :  { %v1819_v28 = vpop.f32.mrb[2].mxu0  ;;  %v808_v30 = vmul.f32 %v484_v12, %v484_v12 }
  0xf8   :  { %v1546_v29 = vpack.c.bf16 %v1819_v28, %v1818_v52  ;;  %v487_v5 = vpop.f32.mrb[3].mxu0  ;;  %v811_v35 = vmul.f32 %v1819_v28, %v1819_v28 }
  0xf9   :  { %v739_v31 = vadd.f32 %v487_v5, %v484_v12  ;;  %v809_v32 = vmul.f32 %v487_v5, %v487_v5  ;;  %v1541_v33 = vpack.c.bf16 %v487_v5, %v484_v12 }
  0xfa   :  { %1729 = vst [vmem:[%s2521_s4 + $0x8] sm:$0xff] %v1546_v29  }
  0xfb   :  { %v740_v34 = vadd.f32 %v1818_v52, %v739_v31  ;;  %v872_v50 = vadd.f32 %v809_v32, %v808_v30  ;;  %1542 = vst [vmem:[%s2521_s4] sm:$0xff] %v1541_v33   ;;  %v2244_v14 = vpop.f32.mrb[0].mxu1 }
  0xfc   :  { %v2246_v15 = vpop.f32.mrb[1].mxu1 }
  0xfd   :  { %v873_v53 = vadd.f32 %v872_v50, %v810_v10  ;;  %v1822_v2 = vpop.f32.mrb[4].mxu0  ;;  %v741_v6 = vadd.f32 %v1819_v28, %v740_v34  ;;  %v2248_v7 = vpop.f32.mrb[2].mxu1 }
  0xfe   :  { %v500_v16 = vpop.f32.mrb[5].mxu0  ;;  %v814_v46 = vmul.f32 %v1822_v2, %v1822_v2  ;;  %v1626_v20 = vpack.c.bf16 %v2248_v7, %v2244_v14  ;;  %v2252_v21 = vpop.f32.mrb[3].mxu1 }
  0xff   :  { %v742_v36 = vadd.f32 %v741_v6, %v500_v16  ;;  %v812_v37 = vmul.f32 %v500_v16, %v500_v16  ;;  %v874_v38 = vadd.f32 %v873_v53, %v811_v35  ;;  %v1823_v39 = vpop.f32.mrb[6].mxu0  ;;  %v1621_v52 = vpack.c.bf16 %v2252_v21, %v2246_v15 }
 0x100   :  { %v1556_v40 = vpack.c.bf16 %v1823_v39, %v1822_v2  ;;  %v503_v41 = vpop.f32.mrb[7].mxu0  ;;  %v815_v49 = vmul.f32 %v1823_v39, %v1823_v39  ;;  %1745 = vst [vmem:[%s2521_s4 + $0x88] sm:$0xff] %v1626_v20  }
 0x101   :  { %v875_v42 = vadd.f32 %v874_v38, %v812_v37  ;;  %v743_v43 = vadd.f32 %v742_v36, %v503_v41  ;;  %v813_v44 = vmul.f32 %v503_v41, %v503_v41  ;;  %v1551_v45 = vpack.c.bf16 %v503_v41, %v500_v16  ;;  %1744 = vst [vmem:[%s2521_s4 + $0x80] sm:$0xff] %v1621_v52  }
 0x102   :  { %1731 = vst [vmem:[%s2521_s4 + $0x18] sm:$0xff] %v1556_v40  }
 0x103   :  { %v744_v47 = vadd.f32 %v1822_v2, %v743_v43  ;;  %v876_v48 = vadd.f32 %v875_v42, %v813_v44  ;;  %1730 = vst [vmem:[%s2521_s4 + $0x10] sm:$0xff] %v1551_v45  }
 0x105   :  { %v877_v51 = vadd.f32 %v876_v48, %v814_v46  ;;  %v1826_v54 = vpop.f32.mrb[8].mxu0  ;;  %v745_v55 = vadd.f32 %v1823_v39, %v744_v47  ;;  %v2268_v33 = vpop.f32.mrb[4].mxu1 }
 0x106   :  { %v516_v56 = vpop.f32.mrb[9].mxu0  ;;  %v818_v9 = vmul.f32 %v1826_v54, %v1826_v54  ;;  %v2270_v10 = vpop.f32.mrb[5].mxu1 }
 0x107   :  { %v746_v25 = vadd.f32 %v745_v55, %v516_v56  ;;  %v816_v57 = vmul.f32 %v516_v56, %v516_v56  ;;  %v878_v59 = vadd.f32 %v877_v51, %v815_v49  ;;  %v1827_v61 = vpop.f32.mrb[10].mxu0  ;;  %v2272_v2 = vpop.f32.mrb[6].mxu1 }
 0x108   :  { %v1566_v62 = vpack.c.bf16 %v1827_v61, %v1826_v54  ;;  %v519_v63 = vpop.f32.mrb[11].mxu0  ;;  %v819_v17 = vmul.f32 %v1827_v61, %v1827_v61  ;;  %v1636_v16 = vpack.c.bf16 %v2272_v2, %v2268_v33  ;;  %v2276_v36 = vpop.f32.mrb[7].mxu1 }
 0x109   :  { %v879_v0 = vadd.f32 %v878_v59, %v816_v57  ;;  %v747_v1 = vadd.f32 %v746_v25, %v519_v63  ;;  %v817_v4 = vmul.f32 %v519_v63, %v519_v63  ;;  %v1561_v8 = vpack.c.bf16 %v519_v63, %v516_v56 }
 0x10a   :  { %1733 = vst [vmem:[%s2521_s4 + $0x28] sm:$0xff] %v1566_v62   ;;  %1747 = vst [vmem:[%s2521_s4 + $0x98] sm:$0xff] %v1636_v16   ;;  %v1631_v43 = vpack.c.bf16 %v2276_v36, %v2270_v10 }
 0x10b   :  { %v748_v11 = vadd.f32 %v1826_v54, %v747_v1  ;;  %v880_v13 = vadd.f32 %v879_v0, %v817_v4  ;;  %1732 = vst [vmem:[%s2521_s4 + $0x20] sm:$0xff] %v1561_v8  }
 0x10c   :  { %1746 = vst [vmem:[%s2521_s4 + $0x90] sm:$0xff] %v1631_v43  }
 0x10d   :  { %v881_v18 = vadd.f32 %v880_v13, %v818_v9  ;;  %v1830_v3 = vpop.f32.mrb[12].mxu0  ;;  %v749_v58 = vadd.f32 %v1827_v61, %v748_v11 }
 0x10e   :  { %v532_v19 = vpop.f32.mrb[13].mxu0  ;;  %v822_v30 = vmul.f32 %v1830_v3, %v1830_v3  ;;  %v2292_v54 = vpop.f32.mrb[8].mxu1 }
 0x10f   :  { %v750_v22 = vadd.f32 %v749_v58, %v532_v19  ;;  %v820_v23 = vmul.f32 %v532_v19, %v532_v19  ;;  %v882_v24 = vadd.f32 %v881_v18, %v819_v17  ;;  %v1831_v26 = vpop.f32.mrb[14].mxu0  ;;  %v2294_v55 = vpop.f32.mrb[9].mxu1 }
 0x110   :  { %v1576_v60 = vpack.c.bf16 %v1831_v26, %v1830_v3  ;;  %v535_v27 = vpop.f32.mrb[15].mxu0  ;;  %v823_v34 = vmul.f32 %v1831_v26, %v1831_v26  ;;  %v2296_v61 = vpop.f32.mrb[10].mxu1 }
 0x111   :  { %v883_v12 = vadd.f32 %v882_v24, %v820_v23  ;;  %v751_v28 = vadd.f32 %v750_v22, %v535_v27  ;;  %v821_v29 = vmul.f32 %v535_v27, %v535_v27  ;;  %v1571_v5 = vpack.c.bf16 %v535_v27, %v532_v19  ;;  %v2300_v0 = vpop.f32.mrb[11].mxu1 }
 0x112   :  { %1735 = vst [vmem:[%s2521_s4 + $0x38] sm:$0xff] %v1576_v60   ;;  %v1646_v63 = vpack.c.bf16 %v2296_v61, %v2292_v54  ;;  %v1641_v17 = vpack.c.bf16 %v2300_v0, %v2294_v55 }
 0x113   :  { %v752_v31 = vadd.f32 %v1830_v3, %v751_v28  ;;  %v884_v32 = vadd.f32 %v883_v12, %v821_v29  ;;  %1734 = vst [vmem:[%s2521_s4 + $0x30] sm:$0xff] %v1571_v5  }
 0x114   :  { %1749 = vst [vmem:[%s2521_s4 + $0xa8] sm:$0xff] %v1646_v63   ;;  %1748 = vst [vmem:[%s2521_s4 + $0xa0] sm:$0xff] %v1641_v17  }
 0x115   :  { %v885_v50 = vadd.f32 %v884_v32, %v822_v30  ;;  %v1834_v35 = vpop.f32.mrb[16].mxu0  ;;  %v753_v53 = vadd.f32 %v1831_v26, %v752_v31 }
 0x116   :  { %v548_v6 = vpop.f32.mrb[17].mxu0  ;;  %v826_v48 = vmul.f32 %v1834_v35, %v1834_v35 }
 0x117   :  { %v754_v37 = vadd.f32 %v753_v53, %v548_v6  ;;  %v824_v38 = vmul.f32 %v548_v6, %v548_v6  ;;  %v886_v39 = vadd.f32 %v885_v50, %v823_v34  ;;  %v1835_v40 = vpop.f32.mrb[18].mxu0 }
 0x118   :  { %v1586_v41 = vpack.c.bf16 %v1835_v40, %v1834_v35  ;;  %v551_v42 = vpop.f32.mrb[19].mxu0  ;;  %v827_v56 = vmul.f32 %v1835_v40, %v1835_v40  ;;  %v2316_v24 = vpop.f32.mrb[12].mxu1 }
 0x119   :  { %v887_v44 = vadd.f32 %v886_v39, %v824_v38  ;;  %v755_v45 = vadd.f32 %v754_v37, %v551_v42  ;;  %v825_v46 = vmul.f32 %v551_v42, %v551_v42  ;;  %v1581_v47 = vpack.c.bf16 %v551_v42, %v548_v6  ;;  %v2318_v26 = vpop.f32.mrb[13].mxu1 }
 0x11a   :  { %1737 = vst [vmem:[%s2521_s4 + $0x48] sm:$0xff] %v1586_v41   ;;  %v2320_v28 = vpop.f32.mrb[14].mxu1 }
 0x11b   :  { %v756_v49 = vadd.f32 %v1834_v35, %v755_v45  ;;  %v888_v51 = vadd.f32 %v887_v44, %v825_v46  ;;  %1736 = vst [vmem:[%s2521_s4 + $0x40] sm:$0xff] %v1581_v47   ;;  %v1656_v5 = vpack.c.bf16 %v2320_v28, %v2316_v24  ;;  %v2324_v30 = vpop.f32.mrb[15].mxu1 }
 0x11c   :  { %v1651_v6 = vpack.c.bf16 %v2324_v30, %v2318_v26 }
 0x11d   :  { %v889_v25 = vadd.f32 %v888_v51, %v826_v48  ;;  %v1838_v57 = vpop.f32.mrb[20].mxu0  ;;  %v757_v59 = vadd.f32 %v1835_v40, %v756_v49  ;;  %1751 = vst [vmem:[%s2521_s4 + $0xb8] sm:$0xff] %v1656_v5  }
 0x11e   :  { %v564_v62 = vpop.f32.mrb[21].mxu0  ;;  %v830_v20 = vmul.f32 %v1838_v57, %v1838_v57  ;;  %1750 = vst [vmem:[%s2521_s4 + $0xb0] sm:$0xff] %v1651_v6  }
 0x11f   :  { %v758_v1 = vadd.f32 %v757_v59, %v564_v62  ;;  %v828_v4 = vmul.f32 %v564_v62, %v564_v62  ;;  %v890_v8 = vadd.f32 %v889_v25, %v827_v56  ;;  %v1839_v9 = vpop.f32.mrb[22].mxu0 }
 0x120   :  { %v1596_v11 = vpack.c.bf16 %v1839_v9, %v1838_v57  ;;  %v567_v13 = vpop.f32.mrb[23].mxu0  ;;  %v831_v60 = vmul.f32 %v1839_v9, %v1839_v9  ;;  %v2340_v43 = vpop.f32.mrb[16].mxu1 }
 0x121   :  { %v891_v18 = vadd.f32 %v890_v8, %v828_v4  ;;  %v759_v3 = vadd.f32 %v758_v1, %v567_v13  ;;  %v829_v58 = vmul.f32 %v567_v13, %v567_v13  ;;  %v1591_v19 = vpack.c.bf16 %v567_v13, %v564_v62  ;;  %v2342_v44 = vpop.f32.mrb[17].mxu1 }
 0x122   :  { %1739 = vst [vmem:[%s2521_s4 + $0x58] sm:$0xff] %v1596_v11   ;;  %v2344_v49 = vpop.f32.mrb[18].mxu1 }
 0x123   :  { %v760_v22 = vadd.f32 %v1838_v57, %v759_v3  ;;  %v892_v23 = vadd.f32 %v891_v18, %v829_v58  ;;  %1738 = vst [vmem:[%s2521_s4 + $0x50] sm:$0xff] %v1591_v19   ;;  %v1666_v56 = vpack.c.bf16 %v2344_v49, %v2340_v43  ;;  %v2348_v25 = vpop.f32.mrb[19].mxu1 }
 0x124   :  { %v1661_v8 = vpack.c.bf16 %v2348_v25, %v2342_v44 }
 0x125   :  { %v893_v27 = vadd.f32 %v892_v23, %v830_v20  ;;  %v1842_v52 = vpop.f32.mrb[24].mxu0  ;;  %v761_v12 = vadd.f32 %v1839_v9, %v760_v22  ;;  %1753 = vst [vmem:[%s2521_s4 + $0xc8] sm:$0xff] %v1666_v56  }
 0x126   :  { %v580_v29 = vpop.f32.mrb[25].mxu0  ;;  %v834_v40 = vmul.f32 %v1842_v52, %v1842_v52  ;;  %1752 = vst [vmem:[%s2521_s4 + $0xc0] sm:$0xff] %v1661_v8  }
 0x127   :  { %v762_v31 = vadd.f32 %v761_v12, %v580_v29  ;;  %v832_v32 = vmul.f32 %v580_v29, %v580_v29  ;;  %v894_v34 = vadd.f32 %v893_v27, %v831_v60  ;;  %v1843_v50 = vpop.f32.mrb[26].mxu0  ;;  %v840_v27 = vmul.f32 %v2246_v15, %v2246_v15 }
 0x128   :  { %v1606_v35 = vpack.c.bf16 %v1843_v50, %v1842_v52  ;;  %v583_v53 = vpop.f32.mrb[27].mxu0  ;;  %v835_v45 = vmul.f32 %v1843_v50, %v1843_v50  ;;  %v2364_v19 = vpop.f32.mrb[20].mxu1 }
 0x129   :  { %v895_v16 = vadd.f32 %v894_v34, %v832_v32  ;;  %v763_v37 = vadd.f32 %v762_v31, %v583_v53  ;;  %v833_v38 = vmul.f32 %v583_v53, %v583_v53  ;;  %v1601_v39 = vpack.c.bf16 %v583_v53, %v580_v29  ;;  %v2366_v20 = vpop.f32.mrb[21].mxu1 }
 0x12a   :  { %1741 = vst [vmem:[%s2521_s4 + $0x68] sm:$0xff] %v1606_v35   ;;  %v841_v35 = vmul.f32 %v2252_v21, %v2252_v21 }
 0x12b   :  { %v764_v41 = vadd.f32 %v1842_v52, %v763_v37  ;;  %v896_v42 = vadd.f32 %v895_v16, %v833_v38  ;;  %1740 = vst [vmem:[%s2521_s4 + $0x60] sm:$0xff] %v1601_v39   ;;  %v2370_v52 = vpop.f32.mrb[22].mxu1  ;;  %v843_v38 = vmul.f32 %v2248_v7, %v2248_v7 }
 0x12c   :  { %v1676_v12 = vpack.c.bf16 %v2370_v52, %v2364_v19  ;;  %v2374_v29 = vpop.f32.mrb[23].mxu1 }
 0x12d   :  { %v897_v46 = vadd.f32 %v896_v42, %v834_v40  ;;  %v1846_v47 = vpop.f32.mrb[28].mxu0  ;;  %v765_v48 = vadd.f32 %v1843_v50, %v764_v41  ;;  %v1671_v32 = vpack.c.bf16 %v2374_v29, %v2366_v20  ;;  %v844_v40 = vmul.f32 %v2270_v10, %v2270_v10 }
 0x12e   :  { %v596_v51 = vpop.f32.mrb[29].mxu0  ;;  %v838_v18 = vmul.f32 %v1846_v47, %v1846_v47  ;;  %1755 = vst [vmem:[%s2521_s4 + $0xd8] sm:$0xff] %v1676_v12   ;;  %v852_v12 = vmul.f32 %v2318_v26, %v2318_v26 }
 0x12f   :  { %v766_v57 = vadd.f32 %v765_v48, %v596_v51  ;;  %v836_v59 = vmul.f32 %v596_v51, %v596_v51  ;;  %v898_v62 = vadd.f32 %v897_v46, %v835_v45  ;;  %v1847_v63 = vpop.f32.mrb[30].mxu0  ;;  %1754 = vst [vmem:[%s2521_s4 + $0xd0] sm:$0xff] %v1671_v32  }
 0x130   :  { %v1616_v1 = vpack.c.bf16 %v1847_v63, %v1846_v47  ;;  %v599_v4 = vpop.f32.mrb[31].mxu0  ;;  %v839_v22 = vmul.f32 %v1847_v63, %v1847_v63  ;;  %v2391_v16 = vpop.f32.mrb[24].mxu1 }
 0x131   :  { %v899_v9 = vadd.f32 %v898_v62, %v836_v59  ;;  %v767_v11 = vadd.f32 %v766_v57, %v599_v4  ;;  %v837_v13 = vmul.f32 %v599_v4, %v599_v4  ;;  %v1611_v17 = vpack.c.bf16 %v599_v4, %v596_v51  ;;  %v2393_v37 = vpop.f32.mrb[25].mxu1 }
 0x132   :  { %1743 = vst [vmem:[%s2521_s4 + $0x78] sm:$0xff] %v1616_v1   ;;  %v2400_v41 = vpop.f32.mrb[26].mxu1  ;;  %v845_v51 = vmul.f32 %v2276_v36, %v2276_v36  ;;  %v848_v4 = vmul.f32 %v2294_v55, %v2294_v55 }
 0x133   :  { %v768_v3 = vadd.f32 %v1846_v47, %v767_v11  ;;  %v900_v58 = vadd.f32 %v899_v9, %v837_v13  ;;  %1742 = vst [vmem:[%s2521_s4 + $0x70] sm:$0xff] %v1611_v17   ;;  %v1686_v42 = vpack.c.bf16 %v2400_v41, %v2391_v16 }
 0x135   :  { %v901_v23 = vadd.f32 %v900_v58, %v838_v18  ;;  %v769_v60 = vadd.f32 %v1847_v63, %v768_v3  ;;  %1757 = vst [vmem:[%s2521_s4 + $0xe8] sm:$0xff] %v1686_v42   ;;  %v847_v63 = vmul.f32 %v2272_v2, %v2272_v2  ;;  %v849_v3 = vmul.f32 %v2300_v0, %v2300_v0 }
 0x137   :  { %v770_v5 = vadd.f32 %v769_v60, %v2246_v15  ;;  %v902_v31 = vadd.f32 %v901_v23, %v839_v22  ;;  %v842_v15 = vmul.f32 %v2244_v14, %v2244_v14  ;;  %v851_v23 = vmul.f32 %v2296_v61, %v2296_v61 }
 0x139   :  { %v903_v34 = vadd.f32 %v902_v31, %v840_v27  ;;  %v771_v50 = vadd.f32 %v770_v5, %v2252_v21 }
 0x13b   :  { %v772_v53 = vadd.f32 %v2244_v14, %v771_v50  ;;  %v904_v6 = vadd.f32 %v903_v34, %v841_v35  ;;  %v2404_v14 = vpop.f32.mrb[27].mxu1  ;;  %v853_v34 = vmul.f32 %v2324_v30, %v2324_v30 }
 0x13c   :  { %v1681_v47 = vpack.c.bf16 %v2404_v14, %v2393_v37  ;;  %v2421_v59 = vpop.f32.mrb[28].mxu1 }
 0x13d   :  { %v905_v39 = vadd.f32 %v904_v6, %v842_v15  ;;  %v773_v21 = vadd.f32 %v2248_v7, %v772_v53  ;;  %v2423_v62 = vpop.f32.mrb[29].mxu1 }
 0x13e   :  { %1756 = vst [vmem:[%s2521_s4 + $0xe0] sm:$0xff] %v1681_v47   ;;  %v2430_v8 = vpop.f32.mrb[30].mxu1 }
 0x13f   :  { %v774_v45 = vadd.f32 %v773_v21, %v2270_v10  ;;  %v906_v46 = vadd.f32 %v905_v39, %v843_v38  ;;  %v846_v10 = vmul.f32 %v2268_v33, %v2268_v33  ;;  %v1696_v9 = vpack.c.bf16 %v2430_v8, %v2421_v59 }
 0x140   :  { %v857_v21 = vmul.f32 %v2348_v25, %v2348_v25 }
 0x141   :  { %v907_v7 = vadd.f32 %v906_v46, %v844_v40  ;;  %v775_v48 = vadd.f32 %v774_v45, %v2276_v36  ;;  %1759 = vst [vmem:[%s2521_s4 + $0xf8] sm:$0xff] %v1696_v9   ;;  %v865_v9 = vmul.f32 %v2404_v14, %v2404_v14 }
 0x143   :  { %v776_v56 = vadd.f32 %v2268_v33, %v775_v48  ;;  %v908_v57 = vadd.f32 %v907_v7, %v845_v51  ;;  %v2434_v33 = vpop.f32.mrb[31].mxu1  ;;  %v861_v51 = vmul.f32 %v2374_v29, %v2374_v29 }
 0x144   :  { %v1691_v17 = vpack.c.bf16 %v2434_v33, %v2423_v62 }
 0x145   :  { %v909_v1 = vadd.f32 %v908_v57, %v846_v10  ;;  %v777_v36 = vadd.f32 %v2272_v2, %v776_v56 }
 0x146   :  { %1758 = vst [vmem:[%s2521_s4 + $0xf0] sm:$0xff] %v1691_v17  }
 0x147   :  { %v778_v11 = vadd.f32 %v777_v36, %v2294_v55  ;;  %v910_v13 = vadd.f32 %v909_v1, %v847_v63  ;;  %v850_v55 = vmul.f32 %v2292_v54, %v2292_v54 }
 0x149   :  { %v911_v2 = vadd.f32 %v910_v13, %v848_v4  ;;  %v779_v18 = vadd.f32 %v778_v11, %v2300_v0 }
 0x14b   :  { %v780_v58 = vadd.f32 %v2292_v54, %v779_v18  ;;  %v912_v22 = vadd.f32 %v911_v2, %v849_v3  ;;  %v854_v54 = vmul.f32 %v2316_v24, %v2316_v24 }
 0x14d   :  { %v913_v60 = vadd.f32 %v912_v22, %v850_v55  ;;  %v781_v27 = vadd.f32 %v2296_v61, %v780_v58  ;;  %v855_v61 = vmul.f32 %v2320_v28, %v2320_v28  ;;  %v869_v58 = vmul.f32 %v2434_v33, %v2434_v33 }
 0x14f   :  { %v782_v0 = vadd.f32 %v781_v27, %v2318_v26  ;;  %v914_v5 = vadd.f32 %v913_v60, %v851_v23  ;;  %v856_v26 = vmul.f32 %v2342_v44, %v2342_v44 }
 0x151   :  { %v915_v31 = vadd.f32 %v914_v5, %v852_v12  ;;  %v783_v32 = vadd.f32 %v782_v0, %v2324_v30 }
 0x153   :  { %v784_v50 = vadd.f32 %v2316_v24, %v783_v32  ;;  %v916_v35 = vadd.f32 %v915_v31, %v853_v34  ;;  %v858_v24 = vmul.f32 %v2340_v43, %v2340_v43 }
 0x155   :  { %v917_v15 = vadd.f32 %v916_v35, %v854_v54  ;;  %v785_v53 = vadd.f32 %v2320_v28, %v784_v50  ;;  %v859_v28 = vmul.f32 %v2344_v49, %v2344_v49 }
 0x157   :  { %v786_v6 = vadd.f32 %v785_v53, %v2342_v44  ;;  %v918_v38 = vadd.f32 %v917_v15, %v855_v61  ;;  %v860_v44 = vmul.f32 %v2366_v20, %v2366_v20 }
 0x159   :  { %v919_v39 = vadd.f32 %v918_v38, %v856_v26  ;;  %v787_v30 = vadd.f32 %v786_v6, %v2348_v25 }
 0x15b   :  { %v788_v40 = vadd.f32 %v2340_v43, %v787_v30  ;;  %v920_v42 = vadd.f32 %v919_v39, %v857_v21  ;;  %v862_v43 = vmul.f32 %v2364_v19, %v2364_v19 }
 0x15d   :  { %v921_v45 = vadd.f32 %v920_v42, %v858_v24  ;;  %v789_v46 = vadd.f32 %v2344_v49, %v788_v40  ;;  %v863_v49 = vmul.f32 %v2370_v52, %v2370_v52 }
 0x15f   :  { %v790_v47 = vadd.f32 %v789_v46, %v2366_v20  ;;  %v922_v7 = vadd.f32 %v921_v45, %v859_v28  ;;  %v864_v20 = vmul.f32 %v2393_v37, %v2393_v37 }
 0x161   :  { %v923_v48 = vadd.f32 %v922_v7, %v860_v44  ;;  %v791_v25 = vadd.f32 %v790_v47, %v2374_v29 }
 0x163   :  { %v792_v10 = vadd.f32 %v2364_v19, %v791_v25  ;;  %v924_v56 = vadd.f32 %v923_v48, %v861_v51  ;;  %v866_v19 = vmul.f32 %v2391_v16, %v2391_v16 }
 0x165   :  { %v925_v57 = vadd.f32 %v924_v56, %v862_v43  ;;  %v793_v63 = vadd.f32 %v2370_v52, %v792_v10  ;;  %v867_v52 = vmul.f32 %v2400_v41, %v2400_v41 }
 0x167   :  { %v794_v1 = vadd.f32 %v793_v63, %v2393_v37  ;;  %v926_v36 = vadd.f32 %v925_v57, %v863_v49  ;;  %v868_v37 = vmul.f32 %v2423_v62, %v2423_v62 }
 0x169   :  { %v927_v4 = vadd.f32 %v926_v36, %v864_v20  ;;  %v795_v29 = vadd.f32 %v794_v1, %v2404_v14 }
 0x16b   :  { %v796_v11 = vadd.f32 %v2391_v16, %v795_v29  ;;  %v928_v13 = vadd.f32 %v927_v4, %v865_v9  ;;  %v870_v16 = vmul.f32 %v2421_v59, %v2421_v59 }
 0x16d   :  { %v929_v17 = vadd.f32 %v928_v13, %v866_v19  ;;  %v797_v2 = vadd.f32 %v2400_v41, %v796_v11  ;;  %v871_v41 = vmul.f32 %v2430_v8, %v2430_v8 }
 0x16f   :  { %v798_v18 = vadd.f32 %v797_v2, %v2423_v62  ;;  %v930_v3 = vadd.f32 %v929_v17, %v867_v52 }
 0x171   :  { %v931_v55 = vadd.f32 %v930_v3, %v868_v37  ;;  %v799_v14 = vadd.f32 %v798_v18, %v2434_v33 }
 0x173   :  { %v800_v22 = vadd.f32 %v2421_v59, %v799_v14  ;;  %v932_v23 = vadd.f32 %v931_v55, %v869_v58 }
 0x175   :  { %v801_v60 = vadd.f32 %v2430_v8, %v800_v22  ;;  %v933_v27 = vadd.f32 %v932_v23, %v870_v16 }
 0x177   :  { %v802_v62 = vrot.slane %v801_v60, 4  ;;  %v934_v12 = vadd.f32 %v933_v27, %v871_v41 }
 0x179   :  { %v803_v0 = vadd.f32 %v802_v62, %v801_v60  ;;  %v935_v5 = vrot.slane %v934_v12, 4 }
 0x17b   :  { %v804_v31 = vrot.slane %v803_v0, 2  ;;  %v936_v32 = vadd.f32 %v935_v5, %v934_v12 }
 0x17d   :  { %v805_v34 = vadd.f32 %v804_v31, %v803_v0  ;;  %v937_v33 = vrot.slane %v936_v32, 2 }
 0x17f   :  { %v806_v54 = vrot.slane %v805_v34, 1  ;;  %v938_v50 = vadd.f32 %v937_v33, %v936_v32 }
 0x181   :  { %v939_v35 = vrot.slane %v938_v50, 1  ;;  %v807_v59 = vadd.f32 %v806_v54, %v805_v34 }
 0x183   :  { %v940_v61 = vadd.f32 %v939_v35, %v938_v50 }
 0x185   :  { %v942_v15 = vsel %vm941_vm0, %v807_v59, %v940_v61 }
 0x186   :  { %943 = vst [vmem:[%s2522_s5] sm:$0x3] %v942_v15 }

// kernel: bottleneck_forward.5
= control target key start
LH: loop header
LB: loop body
LE: loop exit
PB: predicated region body
PF: predicated region fallthrough
CT: control target
= control target key end

     0   :  { %s8097_s18 = smov 0   ;;  %s10124_s0 = inlined_call_operand.vmem [shape: bf16[512,128], index: 0, kind: input, shape index: {}]   ;;  %s10125_s1 = inlined_call_operand.vmem [shape: f32[1,128], index: 1, kind: input, shape index: {}]   ;;  %s10126_s2 = inlined_call_operand.vmem [shape: f32[1,128], index: 2, kind: input, shape index: {}]   ;;  %s10127_s3 = inlined_call_operand.vmem [shape: bf16[9,128,128], index: 3, kind: input, shape index: {}]   ;;  %s10128_s4 = inlined_call_operand.vmem [shape: bf16[512,128], index: 4, kind: output, shape index: {0}]   ;;  %s10129_s5 = inlined_call_operand.vmem [shape: f32[2,2,128], index: 5, kind: output, shape index: {1}]  }
   0x1 LB: > { %s8103_s19 = sadd.s32 4294967295, %s8064_s18   ;;  %p6223_p0 = scmp.ge.s32.totalorder %s8064_s18, 1  ;;  %s8064_s18 = sphi %s8097_s18, %s16_s18  }
   0x2   : > { %p191_p1 = scmp.lt.s32.totalorder %s8064_s18, 3 }
   0x4   : > { %p192_p2 = pnand %p6223_p0, %p191_p1 }
   0x6   : > { %195 = sbr.rel (%p192_p2) target bundleno = 721 (0x2d1), region = 36 }
   0xd   : > { %v7856_v0 = vld [vmem:[%s10127_s3 + $0x40] sm:$0xff]   ;;  %v8066_v2 = vmov 0   ;;  %s6224_s24 = sshll.u32 %s8103_s19, 5  ;;  %v7858_v3 = vld [vmem:[%s10127_s3 + $0x48] sm:$0xff]   ;;  %v7860_v5 = vld [vmem:[%s10127_s3 + $0x50] sm:$0xff]   ;;  %vm834_vm4 = vcmask 1043456  }
   0xe   : > { %v7857_v1 = vld [vmem:[%s10127_s3 + $0x100] sm:$0xff]   ;;  %951 = vst [vmem:[#allocation2] sm:$0xf] %v8066_v2  ;;  %952 = vst [vmem:[#allocation2 + $0x4] sm:$0xf] %v8066_v2  ;;  %7143 = vmatprep.subr.bf16.mxu1 %v7856_v0  ;;  %v7859_v4 = vld [vmem:[%s10127_s3 + $0x108] sm:$0xff]  }
   0xf   : > { %953 = vst [vmem:[#allocation2 + $0x8] sm:$0x1] %v8066_v2  ;;  %955 = vst [vmem:[#allocation2 + $0xcc] sm:$0xf] %v8066_v2  ;;  %7335 = vmatprep.subr.bf16.mxu0 %v7857_v1  ;;  %7144 = vmatpush3.bf16.msra.mxu1 %v7856_v0  ;;  %p224_p3 = scmp.lt.s32.totalorder %s6224_s24, 63  ;;  %v7861_v6 = vld [vmem:[%s10127_s3 + $0x110] sm:$0xff]  }
  0x10   : > { %956 = vst [vmem:[#allocation2 + $0xd0] sm:$0xf] %v8066_v2  ;;  %957 = vst [vmem:[#allocation2 + $0xd4] sm:$0x1] %v8066_v2  ;;  %7336 = vmatpush3.bf16.msra.mxu0 %v7857_v1  ;;  %7145 = vmatprep.subr.bf16.mxu1 %v7858_v3  ;;  %v7862_v7 = vld [vmem:[%s10127_s3 + $0x58] sm:$0xff]   ;;  %v7864_v9 = vld [vmem:[%s10127_s3 + $0x60] sm:$0xff]  }
  0x11   : > { %7337 = vmatprep.subr.bf16.mxu0 %v7859_v4  ;;  %s10198_s24 = smov (!%p224_p3, %s6224_s24), 63  ;;  %v7863_v8 = vld [vmem:[%s10127_s3 + $0x118] sm:$0xff]   ;;  %v7865_v10 = vld [vmem:[%s10127_s3 + $0x120] sm:$0xff]   ;;  %v7866_v11 = vld [vmem:[%s10127_s3 + $0x68] sm:$0xff]   ;;  %vm1119_vm0 = vsmask.f32 3328 }
  0x12   : > { %s6225_s14 = sshll.u32 %s10198_s24, 2  ;;  %v7867_v15 = vld [vmem:[%s10127_s3 + $0x128] sm:$0xff]   ;;  %vm1120_vm1 = vsmask.f32 7440  ;;  %v8158_v26 = vld [vmem:[%s10125_s1] ss:$0 sm:$0xff] }
  0x13   : > { %7146 = vmatpush3.bf16.msra.mxu1 %v7858_v3  ;;  %s8149_s23 = scalar_lea.vmem %s10124_s0, %s6225_s14  ;;  %v7868_v27 = vld [vmem:[%s10127_s3 + $0x70] sm:$0xff]   ;;  %v8166_v30 = vld [vmem:[%s10126_s2] ss:$0 sm:$0xff]  ;;  %vm8175_vm2 = vmor %vm1119_vm0, %vm1120_vm1  ;;  %vm510_vm3 = vsmask.f32 256  ;;  %vm841_vm6 = vcmask 1040384   ;;  %s10093_s10 = scalar_lea.vmem %s10128_s4, %s6225_s14 }
  0x14   : > { %7338 = vmatpush3.bf16.msra.mxu0 %v7859_v4  ;;  %7147 = vmatprep.subr.bf16.mxu1 %v7860_v5  ;;  %v6754_v21 = vld [vmem:[%s8149_s23] sm:$0xff]   ;;  %v7869_v31 = vld [vmem:[%s10127_s3 + $0x130] sm:$0xff]   ;;  %v7870_v41 = vld [vmem:[%s10127_s3 + $0x78] sm:$0xff]   ;;  %vm511_vm5 = vsmask.f32 4368  ;;  %vm2149_vm12 = vcmask 1042432  }
  0x15   : > { %7339 = vmatprep.subr.bf16.mxu0 %v7861_v6  ;;  %v1055_v12 = vld [vmem:[#allocation2] sm:$0xf]  ;;  %v1056_v13 = vld [vmem:[#allocation2 + $0x4] sm:$0xf]  ;;  %v6755_v24 = vunpack.c.l.bf16 %v6754_v21  ;;  %v6756_v25 = vunpack.c.h.bf16 %v6754_v21  ;;  %v6897_v43 = vld [vmem:[%s8149_s23 + $0x8] sm:$0xff]   ;;  %vm2150_vm13 = vcmask 1046532  }
  0x16   : > { %v1103_v14 = vld [vmem:[#allocation2 + $0x8] sm:$0x1]  ;;  %v1123_v16 = vshrl.u32 %v1055_v12, 16  ;;  %v1126_v17 = vshll.u32 %v1055_v12, 16  ;;  %v1132_v18 = vshll.u32 %v1056_v13, 16  ;;  %v1136_v19 = vshrl.u32 %v1056_v13, 16  ;;  %vm8207_vm8 = vmand %vm841_vm6, %vm510_vm3 }
  0x17   : > { %7148 = vmatpush3.bf16.msra.mxu1 %v7860_v5  ;;  %v1142_v20 = vshll.u32 %v1103_v14, 16  ;;  %v311_v33 = vmul.f32 %v6755_v24, %v8158_v26  ;;  %v312_v34 = vmul.f32 %v6756_v25, %v8158_v26  ;;  %v7871_v44 = vld [vmem:[%s10127_s3 + $0x138] sm:$0xff]   ;;  %v6759_v48 = vunpack.c.l.bf16 %v6897_v43  ;;  %v6898_v51 = vld [vmem:[%s8149_s23 + $0x10] sm:$0xff]   ;;  %v8196_v55 = vld [vmem:[%s10127_s3] sm:$0xff]   ;;  %p235_p4 = scmp.lt.s32.totalorder %s8103_s19, 1 }
  0x18   : > { %7340 = vmatpush3.bf16.msra.mxu0 %v7861_v6  ;;  %7149 = vmatprep.subr.bf16.mxu1 %v7862_v7  ;;  %v1125_v22 = vrot.slane %v1123_v16, 4  ;;  %v1128_v23 = vrot.slane %v1126_v17, 5  ;;  %v1134_v28 = vrot.slane %v1132_v18, 5  ;;  %v1138_v29 = vrot.slane %v1136_v19, 4  ;;  %v8201_v56 = vld [vmem:[%s10127_s3 + $0x140] sm:$0xff]   ;;  %v6899_v6 = vld [vmem:[%s8149_s23 + $0x18] sm:$0xff]   ;;  %vm8218_vm9 = vmor %vm510_vm3, %vm511_vm5 }
  0x19   : > { %7341 = vmatprep.subr.bf16.mxu0 %v7863_v8  ;;  %v1144_v37 = vrot.slane %v1142_v20, 5  ;;  %v350_v39 = vadd.f32 %v8166_v30, %v311_v33  ;;  %v351_v40 = vadd.f32 %v8166_v30, %v312_v34  ;;  %v6760_v50 = vunpack.c.h.bf16 %v6897_v43  ;;  %v843_v14 = vld [vmem:[#allocation2 + $0x14] sm:$0x1]  ;;  %v6900_v33 = vld [vmem:[%s8149_s23 + $0x20] sm:$0xff]   ;;  %vm8640_vm14 = vmor %vm2149_vm12, %vm2150_vm13  ;;  %s10200_s19 = smov (!%p235_p4, %s8103_s19), 1 }
  0x1a   : > { %v1129_v32 = vor.u32 %v1128_v23, %v1125_v22  ;;  %v1139_v36 = vor.u32 %v1138_v29, %v1134_v28  ;;  %v313_v57 = vmul.f32 %v6759_v48, %v8158_v26  ;;  %vm835_vm7 = vsmask.f32 7938  ;;  %v850_v48 = vld [vmem:[#allocation2 + $0x20] sm:$0x1]  ;;  %s6228_s24 = sshll.u32 %s10200_s19, 1 }
  0x1b   : > { %7150 = vmatpush3.bf16.msra.mxu1 %v7862_v7  ;;  %v382_v46 = vmax.f32 %v350_v39, 0.0  ;;  %v383_v47 = vmax.f32 %v351_v40, 0.0  ;;  %v314_v58 = vmul.f32 %v6760_v50, %v8158_v26  ;;  %v6763_v59 = vunpack.c.l.bf16 %v6898_v51  ;;  %vm8224_vm10 = vmand %vm834_vm4, %vm835_vm7  ;;  %v7910_v7 = vld [vmem:[%s10127_s3 + $0xa0] sm:$0xff]   ;;  %s238_s12 = scalar_lea.vmem %s10129_s5, %s6228_s24 }
  0x1c   : > { %7342 = vmatpush3.bf16.msra.mxu0 %v7863_v8  ;;  %7151 = vmatprep.subr.bf16.mxu1 %v7864_v9  ;;  %v1130_v38 = vrot.slane %v1129_v32, 4  ;;  %v1140_v42 = vrot.slane %v1139_v36, 4  ;;  %v6764_v60 = vunpack.c.h.bf16 %v6898_v51  ;;  %v352_v2 = vadd.f32 %v8166_v30, %v313_v57  ;;  %vm8244_vm11 = vmand %vm841_vm6, %vm835_vm7 }
  0x1d   : > { %7343 = vmatprep.subr.bf16.mxu0 %v7865_v10  ;;  %v6689_v53 = vpack.c.bf16 %v382_v46, %v382_v46  ;;  %v6690_v54 = vpack.c.bf16 %v383_v47, %v383_v47  ;;  %v353_v3 = vadd.f32 %v8166_v30, %v314_v58  ;;  %v315_v4 = vmul.f32 %v6763_v59, %v8158_v26  ;;  %v7922_v59 = vld [vmem:[%s10127_s3 + $0xb0] sm:$0xff]  }
  0x1e   : > { %v1135_v45 = vsel %vm8175_vm2, %v1130_v38, %v1134_v28  ;;  %v1145_v49 = vsel %vm8175_vm2, %v1140_v42, %v1144_v37  ;;  %v316_v5 = vmul.f32 %v6764_v60, %v8158_v26  ;;  %v6768_v12 = vunpack.c.h.bf16 %v6899_v6 }
  0x1f   : > { %7152 = vmatpush3.bf16.msra.mxu1 %v7864_v9  ;;  %v6279_v52 = vcombine.low %v1135_v45, %v1145_v49  ;;  %v514_v61 = vshrl.u32 %v6689_v53, 16  ;;  %v517_v62 = vshll.u32 %v6689_v53, 16  ;;  %v522_v63 = vshrl.u32 %v6690_v54, 16  ;;  %v846_v45 = vld [vmem:[#allocation2 + $0x18] sm:$0xf] }
  0x20   : > { %7344 = vmatpush3.bf16.msra.mxu0 %v7865_v10  ;;  %7153 = vmatprep.subr.bf16.mxu1 %v7866_v11  ;;  %v525_v0 = vshll.u32 %v6690_v54, 16  ;;  %v837_v10 = vld [vmem:[#allocation2 + $0xc] sm:$0xf]  ;;  %v385_v16 = vmax.f32 %v353_v3, 0.0  ;;  %v354_v17 = vadd.f32 %v8166_v30, %v315_v4  ;;  %v355_v18 = vadd.f32 %v8166_v30, %v316_v5 }
  0x21   : > { %7345 = vmatprep.subr.bf16.mxu0 %v7867_v15  ;;  %7159 = vmatprep.mubr.bf16.mxu1 %v6279_v52  ;;  %v516_v8 = vrot.slane %v514_v61, 7  ;;  %v524_v9 = vrot.slane %v522_v63, 7  ;;  %v6771_v46 = vunpack.c.l.bf16 %v6900_v33  ;;  %v6772_v47 = vunpack.c.h.bf16 %v6900_v33  ;;  %v857_v5 = vld [vmem:[#allocation2 + $0x2c] sm:$0x1] }
  0x22   : > { %v6692_v24 = vpack.c.bf16 %v385_v16, %v385_v16  ;;  %v386_v25 = vmax.f32 %v354_v17, 0.0 }
  0x23   : > { %7154 = vmatpush3.bf16.msra.mxu1 %v7866_v11  ;;  %v6767_v11 = vunpack.c.l.bf16 %v6899_v6  ;;  %v519_v19 = vor.u32 %v517_v62, %v516_v8  ;;  %v520_v20 = vrot.slane %v516_v8, 4  ;;  %v527_v21 = vor.u32 %v525_v0, %v524_v9  ;;  %v853_v62 = vld [vmem:[#allocation2 + $0x24] sm:$0xf] }
  0x24   : > { %7346 = vmatpush3.bf16.msra.mxu0 %v7867_v15  ;;  %7155 = vmatprep.subr.bf16.mxu1 %v7868_v27  ;;  %v384_v15 = vmax.f32 %v352_v2, 0.0  ;;  %v529_v22 = vrot.slane %v524_v9, 4  ;;  %v539_v37 = vshrl.u32 %v6692_v24, 16  ;;  %v542_v38 = vshll.u32 %v6692_v24, 16 }
  0x25   : > { %7347 = vmatprep.subr.bf16.mxu0 %v7869_v31  ;;  %v528_v28 = vsel %vm8218_vm9, %v520_v20, %v527_v21  ;;  %v838_v29 = vsel %vm8224_vm10, %v519_v19, %v837_v10  ;;  %v317_v32 = vmul.f32 %v6767_v11, %v8158_v26  ;;  %v6693_v39 = vpack.c.bf16 %v386_v25, %v386_v25 }
  0x26   : > { %v6691_v23 = vpack.c.bf16 %v384_v15, %v384_v15  ;;  %839 = vst [vmem:[#allocation2 + $0xc] sm:$0xf] %v838_v29  ;;  %840 = vst [vmem:[#allocation2 + $0x10] sm:$0xf] %v528_v28  ;;  %v319_v6 = vmul.f32 %v6771_v46, %v8158_v26  ;;  %v320_v15 = vmul.f32 %v6772_v47, %v8158_v26 }
  0x27   : > { %7156 = vmatpush3.bf16.msra.mxu1 %v7868_v27  ;;  %v387_v27 = vmax.f32 %v355_v18, 0.0  ;;  %v356_v42 = vadd.f32 %v8166_v30, %v317_v32  ;;  %v548_v49 = vshrl.u32 %v6693_v39, 16  ;;  %v551_v50 = vshll.u32 %v6693_v39, 16 }
  0x28   : > { %7348 = vmatpush3.bf16.msra.mxu0 %v7869_v31  ;;  %7157 = vmatprep.subr.bf16.mxu1 %v7870_v41  ;;  %v844_v31 = vsel %vm8207_vm8, %v529_v22, %v843_v14  ;;  %v531_v34 = vshrl.u32 %v6691_v23, 16  ;;  %v534_v36 = vshll.u32 %v6691_v23, 16 }
  0x29   : > { %7349 = vmatprep.subr.bf16.mxu0 %v7871_v44  ;;  %845 = vst [vmem:[#allocation2 + $0x14] sm:$0x1] %v844_v31  ;;  %v6694_v40 = vpack.c.bf16 %v387_v27, %v387_v27  ;;  %v550_v60 = vrot.slane %v548_v49, 7  ;;  %v388_v0 = vmax.f32 %v356_v42, 0.0  ;;  %v6901_v31 = vld [vmem:[%s8149_s23 + $0x28] sm:$0xff]   ;;  %v8277_v42 = vadd.f32 %v8166_v30, %v319_v6 }
  0x2a   : > { %v533_v43 = vrot.slane %v531_v34, 7  ;;  %v8287_v49 = vadd.f32 %v8166_v30, %v320_v15 }
  0x2b   : > { %7158 = vmatpush3.bf16.msra.mxu1 %v7870_v41  ;;  %v318_v41 = vmul.f32 %v6768_v12, %v8158_v26  ;;  %v556_v51 = vshrl.u32 %v6694_v40, 16  ;;  %v559_v52 = vshll.u32 %v6694_v40, 16  ;;  %v553_v11 = vor.u32 %v551_v50, %v550_v60 }
  0x2c   : > { %7350 = vmatpush3.bf16.msra.mxu0 %v7871_v44  ;;  %7191 = vmatprep.subr.bf16.mxu1 %v8196_v55  ;;  %v541_v44 = vrot.slane %v539_v37, 7  ;;  %v536_v53 = vor.u32 %v534_v36, %v533_v43  ;;  %v537_v54 = vrot.slane %v533_v43, 4  ;;  %v6695_v14 = vpack.c.bf16 %v388_v0, %v388_v0 }
  0x2d   : > { %7383 = vmatprep.subr.bf16.mxu0 %v8201_v56  ;;  %v558_v61 = vrot.slane %v556_v51, 7  ;;  %v357_v63 = vadd.f32 %v8166_v30, %v318_v41  ;;  %v958_v8 = vld [vmem:[#allocation2 + $0xc] sm:$0x1]  ;;  %v1058_v10 = vld [vmem:[#allocation2 + $0x10] sm:$0xf]  ;;  %v554_v23 = vrot.slane %v550_v60, 4  ;;  %v854_v28 = vsel %vm8224_vm10, %v553_v11, %v853_v62 }
  0x2e   : > { %v544_v57 = vor.u32 %v542_v38, %v541_v44  ;;  %v546_v58 = vrot.slane %v541_v44, 4  ;;  %v847_v3 = vsel %vm8224_vm10, %v536_v53, %v846_v45  ;;  %v959_v16 = vsel %vm8207_vm8, 0, %v958_v8  ;;  %v2973_v20 = vld [vmem:[#allocation2 + $0x10] sm:$0xf]  ;;  %855 = vst [vmem:[#allocation2 + $0x24] sm:$0xf] %v854_v28 }
  0x2f   : > { %848 = vst [vmem:[#allocation2 + $0x18] sm:$0xf] %v847_v3  ;;  %v561_v12 = vor.u32 %v559_v52, %v558_v61  ;;  %v1156_v18 = vshll.u32 %v1058_v10, 16  ;;  %v1160_v19 = vshrl.u32 %v1058_v10, 16  ;;  %960 = vst [vmem:[#allocation2 + $0xc] sm:$0x1] %v959_v16  ;;  %v6775_v43 = vunpack.c.l.bf16 %v6901_v31 }
  0x30   : > { %v545_v2 = vsel %vm8218_vm9, %v537_v54, %v544_v57  ;;  %v851_v4 = vsel %vm8207_vm8, %v546_v58, %v850_v48  ;;  %v1007_v9 = vld [vmem:[#allocation2 + $0x14] sm:$0x1]  ;;  %v3030_v21 = vshll.u32 %v2973_v20, 16  ;;  %v3034_v22 = vshrl.u32 %v2973_v20, 16 }
  0x31   : > { %849 = vst [vmem:[#allocation2 + $0x1c] sm:$0xf] %v545_v2  ;;  %852 = vst [vmem:[#allocation2 + $0x20] sm:$0x1] %v851_v4  ;;  %v1008_v17 = vsel %vm8244_vm11, 0, %v1007_v9  ;;  %v563_v24 = vrot.slane %v558_v61, 4  ;;  %v562_v34 = vsel %vm8218_vm9, %v554_v23, %v561_v12  ;;  %v6776_v50 = vunpack.c.h.bf16 %v6901_v31 }
  0x32   : > { %1009 = vst [vmem:[#allocation2 + $0x14] sm:$0x1] %v1008_v17  ;;  %v8261_v25 = vrot.slane %v1156_v18, 5  ;;  %v1162_v27 = vrot.slane %v1160_v19, 4  ;;  %v389_v29 = vmax.f32 %v357_v63, 0.0  ;;  %v8266_v32 = vrot.slane %v3030_v21, 5 }
  0x33   : > { %v3036_v33 = vrot.slane %v3034_v22, 4  ;;  %v858_v36 = vsel %vm8207_vm8, %v563_v24, %v857_v5  ;;  %856 = vst [vmem:[#allocation2 + $0x28] sm:$0xf] %v562_v34  ;;  %v565_v39 = vshrl.u32 %v6695_v14, 16  ;;  %v568_v40 = vshll.u32 %v6695_v14, 16  ;;  %v8280_v44 = vld [vmem:[%s8149_s23 + $0x30] sm:$0xff]  }
  0x34   : > { %v1163_v37 = vor.u32 %v1162_v27, %v8261_v25  ;;  %859 = vst [vmem:[#allocation2 + $0x2c] sm:$0x1] %v858_v36  ;;  %v8273_v38 = vpack.c.bf16 %v389_v29, %v389_v29  ;;  %v321_v63 = vmul.f32 %v6775_v43, %v8158_v26  ;;  %v8301_v0 = vmul.f32 %v6776_v50, %v8158_v26  ;;  %v860_v23 = vld [vmem:[#allocation2 + $0x30] sm:$0xf] }
  0x35   : > { %v3037_v41 = vor.u32 %v3036_v33, %v8266_v32  ;;  %v8284_v48 = vrot.slane %v565_v39, 7  ;;  %v6779_v2 = vunpack.c.l.bf16 %v8280_v44  ;;  %v6780_v8 = vunpack.c.h.bf16 %v8280_v44 }
  0x36   : > { %v8282_v45 = vrot.slane %v1163_v37, 4  ;;  %v961_v46 = vld [vmem:[#allocation2 + $0x18] sm:$0x1]  ;;  %v573_v57 = vshrl.u32 %v8273_v38, 16  ;;  %v1057_v58 = vld [vmem:[#allocation2 + $0xc] sm:$0xf] }
  0x37   : > { %v8289_v51 = vrot.slane %v3037_v41, 4  ;;  %v962_v52 = vsel %vm8207_vm8, 0, %v961_v46  ;;  %v2972_v61 = vld [vmem:[#allocation2 + $0xc] sm:$0xf]  ;;  %v570_v62 = vor.u32 %v568_v40, %v8284_v48  ;;  %v1147_v3 = vshrl.u32 %v1057_v58, 16 }
  0x38   : > { %v1010_v47 = vld [vmem:[#allocation2 + $0x20] sm:$0x1]  ;;  %v8295_v54 = vld [vmem:[#allocation2 + $0x1c] sm:$0xf]  ;;  %963 = vst [vmem:[#allocation2 + $0x18] sm:$0x1] %v962_v52 }
  0x39   : > { %v1011_v53 = vsel %vm8244_vm11, 0, %v1010_v47  ;;  %v1104_v60 = vld [vmem:[#allocation2 + $0x14] sm:$0x1]  ;;  %v1150_v4 = vshll.u32 %v1057_v58, 16  ;;  %v3021_v9 = vshrl.u32 %v2972_v61, 16  ;;  %v3024_v10 = vshll.u32 %v2972_v61, 16 }
  0x3a   : > { %1012 = vst [vmem:[#allocation2 + $0x20] sm:$0x1] %v1011_v53  ;;  %v1166_v5 = vshll.u32 %v1104_v60, 16  ;;  %v8304_v6 = vld [vmem:[#allocation2 + $0x14] sm:$0x1]  ;;  %v1149_v14 = vrot.slane %v1147_v3, 4  ;;  %v861_v43 = vsel %vm8224_vm10, %v570_v62, %v860_v23 }
  0x3b   : > { %v3040_v11 = vshll.u32 %v8304_v6, 16  ;;  %v3795_v12 = vrot.slane %v8304_v6, 5  ;;  %v1152_v15 = vrot.slane %v1150_v4, 5  ;;  %v3054_v17 = vshll.u32 %v8295_v54, 16  ;;  %v1060_v18 = vld [vmem:[#allocation2 + $0x1c] sm:$0xf] }
  0x3c   : > { %v1168_v16 = vrot.slane %v1166_v5, 5  ;;  %v3023_v19 = vrot.slane %v3021_v9, 4  ;;  %v3026_v20 = vrot.slane %v3024_v10, 5  ;;  %v3058_v22 = vshrl.u32 %v8295_v54, 16  ;;  %v964_v53 = vld [vmem:[#allocation2 + $0x24] sm:$0x1] }
  0x3d   : > { %v3042_v21 = vrot.slane %v3040_v11, 5  ;;  %v1153_v24 = vor.u32 %v1152_v15, %v1149_v14  ;;  %v8314_v28 = vrot.slane %v3054_v17, 5  ;;  %v3799_v29 = vrot.slane %v8295_v54, 5  ;;  %v1013_v58 = vld [vmem:[#allocation2 + $0x2c] sm:$0x1] }
  0x3e   : > { %v1169_v27 = vsel %vm8175_vm2, %v8282_v45, %v1168_v16  ;;  %v3027_v31 = vor.u32 %v3026_v20, %v3023_v19  ;;  %v3060_v34 = vrot.slane %v3058_v22, 4  ;;  %v1180_v36 = vshll.u32 %v1060_v18, 16  ;;  %862 = vst [vmem:[#allocation2 + $0x30] sm:$0xf] %v861_v43  ;;  %v7875_v4 = vld [vmem:[%s10127_s3 + $0x8] sm:$0xff]  }
  0x3f   : > { %v3043_v33 = vsel %vm8175_vm2, %v8289_v51, %v3042_v21  ;;  %v1154_v37 = vrot.slane %v1153_v24, 4  ;;  %v2975_v39 = vld [vmem:[#allocation2 + $0x18] sm:$0xf]  ;;  %v8324_v41 = vrot.slane %v3799_v29, 4  ;;  %v8329_v45 = vadd.f32 %v8166_v30, %v321_v63  ;;  %v1062_v17 = vld [vmem:[#allocation2 + $0x28] sm:$0xf] }
  0x40   : > { %v3028_v46 = vrot.slane %v3027_v31, 4  ;;  %v3045_v47 = vshrl.u32 %v2975_v39, 16  ;;  %v3048_v50 = vshll.u32 %v2975_v39, 16  ;;  %v3061_v51 = vor.u32 %v3060_v34, %v8314_v28  ;;  %v1059_v52 = vld [vmem:[#allocation2 + $0x18] sm:$0xf] }
  0x41   : > { %v8320_v40 = vld [vmem:[#allocation2 + $0x20] sm:$0x1]  ;;  %v1159_v60 = vsel %vm8175_vm2, %v1154_v37, %v8261_v25  ;;  %v1171_v63 = vshrl.u32 %v1059_v52, 16  ;;  %v1174_v20 = vshll.u32 %v1059_v52, 16  ;;  %v1182_v21 = vrot.slane %v1180_v36, 5 }
  0x42   : > { %v3064_v61 = vshll.u32 %v8320_v40, 16  ;;  %v3802_v62 = vrot.slane %v8320_v40, 5  ;;  %v1105_v3 = vld [vmem:[#allocation2 + $0x20] sm:$0x1]  ;;  %v6280_v5 = vcombine.low %v1159_v60, %v1169_v27  ;;  %v3033_v9 = vsel %vm8175_vm2, %v3028_v46, %v8266_v32  ;;  %v2979_v23 = vld [vmem:[#allocation2 + $0x28] sm:$0xf] }
  0x43   : > { %v3047_v10 = vrot.slane %v3045_v47, 4  ;;  %v3050_v11 = vrot.slane %v3048_v50, 5  ;;  %v6439_v14 = vcombine.low %v3033_v9, %v3043_v33  ;;  %v3062_v15 = vrot.slane %v3061_v51, 4  ;;  %v7874_v60 = vld [vmem:[%s10127_s3 + $0x148] sm:$0xff]   ;;  %v899_v40 = vld [vmem:[#allocation2 + $0x74] sm:$0x1] }
  0x44   : > { %v3066_v25 = vrot.slane %v3064_v61, 5  ;;  %v1173_v16 = vrot.slane %v1171_v63, 4  ;;  %7160 = vmatmul.mubr.bf16.vlgmr.msra.gmra.mrb[0].mxu1 %v6280_v5  ;;  %v1184_v22 = vshrl.u32 %v1060_v18, 16  ;;  %v1190_v32 = vshll.u32 %v1105_v3, 16  ;;  %v864_v5 = vld [vmem:[#allocation2 + $0x38] sm:$0x1] }
  0x45   : > { %v3051_v19 = vor.u32 %v3050_v11, %v3047_v10  ;;  %7351 = vmatprep.mubr.bf16.mxu0 %v6439_v14  ;;  %7192 = vmatpush3.bf16.msra.mxu1 %v8196_v55  ;;  %v965_v27 = vsel %vm8207_vm8, 0, %v964_v53  ;;  %v1014_v31 = vsel %vm8244_vm11, 0, %v1013_v58  ;;  %v1176_v34 = vrot.slane %v1174_v20, 5  ;;  %v7878_v55 = vld [vmem:[%s10127_s3 + $0x10] sm:$0xff]   ;;  %v7881_v14 = vld [vmem:[%s10127_s3 + $0x18] sm:$0xff]  }
  0x46   : > { %v3067_v24 = vsel %vm8175_vm2, %v3062_v15, %v3066_v25  ;;  %v1186_v37 = vrot.slane %v1184_v22, 4  ;;  %966 = vst [vmem:[#allocation2 + $0x24] sm:$0x1] %v965_v27  ;;  %1015 = vst [vmem:[#allocation2 + $0x2c] sm:$0x1] %v1014_v31  ;;  %v1204_v18 = vshll.u32 %v1062_v17, 16  ;;  %7193 = vmatprep.subr.bf16.mxu1 %v7875_v4 }
  0x47   : > { %v3052_v33 = vrot.slane %v3051_v19, 4  ;;  %v1192_v36 = vrot.slane %v1190_v32, 5  ;;  %v1208_v39 = vshrl.u32 %v1062_v17, 16  ;;  %v3078_v43 = vshll.u32 %v2979_v23, 16  ;;  %v967_v53 = vld [vmem:[#allocation2 + $0x30] sm:$0x1] }
  0x48   : > { %v3082_v46 = vshrl.u32 %v2979_v23, 16  ;;  %v1177_v50 = vor.u32 %v1176_v34, %v1173_v16  ;;  %v1187_v51 = vor.u32 %v1186_v37, %v1182_v21  ;;  %v8356_v52 = vrot.slane %v1204_v18, 5  ;;  %v7876_v17 = vld [vmem:[%s10127_s3 + $0x150] sm:$0xff]  }
  0x49   : > { %v3057_v47 = vsel %vm8175_vm2, %v3052_v33, %v8314_v28  ;;  %v1210_v61 = vrot.slane %v1208_v39, 4  ;;  %v8361_v3 = vrot.slane %v3078_v43, 5  ;;  %7194 = vmatpush3.bf16.msra.mxu1 %v7875_v4  ;;  %v571_v28 = vrot.slane %v8284_v48, 4 }
  0x4a   : > { %v6440_v58 = vcombine.low %v3057_v47, %v3067_v24  ;;  %v3084_v63 = vrot.slane %v3082_v46, 4  ;;  %v1178_v9 = vrot.slane %v1177_v50, 4  ;;  %v1188_v10 = vrot.slane %v1187_v51, 4  ;;  %7195 = vmatprep.subr.bf16.mxu1 %v7878_v55 }
  0x4b   : > { %v575_v11 = vrot.slane %v573_v57, 7  ;;  %v1211_v15 = vor.u32 %v1210_v61, %v8356_v52  ;;  %v576_v4 = vshll.u32 %v8273_v38, 16  ;;  %v968_v16 = vsel %vm8207_vm8, 0, %v967_v53 }
  0x4c   : > { %7352 = vmatmul.mubr.bf16.vlgmr.msra.gmra.mrb[0].mxu0 %v6440_v58  ;;  %v3085_v25 = vor.u32 %v3084_v63, %v8361_v3  ;;  %v1183_v48 = vsel %vm8175_vm2, %v1178_v9, %v1182_v21  ;;  %v1193_v57 = vsel %vm8175_vm2, %v1188_v10, %v1192_v36  ;;  %969 = vst [vmem:[#allocation2 + $0x30] sm:$0x1] %v968_v16  ;;  %v390_v20 = vmax.f32 %v8277_v42, 0.0  ;;  %v7884_v42 = vld [vmem:[%s10127_s3 + $0x20] sm:$0xff]   ;;  %v7877_v58 = vld [vmem:[%s10127_s3 + $0x158] sm:$0xff]   ;;  %v7886_v10 = vld [vmem:[%s10127_s3 + $0x28] sm:$0xff]  }
  0x4d   : > { %7384 = vmatpush3.bf16.msra.mxu0 %v8201_v56  ;;  %v580_v19 = vrot.slane %v575_v11, 4  ;;  %v6281_v38 = vcombine.low %v1183_v48, %v1193_v57  ;;  %v1061_v22 = vld [vmem:[#allocation2 + $0x24] sm:$0xf]  ;;  %v1106_v23 = vld [vmem:[#allocation2 + $0x2c] sm:$0x1]  ;;  %v1212_v24 = vrot.slane %v1211_v15, 4  ;;  %v578_v32 = vor.u32 %v576_v4, %v575_v11  ;;  %7196 = vmatpush3.bf16.msra.mxu1 %v7878_v55 }
  0x4e   : > { %7385 = vmatprep.subr.bf16.mxu0 %v7874_v60  ;;  %v8383_v56 = vrot.slane %v3085_v25, 4  ;;  %v1195_v21 = vshrl.u32 %v1061_v22, 16  ;;  %v1198_v27 = vshll.u32 %v1061_v22, 16  ;;  %v1214_v31 = vshll.u32 %v1106_v23, 16  ;;  %v2978_v33 = vld [vmem:[#allocation2 + $0x24] sm:$0xf]  ;;  %7197 = vmatprep.subr.bf16.mxu1 %v7881_v14 }
  0x4f   : > { %v865_v34 = vsel %vm8207_vm8, %v580_v19, %v864_v5  ;;  %7163 = vmatprep.mubr.bf16.mxu1 %v6281_v38  ;;  %v2980_v37 = vld [vmem:[#allocation2 + $0x2c] sm:$0x1]  ;;  %v3069_v18 = vshrl.u32 %v2978_v33, 16  ;;  %v3072_v36 = vshll.u32 %v2978_v33, 16  ;;  %v579_v39 = vsel %vm8218_vm9, %v571_v28, %v578_v32  ;;  %v7879_v19 = vld [vmem:[%s10127_s3 + $0x160] sm:$0xff]  }
  0x50   : > { %866 = vst [vmem:[#allocation2 + $0x38] sm:$0x1] %v865_v34  ;;  %v391_v55 = vmax.f32 %v8287_v49, 0.0  ;;  %v1197_v43 = vrot.slane %v1195_v21, 4  ;;  %v1200_v46 = vrot.slane %v1198_v27, 5  ;;  %v1216_v47 = vrot.slane %v1214_v31, 5 }
  0x51   : > { %7386 = vmatpush3.bf16.msra.mxu0 %v7874_v60  ;;  %v3088_v50 = vshll.u32 %v2980_v37, 16  ;;  %863 = vst [vmem:[#allocation2 + $0x34] sm:$0xf] %v579_v39  ;;  %v3071_v51 = vrot.slane %v3069_v18, 4  ;;  %v3074_v53 = vrot.slane %v3072_v36, 5  ;;  %v6697_v61 = vpack.c.bf16 %v390_v20, %v390_v20  ;;  %7198 = vmatpush3.bf16.msra.mxu1 %v7881_v14 }
  0x52   : > { %7387 = vmatprep.subr.bf16.mxu0 %v7876_v17  ;;  %v8396_v63 = vpack.c.bf16 %v391_v55, %v391_v55  ;;  %v1201_v5 = vor.u32 %v1200_v46, %v1197_v43  ;;  %v1217_v49 = vsel %vm8175_vm2, %v1212_v24, %v1216_v47  ;;  %v8402_v9 = vadd.f32 %v8166_v30, %v8301_v0  ;;  %v867_v39 = vld [vmem:[#allocation2 + $0x3c] sm:$0xf] }
  0x53   : > { %v3090_v60 = vrot.slane %v3088_v50, 5  ;;  %7199 = vmatprep.subr.bf16.mxu1 %v7884_v42  ;;  %v3075_v28 = vor.u32 %v3074_v53, %v3071_v51  ;;  %v2981_v11 = vld [vmem:[#allocation2 + $0x30] sm:$0xf]  ;;  %v582_v25 = vshrl.u32 %v6697_v61, 16  ;;  %v585_v4 = vshll.u32 %v6697_v61, 16 }
  0x54   : > { %v1063_v15 = vld [vmem:[#allocation2 + $0x30] sm:$0xf]  ;;  %v8410_v14 = vmul.f32 %v6779_v2, %v8158_v26  ;;  %v1202_v16 = vrot.slane %v1201_v5, 4  ;;  %v3093_v48 = vshrl.u32 %v2981_v11, 16  ;;  %v3096_v57 = vshll.u32 %v2981_v11, 16 }
  0x55   : > { %v3091_v0 = vsel %vm8175_vm2, %v8383_v56, %v3090_v60  ;;  %7388 = vmatpush3.bf16.msra.mxu0 %v7876_v17  ;;  %v3076_v20 = vrot.slane %v3075_v28, 4  ;;  %v1219_v38 = vshrl.u32 %v1063_v15, 16  ;;  %v1222_v22 = vshll.u32 %v1063_v15, 16  ;;  %7200 = vmatpush3.bf16.msra.mxu1 %v7884_v42  ;;  %v871_v61 = vld [vmem:[#allocation2 + $0x44] sm:$0x1] }
  0x56   : > { %7389 = vmatprep.subr.bf16.mxu0 %v7877_v58  ;;  %v8418_v23 = vrot.slane %v582_v25, 7  ;;  %v1207_v2 = vsel %vm8175_vm2, %v1202_v16, %v8356_v52  ;;  %v3095_v56 = vrot.slane %v3093_v48, 4  ;;  %v3098_v32 = vrot.slane %v3096_v57, 5  ;;  %7201 = vmatprep.subr.bf16.mxu1 %v7886_v10  ;;  %v7882_v57 = vld [vmem:[%s10127_s3 + $0x170] sm:$0xff]  }
  0x57   : > { %v1016_v24 = vld [vmem:[#allocation2 + $0x38] sm:$0x1]  ;;  %v590_v17 = vshrl.u32 %v8396_v63, 16  ;;  %v6282_v21 = vcombine.low %v1207_v2, %v1217_v49  ;;  %v3081_v27 = vsel %vm8175_vm2, %v3076_v20, %v8361_v3  ;;  %v1221_v42 = vrot.slane %v1219_v38, 4  ;;  %v7880_v3 = vld [vmem:[%s10127_s3 + $0x168] sm:$0xff]  }
  0x58   : > { %v1017_v31 = vsel %vm8244_vm11, 0, %v1016_v24  ;;  %v2982_v33 = vld [vmem:[#allocation2 + $0x34] sm:$0xf]  ;;  %v6441_v37 = vcombine.low %v3081_v27, %v3091_v0  ;;  %v3099_v52 = vor.u32 %v3098_v32, %v3095_v56  ;;  %v1224_v55 = vrot.slane %v1222_v22, 5 }
  0x59   : > { %v1064_v34 = vld [vmem:[#allocation2 + $0x34] sm:$0xf]  ;;  %1018 = vst [vmem:[#allocation2 + $0x38] sm:$0x1] %v1017_v31  ;;  %v3102_v18 = vshll.u32 %v2982_v33, 16  ;;  %v3106_v36 = vshrl.u32 %v2982_v33, 16  ;;  %7390 = vmatpush3.bf16.msra.mxu0 %v7877_v58  ;;  %7164 = vmatmul.mubr.bf16.gmra.mrb[4].mxu1 %v6282_v21  ;;  %v587_v47 = vor.u32 %v585_v4, %v8418_v23  ;;  %v362_v31 = vadd.f32 %v8166_v30, %v8410_v14 }
  0x5a   : > { %v1228_v43 = vshll.u32 %v1064_v34, 16  ;;  %v1232_v46 = vshrl.u32 %v1064_v34, 16  ;;  %7391 = vmatprep.subr.bf16.mxu0 %v7879_v19  ;;  %7355 = vmatprep.mubr.bf16.mxu0 %v6441_v37  ;;  %v8433_v50 = vrot.slane %v3099_v52, 4  ;;  %v588_v58 = vrot.slane %v8418_v23, 4 }
  0x5b   : > { %v8435_v51 = vrot.slane %v3102_v18, 5  ;;  %v3108_v53 = vrot.slane %v3106_v36, 4  ;;  %7202 = vmatpush3.bf16.msra.mxu1 %v7886_v10  ;;  %v1225_v5 = vor.u32 %v1224_v55, %v1221_v42  ;;  %v592_v28 = vrot.slane %v590_v17, 7  ;;  %v874_v18 = vld [vmem:[#allocation2 + $0x48] sm:$0xf] }
  0x5c   : > { %v1230_v49 = vrot.slane %v1228_v43, 5  ;;  %v1234_v60 = vrot.slane %v1232_v46, 4  ;;  %v593_v25 = vshll.u32 %v8396_v63, 16  ;;  %v868_v4 = vsel %vm8224_vm10, %v587_v47, %v867_v39  ;;  %v878_v39 = vld [vmem:[#allocation2 + $0x50] sm:$0x1] }
  0x5d   : > { %v3105_v11 = vsel %vm8175_vm2, %v8433_v50, %v8435_v51  ;;  %v3109_v15 = vor.u32 %v3108_v53, %v8435_v51  ;;  %7392 = vmatpush3.bf16.msra.mxu0 %v7879_v19  ;;  %v1226_v16 = vrot.slane %v1225_v5, 4  ;;  %v597_v10 = vrot.slane %v592_v28, 4  ;;  %869 = vst [vmem:[#allocation2 + $0x3c] sm:$0xf] %v868_v4  ;;  %v8479_v51 = vld [vmem:[%s8149_s23 + $0x40] sm:$0xff]   ;;  %v7888_v53 = vld [vmem:[%s10127_s3 + $0x30] sm:$0xff]  }
  0x5e   : > { %v1235_v0 = vor.u32 %v1234_v60, %v1230_v49  ;;  %v392_v48 = vmax.f32 %v8329_v45, 0.0  ;;  %7393 = vmatprep.subr.bf16.mxu0 %v7880_v3  ;;  %v595_v38 = vor.u32 %v593_v25, %v592_v28  ;;  %v393_v63 = vmax.f32 %v8402_v9, 0.0  ;;  %v8489_v60 = vld [vmem:[%s10127_s3 + $0x180] sm:$0xff]   ;;  %7203 = vmatprep.subr.bf16.mxu1 %v7888_v53 }
  0x5f   : > { %v3110_v20 = vrot.slane %v3109_v15, 4  ;;  %v324_v19 = vmul.f32 %v6780_v8, %v8158_v26  ;;  %v1231_v45 = vsel %vm8175_vm2, %v1226_v16, %v1230_v49  ;;  %v872_v24 = vsel %vm8207_vm8, %v597_v10, %v871_v61  ;;  %v8464_v26 = vld [vmem:[%s8149_s23 + $0x38] sm:$0xff]   ;;  %v8496_v10 = vld [vmem:[%s10125_s1] ss:$0 sm:$0xff]  ;;  %7204 = vmatpush3.bf16.msra.mxu1 %v7888_v53 }
  0x60   : > { %v8454_v22 = vld [vmem:[#allocation2 + $0x38] sm:$0x1]  ;;  %v1236_v2 = vrot.slane %v1235_v0, 4  ;;  %v6699_v56 = vpack.c.bf16 %v392_v48, %v392_v48  ;;  %v596_v9 = vsel %vm8218_vm9, %v588_v58, %v595_v38  ;;  %873 = vst [vmem:[#allocation2 + $0x44] sm:$0x1] %v872_v24  ;;  %v6700_v44 = vpack.c.bf16 %v393_v63, %v393_v63 }
  0x61   : > { %v1107_v23 = vld [vmem:[#allocation2 + $0x38] sm:$0x1]  ;;  %v3112_v32 = vshll.u32 %v8454_v22, 16  ;;  %7394 = vmatpush3.bf16.msra.mxu0 %v7880_v3  ;;  %870 = vst [vmem:[#allocation2 + $0x40] sm:$0xf] %v596_v9  ;;  %v363_v33 = vadd.f32 %v8166_v30, %v324_v19  ;;  %v394_v55 = vmax.f32 %v362_v31, 0.0  ;;  %v6783_v46 = vunpack.c.l.bf16 %v8464_v26 }
  0x62   : > { %v1238_v17 = vshll.u32 %v1107_v23, 16  ;;  %v7883_v8 = vld [vmem:[%s10127_s3 + $0x178] sm:$0xff]   ;;  %v599_v21 = vshrl.u32 %v6699_v56, 16  ;;  %v602_v27 = vshll.u32 %v6699_v56, 16  ;;  %7395 = vmatprep.subr.bf16.mxu0 %v7882_v57  ;;  %v607_v37 = vshrl.u32 %v6700_v44, 16 }
  0x63   : > { %v3114_v34 = vrot.slane %v3112_v32, 5  ;;  %v610_v52 = vshll.u32 %v6700_v44, 16  ;;  %v395_v43 = vmax.f32 %v363_v33, 0.0  ;;  %v6784_v50 = vunpack.c.h.bf16 %v8464_v26  ;;  %v881_v33 = vld [vmem:[#allocation2 + $0x54] sm:$0xf] }
  0x64   : > { %v1240_v42 = vrot.slane %v1238_v17, 5  ;;  %v601_v36 = vrot.slane %v599_v21, 7  ;;  %v970_v30 = vld [vmem:[#allocation2 + $0x3c] sm:$0x1]  ;;  %v609_v3 = vrot.slane %v607_v37, 7  ;;  %v6701_v4 = vpack.c.bf16 %v394_v55, %v394_v55 }
  0x65   : > { %v3115_v47 = vsel %vm8175_vm2, %v3110_v20, %v3114_v34  ;;  %7396 = vmatpush3.bf16.msra.mxu0 %v7882_v57  ;;  %v971_v5 = vsel %vm8207_vm8, 0, %v970_v30  ;;  %v6702_v0 = vpack.c.bf16 %v395_v43, %v395_v43  ;;  %v325_v48 = vmul.f32 %v8496_v10, %v6783_v46  ;;  %v8521_v43 = vld [vmem:[%s10126_s2] ss:$0 sm:$0xff] }
  0x66   : > { %v1241_v14 = vsel %vm8175_vm2, %v1236_v2, %v1240_v42  ;;  %v6442_v58 = vcombine.low %v3105_v11, %v3115_v47  ;;  %v604_v49 = vor.u32 %v602_v27, %v601_v36  ;;  %7397 = vmatprep.subr.bf16.mxu0 %v7883_v8  ;;  %972 = vst [vmem:[#allocation2 + $0x3c] sm:$0x1] %v971_v5  ;;  %v605_v28 = vrot.slane %v601_v36, 4 }
  0x67   : > { %v6283_v61 = vcombine.low %v1231_v45, %v1241_v14  ;;  %v612_v15 = vor.u32 %v610_v52, %v609_v3  ;;  %v614_v25 = vrot.slane %v609_v3, 4  ;;  %v1019_v11 = vld [vmem:[#allocation2 + $0x44] sm:$0x1]  ;;  %v6787_v57 = vunpack.c.l.bf16 %v8479_v51 }
  0x68   : > { %7356 = vmatmul.mubr.bf16.gmra.mrb[4].mxu0 %v6442_v58  ;;  %v875_v16 = vsel %vm8224_vm10, %v604_v49, %v874_v18  ;;  %v1020_v20 = vsel %vm8244_vm11, 0, %v1019_v11  ;;  %v1066_v38 = vld [vmem:[#allocation2 + $0x40] sm:$0xf]  ;;  %v616_v45 = vshrl.u32 %v6701_v4, 16  ;;  %v619_v9 = vshll.u32 %v6701_v4, 16 }
  0x69   : > { %7167 = vmatprep.mubr.bf16.mxu1 %v6283_v61  ;;  %v8502_v63 = vld [vmem:[#allocation2 + $0x40] sm:$0xf]  ;;  %v613_v19 = vsel %vm8218_vm9, %v605_v28, %v612_v15  ;;  %876 = vst [vmem:[#allocation2 + $0x48] sm:$0xf] %v875_v16  ;;  %v879_v23 = vsel %vm8207_vm8, %v614_v25, %v878_v39  ;;  %7398 = vmatpush3.bf16.msra.mxu0 %v7883_v8  ;;  %1021 = vst [vmem:[#allocation2 + $0x44] sm:$0x1] %v1020_v20  ;;  %v6788_v47 = vunpack.c.h.bf16 %v8479_v51 }
  0x6a   : > { %v1252_v2 = vshll.u32 %v1066_v38, 16  ;;  %v1256_v24 = vshrl.u32 %v1066_v38, 16  ;;  %v3126_v56 = vshll.u32 %v8502_v63, 16  ;;  %v3130_v32 = vshrl.u32 %v8502_v63, 16  ;;  %877 = vst [vmem:[#allocation2 + $0x4c] sm:$0xf] %v613_v19  ;;  %7431 = vmatprep.subr.bf16.mxu0 %v8489_v60 }
  0x6b   : > { %880 = vst [vmem:[#allocation2 + $0x50] sm:$0x1] %v879_v23  ;;  %v618_v17 = vrot.slane %v616_v45, 7  ;;  %v624_v44 = vshrl.u32 %v6702_v0, 16  ;;  %v627_v26 = vshll.u32 %v6702_v0, 16  ;;  %v326_v52 = vmul.f32 %v8496_v10, %v6784_v50 }
  0x6c   : > { %v8511_v21 = vrot.slane %v1252_v2, 5  ;;  %v1258_v27 = vrot.slane %v1256_v24, 4  ;;  %v8513_v8 = vrot.slane %v3126_v56, 5  ;;  %v3132_v31 = vrot.slane %v3130_v32, 4  ;;  %v9077_v13 = vld [vmem:[#allocation2 + $0x40] sm:$0xf] }
  0x6d   : > { %v621_v34 = vor.u32 %v619_v9, %v618_v17  ;;  %v622_v42 = vrot.slane %v618_v17, 4  ;;  %v626_v37 = vrot.slane %v624_v44, 7  ;;  %v1065_v18 = vld [vmem:[#allocation2 + $0x3c] sm:$0xf]  ;;  %v8524_v46 = vadd.f32 %v8521_v43, %v325_v48 }
  0x6e   : > { %v1259_v36 = vor.u32 %v1258_v27, %v8511_v21  ;;  %v2984_v39 = vld [vmem:[#allocation2 + $0x3c] sm:$0xf]  ;;  %v3133_v55 = vor.u32 %v3132_v31, %v8513_v8  ;;  %v1243_v14 = vshrl.u32 %v1065_v18, 16  ;;  %v1246_v30 = vshll.u32 %v1065_v18, 16 }
  0x6f   : > { %v3117_v3 = vshrl.u32 %v2984_v39, 16  ;;  %v3120_v50 = vshll.u32 %v2984_v39, 16  ;;  %v629_v5 = vor.u32 %v627_v26, %v626_v37  ;;  %v631_v49 = vrot.slane %v626_v37, 4  ;;  %v885_v27 = vld [vmem:[#allocation2 + $0x5c] sm:$0x1] }
  0x70   : > { %v1260_v53 = vrot.slane %v1259_v36, 4  ;;  %v3134_v58 = vrot.slane %v3133_v55, 4  ;;  %v973_v61 = vld [vmem:[#allocation2 + $0x48] sm:$0x1]  ;;  %v1108_v28 = vld [vmem:[#allocation2 + $0x44] sm:$0x1]  ;;  %v882_v11 = vsel %vm8224_vm10, %v621_v34, %v881_v33  ;;  %v365_v16 = vadd.f32 %v8521_v43, %v326_v52 }
  0x71   : > { %v1245_v15 = vrot.slane %v1243_v14, 4  ;;  %v1248_v25 = vrot.slane %v1246_v30, 5  ;;  %v8527_v4 = vld [vmem:[#allocation2 + $0x44] sm:$0x1]  ;;  %v1262_v0 = vshll.u32 %v1108_v28, 16  ;;  %v3119_v48 = vrot.slane %v3117_v3, 4 }
  0x72   : > { %v3122_v20 = vrot.slane %v3120_v50, 5  ;;  %v3136_v38 = vshll.u32 %v8527_v4, 16  ;;  %v1022_v19 = vld [vmem:[#allocation2 + $0x50] sm:$0x1]  ;;  %883 = vst [vmem:[#allocation2 + $0x54] sm:$0xf] %v882_v11  ;;  %v630_v32 = vsel %vm8218_vm9, %v622_v42, %v629_v5 }
  0x73   : > { %v1249_v23 = vor.u32 %v1248_v25, %v1245_v15  ;;  %v974_v45 = vsel %vm8207_vm8, 0, %v973_v61  ;;  %v1023_v2 = vsel %vm8244_vm11, 0, %v1022_v19  ;;  %v8537_v24 = vld [vmem:[#allocation2 + $0x4c] sm:$0xf]  ;;  %v1264_v17 = vrot.slane %v1262_v0, 5 }
  0x74   : > { %v1068_v56 = vld [vmem:[#allocation2 + $0x4c] sm:$0xf]  ;;  %v3123_v9 = vor.u32 %v3122_v20, %v3119_v48  ;;  %v3138_v44 = vrot.slane %v3136_v38, 5  ;;  %975 = vst [vmem:[#allocation2 + $0x48] sm:$0x1] %v974_v45  ;;  %v3150_v26 = vshll.u32 %v8537_v24, 16 }
  0x75   : > { %1024 = vst [vmem:[#allocation2 + $0x50] sm:$0x1] %v1023_v2  ;;  %884 = vst [vmem:[#allocation2 + $0x58] sm:$0xf] %v630_v32  ;;  %v1250_v31 = vrot.slane %v1249_v23, 4  ;;  %v3154_v33 = vshrl.u32 %v8537_v24, 16  ;;  %v1265_v52 = vsel %vm8175_vm2, %v1260_v53, %v1264_v17  ;;  %v886_v53 = vsel %vm8207_vm8, %v631_v49, %v885_v27 }
  0x76   : > { %v1276_v34 = vshll.u32 %v1068_v56, 16  ;;  %v1280_v37 = vshrl.u32 %v1068_v56, 16  ;;  %v3124_v18 = vrot.slane %v3123_v9, 4  ;;  %v3139_v42 = vsel %vm8175_vm2, %v3134_v58, %v3138_v44  ;;  %v8561_v61 = vld [vmem:[%s8149_s23 + $0x48] sm:$0xff]   ;;  %887 = vst [vmem:[#allocation2 + $0x5c] sm:$0x1] %v886_v53 }
  0x77   : > { %v8547_v36 = vrot.slane %v3150_v26, 5  ;;  %v1255_v39 = vsel %vm8175_vm2, %v1250_v31, %v8511_v21  ;;  %v3156_v55 = vrot.slane %v3154_v33, 4  ;;  %v396_v58 = vmax.f32 %v8524_v46, 0.0 }
  0x78   : > { %v8552_v14 = vrot.slane %v1276_v34, 5  ;;  %v1282_v30 = vrot.slane %v1280_v37, 4  ;;  %v6284_v3 = vcombine.low %v1255_v39, %v1265_v52  ;;  %v3129_v50 = vsel %vm8175_vm2, %v3124_v18, %v8513_v8  ;;  %v7890_v39 = vld [vmem:[%s10127_s3 + $0x38] sm:$0xff]  }
  0x79   : > { %v6443_v5 = vcombine.low %v3129_v50, %v3139_v42  ;;  %v3157_v28 = vor.u32 %v3156_v55, %v8547_v36  ;;  %v976_v15 = vld [vmem:[#allocation2 + $0x54] sm:$0x1]  ;;  %v397_v25 = vmax.f32 %v365_v16, 0.0  ;;  %v8567_v8 = vpack.c.bf16 %v396_v58, %v396_v58  ;;  %7205 = vmatprep.subr.bf16.mxu1 %v7890_v39 }
  0x7a   : > { %v1283_v21 = vor.u32 %v1282_v30, %v8552_v14  ;;  %7168 = vmatmul.mubr.bf16.gmra.mrb[8].mxu1 %v6284_v3  ;;  %v977_v11 = vsel %vm8207_vm8, 0, %v976_v15  ;;  %v327_v46 = vmul.f32 %v8496_v10, %v6787_v57  ;;  %v328_v49 = vmul.f32 %v8496_v10, %v6788_v47 }
  0x7b   : > { %7359 = vmatprep.mubr.bf16.mxu0 %v6443_v5  ;;  %v2987_v0 = vld [vmem:[#allocation2 + $0x48] sm:$0xf]  ;;  %v3158_v20 = vrot.slane %v3157_v28, 4  ;;  %978 = vst [vmem:[#allocation2 + $0x54] sm:$0x1] %v977_v11  ;;  %v8577_v38 = vpack.c.bf16 %v397_v25, %v397_v25  ;;  %v6791_v19 = vunpack.c.l.bf16 %v8561_v61  ;;  %v633_v51 = vshrl.u32 %v8567_v8, 16  ;;  %7206 = vmatpush3.bf16.msra.mxu1 %v7890_v39 }
  0x7c   : > { %v8575_v48 = vld [vmem:[#allocation2 + $0x50] sm:$0x1]  ;;  %v1284_v16 = vrot.slane %v1283_v21, 4  ;;  %v3141_v23 = vshrl.u32 %v2987_v0, 16  ;;  %v3144_v45 = vshll.u32 %v2987_v0, 16  ;;  %v8583_v9 = vadd.f32 %v8521_v43, %v327_v46 }
  0x7d   : > { %v3160_v2 = vshll.u32 %v8575_v48, 16  ;;  %v1067_v57 = vld [vmem:[#allocation2 + $0x48] sm:$0xf]  ;;  %v1109_v56 = vld [vmem:[#allocation2 + $0x50] sm:$0x1]  ;;  %v8586_v44 = vadd.f32 %v8521_v43, %v328_v49  ;;  %v6792_v0 = vunpack.c.h.bf16 %v8561_v61 }
  0x7e   : > { %v1267_v47 = vshrl.u32 %v1067_v57, 16  ;;  %v1270_v32 = vshll.u32 %v1067_v57, 16  ;;  %v1070_v17 = vld [vmem:[#allocation2 + $0x58] sm:$0xf]  ;;  %v3143_v26 = vrot.slane %v3141_v23, 4  ;;  %v3146_v27 = vrot.slane %v3144_v45, 5 }
  0x7f   : > { %v3162_v31 = vrot.slane %v3160_v2, 5  ;;  %v1286_v33 = vshll.u32 %v1109_v56, 16  ;;  %v2991_v34 = vld [vmem:[#allocation2 + $0x58] sm:$0xf]  ;;  %v1300_v18 = vshll.u32 %v1070_v17, 16  ;;  %v1304_v42 = vshrl.u32 %v1070_v17, 16 }
  0x80   : > { %v1269_v37 = vrot.slane %v1267_v47, 4  ;;  %v1272_v52 = vrot.slane %v1270_v32, 5  ;;  %v3147_v55 = vor.u32 %v3146_v27, %v3143_v26  ;;  %v1025_v50 = vld [vmem:[#allocation2 + $0x5c] sm:$0x1]  ;;  %v3174_v53 = vshll.u32 %v2991_v34, 16 }
  0x81   : > { %v3163_v30 = vsel %vm8175_vm2, %v3158_v20, %v3162_v31  ;;  %v1288_v3 = vrot.slane %v1286_v33, 5  ;;  %v1026_v5 = vsel %vm8244_vm11, 0, %v1025_v50  ;;  %v8595_v28 = vrot.slane %v1300_v18, 5  ;;  %v888_v18 = vld [vmem:[#allocation2 + $0x60] sm:$0xf] }
  0x82   : > { %v1273_v58 = vor.u32 %v1272_v52, %v1269_v37  ;;  %v1306_v21 = vrot.slane %v1304_v42, 4  ;;  %v3148_v15 = vrot.slane %v3147_v55, 4  ;;  %1027 = vst [vmem:[#allocation2 + $0x5c] sm:$0x1] %v1026_v5  ;;  %v1069_v11 = vld [vmem:[#allocation2 + $0x54] sm:$0xf] }
  0x83   : > { %v1289_v25 = vsel %vm8175_vm2, %v1284_v16, %v1288_v3  ;;  %v2990_v46 = vld [vmem:[#allocation2 + $0x54] sm:$0xf]  ;;  %v8599_v49 = vrot.slane %v3174_v53, 5  ;;  %v1291_v23 = vshrl.u32 %v1069_v11, 16  ;;  %v1294_v45 = vshll.u32 %v1069_v11, 16  ;;  %v7894_v42 = vld [vmem:[%s10127_s3 + $0x80] sm:$0xff]  }
  0x84   : > { %v1274_v20 = vrot.slane %v1273_v58, 4  ;;  %v1307_v2 = vor.u32 %v1306_v21, %v8595_v28  ;;  %v3153_v57 = vsel %vm8175_vm2, %v3148_v15, %v8547_v36  ;;  %v3165_v56 = vshrl.u32 %v2990_v46, 16  ;;  %7239 = vmatprep.subr.bf16.mxu1 %v7894_v42 }
  0x85   : > { %v3168_v47 = vshll.u32 %v2990_v46, 16  ;;  %v3178_v16 = vshrl.u32 %v2991_v34, 16  ;;  %v6444_v32 = vcombine.low %v3153_v57, %v3163_v30  ;;  %v1293_v26 = vrot.slane %v1291_v23, 4 }
  0x86   : > { %v1279_v17 = vsel %vm8175_vm2, %v1274_v20, %v8552_v14  ;;  %v1296_v27 = vrot.slane %v1294_v45, 5  ;;  %v1308_v33 = vrot.slane %v1307_v2, 4  ;;  %v3167_v37 = vrot.slane %v3165_v56, 4  ;;  %v892_v20 = vld [vmem:[#allocation2 + $0x68] sm:$0x1] }
  0x87   : > { %v6285_v31 = vcombine.low %v1279_v17, %v1289_v25  ;;  %v3170_v52 = vrot.slane %v3168_v47, 5  ;;  %7360 = vmatmul.mubr.bf16.gmra.mrb[8].mxu0 %v6444_v32  ;;  %v3180_v39 = vrot.slane %v3178_v16, 4  ;;  %v635_v34 = vrot.slane %v633_v51, 7  ;;  %v3726_v2 = vld [vmem:[#allocation2 + $0xc] sm:$0xe] }
  0x88   : > { %v1297_v36 = vor.u32 %v1296_v27, %v1293_v26  ;;  %v636_v55 = vshll.u32 %v8567_v8, 16  ;;  %v641_v14 = vshrl.u32 %v8577_v38, 16  ;;  %v644_v3 = vshll.u32 %v8577_v38, 16 }
  0x89   : > { %7171 = vmatprep.mubr.bf16.mxu1 %v6285_v31  ;;  %v3171_v30 = vor.u32 %v3170_v52, %v3167_v37  ;;  %v398_v50 = vmax.f32 %v8583_v9, 0.0  ;;  %v1110_v53 = vld [vmem:[#allocation2 + $0x5c] sm:$0x1]  ;;  %v3181_v21 = vor.u32 %v3180_v39, %v8599_v49  ;;  %v639_v25 = vrot.slane %v635_v34, 4  ;;  %v3727_v31 = vld [vmem:[#allocation2 + $0x18] sm:$0xe] }
  0x8a   : > { %v1298_v58 = vrot.slane %v1297_v36, 4  ;;  %v8616_v5 = vld [vmem:[#allocation2 + $0x5c] sm:$0x1]  ;;  %v638_v15 = vor.u32 %v636_v55, %v635_v34  ;;  %v1310_v51 = vshll.u32 %v1110_v53, 16  ;;  %v643_v46 = vrot.slane %v641_v14, 7  ;;  %v8636_v37 = vld [vmem:[%s8149_s23 + $0x50] sm:$0xff]  }
  0x8b   : > { %v3172_v11 = vrot.slane %v3171_v30, 4  ;;  %v3184_v8 = vshll.u32 %v8616_v5, 16  ;;  %v3182_v9 = vrot.slane %v3181_v21, 4  ;;  %v399_v45 = vmax.f32 %v8586_v44, 0.0  ;;  %v895_v55 = vld [vmem:[#allocation2 + $0x6c] sm:$0xf] }
  0x8c   : > { %v1303_v38 = vsel %vm8175_vm2, %v1298_v58, %v8595_v28  ;;  %v889_v23 = vsel %vm8224_vm10, %v638_v15, %v888_v18  ;;  %v1312_v57 = vrot.slane %v1310_v51, 5  ;;  %v646_v16 = vor.u32 %v644_v3, %v643_v46  ;;  %v7978_v3 = vld [vmem:[#allocation2 + $0x10] sm:$0xf] }
  0x8d   : > { %v3177_v56 = vsel %vm8175_vm2, %v3172_v11, %v8599_v49  ;;  %v3186_v47 = vrot.slane %v3184_v8, 5  ;;  %890 = vst [vmem:[#allocation2 + $0x60] sm:$0xf] %v889_v23  ;;  %v648_v32 = vrot.slane %v643_v46, 4  ;;  %v6705_v17 = vpack.c.bf16 %v398_v50, %v398_v50 }
  0x8e   : > { %v6706_v26 = vpack.c.bf16 %v399_v45, %v399_v45  ;;  %v1313_v28 = vsel %vm8175_vm2, %v1308_v33, %v1312_v57  ;;  %v647_v27 = vsel %vm8218_vm9, %v639_v25, %v646_v16  ;;  %v6463_v30 = vrot.slane %v3726_v2, 9 }
  0x8f   : > { %v3187_v44 = vsel %vm8175_vm2, %v3182_v9, %v3186_v47  ;;  %v6286_v49 = vcombine.low %v1303_v38, %v1313_v28  ;;  %891 = vst [vmem:[#allocation2 + $0x64] sm:$0xf] %v647_v27  ;;  %v893_v18 = vsel %vm8207_vm8, %v648_v32, %v892_v20  ;;  %v650_v42 = vshrl.u32 %v6705_v17, 16 }
  0x90   : > { %v6445_v52 = vcombine.low %v3177_v56, %v3187_v44  ;;  %894 = vst [vmem:[#allocation2 + $0x68] sm:$0x1] %v893_v18  ;;  %v653_v33 = vshll.u32 %v6705_v17, 16  ;;  %v658_v39 = vshrl.u32 %v6706_v26, 16  ;;  %v661_v34 = vshll.u32 %v6706_v26, 16 }
  0x91   : > { %7172 = vmatmul.mubr.bf16.gmra.mrb[12].mxu1 %v6286_v49  ;;  %v652_v14 = vrot.slane %v650_v42, 7  ;;  %v3792_v50 = vrot.slane %v7978_v3, 5  ;;  %v6464_v53 = vrot.slane %v3727_v31, 9  ;;  %v8649_v58 = vsel %vm8640_vm14, %v8324_v41, %v3802_v62  ;;  %v3728_v56 = vld [vmem:[#allocation2 + $0x24] sm:$0xe] }
  0x92   : > { %7363 = vmatprep.mubr.bf16.mxu0 %v6445_v52  ;;  %v660_v21 = vrot.slane %v658_v39, 7  ;;  %v329_v15 = vmul.f32 %v8496_v10, %v6791_v19  ;;  %v330_v25 = vmul.f32 %v8496_v10, %v6792_v0  ;;  %v6795_v51 = vunpack.c.l.bf16 %v8636_v37 }
  0x93   : > { %v655_v8 = vor.u32 %v653_v33, %v652_v14  ;;  %v656_v46 = vrot.slane %v652_v14, 4  ;;  %v8660_v20 = vsel %vm8640_vm14, %v6463_v30, %v3792_v50  ;;  %v3794_v41 = vrot.slane %v3792_v50, 4 }
  0x94   : > { %v979_v11 = vld [vmem:[#allocation2 + $0x60] sm:$0x1]  ;;  %v663_v38 = vor.u32 %v661_v34, %v660_v21  ;;  %v665_v19 = vrot.slane %v660_v21, 4  ;;  %v8668_v61 = vsel %vm8640_vm14, %v6464_v53, %v3799_v29  ;;  %v368_v45 = vadd.f32 %v8521_v43, %v329_v15 }
  0x95   : > { %v980_v62 = vsel %vm8207_vm8, 0, %v979_v11  ;;  %v896_v0 = vsel %vm8224_vm10, %v655_v8, %v895_v55  ;;  %v8676_v9 = vsel %vm8640_vm14, %v3794_v41, %v3795_v12  ;;  %v6496_v23 = vcombine.low %v8668_v61, %v8649_v58 }
  0x96   : > { %981 = vst [vmem:[#allocation2 + $0x60] sm:$0x1] %v980_v62  ;;  %v8681_v54 = vld [vmem:[#allocation2 + $0x64] sm:$0xf]  ;;  %v664_v29 = vsel %vm8218_vm9, %v656_v46, %v663_v38  ;;  %897 = vst [vmem:[#allocation2 + $0x6c] sm:$0xf] %v896_v0  ;;  %v900_v57 = vsel %vm8207_vm8, %v665_v19, %v899_v40  ;;  %v6495_v6 = vcombine.low %v8660_v20, %v8676_v9  ;;  %v6796_v31 = vunpack.c.h.bf16 %v8636_v37 }
  0x97   : > { %v1072_v2 = vld [vmem:[#allocation2 + $0x64] sm:$0xf]  ;;  %v369_v12 = vadd.f32 %v8521_v43, %v330_v25  ;;  %v1028_v47 = vld [vmem:[#allocation2 + $0x68] sm:$0x1]  ;;  %v3198_v16 = vshll.u32 %v8681_v54, 16  ;;  %v3202_v32 = vshrl.u32 %v8681_v54, 16  ;;  %v331_v34 = vmul.f32 %v8496_v10, %v6795_v51 }
  0x98   : > { %v1324_v17 = vshll.u32 %v1072_v2, 16  ;;  %v1328_v26 = vshrl.u32 %v1072_v2, 16  ;;  %898 = vst [vmem:[#allocation2 + $0x70] sm:$0xf] %v664_v29  ;;  %901 = vst [vmem:[#allocation2 + $0x74] sm:$0x1] %v900_v57  ;;  %v332_v55 = vmul.f32 %v8496_v10, %v6796_v31 }
  0x99   : > { %v1029_v28 = vsel %vm8244_vm11, 0, %v1028_v47  ;;  %v400_v44 = vmax.f32 %v368_v45, 0.0  ;;  %v401_v27 = vmax.f32 %v369_v12, 0.0  ;;  %v8695_v49 = vrot.slane %v3198_v16, 5  ;;  %v8705_v37 = vld [vmem:[#allocation2 + $0x28] sm:$0xf] }
  0x9a   : > { %1030 = vst [vmem:[#allocation2 + $0x68] sm:$0x1] %v1029_v28  ;;  %v3204_v52 = vrot.slane %v3202_v32, 4  ;;  %v8697_v18 = vrot.slane %v1324_v17, 5  ;;  %v1330_v42 = vrot.slane %v1328_v26, 4  ;;  %v6465_v3 = vrot.slane %v3728_v56, 9 }
  0x9b   : > { %v6707_v33 = vpack.c.bf16 %v400_v44, %v400_v44  ;;  %v8699_v39 = vpack.c.bf16 %v401_v27, %v401_v27  ;;  %v3806_v50 = vrot.slane %v8705_v37, 5  ;;  %v8709_v11 = vadd.f32 %v8521_v43, %v331_v34 }
  0x9c   : > { %v3205_v30 = vor.u32 %v3204_v52, %v8695_v49  ;;  %v1331_v14 = vor.u32 %v1330_v42, %v8697_v18  ;;  %v8712_v51 = vadd.f32 %v8521_v43, %v332_v55  ;;  %v3816_v20 = vrot.slane %v8454_v22, 5 }
  0x9d   : > { %v2993_v53 = vld [vmem:[#allocation2 + $0x60] sm:$0xf]  ;;  %v667_v15 = vshrl.u32 %v6707_v33, 16  ;;  %v670_v25 = vshll.u32 %v6707_v33, 16  ;;  %v982_v62 = vld [vmem:[#allocation2 + $0x6c] sm:$0x1]  ;;  %v8724_v44 = vsel %vm8640_vm14, %v6465_v3, %v3806_v50 }
  0x9e   : > { %v1071_v21 = vld [vmem:[#allocation2 + $0x60] sm:$0xf]  ;;  %v3189_v8 = vshrl.u32 %v2993_v53, 16  ;;  %v3192_v46 = vshll.u32 %v2993_v53, 16  ;;  %v3206_v40 = vrot.slane %v3205_v30, 4  ;;  %v1332_v19 = vrot.slane %v1331_v14, 4 }
  0x9f   : > { %v1315_v41 = vshrl.u32 %v1071_v21, 16  ;;  %v1318_v38 = vshll.u32 %v1071_v21, 16  ;;  %v983_v0 = vsel %vm8207_vm8, 0, %v982_v62  ;;  %v1031_v45 = vld [vmem:[#allocation2 + $0x74] sm:$0x1]  ;;  %v669_v2 = vrot.slane %v667_v15, 7 }
  0xa0   : > { %v3191_v29 = vrot.slane %v3189_v8, 4  ;;  %v3194_v57 = vrot.slane %v3192_v46, 5  ;;  %984 = vst [vmem:[#allocation2 + $0x6c] sm:$0x1] %v983_v0  ;;  %v1032_v56 = vsel %vm8244_vm11, 0, %v1031_v45  ;;  %v675_v14 = vshrl.u32 %v8699_v39, 16 }
  0xa1   : > { %v1317_v12 = vrot.slane %v1315_v41, 4  ;;  %v1074_v47 = vld [vmem:[#allocation2 + $0x70] sm:$0xf]  ;;  %v8718_v16 = vld [vmem:[#allocation2 + $0x68] sm:$0x1]  ;;  %v1320_v17 = vrot.slane %v1318_v38, 5  ;;  %v672_v28 = vor.u32 %v670_v25, %v669_v2 }
  0xa2   : > { %v1111_v32 = vld [vmem:[#allocation2 + $0x68] sm:$0x1]  ;;  %1033 = vst [vmem:[#allocation2 + $0x74] sm:$0x1] %v1032_v56  ;;  %v1348_v26 = vshll.u32 %v1074_v47, 16  ;;  %v3195_v27 = vor.u32 %v3194_v57, %v3191_v29  ;;  %v3208_v31 = vshll.u32 %v8718_v16, 16 }
  0xa3   : > { %v1334_v52 = vshll.u32 %v1111_v32, 16  ;;  %v1352_v42 = vshrl.u32 %v1074_v47, 16  ;;  %v902_v33 = vld [vmem:[#allocation2 + $0x78] sm:$0xf]  ;;  %v1321_v34 = vor.u32 %v1320_v17, %v1317_v12  ;;  %v673_v30 = vrot.slane %v669_v2, 4 }
  0xa4   : > { %v8727_v55 = vrot.slane %v1348_v26, 5  ;;  %v3196_v53 = vrot.slane %v3195_v27, 4  ;;  %v3210_v21 = vrot.slane %v3208_v31, 5  ;;  %v906_v8 = vld [vmem:[#allocation2 + $0x80] sm:$0x1]  ;;  %v677_v3 = vrot.slane %v675_v14, 7 }
  0xa5   : > { %v1336_v15 = vrot.slane %v1334_v52, 5  ;;  %v1354_v25 = vrot.slane %v1352_v42, 4  ;;  %v1322_v46 = vrot.slane %v1321_v34, 4  ;;  %v678_v41 = vshll.u32 %v8699_v39, 16  ;;  %v3729_v47 = vld [vmem:[#allocation2 + $0x30] sm:$0xe] }
  0xa6   : > { %v903_v62 = vsel %vm8224_vm10, %v672_v28, %v902_v33  ;;  %v3201_v38 = vsel %vm8175_vm2, %v3196_v53, %v8695_v49  ;;  %v3211_v0 = vsel %vm8175_vm2, %v3206_v40, %v3210_v21  ;;  %v682_v56 = vrot.slane %v677_v3, 4  ;;  %v7980_v14 = vld [vmem:[#allocation2 + $0x2c] sm:$0x1] }
  0xa7   : > { %v1337_v45 = vsel %vm8175_vm2, %v1332_v19, %v1336_v15  ;;  %v1355_v2 = vor.u32 %v1354_v25, %v8727_v55  ;;  %904 = vst [vmem:[#allocation2 + $0x78] sm:$0xf] %v903_v62  ;;  %v6446_v29 = vcombine.low %v3201_v38, %v3211_v0  ;;  %v1327_v39 = vsel %vm8175_vm2, %v1322_v46, %v8697_v18  ;;  %v1073_v57 = vld [vmem:[#allocation2 + $0x6c] sm:$0xf]  ;;  %v7981_v25 = vld [vmem:[#allocation2 + $0x34] sm:$0xf] }
  0xa8   : > { %v680_v12 = vor.u32 %v678_v41, %v677_v3  ;;  %v6287_v32 = vcombine.low %v1327_v39, %v1337_v45  ;;  %v1339_v17 = vshrl.u32 %v1073_v57, 16  ;;  %v1342_v26 = vshll.u32 %v1073_v57, 16  ;;  %v909_v45 = vld [vmem:[#allocation2 + $0x84] sm:$0xf] }
  0xa9   : > { %v1112_v49 = vld [vmem:[#allocation2 + $0x74] sm:$0x1]  ;;  %v1356_v40 = vrot.slane %v1355_v2, 4  ;;  %7364 = vmatmul.mubr.bf16.gmra.mrb[12].mxu0 %v6446_v29  ;;  %v907_v27 = vsel %vm8207_vm8, %v682_v56, %v906_v8  ;;  %v402_v31 = vmax.f32 %v8709_v11, 0.0  ;;  %v403_v42 = vmax.f32 %v8712_v51, 0.0  ;;  %v7887_v2 = vld [vmem:[%s10127_s3 + $0x188] sm:$0xff]  }
  0xaa   : > { %v1358_v28 = vshll.u32 %v1112_v49, 16  ;;  %v681_v19 = vsel %vm8218_vm9, %v673_v30, %v680_v12  ;;  %7175 = vmatprep.mubr.bf16.mxu1 %v6287_v32  ;;  %v1341_v18 = vrot.slane %v1339_v17, 4  ;;  %v1344_v52 = vrot.slane %v1342_v26, 5  ;;  %7399 = vmatprep.mubr.bf16.mxu0 %v6495_v6  ;;  %908 = vst [vmem:[#allocation2 + $0x80] sm:$0x1] %v907_v27 }
  0xab   : > { %905 = vst [vmem:[#allocation2 + $0x7c] sm:$0xf] %v681_v19  ;;  %v3808_v33 = vrot.slane %v3806_v50, 4  ;;  %v6709_v30 = vpack.c.bf16 %v402_v31, %v402_v31  ;;  %v3809_v53 = vrot.slane %v7980_v14, 5  ;;  %v6466_v11 = vrot.slane %v3729_v47, 9  ;;  %v6907_v50 = vld [vmem:[%s8149_s23 + $0x58] sm:$0xff]  }
  0xac   : > { %v1360_v34 = vrot.slane %v1358_v28, 5  ;;  %v1345_v21 = vor.u32 %v1344_v52, %v1341_v18  ;;  %v6710_v15 = vpack.c.bf16 %v403_v42, %v403_v42  ;;  %v3813_v8 = vrot.slane %v7981_v25, 5  ;;  %v913_v56 = vld [vmem:[#allocation2 + $0x8c] sm:$0x1]  ;;  %v6908_v18 = vld [vmem:[%s8149_s23 + $0x60] sm:$0xff]  }
  0xad   : > { %v684_v51 = vshrl.u32 %v6709_v30, 16  ;;  %v687_v46 = vshll.u32 %v6709_v30, 16  ;;  %v3810_v37 = vsel %vm8640_vm14, %v3808_v33, %v3809_v53  ;;  %v6799_v47 = vunpack.c.l.bf16 %v6907_v50  ;;  %v3730_v52 = vld [vmem:[#allocation2 + $0x3c] sm:$0xe] }
  0xae   : > { %v1361_v9 = vsel %vm8175_vm2, %v1356_v40, %v1360_v34  ;;  %v985_v6 = vld [vmem:[#allocation2 + $0x78] sm:$0x1]  ;;  %v1346_v3 = vrot.slane %v1345_v21, 4  ;;  %v692_v62 = vshrl.u32 %v6710_v15, 16  ;;  %v695_v38 = vshll.u32 %v6710_v15, 16 }
  0xaf   : > { %v986_v41 = vsel %vm8207_vm8, 0, %v985_v6  ;;  %v686_v0 = vrot.slane %v684_v51, 7  ;;  %v6497_v22 = vcombine.low %v8724_v44, %v3810_v37  ;;  %v3814_v29 = vsel %vm8640_vm14, %v6466_v11, %v3813_v8 }
  0xb0   : > { %987 = vst [vmem:[#allocation2 + $0x78] sm:$0x1] %v986_v41  ;;  %v3815_v39 = vrot.slane %v3813_v8, 4  ;;  %v1351_v57 = vsel %vm8175_vm2, %v1346_v3, %v8727_v55  ;;  %v694_v12 = vrot.slane %v692_v62, 7  ;;  %v6800_v32 = vunpack.c.h.bf16 %v6907_v50  ;;  %v7891_v3 = vld [vmem:[%s10127_s3 + $0x198] sm:$0xff]  }
  0xb1   : > { %v6288_v49 = vcombine.low %v1351_v57, %v1361_v9  ;;  %7400 = vmatmul.mubr.bf16.vlgmr.msra.gmra.mrb[0].mxu0 %v6496_v23  ;;  %v1034_v44 = vld [vmem:[#allocation2 + $0x80] sm:$0x1]  ;;  %v689_v26 = vor.u32 %v687_v46, %v686_v0  ;;  %v690_v40 = vrot.slane %v686_v0, 4  ;;  %v333_v42 = vmul.f32 %v8496_v10, %v6799_v47 }
  0xb2   : > { %v1076_v17 = vld [vmem:[#allocation2 + $0x7c] sm:$0xf]  ;;  %v3817_v28 = vsel %vm8640_vm14, %v3815_v39, %v3816_v20  ;;  %7432 = vmatpush3.bf16.msra.mxu0 %v8489_v60  ;;  %v1035_v55 = vsel %vm8244_vm11, 0, %v1034_v44  ;;  %v697_v31 = vor.u32 %v695_v38, %v694_v12  ;;  %7403 = vmatprep.mubr.bf16.mxu0 %v6497_v22  ;;  %v699_v58 = vrot.slane %v694_v12, 4  ;;  %v7889_v60 = vld [vmem:[%s10127_s3 + $0x190] sm:$0xff]  }
  0xb3   : > { %v1372_v19 = vshll.u32 %v1076_v17, 16  ;;  %v1376_v27 = vshrl.u32 %v1076_v17, 16  ;;  %7176 = vmatmul.mubr.bf16.gmra.mrb[16].mxu1 %v6288_v49  ;;  %1036 = vst [vmem:[#allocation2 + $0x80] sm:$0x1] %v1035_v55  ;;  %v910_v61 = vsel %vm8224_vm10, %v689_v26, %v909_v45  ;;  %7433 = vmatprep.subr.bf16.mxu0 %v7887_v2  ;;  %v6498_v23 = vcombine.low %v3814_v29, %v3817_v28  ;;  %v7895_v17 = vld [vmem:[%s10127_s3 + $0x1a0] sm:$0xff]  }
  0xb4   : > { %v698_v30 = vsel %vm8218_vm9, %v690_v40, %v697_v31  ;;  %911 = vst [vmem:[#allocation2 + $0x84] sm:$0xf] %v910_v61  ;;  %v334_v14 = vmul.f32 %v8496_v10, %v6800_v32  ;;  %v914_v53 = vsel %vm8207_vm8, %v699_v58, %v913_v56  ;;  %v372_v11 = vadd.f32 %v8521_v43, %v333_v42 }
  0xb5   : > { %v8787_v33 = vrot.slane %v1372_v19, 5  ;;  %v1378_v34 = vrot.slane %v1376_v27, 4  ;;  %912 = vst [vmem:[#allocation2 + $0x88] sm:$0xf] %v698_v30  ;;  %v6803_v21 = vunpack.c.l.bf16 %v6908_v18  ;;  %v6804_v15 = vunpack.c.h.bf16 %v6908_v18  ;;  %915 = vst [vmem:[#allocation2 + $0x8c] sm:$0x1] %v914_v53 }
  0xb6   : > { %7434 = vmatpush3.bf16.msra.mxu0 %v7887_v2  ;;  %v373_v20 = vadd.f32 %v8521_v43, %v334_v14  ;;  %v6467_v9 = vrot.slane %v3730_v52, 9  ;;  %v3820_v6 = vrot.slane %v8502_v63, 5  ;;  %v404_v37 = vmax.f32 %v372_v11, 0.0  ;;  %v3731_v53 = vld [vmem:[#allocation2 + $0x48] sm:$0xe] }
  0xb7   : > { %v1075_v25 = vld [vmem:[#allocation2 + $0x78] sm:$0xf]  ;;  %v1379_v8 = vor.u32 %v1378_v34, %v8787_v33  ;;  %v335_v50 = vmul.f32 %v8496_v10, %v6803_v21  ;;  %7435 = vmatprep.subr.bf16.mxu0 %v7889_v60  ;;  %v336_v38 = vmul.f32 %v8496_v10, %v6804_v15  ;;  %v3823_v56 = vrot.slane %v8527_v4, 5  ;;  %v7899_v11 = vld [vmem:[%s10127_s3 + $0x1a8] sm:$0xff]  }
  0xb8   : > { %v1363_v51 = vshrl.u32 %v1075_v25, 16  ;;  %v1366_v46 = vshll.u32 %v1075_v25, 16  ;;  %v405_v62 = vmax.f32 %v373_v20, 0.0  ;;  %v8805_v0 = vsel %vm8640_vm14, %v6467_v9, %v3820_v6  ;;  %v920_v20 = vld [vmem:[#allocation2 + $0x98] sm:$0x1] }
  0xb9   : > { %v1380_v41 = vrot.slane %v1379_v8, 4  ;;  %7404 = vmatmul.mubr.bf16.gmra.mrb[4].mxu0 %v6498_v23  ;;  %v6711_v22 = vpack.c.bf16 %v404_v37, %v404_v37  ;;  %v374_v2 = vadd.f32 %v8521_v43, %v335_v50  ;;  %v375_v57 = vadd.f32 %v8521_v43, %v336_v38  ;;  %v916_v23 = vld [vmem:[#allocation2 + $0x90] sm:$0xf] }
  0xba   : > { %v1365_v45 = vrot.slane %v1363_v51, 4  ;;  %v1368_v63 = vrot.slane %v1366_v46, 5  ;;  %v1113_v29 = vld [vmem:[#allocation2 + $0x80] sm:$0x1]  ;;  %v6712_v39 = vpack.c.bf16 %v405_v62, %v405_v62  ;;  %v3822_v12 = vrot.slane %v3820_v6, 4  ;;  %7436 = vmatpush3.bf16.msra.mxu0 %v7889_v60 }
  0xbb   : > { %v1382_v10 = vshll.u32 %v1113_v29, 16  ;;  %v988_v32 = vld [vmem:[#allocation2 + $0x84] sm:$0x1]  ;;  %v701_v49 = vshrl.u32 %v6711_v22, 16  ;;  %v704_v44 = vshll.u32 %v6711_v22, 16  ;;  %7437 = vmatprep.subr.bf16.mxu0 %v7891_v3  ;;  %v406_v55 = vmax.f32 %v374_v2, 0.0 }
  0xbc   : > { %v1369_v47 = vor.u32 %v1368_v63, %v1365_v45  ;;  %v989_v26 = vsel %vm8207_vm8, 0, %v988_v32  ;;  %v1078_v40 = vld [vmem:[#allocation2 + $0x88] sm:$0xf]  ;;  %v709_v28 = vshrl.u32 %v6712_v39, 16  ;;  %v712_v43 = vshll.u32 %v6712_v39, 16  ;;  %v7903_v22 = vld [vmem:[%s10127_s3 + $0x1b0] sm:$0xff]  }
  0xbd   : > { %v1384_v4 = vrot.slane %v1382_v10, 5  ;;  %990 = vst [vmem:[#allocation2 + $0x84] sm:$0x1] %v989_v26  ;;  %v1037_v27 = vld [vmem:[#allocation2 + $0x8c] sm:$0x1]  ;;  %v1396_v31 = vshll.u32 %v1078_v40, 16  ;;  %v6713_v6 = vpack.c.bf16 %v406_v55, %v406_v55  ;;  %v3824_v50 = vsel %vm8640_vm14, %v3822_v12, %v3823_v56 }
  0xbe   : > { %v1370_v19 = vrot.slane %v1369_v47, 4  ;;  %v1400_v18 = vshrl.u32 %v1078_v40, 16  ;;  %v1038_v52 = vsel %vm8244_vm11, 0, %v1037_v27  ;;  %v703_v58 = vrot.slane %v701_v49, 7  ;;  %7438 = vmatpush3.bf16.msra.mxu0 %v7891_v3  ;;  %v6909_v63 = vld [vmem:[%s8149_s23 + $0x68] sm:$0xff]  }
  0xbf   : > { %v711_v61 = vrot.slane %v709_v28, 7  ;;  %v407_v42 = vmax.f32 %v375_v57, 0.0  ;;  %v1385_v34 = vsel %vm8175_vm2, %v1380_v41, %v1384_v4  ;;  %1039 = vst [vmem:[#allocation2 + $0x8c] sm:$0x1] %v1038_v52  ;;  %v8822_v30 = vrot.slane %v1396_v31, 5  ;;  %7439 = vmatprep.subr.bf16.mxu0 %v7895_v17 }
  0xc0   : > { %v1375_v60 = vsel %vm8175_vm2, %v1370_v19, %v8787_v33  ;;  %v1402_v14 = vrot.slane %v1400_v18, 4  ;;  %v706_v15 = vor.u32 %v704_v44, %v703_v58  ;;  %v707_v25 = vrot.slane %v703_v58, 4  ;;  %v927_v19 = vld [vmem:[#allocation2 + $0xa4] sm:$0x1] }
  0xc1   : > { %v6289_v21 = vcombine.low %v1375_v60, %v1385_v34  ;;  %v714_v8 = vor.u32 %v712_v43, %v711_v61  ;;  %v716_v9 = vrot.slane %v711_v61, 4  ;;  %v6714_v51 = vpack.c.bf16 %v407_v42, %v407_v42 }
  0xc2   : > { %v1403_v33 = vor.u32 %v1402_v14, %v8822_v30  ;;  %v917_v37 = vsel %vm8224_vm10, %v706_v15, %v916_v23  ;;  %v6468_v3 = vrot.slane %v3731_v53, 9  ;;  %7440 = vmatpush3.bf16.msra.mxu0 %v7895_v17  ;;  %v718_v38 = vshrl.u32 %v6713_v6, 16  ;;  %v923_v17 = vld [vmem:[#allocation2 + $0x9c] sm:$0xf]  ;;  %v6910_v15 = vld [vmem:[%s8149_s23 + $0x70] sm:$0xff]  }
  0xc3   : > { %7179 = vmatprep.mubr.bf16.mxu1 %v6289_v21  ;;  %v715_v46 = vsel %vm8218_vm9, %v707_v25, %v714_v8  ;;  %918 = vst [vmem:[#allocation2 + $0x90] sm:$0xf] %v917_v37  ;;  %v921_v62 = vsel %vm8207_vm8, %v716_v9, %v920_v20  ;;  %v721_v45 = vshll.u32 %v6713_v6, 16  ;;  %7441 = vmatprep.subr.bf16.mxu0 %v7899_v11  ;;  %v726_v29 = vshrl.u32 %v6714_v51, 16  ;;  %v8880_v6 = vld [vmem:[%s10127_s3 + $0x1c0] sm:$0xff]  }
  0xc4   : > { %v8834_v41 = vrot.slane %v1403_v33, 4  ;;  %919 = vst [vmem:[#allocation2 + $0x94] sm:$0xf] %v715_v46  ;;  %v8842_v2 = vld [vmem:[#allocation2 + $0x84] sm:$0xf]  ;;  %v729_v39 = vshll.u32 %v6714_v51, 16  ;;  %v6499_v57 = vcombine.low %v8805_v0, %v3824_v50  ;;  %v6807_v28 = vunpack.c.l.bf16 %v6909_v63 }
  0xc5   : > { %922 = vst [vmem:[#allocation2 + $0x98] sm:$0x1] %v921_v62  ;;  %v3827_v12 = vrot.slane %v8537_v24, 5  ;;  %v1387_v56 = vshrl.u32 %v8842_v2, 16  ;;  %v1390_v47 = vshll.u32 %v8842_v2, 16  ;;  %v720_v10 = vrot.slane %v718_v38, 7 }
  0xc6   : > { %v3830_v32 = vrot.slane %v8575_v48, 5  ;;  %v1114_v49 = vld [vmem:[#allocation2 + $0x8c] sm:$0x1]  ;;  %v728_v44 = vrot.slane %v726_v29, 7  ;;  %7407 = vmatprep.mubr.bf16.mxu0 %v6499_v57  ;;  %7442 = vmatpush3.bf16.msra.mxu0 %v7899_v11  ;;  %v7907_v48 = vld [vmem:[%s10127_s3 + $0x1b8] sm:$0xff]   ;;  %v6808_v53 = vunpack.c.h.bf16 %v6909_v63  ;;  %v6812_v63 = vunpack.c.h.bf16 %v6910_v15 }
  0xc7   : > { %v3828_v26 = vsel %vm8640_vm14, %v6468_v3, %v3827_v12  ;;  %v3829_v40 = vrot.slane %v3827_v12, 4  ;;  %v1389_v0 = vrot.slane %v1387_v56, 4  ;;  %v1392_v43 = vrot.slane %v1390_v47, 5  ;;  %7443 = vmatprep.subr.bf16.mxu0 %v7903_v22  ;;  %v8867_v11 = vld [vmem:[%s10125_s1] ss:$0 sm:$0xff] }
  0xc8   : > { %v1406_v24 = vshll.u32 %v1114_v49, 16  ;;  %v723_v55 = vor.u32 %v721_v45, %v720_v10  ;;  %v724_v4 = vrot.slane %v720_v10, 4  ;;  %v731_v27 = vor.u32 %v729_v39, %v728_v44  ;;  %v8889_v50 = vld [vmem:[%s10126_s2] ss:$0 sm:$0xff]  ;;  %v7984_v10 = vld [vmem:[#allocation2 + $0x58] sm:$0xf] }
  0xc9   : > { %v733_v31 = vrot.slane %v728_v44, 4  ;;  %v3831_v18 = vsel %vm8640_vm14, %v3829_v40, %v3830_v32  ;;  %v1393_v52 = vor.u32 %v1392_v43, %v1389_v0  ;;  %v337_v21 = vmul.f32 %v8867_v11, %v6807_v28 }
  0xca   : > { %v1408_v58 = vrot.slane %v1406_v24, 5  ;;  %v924_v61 = vsel %vm8224_vm10, %v723_v55, %v923_v17  ;;  %v6500_v23 = vcombine.low %v3828_v26, %v3831_v18  ;;  %v991_v42 = vld [vmem:[#allocation2 + $0x90] sm:$0x1]  ;;  %v732_v34 = vsel %vm8218_vm9, %v724_v4, %v731_v27  ;;  %7444 = vmatpush3.bf16.msra.mxu0 %v7903_v22 }
  0xcb   : > { %v8858_v60 = vld [vmem:[#allocation2 + $0x94] sm:$0xf]  ;;  %925 = vst [vmem:[#allocation2 + $0x9c] sm:$0xf] %v924_v61  ;;  %v928_v14 = vsel %vm8207_vm8, %v733_v31, %v927_v19  ;;  %v1394_v25 = vrot.slane %v1393_v52, 4  ;;  %v992_v20 = vsel %vm8207_vm8, 0, %v991_v42  ;;  %7445 = vmatprep.subr.bf16.mxu0 %v7907_v48  ;;  %v338_v37 = vmul.f32 %v8867_v11, %v6808_v53 }
  0xcc   : > { %v1409_v8 = vsel %vm8175_vm2, %v8834_v41, %v1408_v58  ;;  %v1040_v33 = vld [vmem:[#allocation2 + $0x98] sm:$0x1]  ;;  %v1420_v9 = vshll.u32 %v8858_v60, 16  ;;  %926 = vst [vmem:[#allocation2 + $0xa0] sm:$0xf] %v732_v34  ;;  %7408 = vmatmul.mubr.bf16.gmra.mrb[8].mxu0 %v6500_v23  ;;  %v1424_v46 = vshrl.u32 %v8858_v60, 16  ;;  %v376_v3 = vadd.f32 %v8889_v50, %v337_v21 }
  0xcd   : > { %929 = vst [vmem:[#allocation2 + $0xa4] sm:$0x1] %v928_v14  ;;  %993 = vst [vmem:[#allocation2 + $0x90] sm:$0x1] %v992_v20  ;;  %v1041_v51 = vsel %vm8244_vm11, 0, %v1040_v33  ;;  %v1399_v62 = vsel %vm8175_vm2, %v1394_v25, %v8822_v30  ;;  %v6811_v45 = vunpack.c.l.bf16 %v6910_v15  ;;  %v377_v39 = vadd.f32 %v8889_v50, %v338_v37 }
  0xce   : > { %v3732_v41 = vld [vmem:[#allocation2 + $0x54] sm:$0xe]  ;;  %1042 = vst [vmem:[#allocation2 + $0x98] sm:$0x1] %v1041_v51  ;;  %v8895_v38 = vrot.slane %v1420_v9, 5  ;;  %v6290_v22 = vcombine.low %v1399_v62, %v1409_v8  ;;  %v1426_v29 = vrot.slane %v1424_v46, 4  ;;  %7446 = vmatpush3.bf16.msra.mxu0 %v7907_v48  ;;  %v340_v56 = vmul.f32 %v8867_v11, %v6812_v63 }
  0xcf   : > { %v408_v57 = vmax.f32 %v376_v3, 0.0  ;;  %v339_v12 = vmul.f32 %v8867_v11, %v6811_v45  ;;  %v6469_v47 = vrot.slane %v3732_v41, 9  ;;  %v3834_v32 = vrot.slane %v7984_v10, 5  ;;  %7479 = vmatprep.subr.bf16.mxu0 %v8880_v6  ;;  %v930_v9 = vld [vmem:[#allocation2 + $0xa8] sm:$0xf] }
  0xd0   : > { %7180 = vmatmul.mubr.bf16.gmra.mrb[20].mxu1 %v6290_v22  ;;  %v1427_v30 = vor.u32 %v1426_v29, %v8895_v38  ;;  %v409_v49 = vmax.f32 %v377_v39, 0.0  ;;  %v379_v40 = vadd.f32 %v8889_v50, %v340_v56  ;;  %v3837_v0 = vrot.slane %v8616_v5, 5  ;;  %v934_v41 = vld [vmem:[#allocation2 + $0xb0] sm:$0x1] }
  0xd1   : > { %v6715_v44 = vpack.c.bf16 %v408_v57, %v408_v57  ;;  %v378_v26 = vadd.f32 %v8889_v50, %v339_v12  ;;  %v3836_v28 = vrot.slane %v3834_v32, 4  ;;  %v8911_v4 = vsel %vm8640_vm14, %v6469_v47, %v3834_v32 }
  0xd2   : > { %v994_v17 = vld [vmem:[#allocation2 + $0x9c] sm:$0x1]  ;;  %v1428_v43 = vrot.slane %v1427_v30, 4  ;;  %v6716_v48 = vpack.c.bf16 %v409_v49, %v409_v49  ;;  %v411_v12 = vmax.f32 %v379_v40, 0.0 }
  0xd3   : > { %v995_v24 = vsel %vm8207_vm8, 0, %v994_v17  ;;  %v8907_v19 = vld [vmem:[#allocation2 + $0xa0] sm:$0xf]  ;;  %v735_v52 = vshrl.u32 %v6715_v44, 16  ;;  %v738_v42 = vshll.u32 %v6715_v44, 16  ;;  %v410_v22 = vmax.f32 %v378_v26, 0.0 }
  0xd4   : > { %v1043_v55 = vld [vmem:[#allocation2 + $0xa4] sm:$0x1]  ;;  %v8913_v27 = vld [vmem:[#allocation2 + $0x90] sm:$0xf]  ;;  %996 = vst [vmem:[#allocation2 + $0x9c] sm:$0x1] %v995_v24  ;;  %v6718_v26 = vpack.c.bf16 %v411_v12, %v411_v12  ;;  %v3838_v40 = vsel %vm8640_vm14, %v3836_v28, %v3837_v0 }
  0xd5   : > { %v1044_v31 = vsel %vm8244_vm11, 0, %v1043_v55  ;;  %v1444_v5 = vshll.u32 %v8907_v19, 16  ;;  %v1448_v18 = vshrl.u32 %v8907_v19, 16  ;;  %v1115_v58 = vld [vmem:[#allocation2 + $0x98] sm:$0x1]  ;;  %v1411_v61 = vshrl.u32 %v8913_v27, 16 }
  0xd6   : > { %v1414_v23 = vshll.u32 %v8913_v27, 16  ;;  %1045 = vst [vmem:[#allocation2 + $0xa4] sm:$0x1] %v1044_v31  ;;  %v743_v34 = vshrl.u32 %v6716_v48, 16  ;;  %v1430_v14 = vshll.u32 %v1115_v58, 16  ;;  %v737_v15 = vrot.slane %v735_v52, 7 }
  0xd7   : > { %v8921_v53 = vrot.slane %v1444_v5, 5  ;;  %v1450_v21 = vrot.slane %v1448_v18, 4  ;;  %v1413_v25 = vrot.slane %v1411_v61, 4  ;;  %v746_v33 = vshll.u32 %v6716_v48, 16  ;;  %v3733_v31 = vld [vmem:[#allocation2 + $0x60] sm:$0xe] }
  0xd8   : > { %v1416_v8 = vrot.slane %v1414_v23, 5  ;;  %v745_v20 = vrot.slane %v743_v34, 7  ;;  %v1432_v51 = vrot.slane %v1430_v14, 5  ;;  %v740_v37 = vor.u32 %v738_v42, %v737_v15  ;;  %v937_v0 = vld [vmem:[#allocation2 + $0xb4] sm:$0xf] }
  0xd9   : > { %v1451_v46 = vor.u32 %v1450_v21, %v8921_v53  ;;  %v741_v3 = vrot.slane %v737_v15, 4  ;;  %v6717_v30 = vpack.c.bf16 %v410_v22, %v410_v22  ;;  %v760_v58 = vshrl.u32 %v6718_v26, 16  ;;  %v2998_v12 = vld [vmem:[#allocation2 + $0x74] sm:$0x1] }
  0xda   : > { %v1417_v62 = vor.u32 %v1416_v8, %v1413_v25  ;;  %v748_v45 = vor.u32 %v746_v33, %v745_v20  ;;  %v750_v63 = vrot.slane %v745_v20, 4  ;;  %v1433_v29 = vsel %vm8175_vm2, %v1428_v43, %v1432_v51  ;;  %v941_v8 = vld [vmem:[#allocation2 + $0xbc] sm:$0x1] }
  0xdb   : > { %v1452_v39 = vrot.slane %v1451_v46, 4  ;;  %v931_v57 = vsel %vm8224_vm10, %v740_v37, %v930_v9  ;;  %v8928_v47 = vld [vmem:[#allocation2 + $0x9c] sm:$0xf]  ;;  %v752_v55 = vshrl.u32 %v6717_v30, 16  ;;  %v755_v48 = vshll.u32 %v6717_v30, 16 }
  0xdc   : > { %v1418_v56 = vrot.slane %v1417_v62, 4  ;;  %v749_v10 = vsel %vm8218_vm9, %v741_v3, %v748_v45  ;;  %932 = vst [vmem:[#allocation2 + $0xa8] sm:$0xf] %v931_v57  ;;  %v935_v32 = vsel %vm8207_vm8, %v750_v63, %v934_v41  ;;  %v1435_v44 = vshrl.u32 %v8928_v47, 16  ;;  %v2997_v37 = vld [vmem:[#allocation2 + $0x70] sm:$0xf] }
  0xdd   : > { %v1116_v49 = vld [vmem:[#allocation2 + $0xa4] sm:$0x1]  ;;  %v1438_v17 = vshll.u32 %v8928_v47, 16  ;;  %933 = vst [vmem:[#allocation2 + $0xac] sm:$0xf] %v749_v10  ;;  %v754_v23 = vrot.slane %v752_v55, 7  ;;  %v6501_v34 = vcombine.low %v8911_v4, %v3838_v40 }
  0xde   : > { %936 = vst [vmem:[#allocation2 + $0xb0] sm:$0x1] %v935_v32  ;;  %v1423_v43 = vsel %vm8175_vm2, %v1418_v56, %v8895_v38  ;;  %v1454_v24 = vshll.u32 %v1116_v49, 16  ;;  %v1437_v18 = vrot.slane %v1435_v44, 4  ;;  %v763_v42 = vshll.u32 %v6718_v26, 16 }
  0xdf   : > { %v6291_v5 = vcombine.low %v1423_v43, %v1433_v29  ;;  %v1440_v52 = vrot.slane %v1438_v17, 5  ;;  %v762_v28 = vrot.slane %v760_v58, 7  ;;  %v6470_v21 = vrot.slane %v3733_v31, 9  ;;  %7411 = vmatprep.mubr.bf16.mxu0 %v6501_v34  ;;  %v3734_v3 = vld [vmem:[#allocation2 + $0x6c] sm:$0xe] }
  0xe0   : > { %v1456_v61 = vrot.slane %v1454_v24, 5  ;;  %v3841_v38 = vrot.slane %v8681_v54, 5  ;;  %v757_v15 = vor.u32 %v755_v48, %v754_v23  ;;  %v758_v25 = vrot.slane %v754_v23, 4  ;;  %v8967_v30 = vld [vmem:[#allocation2 + $0x7c] sm:$0xf] }
  0xe1   : > { %7183 = vmatprep.mubr.bf16.mxu1 %v6291_v5  ;;  %v1441_v14 = vor.u32 %v1440_v52, %v1437_v18  ;;  %v3844_v20 = vrot.slane %v8718_v16, 5  ;;  %v765_v46 = vor.u32 %v763_v42, %v762_v28  ;;  %v767_v4 = vrot.slane %v762_v28, 4  ;;  %v3735_v49 = vld [vmem:[#allocation2 + $0x78] sm:$0xe]  ;;  %v8971_v55 = vld [vmem:[#allocation2 + $0x80] sm:$0x1] }
  0xe2   : > { %v1457_v9 = vsel %vm8175_vm2, %v1452_v39, %v1456_v61  ;;  %v938_v45 = vsel %vm8224_vm10, %v757_v15, %v937_v0  ;;  %v3842_v16 = vsel %vm8640_vm14, %v6470_v21, %v3841_v38  ;;  %v3843_v63 = vrot.slane %v3841_v38, 4  ;;  %v3736_v61 = vld [vmem:[#allocation2 + $0x84] sm:$0xe]  ;;  %v3003_v0 = vld [vmem:[#allocation2 + $0x88] sm:$0xf] }
  0xe3   : > { %v1442_v33 = vrot.slane %v1441_v14, 4  ;;  %v997_v51 = vld [vmem:[#allocation2 + $0xa8] sm:$0x1]  ;;  %939 = vst [vmem:[#allocation2 + $0xb4] sm:$0xf] %v938_v45  ;;  %v766_v10 = vsel %vm8218_vm9, %v758_v25, %v765_v46  ;;  %v942_v32 = vsel %vm8207_vm8, %v767_v4, %v941_v8  ;;  %v6471_v40 = vrot.slane %v3734_v3, 9 }
  0xe4   : > { %v998_v41 = vsel %vm8207_vm8, 0, %v997_v51  ;;  %v8948_v54 = vld [vmem:[#allocation2 + $0xac] sm:$0xf]  ;;  %940 = vst [vmem:[#allocation2 + $0xb8] sm:$0xf] %v766_v10  ;;  %v3848_v43 = vrot.slane %v2997_v37, 5 }
  0xe5   : > { %v1046_v62 = vld [vmem:[#allocation2 + $0xb0] sm:$0x1]  ;;  %v1447_v22 = vsel %vm8175_vm2, %v1442_v33, %v8921_v53  ;;  %999 = vst [vmem:[#allocation2 + $0xa8] sm:$0x1] %v998_v41  ;;  %v1468_v39 = vshll.u32 %v8948_v54, 16  ;;  %v1472_v57 = vshrl.u32 %v8948_v54, 16  ;;  %v3845_v53 = vsel %vm8640_vm14, %v3843_v63, %v3844_v20 }
  0xe6   : > { %v1047_v29 = vsel %vm8244_vm11, 0, %v1046_v62  ;;  %v6292_v56 = vcombine.low %v1447_v22, %v1457_v9  ;;  %943 = vst [vmem:[#allocation2 + $0xbc] sm:$0x1] %v942_v32  ;;  %v6502_v26 = vcombine.low %v3842_v16, %v3845_v53  ;;  %v3851_v24 = vrot.slane %v2998_v12, 5  ;;  %v3004_v21 = vld [vmem:[#allocation2 + $0x8c] sm:$0x1] }
  0xe7   : > { %1048 = vst [vmem:[#allocation2 + $0xb0] sm:$0x1] %v1047_v29  ;;  %v8969_v44 = vrot.slane %v1468_v39, 5  ;;  %v1474_v17 = vrot.slane %v1472_v57, 4  ;;  %v6472_v48 = vrot.slane %v3735_v49, 9  ;;  %v3855_v31 = vrot.slane %v8967_v30, 5 }
  0xe8   : > { %7184 = vmatmul.mubr.bf16.gmra.mrb[24].mxu1 %v6292_v56  ;;  %7412 = vmatmul.mubr.bf16.gmra.mrb[12].mxu0 %v6502_v26  ;;  %v3849_v18 = vsel %vm8640_vm14, %v6471_v40, %v3848_v43  ;;  %v3850_v52 = vrot.slane %v3848_v43, 4  ;;  %v3858_v28 = vrot.slane %v8971_v55, 5  ;;  %v3006_v33 = vld [vmem:[#allocation2 + $0x94] sm:$0xf]  ;;  %v3737_v16 = vld [vmem:[#allocation2 + $0x90] sm:$0xe] }
  0xe9   : > { %v1475_v5 = vor.u32 %v1474_v17, %v8969_v44  ;;  %v3857_v58 = vrot.slane %v3855_v31, 4  ;;  %v3856_v14 = vsel %vm8640_vm14, %v6472_v48, %v3855_v31  ;;  %v6473_v39 = vrot.slane %v3736_v61, 9  ;;  %v3007_v57 = vld [vmem:[#allocation2 + $0x98] sm:$0x1]  ;;  %v3738_v53 = vld [vmem:[#allocation2 + $0x9c] sm:$0xe] }
  0xea   : > { %v1000_v42 = vld [vmem:[#allocation2 + $0xb4] sm:$0x1]  ;;  %v3852_v34 = vsel %vm8640_vm14, %v3850_v52, %v3851_v24  ;;  %v3862_v10 = vrot.slane %v3003_v0, 5  ;;  %v3865_v32 = vrot.slane %v3004_v21, 5  ;;  %v6474_v17 = vrot.slane %v3737_v16, 9 }
  0xeb   : > { %v1001_v8 = vsel %vm8207_vm8, 0, %v1000_v42  ;;  %v6503_v20 = vcombine.low %v3849_v18, %v3852_v34  ;;  %v1476_v9 = vrot.slane %v1475_v5, 4  ;;  %v8988_v4 = vld [vmem:[#allocation2 + $0xb8] sm:$0xf]  ;;  %v3859_v37 = vsel %vm8640_vm14, %v3857_v58, %v3858_v28  ;;  %v3009_v40 = vld [vmem:[#allocation2 + $0xa0] sm:$0xf] }
  0xec   : > { %v8977_v23 = vld [vmem:[#allocation2 + $0xa8] sm:$0xf]  ;;  %1002 = vst [vmem:[#allocation2 + $0xb4] sm:$0x1] %v1001_v8  ;;  %v1492_v45 = vshll.u32 %v8988_v4, 16  ;;  %v1496_v22 = vshrl.u32 %v8988_v4, 16  ;;  %v6504_v29 = vcombine.low %v3856_v14, %v3859_v37  ;;  %v3863_v18 = vsel %vm8640_vm14, %v6473_v39, %v3862_v10 }
  0xed   : > { %v1459_v15 = vshrl.u32 %v8977_v23, 16  ;;  %v1462_v25 = vshll.u32 %v8977_v23, 16  ;;  %v1049_v46 = vld [vmem:[#allocation2 + $0xbc] sm:$0x1]  ;;  %7415 = vmatprep.mubr.bf16.mxu0 %v6503_v20  ;;  %v3869_v26 = vrot.slane %v3006_v33, 5  ;;  %v3864_v48 = vrot.slane %v3862_v10, 4 }
  0xee   : > { %v1117_v38 = vld [vmem:[#allocation2 + $0xb0] sm:$0x1]  ;;  %v1050_v62 = vsel %vm8244_vm11, 0, %v1049_v46  ;;  %v8996_v56 = vrot.slane %v1492_v45, 5  ;;  %v1498_v49 = vrot.slane %v1496_v22, 4  ;;  %v3872_v31 = vrot.slane %v3007_v57, 5 }
  0xef   : > { %v1478_v51 = vshll.u32 %v1117_v38, 16  ;;  %v1461_v3 = vrot.slane %v1459_v15, 4  ;;  %v1464_v41 = vrot.slane %v1462_v25, 5  ;;  %1051 = vst [vmem:[#allocation2 + $0xbc] sm:$0x1] %v1050_v62  ;;  %v3871_v52 = vrot.slane %v3869_v26, 4 }
  0xf0   : > { %7416 = vmatmul.mubr.bf16.gmra.mrb[16].mxu0 %v6504_v29  ;;  %v1499_v5 = vor.u32 %v1498_v49, %v8996_v56  ;;  %v3010_v58 = vld [vmem:[#allocation2 + $0xa4] sm:$0x1]  ;;  %v3739_v61 = vld [vmem:[#allocation2 + $0xa8] sm:$0xe]  ;;  %v3866_v14 = vsel %vm8640_vm14, %v3864_v48, %v3865_v32  ;;  %v3870_v28 = vsel %vm8640_vm14, %v6474_v17, %v3869_v26  ;;  %v6475_v0 = vrot.slane %v3738_v53, 9  ;;  %v6911_v26 = vld [vmem:[%s8149_s23 + $0x78] sm:$0xff]  }
  0xf1   : > { %v1480_v63 = vrot.slane %v1478_v51, 5  ;;  %v1465_v12 = vor.u32 %v1464_v41, %v1461_v3  ;;  %v3012_v8 = vld [vmem:[#allocation2 + $0xac] sm:$0xf]  ;;  %v6505_v33 = vcombine.low %v3863_v18, %v3866_v14  ;;  %v3879_v51 = vrot.slane %v3010_v58, 5  ;;  %v3013_v46 = vld [vmem:[#allocation2 + $0xb0] sm:$0x1] }
  0xf2   : > { %v1500_v25 = vrot.slane %v1499_v5, 4  ;;  %v3883_v22 = vrot.slane %v3012_v8, 5  ;;  %v3740_v29 = vld [vmem:[#allocation2 + $0xb4] sm:$0xe]  ;;  %v3015_v10 = vld [vmem:[#allocation2 + $0xb8] sm:$0xf] }
  0xf3   : > { %v1466_v43 = vrot.slane %v1465_v12, 4  ;;  %v1481_v24 = vsel %vm8175_vm2, %v1476_v9, %v1480_v63  ;;  %v9006_v34 = vld [vmem:[#allocation2 + $0xb4] sm:$0xf]  ;;  %v3876_v9 = vrot.slane %v3009_v40, 5  ;;  %7419 = vmatprep.mubr.bf16.mxu0 %v6505_v33  ;;  %v6476_v63 = vrot.slane %v3739_v61, 9  ;;  %v7973_v36 = vld [vmem:[#allocation2 + $0xa8] sm:$0xff]  }
  0xf4   : > { %v1483_v38 = vshrl.u32 %v9006_v34, 16  ;;  %v1486_v15 = vshll.u32 %v9006_v34, 16  ;;  %v3886_v12 = vrot.slane %v3013_v46, 5  ;;  %v3885_v17 = vrot.slane %v3883_v22, 4  ;;  %v7985_v61 = vld [vmem:[#allocation2] sm:$0xf] }
  0xf5   : > { %v1471_v42 = vsel %vm8175_vm2, %v1466_v43, %v8969_v44  ;;  %v3873_v44 = vsel %vm8640_vm14, %v3871_v52, %v3872_v31  ;;  %v3877_v45 = vsel %vm8640_vm14, %v6475_v0, %v3876_v9  ;;  %v3878_v16 = vrot.slane %v3876_v9, 4 }
  0xf6   : > { %v6293_v21 = vcombine.low %v1471_v42, %v1481_v24  ;;  %v9014_v20 = vld [vmem:[#allocation2 + $0xbc] sm:$0x1]  ;;  %v1485_v37 = vrot.slane %v1483_v38, 4  ;;  %v1488_v3 = vrot.slane %v1486_v15, 5  ;;  %v6506_v62 = vcombine.low %v3870_v28, %v3873_v44  ;;  %v9033_v42 = vld [vmem:[#allocation2 + $0x4] sm:$0xf] }
  0xf7   : > { %v1502_v41 = vshll.u32 %v9014_v20, 16  ;;  %v3016_v32 = vld [vmem:[#allocation2 + $0xbc] sm:$0x1]  ;;  %v3880_v53 = vsel %vm8640_vm14, %v3878_v16, %v3879_v51  ;;  %v3884_v49 = vsel %vm8640_vm14, %v6476_v63, %v3883_v22  ;;  %v6477_v48 = vrot.slane %v3740_v29, 9  ;;  %v7898_v22 = vld [vmem:[%s10127_s3 + $0x88] sm:$0xff]  }
  0xf8   : > { %7187 = vmatprep.mubr.bf16.mxu1 %v6293_v21  ;;  %v1489_v39 = vor.u32 %v1488_v3, %v1485_v37  ;;  %7420 = vmatmul.mubr.bf16.gmra.mrb[20].mxu0 %v6506_v62  ;;  %v6507_v24 = vcombine.low %v3877_v45, %v3880_v53  ;;  %v3887_v31 = vsel %vm8640_vm14, %v3885_v17, %v3886_v12  ;;  %v3890_v5 = vrot.slane %v3015_v10, 5  ;;  %v9044_v37 = vld [vmem:[#allocation2 + $0x10] sm:$0xf]  ;;  %v7988_v3 = vld [vmem:[#allocation2 + $0xc] sm:$0xf]  ;;  %v7991_v10 = vld [vmem:[%s10127_s3 + $0x80] sm:$0xff]  }
  0xf9   : > { %v1504_v57 = vrot.slane %v1502_v41, 5  ;;  %v3893_v18 = vrot.slane %v3016_v32, 5  ;;  %v6815_v52 = vunpack.c.l.bf16 %v6911_v26  ;;  %v6303_v14 = vcombine.low %v7985_v61, %v9033_v42  ;;  %v9047_v62 = vld [vmem:[#allocation2 + $0x1c] sm:$0xf]  ;;  %v7990_v45 = vld [vmem:[#allocation2 + $0x18] sm:$0xf] }
  0xfa   : > { %v1490_v40 = vrot.slane %v1489_v39, 4  ;;  %7423 = vmatprep.mubr.bf16.mxu0 %v6507_v24  ;;  %v6508_v28 = vcombine.low %v3884_v49, %v3887_v31  ;;  %v6816_v0 = vunpack.c.h.bf16 %v6911_v26  ;;  %v3891_v38 = vsel %vm8640_vm14, %v6477_v48, %v3890_v5  ;;  %v944_v53 = vld [vmem:[#allocation2 + $0xc0] sm:$0xf]  ;;  %v7902_v49 = vld [vmem:[%s10127_s3 + $0x90] sm:$0xff]   ;;  %v9059_v48 = vld [vmem:[#allocation2 + $0x28] sm:$0xf] }
  0xfb   : > { %v1505_v43 = vsel %vm8175_vm2, %v1500_v25, %v1504_v57  ;;  %v3892_v15 = vrot.slane %v3890_v5, 4  ;;  %v341_v25 = vmul.f32 %v8867_v11, %v6815_v52  ;;  %v6304_v41 = vcombine.low %v7988_v3, %v9044_v37  ;;  %v7993_v31 = vld [vmem:[#allocation2 + $0x24] sm:$0xf]  ;;  %v7994_v52 = vld [vmem:[#allocation2 + $0x30] sm:$0xf] }
  0xfc   : > { %v1495_v58 = vsel %vm8175_vm2, %v1490_v40, %v8996_v56  ;;  %v342_v8 = vmul.f32 %v8867_v11, %v6816_v0  ;;  %v6305_v16 = vcombine.low %v7990_v45, %v9047_v62  ;;  %v948_v40 = vld [vmem:[#allocation2 + $0xc8] sm:$0x1]  ;;  %v6306_v5 = vcombine.low %v7993_v31, %v9059_v48  ;;  %v7906_v0 = vld [vmem:[%s10127_s3 + $0x98] sm:$0xff]  }
  0xfd   : > { %v6294_v21 = vcombine.low %v1495_v58, %v1505_v43  ;;  %v3894_v56 = vsel %vm8640_vm14, %v3892_v15, %v3893_v18  ;;  %v380_v33 = vadd.f32 %v8889_v50, %v341_v25  ;;  %v9064_v58 = vld [vmem:[#allocation2 + $0x34] sm:$0xf]  ;;  %v9080_v25 = vld [vmem:[#allocation2 + $0x4c] sm:$0xf]  ;;  %v3250_v1 = vshrl.u32 %v8967_v30, 16 }
  0xfe   : > { %v6509_v44 = vcombine.low %v3891_v38, %v3894_v56  ;;  %v381_v9 = vadd.f32 %v8889_v50, %v342_v8  ;;  %v6307_v61 = vcombine.low %v7994_v52, %v9064_v58  ;;  %v7999_v8 = vld [vmem:[#allocation2 + $0x48] sm:$0xf]  ;;  %v7911_v52 = vld [vmem:[#allocation2 + $0x18] sm:$0xff]  }
  0xff   : > { %7188 = vmatmul.mubr.bf16.gmra.mrb[28].mxu1 %v6294_v21  ;;  %v412_v51 = vmax.f32 %v380_v33, 0.0  ;;  %v7997_v21 = vld [vmem:[#allocation2 + $0x3c] sm:$0xf]  ;;  %v6309_v56 = vcombine.low %v7999_v8, %v9080_v25  ;;  %v8004_v31 = vld [vmem:[#allocation2 + $0x8] sm:$0x1] }
 0x100   : > { %7207 = vmatprep.mubr.bf16.mxu1 %v6303_v14  ;;  %7424 = vmatmul.mubr.bf16.gmra.mrb[24].mxu0 %v6508_v28  ;;  %v413_v46 = vmax.f32 %v381_v9, 0.0  ;;  %v6308_v38 = vcombine.low %v7997_v21, %v9077_v13 }
 0x101   : > { %7427 = vmatprep.mubr.bf16.mxu0 %v6509_v44  ;;  %v6719_v11 = vpack.c.bf16 %v412_v51, %v412_v51 }
 0x102   : > { %v6720_v63 = vpack.c.bf16 %v413_v46, %v413_v46  ;;  %v7916_v46 = vld [vmem:[%s10127_s3 + $0xa8] sm:$0xff]  }
 0x103   : > { %v769_v50 = vshrl.u32 %v6719_v11, 16  ;;  %v772_v29 = vshll.u32 %v6719_v11, 16  ;;  %v3246_v11 = vshll.u32 %v8967_v30, 16  ;;  %v3252_v30 = vrot.slane %v3250_v1, 4 }
 0x104   : > { %v777_v39 = vshrl.u32 %v6720_v63, 16  ;;  %v780_v57 = vshll.u32 %v6720_v63, 16  ;;  %v8001_v63 = vld [vmem:[#allocation2 + $0x54] sm:$0xf]  ;;  %v2175_v1 = vrot.slane %v9059_v48, 5 }
 0x105   : > { %v771_v12 = vrot.slane %v769_v50, 7 }
 0x106   : > { %v779_v32 = vrot.slane %v777_v39, 7  ;;  %v8003_v39 = vld [vmem:[#allocation2 + $0x60] sm:$0xf] }
 0x107   : > { %7208 = vmatmul.mubr.bf16.vlgmr.msra.gmra.mrb[0].mxu1 %v6304_v41  ;;  %v774_v17 = vor.u32 %v772_v29, %v771_v12  ;;  %v775_v26 = vrot.slane %v771_v12, 4  ;;  %v9098_v29 = vld [vmem:[#allocation2 + $0x64] sm:$0xf]  ;;  %v9101_v12 = vrot.slane %v3246_v11, 5 }
 0x108   : > { %7240 = vmatpush3.bf16.msra.mxu1 %v7991_v10  ;;  %7211 = vmatprep.mubr.bf16.mxu1 %v6305_v16  ;;  %v782_v43 = vor.u32 %v780_v57, %v779_v32  ;;  %v784_v24 = vrot.slane %v779_v32, 4  ;;  %v9095_v16 = vld [vmem:[#allocation2 + $0x58] sm:$0xf]  ;;  %v6311_v57 = vcombine.low %v8003_v39, %v9098_v29 }
 0x109   : > { %7241 = vmatprep.subr.bf16.mxu1 %v7898_v22  ;;  %v945_v18 = vsel %vm8224_vm10, %v774_v17, %v944_v53  ;;  %10149 = vst [vmem:[#allocation3_spill] sm:$0xff] %v9101_v12  ;;  %v7928_v32 = vld [vmem:[%s10127_s3 + $0xb8] sm:$0xff]   ;;  %v2101_v17 = vld [vmem:[#allocation2] sm:$0xe] }
 0x10a   : > { %v783_v14 = vsel %vm8218_vm9, %v775_v26, %v782_v43  ;;  %946 = vst [vmem:[#allocation2 + $0xc0] sm:$0xf] %v945_v18  ;;  %v949_v28 = vsel %vm8207_vm8, %v784_v24, %v948_v40  ;;  %v2154_v26 = vrot.slane %v9033_v42, 5  ;;  %v2161_v40 = vrot.slane %v9044_v37, 5  ;;  %v2102_v43 = vld [vmem:[#allocation2 + $0xc] sm:$0xe] }
 0x10b   : > { %947 = vst [vmem:[#allocation2 + $0xc4] sm:$0xf] %v783_v14  ;;  %950 = vst [vmem:[#allocation2 + $0xc8] sm:$0x1] %v949_v28  ;;  %v2168_v24 = vrot.slane %v9047_v62, 5  ;;  %v3253_v37 = vor.u32 %v3252_v30, %v9101_v12  ;;  %v3256_v14 = vshll.u32 %v8971_v55, 16 }
 0x10c   : > { %7242 = vmatpush3.bf16.msra.mxu1 %v7898_v22  ;;  %v6310_v22 = vcombine.low %v8001_v63, %v9095_v16  ;;  %v2103_v42 = vld [vmem:[#allocation2 + $0x18] sm:$0xe]  ;;  %v6327_v62 = vrot.slane %v2101_v17, 9  ;;  %v2163_v8 = vrot.slane %v2161_v40, 4  ;;  %v9123_v55 = vld [vmem:[#allocation2 + $0x7c] sm:$0xf] }
 0x10d   : > { %7243 = vmatprep.subr.bf16.mxu1 %v7902_v49  ;;  %v9129_v63 = vrot.slane %v3256_v14, 5  ;;  %v7917_v30 = vld [vmem:[#allocation2 + $0x30] sm:$0xff]  }
 0x10e   : > { %v9137_v39 = vsel %vm8640_vm14, %v6327_v62, %v2154_v26 }
 0x10f   : > { %7212 = vmatmul.mubr.bf16.gmra.mrb[4].mxu1 %v6306_v5  ;;  %v2157_v5 = vrot.slane %v8004_v31, 5  ;;  %10151 = vst [vmem:[#allocation5_spill] sm:$0xff] %v9129_v63  ;;  %v6315_v31 = vcombine.low %v8913_v27, %v8858_v60  ;;  %v9176_v60 = vld [vmem:[#allocation2 + $0x54] sm:$0xe]  ;;  %v4611_v27 = vld [vmem:[#allocation2 + $0x18] sm:$0xf] }
 0x110   : > { %7215 = vmatprep.mubr.bf16.mxu1 %v6307_v61  ;;  %7244 = vmatpush3.bf16.msra.mxu1 %v7902_v49  ;;  %v9116_v61 = vld [vmem:[%s10127_s3 + $0xc0] sm:$0xff]   ;;  %v8023_v63 = vld [vmem:[#allocation2 + $0x98] sm:$0x1] }
 0x111   : > { %7245 = vmatprep.subr.bf16.mxu1 %v7906_v0  ;;  %v1003_v15 = vld [vmem:[#allocation2 + $0xc0] sm:$0x1]  ;;  %v3741_v3 = vld [vmem:[#allocation2 + $0xc0] sm:$0xe] }
 0x112   : > { %v1052_v33 = vld [vmem:[#allocation2 + $0xc8] sm:$0x1]  ;;  %v1004_v44 = vsel %vm8207_vm8, 0, %v1003_v15  ;;  %v3018_v51 = vld [vmem:[#allocation2 + $0xc4] sm:$0xf]  ;;  %v6478_v45 = vrot.slane %v3741_v3, 9 }
 0x113   : > { %v1053_v9 = vsel %vm8244_vm11, 0, %v1052_v33  ;;  %1005 = vst [vmem:[#allocation2 + $0xc0] sm:$0x1] %v1004_v44  ;;  %v3897_v41 = vrot.slane %v3018_v51, 5  ;;  %v6328_v15 = vrot.slane %v2102_v43, 9  ;;  %v2170_v51 = vrot.slane %v2168_v24, 4 }
 0x114   : > { %7246 = vmatpush3.bf16.msra.mxu1 %v7906_v0  ;;  %1054 = vst [vmem:[#allocation2 + $0xc8] sm:$0x1] %v1053_v9  ;;  %v2104_v0 = vld [vmem:[#allocation2 + $0x24] sm:$0xe]  ;;  %v8007_v33 = vld [vmem:[#allocation2 + $0x6c] sm:$0xf] }
 0x115   : > { %7247 = vmatprep.subr.bf16.mxu1 %v7910_v7  ;;  %v3899_v50 = vrot.slane %v3897_v41, 4  ;;  %v3898_v53 = vsel %vm8640_vm14, %v6478_v45, %v3897_v41  ;;  %v6329_v9 = vrot.slane %v2103_v42, 9  ;;  %v8010_v41 = vld [vmem:[#allocation2 + $0x78] sm:$0xf]  ;;  %v9127_v45 = vrot.slane %v3253_v37, 4 }
 0x116   : > { %v6313_v11 = vcombine.low %v8010_v41, %v9123_v55  ;;  %v2182_v43 = vrot.slane %v9064_v58, 5  ;;  %v2107_v37 = vld [vmem:[#allocation2 + $0x48] sm:$0xe]  ;;  %v4660_v41 = vshrl.u32 %v4611_v27, 16 }
 0x117   : > { %7216 = vmatmul.mubr.bf16.gmra.mrb[8].mxu1 %v6308_v38  ;;  %v2156_v38 = vrot.slane %v2154_v26, 4  ;;  %10150 = vst [vmem:[#allocation4_spill] sm:$0xff] %v9127_v45  ;;  %v9157_v17 = vsel %vm8640_vm14, %v6329_v9, %v2168_v24 }
 0x118   : > { %7219 = vmatprep.mubr.bf16.mxu1 %v6309_v56  ;;  %7248 = vmatpush3.bf16.msra.mxu1 %v7910_v7  ;;  %v8005_v7 = vld [vmem:[#allocation2 + $0x14] sm:$0x1]  ;;  %v9120_v56 = vld [vmem:[#allocation2 + $0x70] sm:$0xf] }
 0x119   : > { %7249 = vmatprep.subr.bf16.mxu1 %v7916_v46  ;;  %v2164_v21 = vrot.slane %v8005_v7, 5  ;;  %v6312_v44 = vcombine.low %v8007_v33, %v9120_v56  ;;  %v9142_v48 = vsel %vm8640_vm14, %v2156_v38, %v2157_v5  ;;  %v6316_v5 = vcombine.low %v8928_v47, %v8907_v19  ;;  %v4612_v38 = vld [vmem:[#allocation2 + $0x1c] sm:$0xf]  ;;  %v8013_v33 = vld [vmem:[#allocation2 + $0x38] sm:$0x1] }
 0x11a   : > { %v2189_v7 = vrot.slane %v9077_v13, 5  ;;  %v7924_v13 = vld [vmem:[%s10127_s3 + $0x1d0] sm:$0xff]   ;;  %v4616_v19 = vld [vmem:[#allocation2 + $0x2c] sm:$0x1]  ;;  %v10152_v47 = vcombine.low %v8977_v23, %v8948_v54 }
 0x11b   : > { %v3019_v10 = vld [vmem:[#allocation2 + $0xc8] sm:$0x1] }
 0x11c   : > { %7250 = vmatpush3.bf16.msra.mxu1 %v7916_v46  ;;  %v3900_v49 = vrot.slane %v3019_v10, 5  ;;  %v8008_v46 = vld [vmem:[#allocation2 + $0x20] sm:$0x1]  ;;  %v9146_v10 = vsel %vm8640_vm14, %v6328_v15, %v2161_v40 }
 0x11d   : > { %7251 = vmatprep.subr.bf16.mxu1 %v7922_v59  ;;  %v2171_v3 = vrot.slane %v8008_v46, 5  ;;  %v8014_v46 = vld [vmem:[#allocation2 + $0x44] sm:$0x1] }
 0x11e   : > { %v3901_v18 = vsel %vm8640_vm14, %v3899_v50, %v3900_v49  ;;  %v7918_v49 = vld [vmem:[%s10127_s3 + $0x1c8] sm:$0xff]  }
 0x11f   : > { %7220 = vmatmul.mubr.bf16.gmra.mrb[12].mxu1 %v6310_v22  ;;  %v6510_v28 = vcombine.low %v3898_v53, %v3901_v18  ;;  %v9131_v22 = vld [vmem:[#allocation2 + $0x88] sm:$0xf]  ;;  %v2106_v53 = vld [vmem:[#allocation2 + $0x3c] sm:$0xe]  ;;  %v9161_v26 = vsel %vm8640_vm14, %v2170_v51, %v2171_v3  ;;  %v2177_v18 = vrot.slane %v2175_v1, 4  ;;  %v2192_v3 = vrot.slane %v8014_v46, 5 }
 0x120   : > { %7223 = vmatprep.mubr.bf16.mxu1 %v6311_v57  ;;  %7252 = vmatpush3.bf16.msra.mxu1 %v7922_v59  ;;  %v2105_v59 = vld [vmem:[#allocation2 + $0x30] sm:$0xe]  ;;  %v6314_v50 = vcombine.low %v8842_v2, %v9131_v22  ;;  %v7913_v57 = vld [vmem:[#allocation2 + $0x24] sm:$0xff]   ;;  %v6330_v2 = vrot.slane %v2104_v0, 9  ;;  %v6332_v9 = vrot.slane %v2106_v53, 9  ;;  %v2210_v46 = vrot.slane %v9098_v29, 5 }
 0x121   : > { %7253 = vmatprep.subr.bf16.mxu1 %v7928_v32  ;;  %7428 = vmatmul.mubr.bf16.gmra.mrb[28].mxu0 %v6510_v28  ;;  %v6331_v40 = vrot.slane %v2105_v59, 9  ;;  %v4614_v51 = vld [vmem:[#allocation2 + $0x24] sm:$0xf]  ;;  %v6333_v59 = vrot.slane %v2107_v37, 9  ;;  %v2109_v53 = vld [vmem:[#allocation2 + $0x60] sm:$0xe] }
 0x122   : > { %7447 = vmatprep.mubr.bf16.mxu0 %v7911_v52  ;;  %v8012_v52 = vld [vmem:[#allocation2 + $0x2c] sm:$0x1]  ;;  %v9182_v0 = vsel %vm8640_vm14, %v6330_v2, %v2175_v1  ;;  %v7919_v1 = vld [vmem:[#allocation2 + $0x3c] sm:$0xff]   ;;  %v9206_v37 = vsel %vm8640_vm14, %v6332_v9, %v2189_v7  ;;  %v4687_v28 = vshll.u32 %v4614_v51, 16  ;;  %v6335_v9 = vrot.slane %v2109_v53, 9 }
 0x123   : > { %v2178_v42 = vrot.slane %v8012_v52, 5  ;;  %v9188_v15 = vsel %vm8640_vm14, %v6331_v40, %v2182_v43  ;;  %v7923_v40 = vld [vmem:[#allocation2 + $0x48] sm:$0xff]   ;;  %v2212_v58 = vrot.slane %v2210_v46, 4  ;;  %v7934_v53 = vld [vmem:[%s10127_s3 + $0x1e0] sm:$0xff]  }
 0x124   : > { %7254 = vmatpush3.bf16.msra.mxu1 %v7928_v32  ;;  %v9150_v32 = vsel %vm8640_vm14, %v2163_v8, %v2164_v21  ;;  %v2196_v21 = vrot.slane %v9080_v25, 5  ;;  %v2184_v8 = vrot.slane %v2182_v43, 4  ;;  %v2191_v43 = vrot.slane %v2189_v7, 4 }
 0x125   : > { %7287 = vmatprep.subr.bf16.mxu1 %v9116_v61  ;;  %v9196_v25 = vsel %vm8640_vm14, %v2177_v18, %v2178_v42  ;;  %v2203_v18 = vrot.slane %v9095_v16, 5  ;;  %v2110_v42 = vld [vmem:[#allocation2 + $0x6c] sm:$0xe]  ;;  %v4684_v16 = vshrl.u32 %v4614_v51, 16  ;;  %v8017_v51 = vld [vmem:[#allocation2 + $0x68] sm:$0x1] }
 0x126   : > { %v2198_v52 = vrot.slane %v2196_v21, 4  ;;  %v9215_v7 = vsel %vm8640_vm14, %v6333_v59, %v2196_v21  ;;  %v6336_v14 = vrot.slane %v2110_v42, 9  ;;  %v8018_v21 = vld [vmem:[#allocation2 + $0x74] sm:$0x1] }
 0x127   : > { %7224 = vmatmul.mubr.bf16.gmra.mrb[16].mxu1 %v6312_v44  ;;  %v2185_v44 = vrot.slane %v8013_v33, 5  ;;  %v6334_v33 = vrot.slane %v9176_v60, 9  ;;  %v4662_v60 = vrot.slane %v4660_v41, 4  ;;  %v2213_v41 = vrot.slane %v8017_v51, 5 }
 0x128   : > { %7227 = vmatprep.mubr.bf16.mxu1 %v6313_v11  ;;  %v4663_v11 = vshll.u32 %v4611_v27, 16  ;;  %v2220_v59 = vrot.slane %v8018_v21, 5  ;;  %v4620_v21 = vld [vmem:[#allocation2 + $0x3c] sm:$0xf] }
 0x129   : > { %7448 = vmatmul.mubr.bf16.vlgmr.msra.gmra.mrb[0].mxu0 %v7913_v57  ;;  %v8015_v57 = vld [vmem:[#allocation2 + $0x50] sm:$0x1]  ;;  %v9202_v27 = vsel %vm8640_vm14, %v2184_v8, %v2185_v44  ;;  %v8016_v8 = vld [vmem:[#allocation2 + $0x5c] sm:$0x1] }
 0x12a   : > { %7480 = vmatpush3.bf16.msra.mxu0 %v8880_v6  ;;  %7451 = vmatprep.mubr.bf16.mxu0 %v7917_v30  ;;  %v2199_v2 = vrot.slane %v8015_v57, 5  ;;  %v4669_v6 = vshll.u32 %v4612_v38, 16  ;;  %v4673_v30 = vshrl.u32 %v4612_v38, 16  ;;  %v2217_v38 = vrot.slane %v9120_v56, 5  ;;  %v4613_v57 = vld [vmem:[#allocation2 + $0x20] sm:$0x1] }
 0x12b   : > { %7481 = vmatprep.subr.bf16.mxu0 %v7918_v49  ;;  %v4665_v62 = vrot.slane %v4663_v11, 5  ;;  %v2206_v29 = vrot.slane %v8016_v8, 5  ;;  %v4615_v11 = vld [vmem:[#allocation2 + $0x28] sm:$0xf]  ;;  %v4679_v42 = vshll.u32 %v4613_v57, 16  ;;  %v9248_v57 = vsel %vm8640_vm14, %v6335_v9, %v2210_v46 }
 0x12c   : > { %v9217_v44 = vrot.slane %v4669_v6, 5  ;;  %v4675_v56 = vrot.slane %v4673_v30, 4  ;;  %v2219_v24 = vrot.slane %v2217_v38, 4  ;;  %v9225_v6 = vsel %vm8640_vm14, %v2198_v52, %v2199_v2  ;;  %v7929_v52 = vld [vmem:[#allocation2 + $0x60] sm:$0xff]  }
 0x12d   : > { %v4666_v30 = vor.u32 %v4665_v62, %v4662_v60  ;;  %v4693_v8 = vshll.u32 %v4615_v11, 16  ;;  %v4697_v51 = vshrl.u32 %v4615_v11, 16  ;;  %v9237_v62 = vsel %vm8640_vm14, %v6334_v33, %v2203_v18 }
 0x12e   : > { %7482 = vmatpush3.bf16.msra.mxu0 %v7918_v49  ;;  %v9221_v49 = vsel %vm8640_vm14, %v2191_v43, %v2192_v3  ;;  %v4686_v3 = vrot.slane %v4684_v16, 4  ;;  %v4689_v43 = vrot.slane %v4687_v28, 5  ;;  %v9252_v60 = vsel %vm8640_vm14, %v2212_v58, %v2213_v41  ;;  %v4618_v16 = vld [vmem:[#allocation2 + $0x34] sm:$0xf]  ;;  %v8019_v41 = vld [vmem:[#allocation2 + $0x80] sm:$0x1] }
 0x12f   : > { %7228 = vmatmul.mubr.bf16.gmra.mrb[20].mxu1 %v6314_v50  ;;  %7483 = vmatprep.subr.bf16.mxu0 %v7924_v13  ;;  %v7930_v50 = vld [vmem:[%s10127_s3 + $0x1d8] sm:$0xff]   ;;  %v9256_v33 = vsel %vm8640_vm14, %v6336_v14, %v2217_v38  ;;  %v4667_v46 = vrot.slane %v4666_v30, 4  ;;  %v9272_v54 = vrot.slane %v4693_v8, 5  ;;  %v4699_v23 = vrot.slane %v4697_v51, 4 }
 0x130   : > { %7231 = vmatprep.mubr.bf16.mxu1 %v6315_v31  ;;  %v2205_v31 = vrot.slane %v2203_v18, 4  ;;  %v9260_v18 = vsel %vm8640_vm14, %v2219_v24, %v2220_v59  ;;  %v4690_v38 = vor.u32 %v4689_v43, %v4686_v3  ;;  %v4617_v24 = vld [vmem:[#allocation2 + $0x30] sm:$0xf]  ;;  %v2224_v11 = vrot.slane %v9123_v55, 5 }
 0x131   : > { %7452 = vmatmul.mubr.bf16.gmra.mrb[4].mxu0 %v7919_v1  ;;  %v4676_v1 = vor.u32 %v4675_v56, %v9217_v44  ;;  %v4681_v56 = vrot.slane %v4679_v42, 5  ;;  %v4708_v59 = vshrl.u32 %v4617_v24, 16  ;;  %v4711_v30 = vshll.u32 %v4617_v24, 16  ;;  %v7942_v55 = vld [vmem:[%s10127_s3 + $0x1f0] sm:$0xff]  }
 0x132   : > { %7455 = vmatprep.mubr.bf16.mxu0 %v7923_v40  ;;  %7484 = vmatpush3.bf16.msra.mxu0 %v7924_v13  ;;  %v9241_v28 = vsel %vm8640_vm14, %v2205_v31, %v2206_v29  ;;  %v7925_v40 = vld [vmem:[#allocation2 + $0x54] sm:$0xff]   ;;  %v4717_v3 = vshll.u32 %v4618_v16, 16  ;;  %v4721_v43 = vshrl.u32 %v4618_v16, 16  ;;  %v4672_v42 = vsel %vm8175_vm2, %v4667_v46, %v9217_v44  ;;  %v2112_v44 = vld [vmem:[#allocation2 + $0x84] sm:$0xe] }
 0x133   : > { %7485 = vmatprep.subr.bf16.mxu0 %v7930_v50  ;;  %v4677_v29 = vrot.slane %v4676_v1, 4  ;;  %v4621_v1 = vld [vmem:[#allocation2 + $0x40] sm:$0xf]  ;;  %v9284_v8 = vrot.slane %v4690_v38, 4  ;;  %v4703_v51 = vshll.u32 %v4616_v19, 16  ;;  %v4700_v24 = vor.u32 %v4699_v23, %v9272_v54  ;;  %v7933_v31 = vld [vmem:[#allocation2 + $0x78] sm:$0xff]  }
 0x134   : > { %v2226_v16 = vrot.slane %v2224_v11, 4  ;;  %v2227_v9 = vrot.slane %v8019_v41, 5  ;;  %v4741_v46 = vshll.u32 %v4621_v1, 16  ;;  %v4745_v38 = vshrl.u32 %v4621_v1, 16  ;;  %v7946_v23 = vld [vmem:[%s10127_s3 + $0x1f8] sm:$0xff]  }
 0x135   : > { %v10153_v19 = vcombine.low %v9006_v34, %v8988_v4  ;;  %v4710_v14 = vrot.slane %v4708_v59, 4  ;;  %v4713_v58 = vrot.slane %v4711_v30, 5  ;;  %v9295_v2 = vrot.slane %v4717_v3, 5 }
 0x136   : > { %7486 = vmatpush3.bf16.msra.mxu0 %v7930_v50  ;;  %v2111_v50 = vld [vmem:[#allocation2 + $0x78] sm:$0xe]  ;;  %v9309_v34 = vrot.slane %v4703_v51, 5  ;;  %v6338_v59 = vrot.slane %v2112_v44, 9  ;;  %v9321_v1 = vsel %vm8640_vm14, %v2226_v16, %v2227_v9  ;;  %v9324_v51 = vrot.slane %v4741_v46, 5  ;;  %v7936_v46 = vld [vmem:[%s10127_s3 + $0xc8] sm:$0xff]  }
 0x137   : > { %7232 = vmatmul.mubr.bf16.gmra.mrb[24].mxu1 %v6316_v5  ;;  %v7938_v5 = vld [vmem:[%s10127_s3 + $0x1e8] sm:$0xff]   ;;  %7487 = vmatprep.subr.bf16.mxu0 %v7934_v53 }
 0x138   : > { %7235 = vmatprep.mubr.bf16.mxu1 %v10152_v47  ;;  %v6337_v47 = vrot.slane %v2111_v50, 9  ;;  %v7931_v50 = vld [vmem:[#allocation2 + $0x6c] sm:$0xff]  }
 0x139   : > { %7456 = vmatmul.mubr.bf16.gmra.mrb[8].mxu0 %v7925_v40  ;;  %v4682_v40 = vsel %vm8175_vm2, %v4677_v29, %v4681_v56  ;;  %v4723_v29 = vrot.slane %v4721_v43, 4  ;;  %v10154_v56 = vcombine.low %v9137_v39, %v9142_v48  ;;  %v4619_v39 = vld [vmem:[#allocation2 + $0x38] sm:$0x1]  ;;  %v4623_v48 = vld [vmem:[#allocation2 + $0x48] sm:$0xf] }
 0x13a   : > { %7459 = vmatprep.mubr.bf16.mxu0 %v7929_v52  ;;  %7488 = vmatpush3.bf16.msra.mxu0 %v7934_v53  ;;  %v4732_v52 = vshrl.u32 %v4620_v21, 16  ;;  %v4735_v53 = vshll.u32 %v4620_v21, 16  ;;  %v9303_v41 = vcombine.low %v4672_v42, %v4682_v40  ;;  %v9313_v21 = vsel %vm8640_vm14, %v6337_v47, %v2224_v11  ;;  %v9317_v43 = vld [vmem:[#allocation2 + $0x4c] sm:$0xf] }
 0x13b   : > { %7489 = vmatprep.subr.bf16.mxu0 %v7938_v5  ;;  %10155 = vst [vmem:[#allocation6_spill] sm:$0xff] %v9317_v43  ;;  %v2231_v42 = vrot.slane %v9131_v22, 5  ;;  %v4747_v11 = vrot.slane %v4745_v38, 4  ;;  %v8020_v47 = vld [vmem:[#allocation2 + $0x8c] sm:$0x1]  ;;  %v4727_v44 = vshll.u32 %v4619_v39, 16 }
 0x13c   : > { %v4734_v30 = vrot.slane %v4732_v52, 4  ;;  %v4737_v3 = vrot.slane %v4735_v53, 5  ;;  %v2234_v40 = vrot.slane %v8020_v47, 5  ;;  %v4622_v52 = vld [vmem:[#allocation2 + $0x44] sm:$0x1]  ;;  %v4756_v53 = vshrl.u32 %v4623_v48, 16 }
 0x13d   : > { %v4765_v9 = vshll.u32 %v9317_v43, 16  ;;  %v4769_v16 = vshrl.u32 %v9317_v43, 16  ;;  %v7935_v22 = vld [vmem:[#allocation2 + $0x84] sm:$0xff]   ;;  %v9345_v39 = vsel %vm8640_vm14, %v6338_v59, %v2231_v42  ;;  %v4748_v47 = vor.u32 %v4747_v11, %v9324_v51  ;;  %v2114_v59 = vld [vmem:[#allocation2 + $0x9c] sm:$0xe] }
 0x13e   : > { %7490 = vmatpush3.bf16.msra.mxu0 %v7938_v5  ;;  %v9315_v5 = vrot.slane %v4700_v24, 4  ;;  %v4724_v24 = vor.u32 %v4723_v29, %v9295_v2  ;;  %v9341_v29 = vld [vmem:[%s10127_s3 + $0x200] sm:$0xff]   ;;  %v4751_v4 = vshll.u32 %v4622_v52, 16  ;;  %v9358_v13 = vrot.slane %v4727_v44, 5 }
 0x13f   : > { %7236 = vmatmul.mubr.bf16.gmra.mrb[28].mxu1 %v10153_v19  ;;  %7491 = vmatprep.subr.bf16.mxu0 %v7942_v55  ;;  %v4714_v19 = vor.u32 %v4713_v58, %v4710_v14  ;;  %v2113_v58 = vld [vmem:[#allocation2 + $0x90] sm:$0xe]  ;;  %v10157_v11 = vcombine.low %v9157_v17, %v9161_v26  ;;  %v9364_v52 = vrot.slane %v4765_v9, 5  ;;  %v2241_v43 = vrot.slane %v8023_v63, 5  ;;  %v8024_v9 = vld [vmem:[#allocation2 + $0xa4] sm:$0x1] }
 0x140   : > { %7255 = vmatprep.mubr.bf16.mxu1 %v10154_v56  ;;  %v4759_v56 = vshll.u32 %v4623_v48, 16  ;;  %v2233_v48 = vrot.slane %v2231_v42, 4  ;;  %v9356_v14 = vrot.slane %v4724_v24, 4  ;;  %v8022_v42 = vld [vmem:[#allocation2 + $0xa0] sm:$0xf]  ;;  %v6339_v44 = vrot.slane %v2113_v58, 9 }
 0x141   : > { %7460 = vmatmul.mubr.bf16.gmra.mrb[12].mxu0 %v7931_v50  ;;  %v7937_v50 = vld [vmem:[#allocation2 + $0x90] sm:$0xff]   ;;  %v2245_v12 = vrot.slane %v8022_v42, 5  ;;  %v4749_v17 = vrot.slane %v4748_v47, 4  ;;  %v4753_v26 = vrot.slane %v4751_v4, 5  ;;  %v7944_v47 = vld [vmem:[%s10127_s3 + $0xd8] sm:$0xff]  }
 0x142   : > { %7463 = vmatprep.mubr.bf16.mxu0 %v7933_v31  ;;  %7492 = vmatpush3.bf16.msra.mxu0 %v7942_v55  ;;  %v4738_v31 = vor.u32 %v4737_v3, %v4734_v30  ;;  %v8021_v55 = vld [vmem:[#allocation2 + $0x94] sm:$0xf]  ;;  %v10156_v30 = vcombine.low %v9146_v10, %v9150_v32  ;;  %v4758_v10 = vrot.slane %v4756_v53, 4  ;;  %v4761_v32 = vrot.slane %v4759_v56, 5  ;;  %v9366_v42 = vld [vmem:[#allocation2 + $0x50] sm:$0x1] }
 0x143   : > { %7493 = vmatprep.subr.bf16.mxu0 %v7946_v23  ;;  %v2238_v38 = vrot.slane %v8021_v55, 5  ;;  %v7940_v3 = vld [vmem:[%s10127_s3 + $0xd0] sm:$0xff]   ;;  %v9354_v55 = vrot.slane %v4714_v19, 4  ;;  %v6340_v53 = vrot.slane %v2114_v59, 9  ;;  %v2247_v56 = vrot.slane %v2245_v12, 4 }
 0x144   : > { %v4626_v19 = vld [vmem:[#allocation2 + $0x54] sm:$0xf]  ;;  %v4739_v24 = vrot.slane %v4738_v31, 4  ;;  %v4775_v4 = vshll.u32 %v9366_v42, 16  ;;  %v4754_v59 = vsel %vm8175_vm2, %v4749_v17, %v4753_v26 }
 0x145   : > { %v2240_v45 = vrot.slane %v2238_v38, 4  ;;  %v4780_v58 = vshrl.u32 %v4626_v19, 16  ;;  %v4783_v31 = vshll.u32 %v4626_v19, 16  ;;  %v4720_v63 = vsel %vm8175_vm2, %v9354_v55, %v9295_v2  ;;  %v7941_v19 = vld [vmem:[#allocation2 + $0xa8] sm:$0xff]  }
 0x146   : > { %7494 = vmatpush3.bf16.msra.mxu0 %v7946_v23  ;;  %v2248_v23 = vrot.slane %v8024_v9, 5  ;;  %v4744_v2 = vsel %vm8175_vm2, %v4739_v24, %v9324_v51  ;;  %v10159_v51 = vcombine.low %v9182_v0, %v9196_v25  ;;  %v7948_v0 = vld [vmem:[%s10127_s3 + $0xe0] sm:$0xff]   ;;  %v10162_v25 = vsel %vm8175_vm2, %v9315_v5, %v9309_v34  ;;  %v9443_v5 = vld [vmem:[#allocation2 + $0xb4] sm:$0xe]  ;;  %v9486_v34 = vld [vmem:[#allocation2 + $0x7c] sm:$0xf] }
 0x147   : > { %7256 = vmatmul.mubr.bf16.vlgmr.msra.gmra.mrb[0].mxu1 %v10156_v30  ;;  %v4771_v30 = vrot.slane %v4769_v16, 4  ;;  %7527 = vmatprep.subr.bf16.mxu0 %v9341_v29  ;;  %v9373_v16 = vld [vmem:[#allocation2 + $0x58] sm:$0xf]  ;;  %v9399_v55 = vsel %vm8640_vm14, %v2240_v45, %v2241_v43  ;;  %v4782_v43 = vrot.slane %v4780_v58, 4  ;;  %v10163_v24 = vsel %vm8175_vm2, %v9284_v8, %v9272_v54  ;;  %v9445_v54 = vld [vmem:[#allocation2 + $0x64] sm:$0xf] }
 0x148   : > { %7288 = vmatpush3.bf16.msra.mxu1 %v9116_v61  ;;  %7259 = vmatprep.mubr.bf16.mxu1 %v10157_v11  ;;  %v9371_v61 = vsel %vm8640_vm14, %v2233_v48, %v2234_v40  ;;  %v4762_v40 = vor.u32 %v4761_v32, %v4758_v10  ;;  %v9405_v11 = vsel %vm8640_vm14, %v6340_v53, %v2245_v12  ;;  %v4785_v10 = vrot.slane %v4783_v31, 5  ;;  %v4632_v31 = vld [vmem:[#allocation2 + $0x6c] sm:$0xf]  ;;  %v9484_v8 = vld [vmem:[#allocation2 + $0x68] sm:$0x1] }
 0x149   : > { %7289 = vmatprep.subr.bf16.mxu1 %v7936_v46  ;;  %7464 = vmatmul.mubr.bf16.gmra.mrb[16].mxu0 %v7935_v22  ;;  %v4772_v48 = vor.u32 %v4771_v30, %v9364_v52  ;;  %v9381_v22 = vld [vmem:[#allocation2 + $0x5c] sm:$0x1]  ;;  %10158 = vst [vmem:[#allocation7_spill] sm:$0xff] %v9405_v11  ;;  %v9414_v45 = vsel %vm8640_vm14, %v2247_v56, %v2248_v23  ;;  %v2115_v30 = vld [vmem:[#allocation2 + $0xa8] sm:$0xe]  ;;  %v4777_v17 = vrot.slane %v4775_v4, 5 }
 0x14a   : > { %7467 = vmatprep.mubr.bf16.mxu0 %v7937_v50  ;;  %v9395_v50 = vsel %vm8640_vm14, %v6339_v44, %v2238_v38  ;;  %v7939_v38 = vld [vmem:[#allocation2 + $0x9c] sm:$0xff]   ;;  %10160 = vst [vmem:[#allocation8_spill] sm:$0xff] %v9414_v45  ;;  %v4799_v32 = vshll.u32 %v9381_v22, 16  ;;  %v10161_v12 = vcombine.low %v9188_v15, %v9202_v27  ;;  %v9433_v44 = vcombine.low %v10163_v24, %v10162_v25  ;;  %v9496_v45 = vld [vmem:[#allocation2 + $0x74] sm:$0x1] }
 0x14b   : > { %v4763_v15 = vrot.slane %v4762_v40, 4  ;;  %v4773_v27 = vrot.slane %v4772_v48, 4  ;;  %v9439_v53 = vcombine.low %v4744_v2, %v4754_v59  ;;  %v4629_v56 = vld [vmem:[#allocation2 + $0x60] sm:$0xf]  ;;  %v6341_v58 = vrot.slane %v2115_v30, 9  ;;  %10167 = vst [vmem:[#allocation11_spill] sm:$0xff] %v9486_v34 }
 0x14c   : > { %7290 = vmatpush3.bf16.msra.mxu1 %v7936_v46  ;;  %v4730_v46 = vsel %vm8175_vm2, %v9356_v14, %v9358_v13  ;;  %v4789_v13 = vshll.u32 %v9373_v16, 16  ;;  %v4793_v14 = vshrl.u32 %v9373_v16, 16  ;;  %v9453_v40 = vrot.slane %v4799_v32, 5  ;;  %v8025_v48 = vld [vmem:[#allocation2 + $0xac] sm:$0xf] }
 0x14d   : > { %7291 = vmatprep.subr.bf16.mxu1 %v7940_v3  ;;  %v9437_v26 = vcombine.low %v4720_v63, %v4730_v46  ;;  %10164 = vst [vmem:[#allocation9_spill] sm:$0xff] %v9439_v53  ;;  %v4786_v63 = vor.u32 %v4785_v10, %v4782_v43  ;;  %v2252_v4 = vrot.slane %v8025_v48, 5  ;;  %v8026_v46 = vld [vmem:[#allocation2 + $0xb0] sm:$0x1]  ;;  %v7950_v43 = vld [vmem:[%s10127_s3 + $0xe8] sm:$0xff]   ;;  %v4813_v10 = vshll.u32 %v9445_v54, 16 }
 0x14e   : > { %v9449_v9 = vrot.slane %v4789_v13, 5  ;;  %v9451_v23 = vrot.slane %v4793_v14, 4  ;;  %v2255_v2 = vrot.slane %v8026_v46, 5  ;;  %v9455_v59 = vld [vmem:[#allocation2 + $0x70] sm:$0xf]  ;;  %v4768_v13 = vsel %vm8175_vm2, %v4763_v15, %v9364_v52 }
 0x14f   : > { %7260 = vmatmul.mubr.bf16.gmra.mrb[4].mxu1 %v10159_v51  ;;  %10165 = vst [vmem:[#allocation10_spill] sm:$0xff] %v9455_v59  ;;  %v4778_v14 = vsel %vm8175_vm2, %v4773_v27, %v4777_v17  ;;  %v4804_v51 = vshrl.u32 %v4629_v56, 16  ;;  %v4817_v32 = vshrl.u32 %v9445_v54, 16  ;;  %v4828_v30 = vshrl.u32 %v4632_v31, 16  ;;  %v4635_v15 = vld [vmem:[#allocation2 + $0x78] sm:$0xf] }
 0x150   : > { %7263 = vmatprep.mubr.bf16.mxu1 %v10161_v12  ;;  %7292 = vmatpush3.bf16.msra.mxu1 %v7940_v3  ;;  %v7943_v12 = vld [vmem:[#allocation2 + $0xb4] sm:$0xff]   ;;  %v4796_v52 = vor.u32 %v9451_v23, %v9449_v9  ;;  %v4837_v25 = vshll.u32 %v9455_v59, 16  ;;  %v4841_v24 = vshrl.u32 %v9455_v59, 16  ;;  %v10166_v27 = vcombine.low %v9206_v37, %v9221_v49  ;;  %v7945_v49 = vld [vmem:[#allocation2 + $0xc0] sm:$0xff]  }
 0x151   : > { %7293 = vmatprep.subr.bf16.mxu1 %v7944_v47  ;;  %7468 = vmatmul.mubr.bf16.gmra.mrb[20].mxu0 %v7939_v38  ;;  %v4807_v38 = vshll.u32 %v4629_v56, 16  ;;  %v7952_v17 = vld [vmem:[%s10127_s3 + $0xf0] sm:$0xff]   ;;  %v9478_v56 = vrot.slane %v4786_v63, 4  ;;  %v9482_v23 = vsel %vm8640_vm14, %v6341_v58, %v2252_v4  ;;  %v8027_v48 = vld [vmem:[#allocation2 + $0xb8] sm:$0xf]  ;;  %v10168_v37 = vcombine.low %v9215_v7, %v9225_v6 }
 0x152   : > { %7471 = vmatprep.mubr.bf16.mxu0 %v7941_v19  ;;  %v2259_v46 = vrot.slane %v8027_v48, 5  ;;  %v4806_v3 = vrot.slane %v4804_v51, 4  ;;  %v4638_v19 = vld [vmem:[#allocation2 + $0x84] sm:$0xf]  ;;  %v4819_v48 = vrot.slane %v4817_v32, 4  ;;  %v4830_v11 = vrot.slane %v4828_v30, 4 }
 0x153   : > { %v4809_v58 = vrot.slane %v4807_v38, 5  ;;  %v9498_v59 = vrot.slane %v4837_v25, 5  ;;  %v4843_v7 = vrot.slane %v4841_v24, 4  ;;  %v4852_v6 = vshrl.u32 %v4635_v15, 16 }
 0x154   : > { %7294 = vmatpush3.bf16.msra.mxu1 %v7944_v47  ;;  %v4831_v47 = vshll.u32 %v4632_v31, 16  ;;  %v2254_v31 = vrot.slane %v2252_v4, 4  ;;  %v9494_v4 = vrot.slane %v4813_v10, 5  ;;  %v4865_v51 = vshrl.u32 %v9486_v34, 16 }
 0x155   : > { %7295 = vmatprep.subr.bf16.mxu1 %v7948_v0  ;;  %v4876_v38 = vshrl.u32 %v4638_v19, 16  ;;  %v4879_v10 = vshll.u32 %v4638_v19, 16  ;;  %v9504_v32 = vrot.slane %v4796_v52, 4  ;;  %v4823_v25 = vshll.u32 %v9484_v8, 16 }
 0x156   : > { %v4833_v53 = vrot.slane %v4831_v47, 5  ;;  %v9508_v30 = vsel %vm8640_vm14, %v2254_v31, %v2255_v2  ;;  %v4810_v47 = vor.u32 %v4809_v58, %v4806_v3  ;;  %v4820_v24 = vor.u32 %v4819_v48, %v9494_v4  ;;  %v9522_v58 = vld [vmem:[#allocation2 + $0x80] sm:$0x1] }
 0x157   : > { %7264 = vmatmul.mubr.bf16.gmra.mrb[8].mxu1 %v10166_v27  ;;  %v9491_v27 = vcombine.low %v4768_v13, %v4778_v14  ;;  %v9500_v13 = vld [vmem:[#allocation2 + $0x88] sm:$0xf]  ;;  %v4861_v14 = vshll.u32 %v9486_v34, 16  ;;  %v4847_v19 = vshll.u32 %v9496_v45, 16  ;;  %v4844_v2 = vor.u32 %v4843_v7, %v9498_v59 }
 0x158   : > { %7267 = vmatprep.mubr.bf16.mxu1 %v10168_v37  ;;  %7296 = vmatpush3.bf16.msra.mxu1 %v7948_v0  ;;  %v4855_v0 = vshll.u32 %v4635_v15, 16  ;;  %10170 = vst [vmem:[#allocation13_spill] sm:$0xff] %v9500_v13  ;;  %v4889_v52 = vshrl.u32 %v9500_v13, 16  ;;  %v7947_v15 = vld [vmem:[#allocation2 + $0xcc] sm:$0xff]   ;;  %v4834_v37 = vor.u32 %v4833_v53, %v4830_v11  ;;  %v4854_v3 = vrot.slane %v4852_v6, 4 }
 0x159   : > { %10169 = vst [vmem:[#allocation12_spill] sm:$0xff] %v9491_v27  ;;  %7297 = vmatprep.subr.bf16.mxu1 %v7950_v43  ;;  %7472 = vmatmul.mubr.bf16.gmra.mrb[24].mxu0 %v7943_v12  ;;  %v7954_v12 = vld [vmem:[%s10127_s3 + $0xf8] sm:$0xff]   ;;  %v9524_v63 = vrot.slane %v4861_v14, 5  ;;  %v4867_v48 = vrot.slane %v4865_v51, 4  ;;  %v4878_v34 = vrot.slane %v4876_v38, 4  ;;  %v4881_v27 = vrot.slane %v4879_v10, 5 }
 0x15a   : > { %7475 = vmatprep.mubr.bf16.mxu0 %v7945_v49  ;;  %v4857_v31 = vrot.slane %v4855_v0, 5  ;;  %v10171_v49 = vcombine.low %v9237_v62, %v9241_v28  ;;  %v4792_v11 = vsel %vm8175_vm2, %v9478_v56, %v9449_v9  ;;  %v10173_v62 = vrot.slane %v9443_v5, 9  ;;  %v4641_v6 = vld [vmem:[#allocation2 + $0x90] sm:$0xf]  ;;  %v9544_v56 = vld [vmem:[#allocation2 + $0x8c] sm:$0x1] }
 0x15b   : > { %v2261_v53 = vrot.slane %v2259_v46, 4  ;;  %v4825_v7 = vrot.slane %v4823_v25, 5  ;;  %v4811_v0 = vrot.slane %v4810_v47, 4  ;;  %v4849_v14 = vrot.slane %v4847_v19, 5 }
 0x15c   : > { %7298 = vmatpush3.bf16.msra.mxu1 %v7950_v43  ;;  %v4885_v43 = vshll.u32 %v9500_v13, 16  ;;  %v10172_v13 = vcombine.low %v9248_v57, %v9252_v60  ;;  %v9537_v28 = vsel %vm8640_vm14, %v10173_v62, %v2259_v46  ;;  %v4891_v60 = vrot.slane %v4889_v52, 4 }
 0x15d   : > { %7299 = vmatprep.subr.bf16.mxu1 %v7952_v17  ;;  %v4835_v51 = vrot.slane %v4834_v37, 4  ;;  %v4845_v9 = vrot.slane %v4844_v2, 4  ;;  %v4871_v5 = vshll.u32 %v9522_v58, 16  ;;  %v4858_v38 = vor.u32 %v4857_v31, %v4854_v3  ;;  %v4644_v2 = vld [vmem:[#allocation2 + $0x9c] sm:$0xf] }
 0x15e   : > { %v9539_v57 = vrot.slane %v4885_v43, 5  ;;  %v4868_v46 = vor.u32 %v4867_v48, %v9524_v63  ;;  %v4882_v10 = vor.u32 %v4881_v27, %v4878_v34  ;;  %v4900_v25 = vshrl.u32 %v4641_v6, 16  ;;  %v9566_v34 = vld [vmem:[%s10127_s3 + $0x100] sm:$0xff]  }
 0x15f   : > { %7268 = vmatmul.mubr.bf16.gmra.mrb[12].mxu1 %v10171_v49  ;;  %v4802_v47 = vsel %vm8175_vm2, %v9504_v32, %v9453_v40  ;;  %v10174_v52 = vrot.slane %v9014_v20, 5  ;;  %v4895_v27 = vshll.u32 %v9544_v56, 16  ;;  %v9571_v20 = vld [vmem:[#allocation2 + $0x98] sm:$0x1]  ;;  %v9580_v37 = vrot.slane %v4871_v5, 5 }
 0x160   : > { %7271 = vmatprep.mubr.bf16.mxu1 %v10172_v13  ;;  %7300 = vmatpush3.bf16.msra.mxu1 %v7952_v17  ;;  %v9541_v17 = vld [vmem:[#allocation2 + $0x94] sm:$0xf]  ;;  %v4821_v13 = vrot.slane %v4820_v24, 4  ;;  %v4903_v24 = vshll.u32 %v4641_v6, 16  ;;  %v4892_v40 = vor.u32 %v4891_v60, %v9539_v57  ;;  %v10175_v3 = vcombine.low %v9256_v33, %v9260_v18 }
 0x161   : > { %7301 = vmatprep.subr.bf16.mxu1 %v7954_v12  ;;  %7476 = vmatmul.mubr.bf16.gmra.mrb[28].mxu0 %v7947_v15  ;;  %v4909_v19 = vshll.u32 %v9541_v17, 16  ;;  %v4913_v43 = vshrl.u32 %v9541_v17, 16  ;;  %v9558_v15 = vsel %vm8640_vm14, %v2261_v53, %v10174_v52  ;;  %v9585_v31 = vrot.slane %v4858_v38, 4  ;;  %v7951_v53 = vld [vmem:[%s10127_s3 + $0x208] sm:$0xff]   ;;  %v9612_v38 = vld [vmem:[#allocation2 + $0xa0] sm:$0xf] }
 0x162   : > { %7495 = vmatprep.mubr.bf16.mxu0 %v9303_v41  ;;  %v4816_v41 = vsel %vm8175_vm2, %v4811_v0, %v9494_v4  ;;  %v4826_v32 = vsel %vm8175_vm2, %v4821_v13, %v4825_v7  ;;  %v4840_v4 = vsel %vm8175_vm2, %v4835_v51, %v9498_v59  ;;  %v9587_v49 = vrot.slane %v4868_v46, 4  ;;  %v5369_v51 = vld [vmem:[#allocation2 + $0x48] sm:$0xe]  ;;  %v5371_v52 = vld [vmem:[#allocation2 + $0x60] sm:$0xe] }
 0x163   : > { %v9589_v48 = vrot.slane %v4882_v10, 4  ;;  %v4902_v62 = vrot.slane %v4900_v25, 4  ;;  %v10176_v59 = vcombine.low %v9313_v21, %v9321_v1  ;;  %v4905_v7 = vrot.slane %v4903_v24, 5 }
 0x164   : > { %7302 = vmatpush3.bf16.msra.mxu1 %v7954_v12  ;;  %v4850_v12 = vsel %vm8175_vm2, %v4845_v9, %v4849_v14  ;;  %v9597_v6 = vrot.slane %v4909_v19, 5  ;;  %v4915_v33 = vrot.slane %v4913_v43, 4  ;;  %v4919_v18 = vshll.u32 %v9571_v20, 16 }
 0x165   : > { %7575 = vmatprep.subr.bf16.mxu1 %v9566_v34  ;;  %v9600_v0 = vrot.slane %v4892_v40, 4  ;;  %v9602_v14 = vrot.slane %v4895_v27, 5  ;;  %v4924_v60 = vshrl.u32 %v4644_v2, 16  ;;  %v4927_v13 = vshll.u32 %v4644_v2, 16 }
 0x166   : > { %v9604_v9 = vcombine.low %v4792_v11, %v4802_v47  ;;  %v6373_v21 = vcombine.low %v9482_v23, %v9508_v30  ;;  %v6374_v1 = vcombine.low %v9537_v28, %v9558_v15  ;;  %v9610_v5 = vcombine.low %v4816_v41, %v4826_v32  ;;  %v5370_v47 = vld [vmem:[#allocation2 + $0x54] sm:$0xe] }
 0x167   : > { %7272 = vmatmul.mubr.bf16.gmra.mrb[16].mxu1 %v10175_v3  ;;  %v9615_v46 = vcombine.low %v4840_v4, %v4850_v12  ;;  %v4864_v11 = vsel %vm8175_vm2, %v9585_v31, %v9524_v63  ;;  %v4874_v10 = vsel %vm8175_vm2, %v9587_v49, %v9580_v37  ;;  %v4916_v24 = vor.u32 %v4915_v33, %v9597_v6  ;;  %v7953_v41 = vld [vmem:[%s10127_s3 + $0x210] sm:$0xff]   ;;  %v7967_v31 = vld [vmem:[%s10127_s3 + $0x238] sm:$0xff]  }
 0x168   : > { %7275 = vmatprep.mubr.bf16.mxu1 %v10176_v59  ;;  %v9632_v19 = vrot.slane %v4919_v18, 5  ;;  %v6603_v43 = vrot.slane %v5369_v51, 9  ;;  %v4898_v40 = vsel %vm8175_vm2, %v9600_v0, %v9602_v14  ;;  %v4933_v27 = vshll.u32 %v9612_v38, 16  ;;  %v10177_v32 = vld [vmem:[#allocation6_spill] sm:$0xff]  ;;  %v9676_v51 = vld [vmem:[#allocation2 + $0xa4] sm:$0x1] }
 0x169   : > { %7496 = vmatmul.mubr.bf16.vlgmr.msra.gmra.mrb[0].mxu0 %v9433_v44  ;;  %v4906_v44 = vor.u32 %v4905_v7, %v4902_v62  ;;  %v5459_v4 = vrot.slane %v10177_v32, 5  ;;  %v5462_v12 = vrot.slane %v9366_v42, 5  ;;  %v6604_v2 = vrot.slane %v5370_v47, 9 }
 0x16a   : > { %7528 = vmatpush3.bf16.msra.mxu0 %v9341_v29  ;;  %7499 = vmatprep.mubr.bf16.mxu0 %v9437_v26  ;;  %v9641_v29 = vrot.slane %v4924_v60, 4  ;;  %v9643_v26 = vrot.slane %v4927_v13, 5  ;;  %v5466_v3 = vrot.slane %v9373_v16, 5  ;;  %v10178_v62 = vcombine.low %v9345_v39, %v9371_v61  ;;  %v5372_v60 = vld [vmem:[#allocation2 + $0x6c] sm:$0xe] }
 0x16b   : > { %7529 = vmatprep.subr.bf16.mxu0 %v7951_v53  ;;  %v4937_v59 = vshrl.u32 %v9612_v38, 16  ;;  %v5469_v7 = vrot.slane %v9381_v22, 5  ;;  %v6605_v33 = vrot.slane %v5371_v52, 9  ;;  %v5473_v18 = vrot.slane %v9445_v54, 5  ;;  %v7955_v22 = vld [vmem:[%s10127_s3 + $0x218] sm:$0xff]  }
 0x16c   : > { %v10179_v13 = vcombine.low %v9395_v50, %v9399_v55  ;;  %v9658_v42 = vrot.slane %v4906_v44, 4  ;;  %v9662_v16 = vsel %vm8640_vm14, %v6603_v43, %v5459_v4  ;;  %v5461_v39 = vrot.slane %v5459_v4, 4  ;;  %v10180_v43 = vld [vmem:[#allocation10_spill] sm:$0xff]  ;;  %v10181_v4 = vld [vmem:[#allocation9_spill] sm:$0xff] }
 0x16d   : > { %v9666_v61 = vsel %vm8640_vm14, %v6604_v2, %v5466_v3  ;;  %v5468_v54 = vrot.slane %v5466_v3, 4  ;;  %v9673_v50 = vsel %vm8640_vm14, %v6605_v33, %v5473_v18  ;;  %v5475_v55 = vrot.slane %v5473_v18, 4  ;;  %v4647_v3 = vld [vmem:[#allocation2 + $0xa8] sm:$0xf]  ;;  %v2999_v33 = vld [vmem:[#allocation2 + $0x78] sm:$0xf] }
 0x16e   : > { %7530 = vmatpush3.bf16.msra.mxu0 %v7951_v53  ;;  %v5476_v53 = vrot.slane %v9484_v8, 5  ;;  %v9680_v47 = vsel %vm8640_vm14, %v5461_v39, %v5462_v12  ;;  %v6606_v44 = vrot.slane %v5372_v60, 9  ;;  %v5480_v52 = vrot.slane %v10180_v43, 5  ;;  %v10182_v18 = vld [vmem:[#allocation12_spill] sm:$0xff] }
 0x16f   : > { %7276 = vmatmul.mubr.bf16.gmra.mrb[20].mxu1 %v10178_v62  ;;  %7531 = vmatprep.subr.bf16.mxu0 %v7953_v41  ;;  %v5483_v32 = vrot.slane %v9496_v45, 5  ;;  %v9685_v2 = vrot.slane %v4916_v24, 4  ;;  %v9691_v8 = vsel %vm8640_vm14, %v5468_v54, %v5469_v7  ;;  %v4930_v39 = vor.u32 %v9643_v26, %v9641_v29  ;;  %v10183_v24 = vld [vmem:[#allocation7_spill] sm:$0xff]  ;;  %v10184_v45 = vld [vmem:[#allocation8_spill] sm:$0xff] }
 0x170   : > { %7279 = vmatprep.mubr.bf16.mxu1 %v10179_v13  ;;  %v9695_v12 = vsel %vm8640_vm14, %v5475_v55, %v5476_v53  ;;  %v9704_v60 = vsel %vm8640_vm14, %v6606_v44, %v5480_v52  ;;  %v5482_v7 = vrot.slane %v5480_v52, 4  ;;  %v7958_v13 = vld [vmem:[%s10127_s3 + $0x220] sm:$0xff]   ;;  %v4939_v54 = vrot.slane %v4937_v59, 4  ;;  %v9714_v53 = vld [vmem:[#allocation2 + $0xac] sm:$0xf] }
 0x171   : > { %7500 = vmatmul.mubr.bf16.gmra.mrb[4].mxu0 %v10181_v4  ;;  %v4943_v55 = vshll.u32 %v9676_v51, 16  ;;  %v4948_v43 = vshrl.u32 %v4647_v3, 16  ;;  %v3237_v52 = vshrl.u32 %v2999_v33, 16  ;;  %v3240_v4 = vshll.u32 %v2999_v33, 16 }
 0x172   : > { %7503 = vmatprep.mubr.bf16.mxu0 %v10182_v18  ;;  %7532 = vmatpush3.bf16.msra.mxu0 %v7953_v41  ;;  %v9711_v41 = vrot.slane %v4933_v27, 5  ;;  %v9718_v44 = vsel %vm8640_vm14, %v5482_v7, %v5483_v32  ;;  %v5373_v18 = vld [vmem:[#allocation2 + $0x78] sm:$0xe]  ;;  %v10185_v62 = vcombine.low %v10183_v24, %v10184_v45  ;;  %v4912_v29 = vsel %vm8175_vm2, %v9658_v42, %v9597_v6  ;;  %v5374_v32 = vld [vmem:[#allocation2 + $0x84] sm:$0xe]  ;;  %v10186_v6 = vld [vmem:[#allocation5_spill] sm:$0xff] }
 0x173   : > { %7533 = vmatprep.subr.bf16.mxu0 %v7955_v22  ;;  %v4922_v26 = vsel %vm8175_vm2, %v9685_v2, %v9632_v19  ;;  %v4951_v27 = vshll.u32 %v4647_v3, 16  ;;  %v3239_v33 = vrot.slane %v3237_v52, 4  ;;  %v3242_v45 = vrot.slane %v3240_v4, 5  ;;  %v10187_v42 = vld [vmem:[#allocation4_spill] sm:$0xff]  ;;  %v7961_v19 = vld [vmem:[%s10127_s3 + $0x228] sm:$0xff]  }
 0x174   : > { %v3259_v24 = vsel %vm8175_vm2, %v10187_v42, %v10186_v6  ;;  %v4940_v2 = vor.u32 %v4939_v54, %v9711_v41  ;;  %v4961_v23 = vshrl.u32 %v9714_v53, 16  ;;  %v6607_v30 = vrot.slane %v5373_v18, 9  ;;  %v10189_v4 = vld [vmem:[#allocation13_spill] sm:$0xff] }
 0x175   : > { %v3243_v3 = vor.u32 %v3242_v45, %v3239_v33  ;;  %v5490_v7 = vrot.slane %v9522_v58, 5  ;;  %v6608_v52 = vrot.slane %v5374_v32, 9  ;;  %v5494_v59 = vrot.slane %v10189_v4, 5  ;;  %v7956_v18 = vld [vmem:[#allocation2 + $0xc] sm:$0xff]  }
 0x176   : > { %7534 = vmatpush3.bf16.msra.mxu0 %v7955_v22  ;;  %v4950_v6 = vrot.slane %v4948_v43, 4  ;;  %v4953_v42 = vrot.slane %v4951_v27, 5  ;;  %v9762_v43 = vrot.slane %v4930_v39, 4  ;;  %v9764_v27 = vrot.slane %v4943_v55, 5 }
 0x177   : > { %7280 = vmatmul.mubr.bf16.gmra.mrb[24].mxu1 %v10185_v62  ;;  %v4957_v62 = vshll.u32 %v9714_v53, 16  ;;  %7535 = vmatprep.subr.bf16.mxu0 %v7958_v13  ;;  %v3244_v33 = vrot.slane %v3243_v3, 4  ;;  %v9759_v58 = vsel %vm8640_vm14, %v6608_v52, %v5494_v59  ;;  %v5496_v32 = vrot.slane %v5494_v59, 4  ;;  %v10190_v59 = vld [vmem:[#allocation3_spill] sm:$0xff] }
 0x178   : > { %7283 = vmatprep.mubr.bf16.mxu1 %v6373_v21  ;;  %v10188_v21 = vld [vmem:[#allocation11_spill] sm:$0xff]  ;;  %v6583_v28 = vcombine.low %v4864_v11, %v4874_v10  ;;  %v4954_v15 = vor.u32 %v4953_v42, %v4950_v6  ;;  %v10191_v37 = vsel %vm8175_vm2, %v9589_v48, %v9539_v57  ;;  %v5375_v11 = vld [vmem:[#allocation2 + $0x90] sm:$0xe]  ;;  %v4936_v0 = vsel %vm8175_vm2, %v9762_v43, %v9711_v41  ;;  %v9828_v48 = vld [vmem:[#allocation2 + $0xc4] sm:$0xf] }
 0x179   : > { %v5487_v22 = vrot.slane %v10188_v21, 5  ;;  %7504 = vmatmul.mubr.bf16.gmra.mrb[8].mxu0 %v9604_v9  ;;  %v9755_v21 = vld [vmem:[#allocation2 + $0xb0] sm:$0x1]  ;;  %v5497_v9 = vrot.slane %v9544_v56, 5  ;;  %v9766_v45 = vrot.slane %v4957_v62, 5  ;;  %v3249_v56 = vsel %vm8175_vm2, %v3244_v33, %v10190_v59  ;;  %v8031_v43 = vld [vmem:[%s10127_s3 + $0x118] sm:$0xff]  }
 0x17a   : > { %7507 = vmatprep.mubr.bf16.mxu0 %v9610_v5  ;;  %7536 = vmatpush3.bf16.msra.mxu0 %v7958_v13  ;;  %v7964_v5 = vld [vmem:[%s10127_s3 + $0x230] sm:$0xff]   ;;  %v9787_v62 = vrot.slane %v4940_v2, 4  ;;  %v4967_v3 = vshll.u32 %v9755_v21, 16  ;;  %v6584_v49 = vcombine.low %v10191_v37, %v4898_v40  ;;  %v9816_v2 = vcombine.low %v4912_v29, %v4922_v26  ;;  %v7957_v40 = vld [vmem:[#allocation2 + $0x18] sm:$0xff]   ;;  %v7959_v29 = vld [vmem:[#allocation2 + $0x24] sm:$0xff]  }
 0x17b   : > { %v9752_v25 = vsel %vm8640_vm14, %v6607_v30, %v5487_v22  ;;  %v5489_v54 = vrot.slane %v5487_v22, 4  ;;  %7537 = vmatprep.subr.bf16.mxu0 %v7961_v19  ;;  %v4650_v13 = vld [vmem:[#allocation2 + $0xb4] sm:$0xf]  ;;  %v4963_v22 = vrot.slane %v4961_v23, 4  ;;  %v9782_v55 = vsel %vm8640_vm14, %v5496_v32, %v5497_v9  ;;  %v9790_v23 = vld [vmem:[#allocation2 + $0xb8] sm:$0xf] }
 0x17c   : > { %v6640_v52 = vcombine.low %v9759_v58, %v9782_v55  ;;  %v4975_v63 = vshll.u32 %v4650_v13, 16  ;;  %v4981_v10 = vshll.u32 %v9790_v23, 16  ;;  %v4985_v57 = vshrl.u32 %v9790_v23, 16  ;;  %v5376_v32 = vld [vmem:[#allocation2 + $0x9c] sm:$0xe] }
 0x17d   : > { %v9773_v30 = vsel %vm8640_vm14, %v5489_v54, %v5490_v7  ;;  %v9792_v7 = vcombine.low %v3249_v56, %v3259_v24  ;;  %v4653_v24 = vld [vmem:[#allocation2 + $0xc0] sm:$0xf]  ;;  %v4964_v14 = vor.u32 %v4963_v22, %v9766_v45  ;;  %v4946_v26 = vsel %vm8175_vm2, %v9787_v62, %v9764_v27  ;;  %v5378_v41 = vld [vmem:[#allocation2 + $0xb4] sm:$0xe] }
 0x17e   : > { %v6639_v39 = vcombine.low %v9752_v25, %v9773_v30  ;;  %7538 = vmatpush3.bf16.msra.mxu0 %v7961_v19  ;;  %v9835_v19 = vrot.slane %v4967_v3, 5  ;;  %v4996_v4 = vshrl.u32 %v4653_v24, 16  ;;  %v4999_v6 = vshll.u32 %v4653_v24, 16 }
 0x17f   : > { %7284 = vmatmul.mubr.bf16.gmra.mrb[28].mxu1 %v6374_v1  ;;  %v4972_v1 = vshrl.u32 %v4650_v13, 16  ;;  %7539 = vmatprep.subr.bf16.mxu0 %v7964_v5  ;;  %v4955_v42 = vrot.slane %v4954_v15, 4  ;;  %v5501_v33 = vrot.slane %v9541_v17, 5  ;;  %v4977_v9 = vrot.slane %v4975_v63, 5  ;;  %v4656_v63 = vld [vmem:[#allocation2 + $0xcc] sm:$0xf] }
 0x180   : > { %7303 = vmatprep.mubr.bf16.mxu1 %v7956_v18  ;;  %v6609_v18 = vrot.slane %v5375_v11, 9  ;;  %v5005_v13 = vshll.u32 %v9828_v48, 16  ;;  %v5009_v22 = vshrl.u32 %v9828_v48, 16  ;;  %v5504_v59 = vrot.slane %v9571_v20, 5 }
 0x181   : > { %7508 = vmatmul.mubr.bf16.gmra.mrb[12].mxu0 %v9615_v46  ;;  %v4974_v54 = vrot.slane %v4972_v1, 4  ;;  %v9838_v46 = vld [vmem:[#allocation2 + $0xbc] sm:$0x1]  ;;  %v4965_v56 = vrot.slane %v4964_v14, 4  ;;  %v9843_v3 = vrot.slane %v4981_v10, 5  ;;  %v5503_v15 = vrot.slane %v5501_v33, 4 }
 0x182   : > { %7511 = vmatprep.mubr.bf16.mxu0 %v6583_v28  ;;  %7540 = vmatpush3.bf16.msra.mxu0 %v7964_v5  ;;  %v4987_v28 = vrot.slane %v4985_v57, 4  ;;  %v4998_v5 = vrot.slane %v4996_v4, 4  ;;  %v5001_v1 = vrot.slane %v4999_v6, 5  ;;  %v9847_v17 = vsel %vm8640_vm14, %v6609_v18, %v5501_v33  ;;  %v8029_v10 = vld [vmem:[%s10127_s3 + $0x108] sm:$0xff]   ;;  %v9865_v4 = vld [vmem:[#allocation2 + $0xd0] sm:$0xf] }
 0x183   : > { %7541 = vmatprep.subr.bf16.mxu0 %v7967_v31  ;;  %v6610_v24 = vrot.slane %v5376_v32, 9  ;;  %v4991_v37 = vshll.u32 %v9838_v46, 16  ;;  %v9853_v20 = vsel %vm8640_vm14, %v5503_v15, %v5504_v59  ;;  %v5508_v11 = vrot.slane %v9612_v38, 5  ;;  %v9868_v6 = vld [vmem:[#allocation2 + $0xc8] sm:$0x1] }
 0x184   : > { %v5511_v14 = vrot.slane %v9676_v51, 5  ;;  %v4978_v57 = vor.u32 %v4977_v9, %v4974_v54  ;;  %v4988_v38 = vor.u32 %v4987_v28, %v9843_v3  ;;  %v6641_v51 = vcombine.low %v9847_v17, %v9853_v20  ;;  %v7962_v9 = vld [vmem:[#allocation2 + $0x3c] sm:$0xff]   ;;  %v5377_v28 = vld [vmem:[#allocation2 + $0xa8] sm:$0xe] }
 0x185   : > { %v9874_v18 = vsel %vm8640_vm14, %v6610_v24, %v5508_v11  ;;  %v5510_v33 = vrot.slane %v5508_v11, 4  ;;  %v5002_v54 = vor.u32 %v5001_v1, %v4998_v5  ;;  %v5023_v32 = vshll.u32 %v4656_v63, 16 }
 0x186   : > { %7542 = vmatpush3.bf16.msra.mxu0 %v7967_v31  ;;  %v5020_v31 = vshrl.u32 %v4656_v63, 16  ;;  %v6586_v15 = vcombine.low %v4936_v0, %v4946_v26  ;;  %v4979_v1 = vrot.slane %v4978_v57, 4  ;;  %v4993_v24 = vrot.slane %v4991_v37, 5 }
 0x187   : > { %7304 = vmatmul.mubr.bf16.vlgmr.msra.gmra.mrb[0].mxu1 %v7957_v40  ;;  %v9863_v40 = vrot.slane %v5005_v13, 5  ;;  %v5029_v13 = vshll.u32 %v9865_v4, 16  ;;  %v9884_v59 = vsel %vm8640_vm14, %v5510_v33, %v5511_v14  ;;  %v4989_v63 = vrot.slane %v4988_v38, 4  ;;  %v9903_v14 = vld [vmem:[#allocation2 + $0xd4] sm:$0x1] }
 0x188   : > { %7583 = vmatpush3.bf16.msra.mxu1 %v9566_v34  ;;  %7307 = vmatprep.mubr.bf16.mxu1 %v7959_v29  ;;  %v4960_v34 = vsel %vm8175_vm2, %v4955_v42, %v9766_v45  ;;  %v5011_v29 = vrot.slane %v5009_v22, 4  ;;  %v7960_v45 = vld [vmem:[#allocation2 + $0x30] sm:$0xff]   ;;  %v4970_v42 = vsel %vm8175_vm2, %v4965_v56, %v9835_v19  ;;  %v5033_v22 = vshrl.u32 %v9865_v4, 16 }
 0x189   : > { %7576 = vmatprep.subr.bf16.mxu1 %v8029_v10  ;;  %7512 = vmatmul.mubr.bf16.gmra.mrb[16].mxu0 %v6584_v49  ;;  %v8030_v49 = vld [vmem:[%s10127_s3 + $0x110] sm:$0xff]   ;;  %v5015_v56 = vshll.u32 %v9868_v6, 16  ;;  %v6587_v5 = vcombine.low %v4960_v34, %v4970_v42  ;;  %v5003_v11 = vrot.slane %v5002_v54, 4  ;;  %v9905_v33 = vrot.slane %v5029_v13, 5 }
 0x18a   : > { %7515 = vmatprep.mubr.bf16.mxu0 %v9816_v2  ;;  %v5012_v19 = vor.u32 %v5011_v29, %v9863_v40  ;;  %v5025_v29 = vrot.slane %v5023_v32, 5  ;;  %v5035_v27 = vrot.slane %v5033_v22, 4  ;;  %v6611_v62 = vrot.slane %v5377_v28, 9  ;;  %v5365_v28 = vld [vmem:[#allocation2 + $0x18] sm:$0xe] }
 0x18b   : > { %v5515_v2 = vrot.slane %v9714_v53, 5  ;;  %v5017_v26 = vrot.slane %v5015_v56, 5  ;;  %v4984_v37 = vsel %vm8175_vm2, %v4979_v1, %v9843_v3  ;;  %v5518_v38 = vrot.slane %v9755_v21, 5  ;;  %v7963_v53 = vld [vmem:[#allocation2 + $0x48] sm:$0xff]   ;;  %v7965_v3 = vld [vmem:[#allocation2 + $0x54] sm:$0xff]  }
 0x18c   : > { %7584 = vmatpush3.bf16.msra.mxu1 %v8029_v10  ;;  %v5022_v10 = vrot.slane %v5020_v31, 4  ;;  %v5013_v0 = vrot.slane %v5012_v19, 4  ;;  %v5008_v42 = vsel %vm8175_vm2, %v5003_v11, %v9863_v40  ;;  %v5039_v54 = vshll.u32 %v9903_v14, 16  ;;  %v8032_v40 = vld [vmem:[%s10127_s3 + $0x120] sm:$0xff]  }
 0x18d   : > { %7577 = vmatprep.subr.bf16.mxu1 %v8030_v49  ;;  %v9916_v34 = vsel %vm8640_vm14, %v6611_v62, %v5515_v2  ;;  %v5517_v57 = vrot.slane %v5515_v2, 4  ;;  %v6612_v31 = vrot.slane %v5378_v41, 9  ;;  %v5522_v13 = vrot.slane %v9790_v23, 5  ;;  %v8034_v62 = vld [vmem:[#allocation2 + $0x20] sm:$0x1] }
 0x18e   : > { %v5026_v32 = vor.u32 %v5025_v29, %v5022_v10  ;;  %v5018_v22 = vsel %vm8175_vm2, %v5013_v0, %v5017_v26  ;;  %v5525_v2 = vrot.slane %v9838_v46, 5  ;;  %v5041_v1 = vrot.slane %v5039_v54, 5  ;;  %v5379_v29 = vld [vmem:[#allocation2 + $0xc0] sm:$0xe]  ;;  %v5366_v26 = vld [vmem:[#allocation2 + $0x24] sm:$0xe] }
 0x18f   : > { %7308 = vmatmul.mubr.bf16.gmra.mrb[4].mxu1 %v7960_v45  ;;  %v4994_v45 = vsel %vm8175_vm2, %v4989_v63, %v4993_v24  ;;  %v9928_v21 = vsel %vm8640_vm14, %v5517_v57, %v5518_v38  ;;  %v5524_v23 = vrot.slane %v5522_v13, 4  ;;  %v6589_v24 = vcombine.low %v5008_v42, %v5018_v22  ;;  %v5367_v57 = vld [vmem:[#allocation2 + $0x30] sm:$0xe] }
 0x190   : > { %7311 = vmatprep.mubr.bf16.mxu1 %v7962_v9  ;;  %7585 = vmatpush3.bf16.msra.mxu1 %v8030_v49  ;;  %v5036_v9 = vor.u32 %v5035_v27, %v9905_v33  ;;  %v8033_v49 = vld [vmem:[#allocation2 + $0x1c] sm:$0xf]  ;;  %v6643_v56 = vcombine.low %v9916_v34, %v9928_v21  ;;  %v5027_v63 = vrot.slane %v5026_v32, 4  ;;  %v6599_v46 = vrot.slane %v5365_v28, 9  ;;  %v7968_v54 = vld [vmem:[#allocation2 + $0x6c] sm:$0xff]  }
 0x191   : > { %7578 = vmatprep.subr.bf16.mxu1 %v8031_v43  ;;  %7516 = vmatmul.mubr.bf16.gmra.mrb[20].mxu0 %v6586_v15  ;;  %v5431_v19 = vrot.slane %v8033_v49, 5  ;;  %v9941_v15 = vsel %vm8640_vm14, %v6612_v31, %v5522_v13  ;;  %v9945_v10 = vsel %vm8640_vm14, %v5524_v23, %v5525_v2  ;;  %v5434_v41 = vrot.slane %v8034_v62, 5  ;;  %v8036_v31 = vld [vmem:[#allocation2 + $0x28] sm:$0xf]  ;;  %v8037_v32 = vld [vmem:[#allocation2 + $0x34] sm:$0xf] }
 0x192   : > { %7519 = vmatprep.mubr.bf16.mxu0 %v6587_v5  ;;  %v6588_v5 = vcombine.low %v4984_v37, %v4994_v45  ;;  %v5037_v11 = vrot.slane %v5036_v9, 4  ;;  %v6644_v0 = vcombine.low %v9941_v15, %v9945_v10  ;;  %v7966_v37 = vld [vmem:[#allocation2 + $0x60] sm:$0xff]   ;;  %v6613_v38 = vrot.slane %v5379_v29, 9  ;;  %v8039_v28 = vld [vmem:[#allocation2 + $0x2c] sm:$0x1] }
 0x193   : > { %v5433_v27 = vrot.slane %v5431_v19, 4  ;;  %v5032_v45 = vsel %vm8175_vm2, %v5027_v63, %v9905_v33  ;;  %v5445_v9 = vrot.slane %v8037_v32, 5  ;;  %v5432_v13 = vsel %vm8640_vm14, %v6599_v46, %v5431_v19 }
 0x194   : > { %7586 = vmatpush3.bf16.msra.mxu1 %v8031_v43  ;;  %v8035_v43 = vld [vmem:[%s10127_s3 + $0x128] sm:$0xff]   ;;  %v5042_v42 = vsel %vm8175_vm2, %v5037_v11, %v5041_v1  ;;  %v5529_v33 = vrot.slane %v9828_v48, 5  ;;  %v5532_v49 = vrot.slane %v9868_v6, 5  ;;  %v6600_v2 = vrot.slane %v5366_v26, 9 }
 0x195   : > { %7579 = vmatprep.subr.bf16.mxu1 %v8032_v40  ;;  %v5435_v22 = vsel %vm8640_vm14, %v5433_v27, %v5434_v41  ;;  %v5441_v23 = vrot.slane %v8039_v28, 5  ;;  %v5536_v11 = vrot.slane %v9865_v4, 5  ;;  %v5447_v48 = vrot.slane %v5445_v9, 4  ;;  %v8040_v27 = vld [vmem:[#allocation2 + $0x38] sm:$0x1] }
 0x196   : > { %v9968_v19 = vsel %vm8640_vm14, %v6613_v38, %v5529_v33  ;;  %v5531_v63 = vrot.slane %v5529_v33, 4  ;;  %v6631_v29 = vcombine.low %v5432_v13, %v5435_v22  ;;  %v5539_v6 = vrot.slane %v9903_v14, 5  ;;  %v8041_v41 = vld [vmem:[%s10127_s3 + $0x138] sm:$0xff]  }
 0x197   : > { %7312 = vmatmul.mubr.bf16.gmra.mrb[8].mxu1 %v7963_v53  ;;  %v5380_v53 = vld [vmem:[#allocation2 + $0xcc] sm:$0xe]  ;;  %v5448_v62 = vrot.slane %v8040_v27, 5  ;;  %v5538_v26 = vrot.slane %v5536_v11, 4 }
 0x198   : > { %7315 = vmatprep.mubr.bf16.mxu1 %v7965_v3  ;;  %7587 = vmatpush3.bf16.msra.mxu1 %v8032_v40  ;;  %v5438_v3 = vrot.slane %v8036_v31, 5  ;;  %v8038_v40 = vld [vmem:[%s10127_s3 + $0x130] sm:$0xff]   ;;  %v6614_v1 = vrot.slane %v5380_v53, 9 }
 0x199   : > { %7580 = vmatprep.subr.bf16.mxu1 %v8035_v43  ;;  %7520 = vmatmul.mubr.bf16.gmra.mrb[24].mxu0 %v6588_v5  ;;  %v6601_v5 = vrot.slane %v5367_v57, 9  ;;  %v7969_v57 = vld [vmem:[#allocation2 + $0x78] sm:$0xff]   ;;  %v9987_v38 = vsel %vm8640_vm14, %v5538_v26, %v5539_v6  ;;  %v5449_v22 = vsel %vm8640_vm14, %v5447_v48, %v5448_v62  ;;  %v7971_v48 = vld [vmem:[#allocation2 + $0x90] sm:$0xff]   ;;  %v3002_v26 = vld [vmem:[#allocation2 + $0x84] sm:$0xf] }
 0x19a   : > { %7523 = vmatprep.mubr.bf16.mxu0 %v6589_v24  ;;  %v6590_v24 = vcombine.low %v5032_v45, %v5042_v42  ;;  %v5440_v46 = vrot.slane %v5438_v3, 4  ;;  %v9981_v4 = vsel %vm8640_vm14, %v6614_v1, %v5536_v11  ;;  %v5439_v53 = vsel %vm8640_vm14, %v6600_v2, %v5438_v3  ;;  %v7970_v42 = vld [vmem:[#allocation2 + $0x84] sm:$0xff]   ;;  %v8043_v3 = vld [vmem:[#allocation2 + $0x70] sm:$0xf] }
 0x19b   : > { %v6646_v32 = vcombine.low %v9981_v4, %v9987_v38  ;;  %v5446_v13 = vsel %vm8640_vm14, %v6601_v5, %v5445_v9  ;;  %v3222_v2 = vshll.u32 %v8043_v3, 16  ;;  %v3226_v28 = vshrl.u32 %v8043_v3, 16  ;;  %v8044_v11 = vld [vmem:[#allocation2 + $0x44] sm:$0x1] }
 0x19c   : > { %7588 = vmatpush3.bf16.msra.mxu1 %v8035_v43  ;;  %v9977_v43 = vsel %vm8640_vm14, %v5531_v63, %v5532_v49  ;;  %v5442_v45 = vsel %vm8640_vm14, %v5440_v46, %v5441_v23  ;;  %v6633_v1 = vcombine.low %v5446_v13, %v5449_v22  ;;  %v3264_v13 = vshll.u32 %v3002_v26, 16  ;;  %v8046_v22 = vld [vmem:[#allocation2 + $0x88] sm:$0xf] }
 0x19d   : > { %7581 = vmatprep.subr.bf16.mxu1 %v8038_v40  ;;  %v6645_v14 = vcombine.low %v9968_v19, %v9977_v43  ;;  %v6632_v23 = vcombine.low %v5439_v53, %v5442_v45  ;;  %v3224_v9 = vrot.slane %v3222_v2, 5  ;;  %v3228_v5 = vrot.slane %v3226_v28, 4  ;;  %v8045_v53 = vld [vmem:[#allocation2 + $0x74] sm:$0x1] }
 0x19e   : > { %v3232_v45 = vshll.u32 %v8045_v53, 16  ;;  %v7974_v28 = vld [vmem:[#allocation2 + $0xb4] sm:$0xff]  }
 0x19f   : > { %7316 = vmatmul.mubr.bf16.gmra.mrb[12].mxu1 %v7966_v37  ;;  %v2996_v37 = vld [vmem:[#allocation2 + $0x6c] sm:$0xf] }
 0x1a0   : > { %7319 = vmatprep.mubr.bf16.mxu1 %v7968_v54  ;;  %7589 = vmatpush3.bf16.msra.mxu1 %v8038_v40  ;;  %v8042_v54 = vld [vmem:[#allocation2 + $0x40] sm:$0xf]  ;;  %v5368_v40 = vld [vmem:[#allocation2 + $0x3c] sm:$0xe]  ;;  %v3213_v33 = vshrl.u32 %v2996_v37, 16  ;;  %v3216_v49 = vshll.u32 %v2996_v37, 16 }
 0x1a1   : > { %7582 = vmatprep.subr.bf16.mxu1 %v8041_v41  ;;  %7524 = vmatmul.mubr.bf16.gmra.mrb[28].mxu0 %v6590_v24  ;;  %v5452_v31 = vrot.slane %v8042_v54, 5  ;;  %v6602_v24 = vrot.slane %v5368_v40, 9  ;;  %v3261_v54 = vshrl.u32 %v3002_v26, 16  ;;  %v3270_v40 = vshll.u32 %v8046_v22, 16 }
 0x1a2   : > { %7543 = vmatprep.mubr.bf16.mxu0 %v6631_v29  ;;  %v5455_v29 = vrot.slane %v8044_v11, 5  ;;  %v3215_v46 = vrot.slane %v3213_v33, 4  ;;  %v3218_v6 = vrot.slane %v3216_v49, 5  ;;  %v3274_v33 = vshrl.u32 %v8046_v22, 16  ;;  %v3005_v49 = vld [vmem:[#allocation2 + $0x90] sm:$0xf] }
 0x1a3   : > { %v5454_v63 = vrot.slane %v5452_v31, 4  ;;  %v5453_v27 = vsel %vm8640_vm14, %v6602_v24, %v5452_v31  ;;  %v3234_v2 = vrot.slane %v3232_v45, 5  ;;  %v10192_v24 = vcombine.low %v9662_v16, %v9680_v47  ;;  %v7975_v22 = vld [vmem:[#allocation2 + $0xc0] sm:$0xff]  }
 0x1a4   : > { %7590 = vmatpush3.bf16.msra.mxu1 %v8041_v41  ;;  %v7972_v41 = vld [vmem:[#allocation2 + $0x9c] sm:$0xff]   ;;  %v3219_v37 = vor.u32 %v3218_v6, %v3215_v46  ;;  %v10006_v11 = vrot.slane %v3270_v40, 5  ;;  %v3288_v46 = vshll.u32 %v3005_v49, 16 }
 0x1a5   : > { %v5456_v62 = vsel %vm8640_vm14, %v5454_v63, %v5455_v29  ;;  %v3266_v63 = vrot.slane %v3264_v13, 5  ;;  %v3276_v29 = vrot.slane %v3274_v33, 4  ;;  %v3008_v6 = vld [vmem:[#allocation2 + $0x9c] sm:$0xf] }
 0x1a6   : > { %v3220_v3 = vrot.slane %v3219_v37, 4  ;;  %v3309_v16 = vshrl.u32 %v3008_v6, 16  ;;  %v3312_v47 = vshll.u32 %v3008_v6, 16  ;;  %v8050_v6 = vld [vmem:[#allocation2 + $0x98] sm:$0x1] }
 0x1a7   : > { %7320 = vmatmul.mubr.bf16.gmra.mrb[16].mxu1 %v7969_v57  ;;  %v3229_v57 = vor.u32 %v3228_v5, %v3224_v9 }
 0x1a8   : > { %7323 = vmatprep.mubr.bf16.mxu1 %v7970_v42  ;;  %v6634_v42 = vcombine.low %v5453_v27, %v5456_v62  ;;  %v3225_v5 = vsel %vm8175_vm2, %v3220_v3, %v3224_v9  ;;  %v8047_v27 = vld [vmem:[#allocation2 + $0x8c] sm:$0x1]  ;;  %v3290_v9 = vrot.slane %v3288_v46, 5 }
 0x1a9   : > { %7544 = vmatmul.mubr.bf16.vlgmr.msra.gmra.mrb[0].mxu0 %v6632_v23  ;;  %v3230_v31 = vrot.slane %v3229_v57, 4  ;;  %v3263_v23 = vrot.slane %v3261_v54, 4  ;;  %v3280_v62 = vshll.u32 %v8047_v27, 16  ;;  %v8049_v57 = vld [vmem:[#allocation2 + $0xa0] sm:$0xf]  ;;  %v3277_v54 = vor.u32 %v3276_v29, %v10006_v11 }
 0x1aa   : > { %7547 = vmatprep.mubr.bf16.mxu0 %v6633_v1  ;;  %v3285_v1 = vshrl.u32 %v3005_v49, 16  ;;  %v3318_v53 = vshll.u32 %v8049_v57, 16  ;;  %v3322_v45 = vshrl.u32 %v8049_v57, 16  ;;  %v8051_v27 = vld [vmem:[#allocation2 + $0xa4] sm:$0x1] }
 0x1ab   : > { %v3282_v33 = vrot.slane %v3280_v62, 5  ;;  %v3278_v29 = vrot.slane %v3277_v54, 4 }
 0x1ac   : > { %v3287_v13 = vrot.slane %v3285_v1, 4  ;;  %v10194_v1 = vcombine.low %v9673_v50, %v9695_v12 }
 0x1ad   : > { %v3283_v57 = vsel %vm8175_vm2, %v3278_v29, %v3282_v33 }
 0x1ae   : > { %v3291_v46 = vor.u32 %v3290_v9, %v3287_v13  ;;  %v8053_v13 = vld [vmem:[#allocation2 + $0xb8] sm:$0xf] }
 0x1af   : > { %7324 = vmatmul.mubr.bf16.gmra.mrb[20].mxu1 %v7971_v48  ;;  %v3235_v48 = vsel %vm8175_vm2, %v3230_v31, %v3234_v2  ;;  %v10193_v31 = vcombine.low %v9666_v61, %v9691_v8  ;;  %v3311_v2 = vrot.slane %v3309_v16, 4  ;;  %v3328_v61 = vshll.u32 %v8051_v27, 16  ;;  %v8052_v16 = vld [vmem:[#allocation2 + $0xac] sm:$0xf] }
 0x1b0   : > { %7327 = vmatprep.mubr.bf16.mxu1 %v7972_v41  ;;  %v8048_v41 = vld [vmem:[#allocation2 + $0x94] sm:$0xf]  ;;  %v6447_v40 = vcombine.low %v3225_v5, %v3235_v48  ;;  %v3304_v5 = vshll.u32 %v8050_v6, 16  ;;  %v3346_v50 = vshrl.u32 %v8052_v16, 16  ;;  %v3366_v9 = vshll.u32 %v8053_v13, 16 }
 0x1b1   : > { %7548 = vmatmul.mubr.bf16.gmra.mrb[4].mxu0 %v6634_v42  ;;  %v3294_v26 = vshll.u32 %v8048_v41, 16  ;;  %v3298_v37 = vshrl.u32 %v8048_v41, 16  ;;  %v3267_v42 = vor.u32 %v3266_v63, %v3263_v23  ;;  %v3011_v23 = vld [vmem:[#allocation2 + $0xa8] sm:$0xf]  ;;  %v3014_v41 = vld [vmem:[#allocation2 + $0xb4] sm:$0xf] }
 0x1b2   : > { %7551 = vmatprep.mubr.bf16.mxu0 %v10192_v24  ;;  %v10018_v24 = vrot.slane %v3318_v53, 5  ;;  %v3333_v8 = vshrl.u32 %v3011_v23, 16  ;;  %v3336_v62 = vshll.u32 %v3011_v23, 16  ;;  %v3292_v53 = vrot.slane %v3291_v46, 4 }
 0x1b3   : > { %v10013_v49 = vrot.slane %v3294_v26, 5  ;;  %v3300_v3 = vrot.slane %v3298_v37, 4  ;;  %v3268_v63 = vrot.slane %v3267_v42, 4  ;;  %v3357_v42 = vshrl.u32 %v3014_v41, 16 }
 0x1b4   : > { %v3360_v54 = vshll.u32 %v3014_v41, 16  ;;  %v3368_v46 = vrot.slane %v3366_v9, 5 }
 0x1b5   : > { %v3301_v48 = vor.u32 %v3300_v3, %v10013_v49  ;;  %v3273_v12 = vsel %vm8175_vm2, %v3268_v63, %v10006_v11  ;;  %v3359_v63 = vrot.slane %v3357_v42, 4 }
 0x1b6   : > { %v6449_v33 = vcombine.low %v3273_v12, %v3283_v57  ;;  %v3362_v29 = vrot.slane %v3360_v54, 5 }
 0x1b7   : > { %7328 = vmatmul.mubr.bf16.gmra.mrb[24].mxu1 %v7973_v36  ;;  %v3314_v36 = vrot.slane %v3312_v47, 5  ;;  %v3342_v47 = vshll.u32 %v8052_v16, 16  ;;  %v3302_v3 = vrot.slane %v3301_v48, 4  ;;  %v3297_v48 = vsel %vm8175_vm2, %v3292_v53, %v10013_v49  ;;  %v8055_v49 = vld [vmem:[#allocation2 + $0xc4] sm:$0xf] }
 0x1b8   : > { %7331 = vmatprep.mubr.bf16.mxu1 %v7974_v28  ;;  %v3324_v28 = vrot.slane %v3322_v45, 4  ;;  %v3306_v45 = vrot.slane %v3304_v5, 5  ;;  %v3017_v5 = vld [vmem:[#allocation2 + $0xc0] sm:$0xf]  ;;  %v3390_v41 = vshll.u32 %v8055_v49, 16 }
 0x1b9   : > { %7552 = vmatmul.mubr.bf16.gmra.mrb[8].mxu0 %v10193_v31  ;;  %v3315_v26 = vor.u32 %v3314_v36, %v3311_v2  ;;  %v3330_v31 = vrot.slane %v3328_v61, 5  ;;  %v3335_v2 = vrot.slane %v3333_v8, 4  ;;  %v3338_v36 = vrot.slane %v3336_v62, 5 }
 0x1ba   : > { %7555 = vmatprep.mubr.bf16.mxu0 %v10194_v1  ;;  %v3325_v37 = vor.u32 %v3324_v28, %v10018_v24  ;;  %v3344_v23 = vrot.slane %v3342_v47, 5  ;;  %v3348_v1 = vrot.slane %v3346_v50, 4  ;;  %v3381_v8 = vshrl.u32 %v3017_v5, 16  ;;  %v8056_v47 = vld [vmem:[#allocation2 + $0xbc] sm:$0x1] }
 0x1bb   : > { %v3316_v28 = vrot.slane %v3315_v26, 4  ;;  %v3384_v62 = vshll.u32 %v3017_v5, 16  ;;  %v3394_v26 = vshrl.u32 %v8055_v49, 16  ;;  %v3376_v50 = vshll.u32 %v8056_v47, 16 }
 0x1bc   : > { %v3326_v11 = vrot.slane %v3325_v37, 4  ;;  %v3349_v61 = vor.u32 %v3348_v1, %v3344_v23  ;;  %v3363_v37 = vor.u32 %v3362_v29, %v3359_v63  ;;  %v3392_v54 = vrot.slane %v3390_v41, 5 }
 0x1bd   : > { %v3321_v25 = vsel %vm8175_vm2, %v3316_v28, %v10018_v24  ;;  %v3386_v42 = vrot.slane %v3384_v62, 5 }
 0x1be   : > { %v3331_v30 = vsel %vm8175_vm2, %v3326_v11, %v3330_v31  ;;  %v3350_v57 = vrot.slane %v3349_v61, 4  ;;  %v3364_v9 = vrot.slane %v3363_v37, 4 }
 0x1bf   : > { %7332 = vmatmul.mubr.bf16.gmra.mrb[28].mxu1 %v7975_v22  ;;  %v3370_v22 = vshrl.u32 %v8053_v13, 16  ;;  %v6451_v24 = vcombine.low %v3321_v25, %v3331_v30  ;;  %v3396_v13 = vrot.slane %v3394_v26, 4 }
 0x1c0   : > { %7367 = vmatprep.mubr.bf16.mxu1 %v6447_v40  ;;  %v10195_v40 = vcombine.low %v9704_v60, %v9718_v44  ;;  %v3307_v60 = vsel %vm8175_vm2, %v3302_v3, %v3306_v45  ;;  %v8054_v44 = vld [vmem:[#allocation2 + $0xb0] sm:$0x1]  ;;  %v3383_v45 = vrot.slane %v3381_v8, 4  ;;  %v3378_v3 = vrot.slane %v3376_v50, 5 }
 0x1c1   : > { %v3372_v6 = vrot.slane %v3370_v22, 4  ;;  %v3352_v27 = vshll.u32 %v8054_v44, 16  ;;  %v3397_v31 = vor.u32 %v3396_v13, %v3392_v54  ;;  %v3369_v20 = vsel %vm8175_vm2, %v3364_v9, %v3368_v46 }
 0x1c2   : > { %7556 = vmatmul.mubr.bf16.gmra.mrb[12].mxu0 %v10195_v40 }
 0x1c3   : > { %7559 = vmatprep.mubr.bf16.mxu0 %v6639_v39  ;;  %v3339_v39 = vor.u32 %v3338_v36, %v3335_v2  ;;  %v3373_v16 = vor.u32 %v3372_v6, %v3368_v46  ;;  %v3354_v53 = vrot.slane %v3352_v27, 5  ;;  %v8057_v2 = vld [vmem:[#allocation2 + $0xc8] sm:$0x1]  ;;  %v10196_v36 = vcombine.low %v9874_v18, %v9884_v59 }
 0x1c4   : > { %v3400_v17 = vshll.u32 %v8057_v2, 16 }
 0x1c5   : > { %v3340_v12 = vrot.slane %v3339_v39, 4  ;;  %v3374_v22 = vrot.slane %v3373_v16, 4  ;;  %v3355_v55 = vsel %vm8175_vm2, %v3350_v57, %v3354_v53 }
 0x1c6   : > { %v3402_v1 = vrot.slane %v3400_v17, 5 }
 0x1c7   : > { %7368 = vmatmul.mubr.bf16.vlgmr.msra.gmra.mrb[16].mxu1 %v9792_v7  ;;  %v6450_v7 = vcombine.low %v3297_v48, %v3307_v60  ;;  %v3345_v58 = vsel %vm8175_vm2, %v3340_v12, %v3344_v23  ;;  %v3398_v23 = vrot.slane %v3397_v31, 4 }
 0x1c8   : > { %7371 = vmatprep.mubr.bf16.mxu1 %v6449_v33  ;;  %v6452_v40 = vcombine.low %v3345_v58, %v3355_v55 }
 0x1c9   : > { %v3403_v63 = vsel %vm8175_vm2, %v3398_v23, %v3402_v1 }
 0x1ca   : > { %7560 = vmatmul.mubr.bf16.gmra.mrb[16].mxu0 %v6640_v52  ;;  %v3387_v52 = vor.u32 %v3386_v42, %v3383_v45 }
 0x1cb   : > { %7563 = vmatprep.mubr.bf16.mxu0 %v6641_v51  ;;  %v3379_v51 = vsel %vm8175_vm2, %v3374_v22, %v3378_v3 }
 0x1cc   : > { %v6453_v28 = vcombine.low %v3369_v20, %v3379_v51  ;;  %v3388_v11 = vrot.slane %v3387_v52, 4 }
 0x1ce   : > { %v3393_v33 = vsel %vm8175_vm2, %v3388_v11, %v3392_v54 }
 0x1cf   : > { %7372 = vmatmul.mubr.bf16.gmra.mrb[20].mxu1 %v6450_v7  ;;  %v6454_v18 = vcombine.low %v3393_v33, %v3403_v63 }
 0x1d0   : > { %7375 = vmatprep.mubr.bf16.mxu1 %v6451_v24 }
 0x1d2   : > { %7564 = vmatmul.mubr.bf16.gmra.mrb[20].mxu0 %v10196_v36 }
 0x1d3   : > { %7567 = vmatprep.mubr.bf16.mxu0 %v6643_v56 }
 0x1d7   : > { %7376 = vmatmul.mubr.bf16.gmra.mrb[24].mxu1 %v6452_v40 }
 0x1d8   : > { %7379 = vmatprep.mubr.bf16.mxu1 %v6453_v28 }
 0x1da   : > { %7568 = vmatmul.mubr.bf16.gmra.mrb[24].mxu0 %v6644_v0 }
 0x1db   : > { %7571 = vmatprep.mubr.bf16.mxu0 %v6645_v14 }
 0x1df   : > { %7380 = vmatmul.mubr.bf16.gmra.mrb[28].mxu1 %v6454_v18 }
 0x1e2   : > { %7572 = vmatmul.mubr.bf16.gmra.mrb[28].mxu0 %v6646_v32 }
 0x25a   : > { %v7305_v59 = vpop.f32.mrb[0].mxu1 }
 0x25b   : > { %v2813_v34 = vpop.f32.mrb[1].mxu1 }
 0x25c   : > { %v7306_v21 = vpop.f32.mrb[2].mxu1 }
 0x25d   : > { %v2816_v56 = vpop.f32.mrb[3].mxu1 }
 0x262   : > { %v7309_v35 = vpop.f32.mrb[4].mxu1 }
 0x263   : > { %v2829_v29 = vpop.f32.mrb[5].mxu1 }
 0x264   : > { %v7310_v46 = vpop.f32.mrb[6].mxu1 }
 0x265   : > { %v2832_v6 = vpop.f32.mrb[7].mxu1 }
 0x26a   : > { %v7313_v15 = vpop.f32.mrb[8].mxu1 }
 0x26b   : > { %v2845_v10 = vpop.f32.mrb[9].mxu1 }
 0x26c   : > { %v7314_v0 = vpop.f32.mrb[10].mxu1 }
 0x26d   : > { %v2848_v5 = vpop.f32.mrb[11].mxu1 }
 0x272   : > { %v10080_v19 = vpop.f32.mrb[12].mxu1 }
 0x273   : > { %v10082_v43 = vpop.f32.mrb[13].mxu1 }
 0x274   : > { %v10084_v14 = vpop.f32.mrb[14].mxu1 }
 0x275   : > { %v10086_v4 = vpop.f32.mrb[15].mxu1 }
 0x27c   : > { %v7545_v38 = vpop.f32.mrb[0].mxu0 }
 0x27d   : > { %v7591_v32 = vadd.f32 %v7545_v38, %v7305_v59  ;;  %v5704_v48 = vpop.f32.mrb[1].mxu0 }
 0x27e   : > { %v7592_v60 = vadd.f32 %v5704_v48, %v2813_v34  ;;  %v7546_v44 = vpop.f32.mrb[2].mxu0 }
 0x27f   : > { %v7593_v27 = vadd.f32 %v7546_v44, %v7306_v21  ;;  %v5707_v25 = vpop.f32.mrb[3].mxu0  ;;  %v5902_v41 = vmul.f32 %v7591_v32, %v7591_v32 }
 0x280   : > { %v7594_v30 = vadd.f32 %v5707_v25, %v2816_v56  ;;  %v5900_v61 = vmul.f32 %v7592_v60, %v7592_v60 }
 0x281   : > { %v6825_v39 = vpack.c.bf16 %v7593_v27, %v7591_v32  ;;  %v5903_v7 = vmul.f32 %v7593_v27, %v7593_v27 }
 0x282   : > { %v5863_v8 = vadd.f32 %v7594_v30, %v7592_v60  ;;  %v5901_v62 = vmul.f32 %v7594_v30, %v7594_v30  ;;  %v6820_v49 = vpack.c.bf16 %v7594_v30, %v7592_v60 }
 0x283   : > { %6912 = vst [vmem:[%s10093_s10 + $0x8] sm:$0xff] %v6825_v39  }
 0x284   : > { %v5864_v26 = vadd.f32 %v7591_v32, %v5863_v8  ;;  %v5932_v37 = vadd.f32 %v5901_v62, %v5900_v61  ;;  %6821 = vst [vmem:[%s10093_s10] sm:$0xff] %v6820_v49   ;;  %v7549_v16 = vpop.f32.mrb[4].mxu0 }
 0x285   : > { %v7595_v47 = vadd.f32 %v7549_v16, %v7309_v35  ;;  %v5720_v50 = vpop.f32.mrb[5].mxu0 }
 0x286   : > { %v5933_v24 = vadd.f32 %v5932_v37, %v5902_v41  ;;  %v7596_v12 = vadd.f32 %v5720_v50, %v2829_v29  ;;  %v5865_v57 = vadd.f32 %v7593_v27, %v5864_v26  ;;  %v7550_v53 = vpop.f32.mrb[6].mxu0 }
 0x287   : > { %v7597_v45 = vadd.f32 %v7550_v53, %v7310_v46  ;;  %v5723_v42 = vpop.f32.mrb[7].mxu0  ;;  %v5906_v2 = vmul.f32 %v7595_v47, %v7595_v47 }
 0x288   : > { %v5866_v54 = vadd.f32 %v7596_v12, %v5865_v57  ;;  %v5904_v13 = vmul.f32 %v7596_v12, %v7596_v12  ;;  %v5934_v9 = vadd.f32 %v5933_v24, %v5903_v7  ;;  %v7598_v22 = vadd.f32 %v5723_v42, %v2832_v6 }
 0x289   : > { %v6835_v3 = vpack.c.bf16 %v7597_v45, %v7595_v47  ;;  %v5907_v28 = vmul.f32 %v7597_v45, %v7597_v45 }
 0x28a   : > { %v5935_v58 = vadd.f32 %v5934_v9, %v5904_v13  ;;  %v5867_v55 = vadd.f32 %v7598_v22, %v5866_v54  ;;  %v5905_v52 = vmul.f32 %v7598_v22, %v7598_v22  ;;  %v6830_v31 = vpack.c.bf16 %v7598_v22, %v7596_v12 }
 0x28b   : > { %6914 = vst [vmem:[%s10093_s10 + $0x18] sm:$0xff] %v6835_v3  }
 0x28c   : > { %v5868_v17 = vadd.f32 %v7595_v47, %v5867_v55  ;;  %v5936_v20 = vadd.f32 %v5935_v58, %v5905_v52  ;;  %6913 = vst [vmem:[%s10093_s10 + $0x10] sm:$0xff] %v6830_v31   ;;  %v7553_v51 = vpop.f32.mrb[8].mxu0 }
 0x28d   : > { %v7599_v36 = vadd.f32 %v7553_v51, %v7313_v15  ;;  %v5736_v40 = vpop.f32.mrb[9].mxu0 }
 0x28e   : > { %v5937_v11 = vadd.f32 %v5936_v20, %v5906_v2  ;;  %v7600_v23 = vadd.f32 %v5736_v40, %v2845_v10  ;;  %v5869_v1 = vadd.f32 %v7597_v45, %v5868_v17  ;;  %v7554_v33 = vpop.f32.mrb[10].mxu0 }
 0x28f   : > { %v7601_v63 = vadd.f32 %v7554_v33, %v7314_v0  ;;  %v5739_v18 = vpop.f32.mrb[11].mxu0  ;;  %v5910_v15 = vmul.f32 %v7599_v36, %v7599_v36 }
 0x290   : > { %v5870_v59 = vadd.f32 %v7600_v23, %v5869_v1  ;;  %v5908_v34 = vmul.f32 %v7600_v23, %v7600_v23  ;;  %v5938_v21 = vadd.f32 %v5937_v11, %v5907_v28  ;;  %v7602_v56 = vadd.f32 %v5739_v18, %v2848_v5 }
 0x291   : > { %v6845_v35 = vpack.c.bf16 %v7601_v63, %v7599_v36  ;;  %v5911_v0 = vmul.f32 %v7601_v63, %v7601_v63 }
 0x292   : > { %v5939_v29 = vadd.f32 %v5938_v21, %v5908_v34  ;;  %v5871_v46 = vadd.f32 %v7602_v56, %v5870_v59  ;;  %v5909_v6 = vmul.f32 %v7602_v56, %v7602_v56  ;;  %v6840_v38 = vpack.c.bf16 %v7602_v56, %v7600_v23 }
 0x293   : > { %6916 = vst [vmem:[%s10093_s10 + $0x28] sm:$0xff] %v6845_v35  }
 0x294   : > { %v5872_v32 = vadd.f32 %v7599_v36, %v5871_v46  ;;  %v5940_v48 = vadd.f32 %v5939_v29, %v5909_v6  ;;  %6915 = vst [vmem:[%s10093_s10 + $0x20] sm:$0xff] %v6840_v38  }
 0x295   : > { %v7557_v10 = vpop.f32.mrb[12].mxu0 }
 0x296   : > { %v7603_v60 = vadd.f32 %v7557_v10, %v10080_v19  ;;  %v5752_v44 = vpop.f32.mrb[13].mxu0  ;;  %v5941_v27 = vadd.f32 %v5940_v48, %v5910_v15  ;;  %v5873_v30 = vadd.f32 %v7601_v63, %v5872_v32 }
 0x297   : > { %v7604_v25 = vadd.f32 %v5752_v44, %v10082_v43  ;;  %v7558_v5 = vpop.f32.mrb[14].mxu0 }
 0x298   : > { %v7605_v39 = vadd.f32 %v7558_v5, %v10084_v14  ;;  %v5755_v61 = vpop.f32.mrb[15].mxu0  ;;  %v5942_v49 = vadd.f32 %v5941_v27, %v5911_v0  ;;  %v5914_v12 = vmul.f32 %v7603_v60, %v7603_v60 }
 0x299   : > { %v5874_v8 = vadd.f32 %v7604_v25, %v5873_v30  ;;  %v5912_v62 = vmul.f32 %v7604_v25, %v7604_v25  ;;  %v7606_v41 = vadd.f32 %v5755_v61, %v10086_v4 }
 0x29a   : > { %v7369_v26 = vpop.f32.mrb[16].mxu1  ;;  %v6855_v37 = vpack.c.bf16 %v7605_v39, %v7603_v60  ;;  %v5915_v54 = vmul.f32 %v7605_v39, %v7605_v39 }
 0x29b   : > { %v3631_v19 = vpop.f32.mrb[17].mxu1  ;;  %v5943_v16 = vadd.f32 %v5942_v49, %v5912_v62  ;;  %v5875_v47 = vadd.f32 %v7606_v41, %v5874_v8  ;;  %v5913_v50 = vmul.f32 %v7606_v41, %v7606_v41  ;;  %v6850_v7 = vpack.c.bf16 %v7606_v41, %v7604_v25 }
 0x29c   : > { %v7370_v43 = vpop.f32.mrb[18].mxu1  ;;  %6918 = vst [vmem:[%s10093_s10 + $0x38] sm:$0xff] %v6855_v37  }
 0x29d   : > { %v3634_v24 = vpop.f32.mrb[19].mxu1  ;;  %v5876_v57 = vadd.f32 %v7603_v60, %v5875_v47  ;;  %v5944_v14 = vadd.f32 %v5943_v16, %v5913_v50  ;;  %6917 = vst [vmem:[%s10093_s10 + $0x30] sm:$0xff] %v6850_v7   ;;  %v7561_v53 = vpop.f32.mrb[16].mxu0 }
 0x29e   : > { %v7607_v45 = vadd.f32 %v7561_v53, %v7369_v26  ;;  %v5768_v42 = vpop.f32.mrb[17].mxu0 }
 0x29f   : > { %v5945_v13 = vadd.f32 %v5944_v14, %v5914_v12  ;;  %v7608_v4 = vadd.f32 %v5768_v42, %v3631_v19  ;;  %v5877_v9 = vadd.f32 %v7605_v39, %v5876_v57  ;;  %v7562_v22 = vpop.f32.mrb[18].mxu0 }
 0x2a0   : > { %v7609_v3 = vadd.f32 %v7562_v22, %v7370_v43  ;;  %v5771_v58 = vpop.f32.mrb[19].mxu0  ;;  %v5918_v33 = vmul.f32 %v7607_v45, %v7607_v45 }
 0x2a1   : > { %v5878_v55 = vadd.f32 %v7608_v4, %v5877_v9  ;;  %v5916_v52 = vmul.f32 %v7608_v4, %v7608_v4  ;;  %v5946_v31 = vadd.f32 %v5945_v13, %v5915_v54  ;;  %v7610_v2 = vadd.f32 %v5771_v58, %v3634_v24 }
 0x2a2   : > { %v7373_v17 = vpop.f32.mrb[20].mxu1  ;;  %v6865_v20 = vpack.c.bf16 %v7609_v3, %v7607_v45  ;;  %v5919_v56 = vmul.f32 %v7609_v3, %v7609_v3 }
 0x2a3   : > { %v3647_v51 = vpop.f32.mrb[21].mxu1  ;;  %v5947_v36 = vadd.f32 %v5946_v31, %v5916_v52  ;;  %v5879_v40 = vadd.f32 %v7610_v2, %v5878_v55  ;;  %v5917_v28 = vmul.f32 %v7610_v2, %v7610_v2  ;;  %v6860_v11 = vpack.c.bf16 %v7610_v2, %v7608_v4 }
 0x2a4   : > { %v7374_v23 = vpop.f32.mrb[22].mxu1  ;;  %6920 = vst [vmem:[%s10093_s10 + $0x48] sm:$0xff] %v6865_v20  }
 0x2a5   : > { %v3650_v1 = vpop.f32.mrb[23].mxu1  ;;  %v5880_v63 = vadd.f32 %v7607_v45, %v5879_v40  ;;  %v5948_v18 = vadd.f32 %v5947_v36, %v5917_v28  ;;  %6919 = vst [vmem:[%s10093_s10 + $0x40] sm:$0xff] %v6860_v11   ;;  %v7565_v59 = vpop.f32.mrb[20].mxu0 }
 0x2a6   : > { %v7611_v34 = vadd.f32 %v7565_v59, %v7373_v17  ;;  %v5784_v21 = vpop.f32.mrb[21].mxu0 }
 0x2a7   : > { %v5949_v35 = vadd.f32 %v5948_v18, %v5918_v33  ;;  %v7612_v29 = vadd.f32 %v5784_v21, %v3647_v51  ;;  %v5881_v46 = vadd.f32 %v7609_v3, %v5880_v63  ;;  %v7566_v6 = vpop.f32.mrb[22].mxu0 }
 0x2a8   : > { %v7613_v38 = vadd.f32 %v7566_v6, %v7374_v23  ;;  %v5787_v15 = vpop.f32.mrb[23].mxu0  ;;  %v5922_v62 = vmul.f32 %v7611_v34, %v7611_v34 }
 0x2a9   : > { %v5882_v32 = vadd.f32 %v7612_v29, %v5881_v46  ;;  %v5920_v48 = vmul.f32 %v7612_v29, %v7612_v29  ;;  %v5950_v10 = vadd.f32 %v5949_v35, %v5919_v56  ;;  %v7614_v60 = vadd.f32 %v5787_v15, %v3650_v1 }
 0x2aa   : > { %v7377_v44 = vpop.f32.mrb[24].mxu1  ;;  %v6875_v0 = vpack.c.bf16 %v7613_v38, %v7611_v34  ;;  %v5923_v16 = vmul.f32 %v7613_v38, %v7613_v38 }
 0x2ab   : > { %v3663_v27 = vpop.f32.mrb[25].mxu1  ;;  %v5951_v25 = vadd.f32 %v5950_v10, %v5920_v48  ;;  %v5883_v30 = vadd.f32 %v7614_v60, %v5882_v32  ;;  %v5921_v5 = vmul.f32 %v7614_v60, %v7614_v60  ;;  %v6870_v39 = vpack.c.bf16 %v7614_v60, %v7612_v29 }
 0x2ac   : > { %v7378_v61 = vpop.f32.mrb[26].mxu1  ;;  %6922 = vst [vmem:[%s10093_s10 + $0x58] sm:$0xff] %v6875_v0  }
 0x2ad   : > { %v3666_v8 = vpop.f32.mrb[27].mxu1  ;;  %v5884_v49 = vadd.f32 %v7611_v34, %v5883_v30  ;;  %v5952_v41 = vadd.f32 %v5951_v25, %v5921_v5  ;;  %6921 = vst [vmem:[%s10093_s10 + $0x50] sm:$0xff] %v6870_v39   ;;  %v7569_v26 = vpop.f32.mrb[24].mxu0 }
 0x2ae   : > { %v7615_v37 = vadd.f32 %v7569_v26, %v7377_v44  ;;  %v5800_v19 = vpop.f32.mrb[25].mxu0 }
 0x2af   : > { %v5953_v47 = vadd.f32 %v5952_v41, %v5922_v62  ;;  %v7616_v50 = vadd.f32 %v5800_v19, %v3663_v27  ;;  %v5885_v7 = vadd.f32 %v7613_v38, %v5884_v49  ;;  %v7570_v43 = vpop.f32.mrb[26].mxu0 }
 0x2b0   : > { %v7617_v24 = vadd.f32 %v7570_v43, %v7378_v61  ;;  %v5803_v12 = vpop.f32.mrb[27].mxu0  ;;  %v5926_v52 = vmul.f32 %v7615_v37, %v7615_v37 }
 0x2b1   : > { %v5886_v57 = vadd.f32 %v7616_v50, %v5885_v7  ;;  %v5924_v14 = vmul.f32 %v7616_v50, %v7616_v50  ;;  %v5954_v53 = vadd.f32 %v5953_v47, %v5923_v16  ;;  %v7618_v45 = vadd.f32 %v5803_v12, %v3666_v8 }
 0x2b2   : > { %v7381_v42 = vpop.f32.mrb[28].mxu1  ;;  %v6885_v54 = vpack.c.bf16 %v7617_v24, %v7615_v37  ;;  %v5927_v36 = vmul.f32 %v7617_v24, %v7617_v24 }
 0x2b3   : > { %v3679_v13 = vpop.f32.mrb[29].mxu1  ;;  %v5955_v4 = vadd.f32 %v5954_v53, %v5924_v14  ;;  %v5887_v9 = vadd.f32 %v7618_v45, %v5886_v57  ;;  %v5925_v22 = vmul.f32 %v7618_v45, %v7618_v45  ;;  %v6880_v3 = vpack.c.bf16 %v7618_v45, %v7616_v50 }
 0x2b4   : > { %v7382_v58 = vpop.f32.mrb[30].mxu1  ;;  %6924 = vst [vmem:[%s10093_s10 + $0x68] sm:$0xff] %v6885_v54  }
 0x2b5   : > { %v3682_v55 = vpop.f32.mrb[31].mxu1  ;;  %v5888_v31 = vadd.f32 %v7615_v37, %v5887_v9  ;;  %v5956_v2 = vadd.f32 %v5955_v4, %v5925_v22  ;;  %6923 = vst [vmem:[%s10093_s10 + $0x60] sm:$0xff] %v6880_v3   ;;  %v7573_v17 = vpop.f32.mrb[28].mxu0 }
 0x2b6   : > { %v7619_v20 = vadd.f32 %v7573_v17, %v7381_v42  ;;  %v5816_v51 = vpop.f32.mrb[29].mxu0 }
 0x2b7   : > { %v5957_v40 = vadd.f32 %v5956_v2, %v5926_v52  ;;  %v7620_v28 = vadd.f32 %v5816_v51, %v3679_v13  ;;  %v5889_v11 = vadd.f32 %v7617_v24, %v5888_v31  ;;  %v7574_v23 = vpop.f32.mrb[30].mxu0 }
 0x2b8   : > { %v7621_v1 = vadd.f32 %v7574_v23, %v7382_v58  ;;  %v5819_v33 = vpop.f32.mrb[31].mxu0  ;;  %v5930_v6 = vmul.f32 %v7619_v20, %v7619_v20 }
 0x2b9   : > { %v5890_v63 = vadd.f32 %v7620_v28, %v5889_v11  ;;  %v5928_v18 = vmul.f32 %v7620_v28, %v7620_v28  ;;  %v5958_v59 = vadd.f32 %v5957_v40, %v5927_v36  ;;  %v7622_v34 = vadd.f32 %v5819_v33, %v3682_v55 }
 0x2ba   : > { %v6895_v21 = vpack.c.bf16 %v7621_v1, %v7619_v20  ;;  %v5931_v32 = vmul.f32 %v7621_v1, %v7621_v1 }
 0x2bb   : > { %v5959_v56 = vadd.f32 %v5958_v59, %v5928_v18  ;;  %v5891_v35 = vadd.f32 %v7622_v34, %v5890_v63  ;;  %v5929_v29 = vmul.f32 %v7622_v34, %v7622_v34  ;;  %v6890_v46 = vpack.c.bf16 %v7622_v34, %v7620_v28 }
 0x2bc   : > { %6926 = vst [vmem:[%s10093_s10 + $0x78] sm:$0xff] %v6895_v21  }
 0x2bd   : > { %v5892_v38 = vadd.f32 %v7619_v20, %v5891_v35  ;;  %v5960_v15 = vadd.f32 %v5959_v56, %v5929_v29  ;;  %6925 = vst [vmem:[%s10093_s10 + $0x70] sm:$0xff] %v6890_v46  }
 0x2bf   : > { %v5893_v48 = vadd.f32 %v7621_v1, %v5892_v38  ;;  %v5961_v10 = vadd.f32 %v5960_v15, %v5930_v6 }
 0x2c1   : > { %v5894_v60 = vrot.slane %v5893_v48, 4  ;;  %v5962_v44 = vadd.f32 %v5961_v10, %v5931_v32 }
 0x2c3   : > { %v5895_v0 = vadd.f32 %v5894_v60, %v5893_v48  ;;  %v5963_v27 = vrot.slane %v5962_v44, 4 }
 0x2c5   : > { %v5896_v25 = vrot.slane %v5895_v0, 2  ;;  %v5964_v30 = vadd.f32 %v5963_v27, %v5962_v44 }
 0x2c7   : > { %v5897_v5 = vadd.f32 %v5896_v25, %v5895_v0  ;;  %v5965_v39 = vrot.slane %v5964_v30, 2 }
 0x2c9   : > { %v5898_v61 = vrot.slane %v5897_v5, 1  ;;  %v5966_v8 = vadd.f32 %v5965_v39, %v5964_v30 }
 0x2cb   : > { %v5967_v62 = vrot.slane %v5966_v8, 1  ;;  %v5899_v49 = vadd.f32 %v5898_v61, %v5897_v5 }
 0x2cd   : > { %v5968_v41 = vadd.f32 %v5967_v62, %v5966_v8 }
 0x2cf   : > { %v5970_v26 = vsel %vm841_vm6, %v5899_v49, %v5968_v41 }
 0x2d0   : > { %5971 = vst [vmem:[%s238_s12] sm:$0x3] %v5970_v26 }
 0x2d1 PF: > { %s16_s18 = sadd.s32 1, %s8064_s18  }
 0x2d2   : > { %p13_p5 = scmp.ge.s32.totalorder %s16_s18, 4  }
 0x2d4   :  { %15 = sbr.rel (!%p13_p5) target bundleno = 1 (0x1), region = 89 }

</bundles_post_ra>
